<compile_context>
chip_gen: v7x
topology: tpu7x:2x2x1
jax: 0.10.0
libtpu: 0.0.40
codegen_flags: <defaults>
</compile_context>

<pallas_src>
import numpy as np
import jax
import jax.numpy as jnp
from jax.experimental import pallas as pl
from jax.experimental.pallas import tpu as pltpu


CP = 128  # lane width of activation slabs / padded output-channel count


def calculate_upsample_sizes(input_shape, output_shape, number_of_layers):
    scale = (np.array(output_shape) / np.array(input_shape)) ** (1 / (number_of_layers - 1))
    upsample_sizes = [np.ceil(np.array(input_shape) * scale ** n).astype(int).tolist()
                      for n in range(1, number_of_layers - 1)] + [list(output_shape)]
    return upsample_sizes


def _nearest_idx(n_in, n_out):
    # legacy PyTorch nn.Upsample(mode='nearest'): src = floor(dst * n_in / n_out)
    return [(o * n_in) // n_out for o in range(n_out)]


def _round_up(x, m):
    return ((x + m - 1) // m) * m


def _conv_geom(H, W, cin):
    # Dense-K packing geometry: `tpg` taps share one 128-lane group.
    W2 = W + 2
    rows = H * W2
    tpg = max(1, CP // cin)
    groups = -(-9 // tpg)
    return dict(H=H, W=W, W2=W2, cin=cin, rows=rows, rows_pad=_round_up(rows, 8),
                tpg=tpg, groups=groups)


# ---------------------------------------------------------------------------
# Static plan: spatial schedule + constant selection matrices / BN weights (host)
# ---------------------------------------------------------------------------

def build_plan(input_shape, image_dimensions, number_of_layers, hidden):
    H0, W0 = int(input_shape[0]), int(input_shape[1])
    Hf, Wf = int(image_dimensions[0]), int(image_dimensions[1])
    cout = int(image_dimensions[2])
    assert hidden <= CP and cout <= CP
    sizes = calculate_upsample_sizes(list(input_shape), [Hf, Wf], number_of_layers)
    n_mod = len(sizes)

    conv_in = [(H0, W0)] + [(int(s[0]), int(s[1])) for s in sizes[:-1]]
    convs, u_mats, cnts = [], [], []
    for i in range(n_mod):
        H, W = conv_in[i]
        Ho, Wo = int(sizes[i][0]), int(sizes[i][1])
        cv = _conv_geom(H, W, 1 if i == 0 else hidden)
        W2 = cv["W2"]
        used = (Ho + 2) * (Wo + 2)
        # used_pad >= used + 2 guarantees the next conv's 2-row tap over-read stays
        # inside the region written (as zeros) by the upsample matmul -> no memset.
        cv.update(Ho=Ho, Wo=Wo, used=used, used_pad=_round_up(used + 2, 8), n_out=Ho * Wo)
        convs.append(cv)

        r = _nearest_idx(H, Ho)
        c = _nearest_idx(W, Wo)
        # nearest upsample + zero-border embed into the next conv's padded wide layout,
        # as a 0/1 selection matrix (bf16, applied on the MXU in-kernel).
        U = np.zeros((cv["used_pad"], cv["rows_pad"]), np.float32)
        for ho in range(Ho):
            for wo in range(Wo):
                U[(ho + 1) * (Wo + 2) + (wo + 1), r[ho] * W2 + c[wo]] = 1.0
        u_mats.append(U)

        # duplication count of each source pixel (0 for slack columns / padded rows) so
        # the fused BN epilogue reproduces post-upsample batch statistics.
        rc = np.bincount(np.asarray(r), minlength=H).astype(np.float32)
        cc = np.bincount(np.asarray(c), minlength=W).astype(np.float32)
        cnt = np.zeros((cv["rows_pad"], 1), np.float32)
        for h in range(H):
            cnt[h * W2:h * W2 + W, 0] = rc[h] * cc
        cnts.append(cnt)

    cv_tail = _conv_geom(Hf, Wf, hidden)
    cv_tail.update(n_out=Hf * Wf)
    Wf2 = cv_tail["W2"]
    cnt_tail = np.zeros((cv_tail["rows_pad"], 1), np.float32)
    for h in range(Hf):
        cnt_tail[h * Wf2:h * Wf2 + Wf, 0] = 1.0

    pad_rows = max(cv["used_pad"] for cv in convs)
    tap_rows = max([cv["rows_pad"] for cv in convs[1:]] + [cv_tail["rows_pad"],
                                                           _round_up(Hf * Wf, 8)])
    tap_cols = CP * max([cv["groups"] for cv in convs[1:]] + [cv_tail["groups"]])

    return dict(n_mod=n_mod, in_hw=(H0, W0), out_hw=(Hf, Wf), out_channels=cout,
                hidden=hidden, convs=convs, conv_tail=cv_tail,
                u_mats=u_mats, cnts=cnts, cnt_tail=cnt_tail,
                pad_rows=pad_rows, tap_rows=tap_rows, tap_cols=tap_cols,
                upsample_sizes=sizes)


# ---------------------------------------------------------------------------
# The single fused Pallas kernel
# ---------------------------------------------------------------------------

def _make_fused_kernel(plan):
    n_mod = plan["n_mod"]
    convs = plan["convs"]
    cv_tail = plan["conv_tail"]
    Hf, Wf = plan["out_hw"]
    Wf2 = Wf + 2
    n_in = 3 * n_mod + 6

    def kernel(*refs):
        x_ref = refs[0]                                  # already im2col'd (module 0)
        w_mod = refs[1:1 + n_mod]
        w_t3 = refs[1 + n_mod]
        w_t1 = refs[2 + n_mod]
        u_mod = refs[3 + n_mod:3 + 2 * n_mod]
        c_mod = refs[3 + 2 * n_mod:3 + 3 * n_mod]
        c_tail = refs[3 + 3 * n_mod]
        g_ref = refs[4 + 3 * n_mod]
        b_ref = refs[5 + 3 * n_mod]
        out_ref = refs[n_in]
        tap_ref, pad_a, pad_b = refs[n_in + 1:]

        # One-time zero of the bf16 im2col slab: every K column / slack row a conv's
        # dot can read is either freshly written before that dot or zero.  The f32
        # ping-pong activation buffers need NO memset (see used_pad in build_plan).
        tap_ref[...] = jnp.zeros(tap_ref.shape, jnp.bfloat16)

        def conv3x3(src_ref, cv, w_ref):
            # im2col with densely packed K: tap t lives in lane slot
            # (t // tpg)*128 + (t % tpg)*cin, so K = groups*128 instead of 9*128, and
            # ONE MXU bf16 dot does the whole conv (fused contraction).
            W2, cin, tpg = cv["W2"], cv["cin"], cv["tpg"]
            rows, rows_pad, groups = cv["rows"], cv["rows_pad"], cv["groups"]
            for t in range(9):
                kh, kw = t // 3, t % 3
                off = kh * W2 + kw
                col = (t // tpg) * CP + (t % tpg) * cin
                tap_ref[0:rows, col:col + cin] = (
                    src_ref[off:off + rows, 0:cin].astype(jnp.bfloat16))
            return jnp.dot(tap_ref[0:rows_pad, 0:groups * CP], w_ref[...],
                           preferred_element_type=jnp.float32)

        def relu_bn(y, cnt_ref, n_elems, bn_idx):
            # ReLU + training-mode BatchNorm2d: single-pass duplication-weighted
            # statistics (== BN computed AFTER the nearest upsample), affine folded
            # into one scale/shift.  All in f32 (v5e VPU has no bf16).
            a = jnp.maximum(y, 0.0)
            wa = a * cnt_ref[...]                                   # (rows, 1) weights
            inv_n = 1.0 / float(n_elems)
            mean = jnp.sum(wa, axis=0, keepdims=True) * inv_n       # (1, CP)
            ex2 = jnp.sum(wa * a, axis=0, keepdims=True) * inv_n    # (1, CP)
            var = jnp.maximum(ex2 - mean * mean, 0.0)
            scale = jax.lax.rsqrt(var + 1e-5) * g_ref[bn_idx:bn_idx + 1, :]
            shift = b_ref[bn_idx:bn_idx + 1, :] - mean * scale
            return a * scale + shift

        # --- ConvolutionModules: conv3x3 -> nearest upsample -> ReLU -> BN ----------
        src = x_ref
        pads = (pad_a, pad_b)
        for i in range(n_mod):
            cv = convs[i]
            if i == 0:
                # module 0 (cin=1): its tiny im2col slab is built by the wrapper.
                y = jnp.dot(src[0:cv["rows_pad"], 0:cv["groups"] * CP], w_mod[0][...],
                            preferred_element_type=jnp.float32)
            else:
                y = conv3x3(src, cv, w_mod[i])
            a = relu_bn(y, c_mod[i], cv["n_out"], i)
            # nearest upsample + zero-border embed: one bf16 0/1 selection matmul whose
            # M is padded to a multiple of 8; the extra all-zero rows land exactly on
            # the 2-row tap over-read slack of the next conv.
            nxt = jnp.dot(u_mod[i][...], a.astype(jnp.bfloat16),
                          preferred_element_type=jnp.float32)
            dst = pads[i % 2]
            dst[0:cv["used_pad"], :] = nxt
            src = dst

        # --- tail: conv3x3 -> ReLU -> BN -> de-pad (row copies) -> conv1x1 ----------
        y = conv3x3(src, cv_tail, w_t3)
        a = relu_bn(y, c_tail, Hf * Wf, n_mod).astype(jnp.bfloat16)
        # De-padding via Hf row-slice copies (replaces the dense O(pixels^2) `cf`
        # selection matmul), staged in the now-free im2col slab so the 1x1 conv writes
        # out_ref with a single aligned full-lane store.
        for h in range(Hf):
            tap_ref[h * Wf:(h + 1) * Wf, 0:CP] = a[h * Wf2:h * Wf2 + Wf, :]
        out_ref[...] = jnp.dot(tap_ref[0:Hf * Wf, 0:CP], w_t1[...],
                               preferred_element_type=jnp.float32)

    return kernel


# ---------------------------------------------------------------------------
# Parameter init + one-time packing into the dense-K bf16 kernel layout
# ---------------------------------------------------------------------------

def init_params(key, n_modules, hidden, out_channels):
    keys = jax.random.split(key, n_modules + 2)
    module_w = []
    cin = 1
    for i in range(n_modules):
        w = jax.random.normal(keys[i], (9, cin, hidden), jnp.float32) / np.sqrt(9 * cin)
        module_w.append(w)
        cin = hidden
    tail_w3 = jax.random.normal(keys[n_modules], (9, hidden, hidden), jnp.float32) / np.sqrt(9 * hidden)
    tail_w1 = jax.random.normal(keys[n_modules + 1], (hidden, out_channels), jnp.float32) / np.sqrt(hidden)
    gamma = [jnp.ones((hidden,), jnp.float32) for _ in range(n_modules + 1)]
    beta = [jnp.zeros((hidden,), jnp.float32) for _ in range(n_modules + 1)]
    return {"module_w": module_w, "tail_w3": tail_w3, "tail_w1": tail_w1,
            "gamma": gamma, "beta": beta}


def _pack_conv3(w9):
    # (9, cin, cout) tap-major conv weights -> densely packed (groups*128, 128) bf16
    # fused-K matrix matching the in-kernel tap-slab lane layout.
    w9 = np.asarray(w9, np.float32)
    _, cin, cout = w9.shape
    tpg = max(1, CP // cin)
    groups = -(-9 // tpg)
    wp = np.zeros((groups * CP, CP), np.float32)
    for t in range(9):
        row = (t // tpg) * CP + (t % tpg) * cin
        wp[row:row + cin, :cout] = w9[t]
    return jnp.asarray(wp, jnp.bfloat16)


def _pack_conv1(w):
    w = np.asarray(w, np.float32)
    cin, cout = w.shape
    wp = np.zeros((CP, CP), np.float32)
    wp[:cin, :cout] = w
    return jnp.asarray(wp, jnp.bfloat16)


def _pack_bn(vecs, fill):
    c = vecs[0].shape[0]
    out = np.full((len(vecs), CP), fill, np.float32)
    out[:, :c] = np.stack([np.asarray(v, np.float32) for v in vecs])
    return jnp.asarray(out)


def pack_inputs(params, plan):
    # One-time packing; keep these device arrays cached across forward calls.
    return dict(
        w_mod=[_pack_conv3(w) for w in params["module_w"]],
        w_t3=_pack_conv3(params["tail_w3"]),
        w_t1=_pack_conv1(params["tail_w1"]),
        u=[jnp.asarray(u, jnp.bfloat16) for u in plan["u_mats"]],
        cnt=[jnp.asarray(c) for c in plan["cnts"]],
        cnt_tail=jnp.asarray(plan["cnt_tail"]),
        gamma=_pack_bn(params["gamma"], 1.0),
        beta=_pack_bn(params["beta"], 0.0),
    )


# ---------------------------------------------------------------------------
# Forward pass (one pallas_call for the whole decoder)
# ---------------------------------------------------------------------------

def convolution_decoder_forward(x_nchw, packed, plan):
    H0, W0 = plan["in_hw"]
    Hf, Wf = plan["out_hw"]
    cout = plan["out_channels"]
    cv0 = plan["convs"][0]
    assert cv0["cin"] == 1  # first ConvolutionModule takes the 1-channel latent

    # Module 0's im2col slab (rows x 9 taps, cin=1) is tiny; build it here so the
    # kernel's first conv is a single aligned bf16 dot with K=128.
    x2d = x_nchw.reshape(H0, W0).astype(jnp.float32)
    xflat = jnp.pad(jnp.pad(x2d, ((1, 1), (1, 1))).reshape(-1), (0, 2))
    W2, rows = cv0["W2"], cv0["rows"]
    taps = [xflat[kh * W2 + kw: kh * W2 + kw + rows] for kh in range(3) for kw in range(3)]
    x_im2col = jnp.stack(taps, axis=1)                                   # (rows, 9)
    x_in = jnp.zeros((cv0["rows_pad"], CP), jnp.bfloat16).at[0:rows, 0:9].set(
        x_im2col.astype(jnp.bfloat16))

    inputs = ([x_in] + packed["w_mod"] + [packed["w_t3"], packed["w_t1"]]
              + packed["u"] + packed["cnt"]
              + [packed["cnt_tail"], packed["gamma"], packed["beta"]])

    vmem = pl.BlockSpec(memory_space=pltpu.MemorySpace.VMEM)
    # Gridless single invocation: the whole problem is ~1.3 MiB of VMEM.
    out = pl.pallas_call(
        _make_fused_kernel(plan),
        out_shape=jax.ShapeDtypeStruct((Hf * Wf, CP), jnp.float32),
        in_specs=[vmem] * len(inputs),
        out_specs=vmem,
        scratch_shapes=[
            pltpu.VMEM((plan["tap_rows"], plan["tap_cols"]), jnp.bfloat16),  # dense-K im2col slab
            pltpu.VMEM((plan["pad_rows"], CP), jnp.float32),                 # padded activation (ping)
            pltpu.VMEM((plan["pad_rows"], CP), jnp.float32),                 # padded activation (pong)
        ],
    )(*inputs)

    # (HW, CP) lane-dense slab -> (Cout, Hf, Wf), matching x.reshape(C, H, W)
    return out[:, :cout].reshape(Hf, Wf, cout).transpose(2, 0, 1)


# ---------------------------------------------------------------------------
# Straightforward float64 numpy reference (for the self-check)
# ---------------------------------------------------------------------------

def _np_reference(x_nchw, params, plan):
    H0, W0 = plan["in_hw"]
    x = np.asarray(x_nchw, np.float64).reshape(H0, W0)[..., None]

    def conv3x3(xin, w9):
        w9 = np.asarray(w9, np.float64)
        H, W, _ = xin.shape
        xp = np.pad(xin, ((1, 1), (1, 1), (0, 0)))
        out = np.zeros((H, W, w9.shape[-1]), np.float64)
        for kh in range(3):
            for kw in range(3):
                out += xp[kh:kh + H, kw:kw + W, :] @ w9[kh * 3 + kw]
        return out

    def relu_bn(y, g, b):
        y = np.maximum(y, 0.0)
        mean = y.mean(axis=(0, 1))
        var = y.var(axis=(0, 1))  # biased, as BN uses for normalization
        return (y - mean) / np.sqrt(var + 1e-5) * np.asarray(g, np.float64) + np.asarray(b, np.float64)

    for i in range(plan["n_mod"]):
        cv = plan["convs"][i]
        H, W, Ho, Wo = cv["H"], cv["W"], cv["Ho"], cv["Wo"]
        y = conv3x3(x, params["module_w"][i])
        r = np.asarray(_nearest_idx(H, Ho))
        c = np.asarray(_nearest_idx(W, Wo))
        y = y[r][:, c]
        x = relu_bn(y, params["gamma"][i], params["beta"][i])

    y = conv3x3(x, params["tail_w3"])
    y = relu_bn(y, params["gamma"][-1], params["beta"][-1])
    y = y @ np.asarray(params["tail_w1"], np.float64)
    return np.transpose(y, (2, 0, 1)).astype(np.float32)


if __name__ == "__main__":
    # Small, consistent configuration: 4x4 latent -> 16x16x3 image, 4 layers, 32 hidden channels.
    input_shape = [4, 4]
    image_dimensions = [16, 16, 3]
    number_of_layers = 4
    number_of_hidden_channels = 32

    plan = build_plan(input_shape, image_dimensions, number_of_layers, number_of_hidden_channels)

    key = jax.random.PRNGKey(0)
    k_x, k_p = jax.random.split(key)
    # Module input shape is [1, 1, *input_shape]
    x = jax.random.normal(k_x, (1, 1, input_shape[0], input_shape[1]), jnp.float32)
    params = init_params(k_p, plan["n_mod"], number_of_hidden_channels, image_dimensions[2])
    packed = pack_inputs(params, plan)  # cached packed weights / selection matrices

    fwd = jax.jit(lambda xx: convolution_decoder_forward(xx, packed, plan))
    out = jax.block_until_ready(fwd(x))

    assert out.shape == (image_dimensions[2], image_dimensions[0], image_dimensions[1]), out.shape
    assert bool(jnp.all(jnp.isfinite(out)))

    # Numerical self-check against a plain float64 numpy implementation.  MXU operands
    # are bf16 (f32 accumulation / f32 BN stats), so allow a slightly looser max-error
    # tolerance and additionally bound the mean absolute error tightly.
    ref = _np_reference(np.asarray(x), params, plan)
    np.testing.assert_allclose(np.asarray(out), ref, rtol=7.5e-2, atol=7.5e-2)
    assert float(np.mean(np.abs(np.asarray(out) - ref))) < 2.5e-2

    print("KERNEL_OK")
</pallas_src>

<mosaic_0001>
module attributes {stable_mosaic.version = 11 : i64} {
  func.func @kernel(%arg0: memref<24x128xbf16, #tpu.memory_space<vmem>>, %arg1: memref<128x128xbf16, #tpu.memory_space<vmem>>, %arg2: memref<384x128xbf16, #tpu.memory_space<vmem>>, %arg3: memref<384x128xbf16, #tpu.memory_space<vmem>>, %arg4: memref<384x128xbf16, #tpu.memory_space<vmem>>, %arg5: memref<128x128xbf16, #tpu.memory_space<vmem>>, %arg6: memref<88x24xbf16, #tpu.memory_space<vmem>>, %arg7: memref<176x64xbf16, #tpu.memory_space<vmem>>, %arg8: memref<328x144xbf16, #tpu.memory_space<vmem>>, %arg9: memref<24x1xf32, #tpu.memory_space<vmem>>, %arg10: memref<64x1xf32, #tpu.memory_space<vmem>>, %arg11: memref<144x1xf32, #tpu.memory_space<vmem>>, %arg12: memref<288x1xf32, #tpu.memory_space<vmem>>, %arg13: memref<4x128xf32, #tpu.memory_space<vmem>>, %arg14: memref<4x128xf32, #tpu.memory_space<vmem>>, %arg15: memref<256x128xf32, #tpu.memory_space<vmem>>, %arg16: memref<288x384xbf16, #tpu.memory_space<vmem>>, %arg17: memref<328x128xf32, #tpu.memory_space<vmem>>, %arg18: memref<328x128xf32, #tpu.memory_space<vmem>>) attributes {dimension_semantics = [], scalar_prefetch = 0 : i64, scratch_operands = 3 : i64, tpu.core_type = #tpu.core_type<tc>} {
    %cst = arith.constant 0.000000e+00 : bf16
    %0 = vector.broadcast %cst : bf16 to vector<288x384xbf16>
    %c0 = arith.constant 0 : index
    %c0_0 = arith.constant 0 : index
    %1 = vector.load %arg16[%c0, %c0_0] : memref<288x384xbf16, #tpu.memory_space<vmem>>, vector<288x384xbf16>
    tpu.vector_store %arg16[%c0, %c0_0], %0 {strides = array<i32>} : memref<288x384xbf16, #tpu.memory_space<vmem>>, vector<288x384xbf16>,
    %c0_1 = arith.constant 0 : index
    %c0_2 = arith.constant 0 : index
    %2 = vector.load %arg0[%c0_1, %c0_2] : memref<24x128xbf16, #tpu.memory_space<vmem>>, vector<24x128xbf16>
    %c0_3 = arith.constant 0 : index
    %c0_4 = arith.constant 0 : index
    %3 = vector.load %arg1[%c0_3, %c0_4] : memref<128x128xbf16, #tpu.memory_space<vmem>>, vector<128x128xbf16>
    %cst_5 = arith.constant dense<0.000000e+00> : vector<24x128xf32>
    %4 = tpu.matmul %2, %3, %cst_5 {dimension_numbers = #tpu.dot_dimension_numbers<[1], [0], [0], [1], [0, 0, 1, 1], [], []>} : vector<24x128xbf16>, vector<128x128xbf16>, vector<24x128xf32> -> vector<24x128xf32>
    %cst_6 = arith.constant 0.000000e+00 : f32
    %5 = vector.broadcast %cst_6 : f32 to vector<24x128xf32>
    %6 = arith.maximumf %4, %5 : vector<24x128xf32>
    %c0_7 = arith.constant 0 : index
    %c0_8 = arith.constant 0 : index
    %7 = vector.load %arg9[%c0_7, %c0_8] : memref<24x1xf32, #tpu.memory_space<vmem>>, vector<24x1xf32>
    %8 = vector.broadcast %7 : vector<24x1xf32> to vector<24x128xf32>
    %9 = arith.mulf %6, %8 : vector<24x128xf32>
    %cst_9 = arith.constant dense<0.000000e+00> : vector<128xf32>
    %10 = vector.multi_reduction <add>, %9, %cst_9 [0] : vector<24x128xf32> to vector<128xf32>
    %11 = vector.shape_cast %10 : vector<128xf32> to vector<1x128xf32>
    %cst_10 = arith.constant 0.0204081628 : f32
    %12 = vector.broadcast %cst_10 : f32 to vector<1x128xf32>
    %13 = arith.mulf %11, %12 : vector<1x128xf32>
    %14 = arith.mulf %9, %6 : vector<24x128xf32>
    %cst_11 = arith.constant dense<0.000000e+00> : vector<128xf32>
    %15 = vector.multi_reduction <add>, %14, %cst_11 [0] : vector<24x128xf32> to vector<128xf32>
    %16 = vector.shape_cast %15 : vector<128xf32> to vector<1x128xf32>
    %cst_12 = arith.constant 0.0204081628 : f32
    %17 = vector.broadcast %cst_12 : f32 to vector<1x128xf32>
    %18 = arith.mulf %16, %17 : vector<1x128xf32>
    %19 = arith.mulf %13, %13 : vector<1x128xf32>
    %20 = arith.subf %18, %19 : vector<1x128xf32>
    %cst_13 = arith.constant 0.000000e+00 : f32
    %21 = vector.broadcast %cst_13 : f32 to vector<1x128xf32>
    %22 = arith.maximumf %20, %21 : vector<1x128xf32>
    %cst_14 = arith.constant 9.99999974E-6 : f32
    %23 = vector.broadcast %cst_14 : f32 to vector<1x128xf32>
    %24 = arith.addf %22, %23 : vector<1x128xf32>
    %25 = math.rsqrt %24 : vector<1x128xf32>
    %c0_15 = arith.constant 0 : index
    %c0_16 = arith.constant 0 : index
    %26 = vector.load %arg13[%c0_15, %c0_16] : memref<4x128xf32, #tpu.memory_space<vmem>>, vector<1x128xf32>
    %27 = arith.mulf %25, %26 : vector<1x128xf32>
    %c0_17 = arith.constant 0 : index
    %c0_18 = arith.constant 0 : index
    %28 = vector.load %arg14[%c0_17, %c0_18] : memref<4x128xf32, #tpu.memory_space<vmem>>, vector<1x128xf32>
    %29 = arith.mulf %13, %27 : vector<1x128xf32>
    %30 = arith.subf %28, %29 : vector<1x128xf32>
    %31 = vector.broadcast %27 : vector<1x128xf32> to vector<24x128xf32>
    %32 = arith.mulf %6, %31 : vector<24x128xf32>
    %33 = vector.broadcast %30 : vector<1x128xf32> to vector<24x128xf32>
    %34 = arith.addf %32, %33 : vector<24x128xf32>
    %c0_19 = arith.constant 0 : index
    %c0_20 = arith.constant 0 : index
    %35 = vector.load %arg6[%c0_19, %c0_20] : memref<88x24xbf16, #tpu.memory_space<vmem>>, vector<88x24xbf16>
    %36 = arith.truncf %34 : vector<24x128xf32> to vector<24x128xbf16>
    %cst_21 = arith.constant dense<0.000000e+00> : vector<88x128xf32>
    %37 = tpu.matmul %35, %36, %cst_21 {dimension_numbers = #tpu.dot_dimension_numbers<[1], [0], [0], [1], [0, 0, 1, 1], [], []>} : vector<88x24xbf16>, vector<24x128xbf16>, vector<88x128xf32> -> vector<88x128xf32>
    %c0_22 = arith.constant 0 : index
    %c0_23 = arith.constant 0 : index
    %38 = vector.load %arg17[%c0_22, %c0_23] : memref<328x128xf32, #tpu.memory_space<vmem>>, vector<88x128xf32>
    tpu.vector_store %arg17[%c0_22, %c0_23], %37 {strides = array<i32>} : memref<328x128xf32, #tpu.memory_space<vmem>>, vector<88x128xf32>,
    %c0_24 = arith.constant 0 : index
    %c0_25 = arith.constant 0 : index
    %39 = vector.load %arg17[%c0_24, %c0_25] : memref<328x128xf32, #tpu.memory_space<vmem>>, vector<63x32xf32>
    %40 = arith.truncf %39 : vector<63x32xf32> to vector<63x32xbf16>
    %c0_26 = arith.constant 0 : index
    %c0_27 = arith.constant 0 : index
    %41 = vector.load %arg16[%c0_26, %c0_27] : memref<288x384xbf16, #tpu.memory_space<vmem>>, vector<63x32xbf16>
    tpu.vector_store %arg16[%c0_26, %c0_27], %40 {strides = array<i32>} : memref<288x384xbf16, #tpu.memory_space<vmem>>, vector<63x32xbf16>,
    %c1 = arith.constant 1 : index
    %c0_28 = arith.constant 0 : index
    %42 = vector.load %arg17[%c1, %c0_28] : memref<328x128xf32, #tpu.memory_space<vmem>>, vector<63x32xf32>
    %43 = arith.truncf %42 : vector<63x32xf32> to vector<63x32xbf16>
    %c0_29 = arith.constant 0 : index
    %c32 = arith.constant 32 : index
    %44 = vector.load %arg16[%c0_29, %c32] : memref<288x384xbf16, #tpu.memory_space<vmem>>, vector<63x32xbf16>
    tpu.vector_store %arg16[%c0_29, %c32], %43 {strides = array<i32>} : memref<288x384xbf16, #tpu.memory_space<vmem>>, vector<63x32xbf16>,
    %c2 = arith.constant 2 : index
    %c0_30 = arith.constant 0 : index
    %45 = vector.load %arg17[%c2, %c0_30] : memref<328x128xf32, #tpu.memory_space<vmem>>, vector<63x32xf32>
    %46 = arith.truncf %45 : vector<63x32xf32> to vector<63x32xbf16>
    %c0_31 = arith.constant 0 : index
    %c64 = arith.constant 64 : index
    %47 = vector.load %arg16[%c0_31, %c64] : memref<288x384xbf16, #tpu.memory_space<vmem>>, vector<63x32xbf16>
    tpu.vector_store %arg16[%c0_31, %c64], %46 {strides = array<i32>} : memref<288x384xbf16, #tpu.memory_space<vmem>>, vector<63x32xbf16>,
    %c9 = arith.constant 9 : index
    %c0_32 = arith.constant 0 : index
    %48 = vector.load %arg17[%c9, %c0_32] : memref<328x128xf32, #tpu.memory_space<vmem>>, vector<63x32xf32>
    %49 = arith.truncf %48 : vector<63x32xf32> to vector<63x32xbf16>
    %c0_33 = arith.constant 0 : index
    %c96 = arith.constant 96 : index
    %50 = vector.load %arg16[%c0_33, %c96] : memref<288x384xbf16, #tpu.memory_space<vmem>>, vector<63x32xbf16>
    tpu.vector_store %arg16[%c0_33, %c96], %49 {strides = array<i32>} : memref<288x384xbf16, #tpu.memory_space<vmem>>, vector<63x32xbf16>,
    %c10 = arith.constant 10 : index
    %c0_34 = arith.constant 0 : index
    %51 = vector.load %arg17[%c10, %c0_34] : memref<328x128xf32, #tpu.memory_space<vmem>>, vector<63x32xf32>
    %52 = arith.truncf %51 : vector<63x32xf32> to vector<63x32xbf16>
    %c0_35 = arith.constant 0 : index
    %c128 = arith.constant 128 : index
    %53 = vector.load %arg16[%c0_35, %c128] : memref<288x384xbf16, #tpu.memory_space<vmem>>, vector<63x32xbf16>
    tpu.vector_store %arg16[%c0_35, %c128], %52 {strides = array<i32>} : memref<288x384xbf16, #tpu.memory_space<vmem>>, vector<63x32xbf16>,
    %c11 = arith.constant 11 : index
    %c0_36 = arith.constant 0 : index
    %54 = vector.load %arg17[%c11, %c0_36] : memref<328x128xf32, #tpu.memory_space<vmem>>, vector<63x32xf32>
    %55 = arith.truncf %54 : vector<63x32xf32> to vector<63x32xbf16>
    %c0_37 = arith.constant 0 : index
    %c160 = arith.constant 160 : index
    %56 = vector.load %arg16[%c0_37, %c160] : memref<288x384xbf16, #tpu.memory_space<vmem>>, vector<63x32xbf16>
    tpu.vector_store %arg16[%c0_37, %c160], %55 {strides = array<i32>} : memref<288x384xbf16, #tpu.memory_space<vmem>>, vector<63x32xbf16>,
    %c18 = arith.constant 18 : index
    %c0_38 = arith.constant 0 : index
    %57 = vector.load %arg17[%c18, %c0_38] : memref<328x128xf32, #tpu.memory_space<vmem>>, vector<63x32xf32>
    %58 = arith.truncf %57 : vector<63x32xf32> to vector<63x32xbf16>
    %c0_39 = arith.constant 0 : index
    %c192 = arith.constant 192 : index
    %59 = vector.load %arg16[%c0_39, %c192] : memref<288x384xbf16, #tpu.memory_space<vmem>>, vector<63x32xbf16>
    tpu.vector_store %arg16[%c0_39, %c192], %58 {strides = array<i32>} : memref<288x384xbf16, #tpu.memory_space<vmem>>, vector<63x32xbf16>,
    %c19 = arith.constant 19 : index
    %c0_40 = arith.constant 0 : index
    %60 = vector.load %arg17[%c19, %c0_40] : memref<328x128xf32, #tpu.memory_space<vmem>>, vector<63x32xf32>
    %61 = arith.truncf %60 : vector<63x32xf32> to vector<63x32xbf16>
    %c0_41 = arith.constant 0 : index
    %c224 = arith.constant 224 : index
    %62 = vector.load %arg16[%c0_41, %c224] : memref<288x384xbf16, #tpu.memory_space<vmem>>, vector<63x32xbf16>
    tpu.vector_store %arg16[%c0_41, %c224], %61 {strides = array<i32>} : memref<288x384xbf16, #tpu.memory_space<vmem>>, vector<63x32xbf16>,
    %c20 = arith.constant 20 : index
    %c0_42 = arith.constant 0 : index
    %63 = vector.load %arg17[%c20, %c0_42] : memref<328x128xf32, #tpu.memory_space<vmem>>, vector<63x32xf32>
    %64 = arith.truncf %63 : vector<63x32xf32> to vector<63x32xbf16>
    %c0_43 = arith.constant 0 : index
    %c256 = arith.constant 256 : index
    %65 = vector.load %arg16[%c0_43, %c256] : memref<288x384xbf16, #tpu.memory_space<vmem>>, vector<63x32xbf16>
    tpu.vector_store %arg16[%c0_43, %c256], %64 {strides = array<i32>} : memref<288x384xbf16, #tpu.memory_space<vmem>>, vector<63x32xbf16>,
    %c0_44 = arith.constant 0 : index
    %c0_45 = arith.constant 0 : index
    %66 = vector.load %arg16[%c0_44, %c0_45] : memref<288x384xbf16, #tpu.memory_space<vmem>>, vector<64x384xbf16>
    %c0_46 = arith.constant 0 : index
    %c0_47 = arith.constant 0 : index
    %67 = vector.load %arg2[%c0_46, %c0_47] : memref<384x128xbf16, #tpu.memory_space<vmem>>, vector<384x128xbf16>
    %cst_48 = arith.constant dense<0.000000e+00> : vector<64x128xf32>
    %68 = tpu.matmul %66, %67, %cst_48 {dimension_numbers = #tpu.dot_dimension_numbers<[1], [0], [0], [1], [0, 0, 1, 1], [], []>} : vector<64x384xbf16>, vector<384x128xbf16>, vector<64x128xf32> -> vector<64x128xf32>
    %cst_49 = arith.constant 0.000000e+00 : f32
    %69 = vector.broadcast %cst_49 : f32 to vector<64x128xf32>
    %70 = arith.maximumf %68, %69 : vector<64x128xf32>
    %c0_50 = arith.constant 0 : index
    %c0_51 = arith.constant 0 : index
    %71 = vector.load %arg10[%c0_50, %c0_51] : memref<64x1xf32, #tpu.memory_space<vmem>>, vector<64x1xf32>
    %72 = vector.broadcast %71 : vector<64x1xf32> to vector<64x128xf32>
    %73 = arith.mulf %70, %72 : vector<64x128xf32>
    %cst_52 = arith.constant dense<0.000000e+00> : vector<128xf32>
    %74 = vector.multi_reduction <add>, %73, %cst_52 [0] : vector<64x128xf32> to vector<128xf32>
    %75 = vector.shape_cast %74 : vector<128xf32> to vector<1x128xf32>
    %cst_53 = arith.constant 0.00826446246 : f32
    %76 = vector.broadcast %cst_53 : f32 to vector<1x128xf32>
    %77 = arith.mulf %75, %76 : vector<1x128xf32>
    %78 = arith.mulf %73, %70 : vector<64x128xf32>
    %cst_54 = arith.constant dense<0.000000e+00> : vector<128xf32>
    %79 = vector.multi_reduction <add>, %78, %cst_54 [0] : vector<64x128xf32> to vector<128xf32>
    %80 = vector.shape_cast %79 : vector<128xf32> to vector<1x128xf32>
    %cst_55 = arith.constant 0.00826446246 : f32
    %81 = vector.broadcast %cst_55 : f32 to vector<1x128xf32>
    %82 = arith.mulf %80, %81 : vector<1x128xf32>
    %83 = arith.mulf %77, %77 : vector<1x128xf32>
    %84 = arith.subf %82, %83 : vector<1x128xf32>
    %cst_56 = arith.constant 0.000000e+00 : f32
    %85 = vector.broadcast %cst_56 : f32 to vector<1x128xf32>
    %86 = arith.maximumf %84, %85 : vector<1x128xf32>
    %cst_57 = arith.constant 9.99999974E-6 : f32
    %87 = vector.broadcast %cst_57 : f32 to vector<1x128xf32>
    %88 = arith.addf %86, %87 : vector<1x128xf32>
    %89 = math.rsqrt %88 : vector<1x128xf32>
    %c1_58 = arith.constant 1 : index
    %c0_59 = arith.constant 0 : index
    %90 = vector.load %arg13[%c1_58, %c0_59] : memref<4x128xf32, #tpu.memory_space<vmem>>, vector<1x128xf32>
    %91 = arith.mulf %89, %90 : vector<1x128xf32>
    %c1_60 = arith.constant 1 : index
    %c0_61 = arith.constant 0 : index
    %92 = vector.load %arg14[%c1_60, %c0_61] : memref<4x128xf32, #tpu.memory_space<vmem>>, vector<1x128xf32>
    %93 = arith.mulf %77, %91 : vector<1x128xf32>
    %94 = arith.subf %92, %93 : vector<1x128xf32>
    %95 = vector.broadcast %91 : vector<1x128xf32> to vector<64x128xf32>
    %96 = arith.mulf %70, %95 : vector<64x128xf32>
    %97 = vector.broadcast %94 : vector<1x128xf32> to vector<64x128xf32>
    %98 = arith.addf %96, %97 : vector<64x128xf32>
    %c0_62 = arith.constant 0 : index
    %c0_63 = arith.constant 0 : index
    %99 = vector.load %arg7[%c0_62, %c0_63] : memref<176x64xbf16, #tpu.memory_space<vmem>>, vector<176x64xbf16>
    %100 = arith.truncf %98 : vector<64x128xf32> to vector<64x128xbf16>
    %cst_64 = arith.constant dense<0.000000e+00> : vector<176x128xf32>
    %101 = tpu.matmul %99, %100, %cst_64 {dimension_numbers = #tpu.dot_dimension_numbers<[1], [0], [0], [1], [0, 0, 1, 1], [], []>} : vector<176x64xbf16>, vector<64x128xbf16>, vector<176x128xf32> -> vector<176x128xf32>
    %c0_65 = arith.constant 0 : index
    %c0_66 = arith.constant 0 : index
    %102 = vector.load %arg18[%c0_65, %c0_66] : memref<328x128xf32, #tpu.memory_space<vmem>>, vector<176x128xf32>
    tpu.vector_store %arg18[%c0_65, %c0_66], %101 {strides = array<i32>} : memref<328x128xf32, #tpu.memory_space<vmem>>, vector<176x128xf32>,
    %c0_67 = arith.constant 0 : index
    %c0_68 = arith.constant 0 : index
    %103 = vector.load %arg18[%c0_67, %c0_68] : memref<328x128xf32, #tpu.memory_space<vmem>>, vector<143x32xf32>
    %104 = arith.truncf %103 : vector<143x32xf32> to vector<143x32xbf16>
    %c0_69 = arith.constant 0 : index
    %c0_70 = arith.constant 0 : index
    %105 = vector.load %arg16[%c0_69, %c0_70] : memref<288x384xbf16, #tpu.memory_space<vmem>>, vector<143x32xbf16>
    tpu.vector_store %arg16[%c0_69, %c0_70], %104 {strides = array<i32>} : memref<288x384xbf16, #tpu.memory_space<vmem>>, vector<143x32xbf16>,
    %c1_71 = arith.constant 1 : index
    %c0_72 = arith.constant 0 : index
    %106 = vector.load %arg18[%c1_71, %c0_72] : memref<328x128xf32, #tpu.memory_space<vmem>>, vector<143x32xf32>
    %107 = arith.truncf %106 : vector<143x32xf32> to vector<143x32xbf16>
    %c0_73 = arith.constant 0 : index
    %c32_74 = arith.constant 32 : index
    %108 = vector.load %arg16[%c0_73, %c32_74] : memref<288x384xbf16, #tpu.memory_space<vmem>>, vector<143x32xbf16>
    tpu.vector_store %arg16[%c0_73, %c32_74], %107 {strides = array<i32>} : memref<288x384xbf16, #tpu.memory_space<vmem>>, vector<143x32xbf16>,
    %c2_75 = arith.constant 2 : index
    %c0_76 = arith.constant 0 : index
    %109 = vector.load %arg18[%c2_75, %c0_76] : memref<328x128xf32, #tpu.memory_space<vmem>>, vector<143x32xf32>
    %110 = arith.truncf %109 : vector<143x32xf32> to vector<143x32xbf16>
    %c0_77 = arith.constant 0 : index
    %c64_78 = arith.constant 64 : index
    %111 = vector.load %arg16[%c0_77, %c64_78] : memref<288x384xbf16, #tpu.memory_space<vmem>>, vector<143x32xbf16>
    tpu.vector_store %arg16[%c0_77, %c64_78], %110 {strides = array<i32>} : memref<288x384xbf16, #tpu.memory_space<vmem>>, vector<143x32xbf16>,
    %c13 = arith.constant 13 : index
    %c0_79 = arith.constant 0 : index
    %112 = vector.load %arg18[%c13, %c0_79] : memref<328x128xf32, #tpu.memory_space<vmem>>, vector<143x32xf32>
    %113 = arith.truncf %112 : vector<143x32xf32> to vector<143x32xbf16>
    %c0_80 = arith.constant 0 : index
    %c96_81 = arith.constant 96 : index
    %114 = vector.load %arg16[%c0_80, %c96_81] : memref<288x384xbf16, #tpu.memory_space<vmem>>, vector<143x32xbf16>
    tpu.vector_store %arg16[%c0_80, %c96_81], %113 {strides = array<i32>} : memref<288x384xbf16, #tpu.memory_space<vmem>>, vector<143x32xbf16>,
    %c14 = arith.constant 14 : index
    %c0_82 = arith.constant 0 : index
    %115 = vector.load %arg18[%c14, %c0_82] : memref<328x128xf32, #tpu.memory_space<vmem>>, vector<143x32xf32>
    %116 = arith.truncf %115 : vector<143x32xf32> to vector<143x32xbf16>
    %c0_83 = arith.constant 0 : index
    %c128_84 = arith.constant 128 : index
    %117 = vector.load %arg16[%c0_83, %c128_84] : memref<288x384xbf16, #tpu.memory_space<vmem>>, vector<143x32xbf16>
    tpu.vector_store %arg16[%c0_83, %c128_84], %116 {strides = array<i32>} : memref<288x384xbf16, #tpu.memory_space<vmem>>, vector<143x32xbf16>,
    %c15 = arith.constant 15 : index
    %c0_85 = arith.constant 0 : index
    %118 = vector.load %arg18[%c15, %c0_85] : memref<328x128xf32, #tpu.memory_space<vmem>>, vector<143x32xf32>
    %119 = arith.truncf %118 : vector<143x32xf32> to vector<143x32xbf16>
    %c0_86 = arith.constant 0 : index
    %c160_87 = arith.constant 160 : index
    %120 = vector.load %arg16[%c0_86, %c160_87] : memref<288x384xbf16, #tpu.memory_space<vmem>>, vector<143x32xbf16>
    tpu.vector_store %arg16[%c0_86, %c160_87], %119 {strides = array<i32>} : memref<288x384xbf16, #tpu.memory_space<vmem>>, vector<143x32xbf16>,
    %c26 = arith.constant 26 : index
    %c0_88 = arith.constant 0 : index
    %121 = vector.load %arg18[%c26, %c0_88] : memref<328x128xf32, #tpu.memory_space<vmem>>, vector<143x32xf32>
    %122 = arith.truncf %121 : vector<143x32xf32> to vector<143x32xbf16>
    %c0_89 = arith.constant 0 : index
    %c192_90 = arith.constant 192 : index
    %123 = vector.load %arg16[%c0_89, %c192_90] : memref<288x384xbf16, #tpu.memory_space<vmem>>, vector<143x32xbf16>
    tpu.vector_store %arg16[%c0_89, %c192_90], %122 {strides = array<i32>} : memref<288x384xbf16, #tpu.memory_space<vmem>>, vector<143x32xbf16>,
    %c27 = arith.constant 27 : index
    %c0_91 = arith.constant 0 : index
    %124 = vector.load %arg18[%c27, %c0_91] : memref<328x128xf32, #tpu.memory_space<vmem>>, vector<143x32xf32>
    %125 = arith.truncf %124 : vector<143x32xf32> to vector<143x32xbf16>
    %c0_92 = arith.constant 0 : index
    %c224_93 = arith.constant 224 : index
    %126 = vector.load %arg16[%c0_92, %c224_93] : memref<288x384xbf16, #tpu.memory_space<vmem>>, vector<143x32xbf16>
    tpu.vector_store %arg16[%c0_92, %c224_93], %125 {strides = array<i32>} : memref<288x384xbf16, #tpu.memory_space<vmem>>, vector<143x32xbf16>,
    %c28 = arith.constant 28 : index
    %c0_94 = arith.constant 0 : index
    %127 = vector.load %arg18[%c28, %c0_94] : memref<328x128xf32, #tpu.memory_space<vmem>>, vector<143x32xf32>
    %128 = arith.truncf %127 : vector<143x32xf32> to vector<143x32xbf16>
    %c0_95 = arith.constant 0 : index
    %c256_96 = arith.constant 256 : index
    %129 = vector.load %arg16[%c0_95, %c256_96] : memref<288x384xbf16, #tpu.memory_space<vmem>>, vector<143x32xbf16>
    tpu.vector_store %arg16[%c0_95, %c256_96], %128 {strides = array<i32>} : memref<288x384xbf16, #tpu.memory_space<vmem>>, vector<143x32xbf16>,
    %c0_97 = arith.constant 0 : index
    %c0_98 = arith.constant 0 : index
    %130 = vector.load %arg16[%c0_97, %c0_98] : memref<288x384xbf16, #tpu.memory_space<vmem>>, vector<144x384xbf16>
    %c0_99 = arith.constant 0 : index
    %c0_100 = arith.constant 0 : index
    %131 = vector.load %arg3[%c0_99, %c0_100] : memref<384x128xbf16, #tpu.memory_space<vmem>>, vector<384x128xbf16>
    %cst_101 = arith.constant dense<0.000000e+00> : vector<144x128xf32>
    %132 = tpu.matmul %130, %131, %cst_101 {dimension_numbers = #tpu.dot_dimension_numbers<[1], [0], [0], [1], [0, 0, 1, 1], [], []>} : vector<144x384xbf16>, vector<384x128xbf16>, vector<144x128xf32> -> vector<144x128xf32>
    %cst_102 = arith.constant 0.000000e+00 : f32
    %133 = vector.broadcast %cst_102 : f32 to vector<144x128xf32>
    %134 = arith.maximumf %132, %133 : vector<144x128xf32>
    %c0_103 = arith.constant 0 : index
    %c0_104 = arith.constant 0 : index
    %135 = vector.load %arg11[%c0_103, %c0_104] : memref<144x1xf32, #tpu.memory_space<vmem>>, vector<144x1xf32>
    %136 = vector.broadcast %135 : vector<144x1xf32> to vector<144x128xf32>
    %137 = arith.mulf %134, %136 : vector<144x128xf32>
    %cst_105 = arith.constant dense<0.000000e+00> : vector<128xf32>
    %138 = vector.multi_reduction <add>, %137, %cst_105 [0] : vector<144x128xf32> to vector<128xf32>
    %139 = vector.shape_cast %138 : vector<128xf32> to vector<1x128xf32>
    %cst_106 = arith.constant 3.906250e-03 : f32
    %140 = vector.broadcast %cst_106 : f32 to vector<1x128xf32>
    %141 = arith.mulf %139, %140 : vector<1x128xf32>
    %142 = arith.mulf %137, %134 : vector<144x128xf32>
    %cst_107 = arith.constant dense<0.000000e+00> : vector<128xf32>
    %143 = vector.multi_reduction <add>, %142, %cst_107 [0] : vector<144x128xf32> to vector<128xf32>
    %144 = vector.shape_cast %143 : vector<128xf32> to vector<1x128xf32>
    %cst_108 = arith.constant 3.906250e-03 : f32
    %145 = vector.broadcast %cst_108 : f32 to vector<1x128xf32>
    %146 = arith.mulf %144, %145 : vector<1x128xf32>
    %147 = arith.mulf %141, %141 : vector<1x128xf32>
    %148 = arith.subf %146, %147 : vector<1x128xf32>
    %cst_109 = arith.constant 0.000000e+00 : f32
    %149 = vector.broadcast %cst_109 : f32 to vector<1x128xf32>
    %150 = arith.maximumf %148, %149 : vector<1x128xf32>
    %cst_110 = arith.constant 9.99999974E-6 : f32
    %151 = vector.broadcast %cst_110 : f32 to vector<1x128xf32>
    %152 = arith.addf %150, %151 : vector<1x128xf32>
    %153 = math.rsqrt %152 : vector<1x128xf32>
    %c2_111 = arith.constant 2 : index
    %c0_112 = arith.constant 0 : index
    %154 = vector.load %arg13[%c2_111, %c0_112] : memref<4x128xf32, #tpu.memory_space<vmem>>, vector<1x128xf32>
    %155 = arith.mulf %153, %154 : vector<1x128xf32>
    %c2_113 = arith.constant 2 : index
    %c0_114 = arith.constant 0 : index
    %156 = vector.load %arg14[%c2_113, %c0_114] : memref<4x128xf32, #tpu.memory_space<vmem>>, vector<1x128xf32>
    %157 = arith.mulf %141, %155 : vector<1x128xf32>
    %158 = arith.subf %156, %157 : vector<1x128xf32>
    %159 = vector.broadcast %155 : vector<1x128xf32> to vector<144x128xf32>
    %160 = arith.mulf %134, %159 : vector<144x128xf32>
    %161 = vector.broadcast %158 : vector<1x128xf32> to vector<144x128xf32>
    %162 = arith.addf %160, %161 : vector<144x128xf32>
    %c0_115 = arith.constant 0 : index
    %c0_116 = arith.constant 0 : index
    %163 = vector.load %arg8[%c0_115, %c0_116] : memref<328x144xbf16, #tpu.memory_space<vmem>>, vector<328x144xbf16>
    %164 = arith.truncf %162 : vector<144x128xf32> to vector<144x128xbf16>
    %cst_117 = arith.constant dense<0.000000e+00> : vector<328x128xf32>
    %165 = tpu.matmul %163, %164, %cst_117 {dimension_numbers = #tpu.dot_dimension_numbers<[1], [0], [0], [1], [0, 0, 1, 1], [], []>} : vector<328x144xbf16>, vector<144x128xbf16>, vector<328x128xf32> -> vector<328x128xf32>
    %c0_118 = arith.constant 0 : index
    %c0_119 = arith.constant 0 : index
    %166 = vector.load %arg17[%c0_118, %c0_119] : memref<328x128xf32, #tpu.memory_space<vmem>>, vector<328x128xf32>
    tpu.vector_store %arg17[%c0_118, %c0_119], %165 {strides = array<i32>} : memref<328x128xf32, #tpu.memory_space<vmem>>, vector<328x128xf32>,
    %c0_120 = arith.constant 0 : index
    %c0_121 = arith.constant 0 : index
    %167 = vector.load %arg17[%c0_120, %c0_121] : memref<328x128xf32, #tpu.memory_space<vmem>>, vector<288x32xf32>
    %168 = arith.truncf %167 : vector<288x32xf32> to vector<288x32xbf16>
    %c0_122 = arith.constant 0 : index
    %c0_123 = arith.constant 0 : index
    %169 = vector.load %arg16[%c0_122, %c0_123] : memref<288x384xbf16, #tpu.memory_space<vmem>>, vector<288x32xbf16>
    tpu.vector_store %arg16[%c0_122, %c0_123], %168 {strides = array<i32>} : memref<288x384xbf16, #tpu.memory_space<vmem>>, vector<288x32xbf16>,
    %c1_124 = arith.constant 1 : index
    %c0_125 = arith.constant 0 : index
    %170 = vector.load %arg17[%c1_124, %c0_125] : memref<328x128xf32, #tpu.memory_space<vmem>>, vector<288x32xf32>
    %171 = arith.truncf %170 : vector<288x32xf32> to vector<288x32xbf16>
    %c0_126 = arith.constant 0 : index
    %c32_127 = arith.constant 32 : index
    %172 = vector.load %arg16[%c0_126, %c32_127] : memref<288x384xbf16, #tpu.memory_space<vmem>>, vector<288x32xbf16>
    tpu.vector_store %arg16[%c0_126, %c32_127], %171 {strides = array<i32>} : memref<288x384xbf16, #tpu.memory_space<vmem>>, vector<288x32xbf16>,
    %c2_128 = arith.constant 2 : index
    %c0_129 = arith.constant 0 : index
    %173 = vector.load %arg17[%c2_128, %c0_129] : memref<328x128xf32, #tpu.memory_space<vmem>>, vector<288x32xf32>
    %174 = arith.truncf %173 : vector<288x32xf32> to vector<288x32xbf16>
    %c0_130 = arith.constant 0 : index
    %c64_131 = arith.constant 64 : index
    %175 = vector.load %arg16[%c0_130, %c64_131] : memref<288x384xbf16, #tpu.memory_space<vmem>>, vector<288x32xbf16>
    tpu.vector_store %arg16[%c0_130, %c64_131], %174 {strides = array<i32>} : memref<288x384xbf16, #tpu.memory_space<vmem>>, vector<288x32xbf16>,
    %c18_132 = arith.constant 18 : index
    %c0_133 = arith.constant 0 : index
    %176 = vector.load %arg17[%c18_132, %c0_133] : memref<328x128xf32, #tpu.memory_space<vmem>>, vector<288x32xf32>
    %177 = arith.truncf %176 : vector<288x32xf32> to vector<288x32xbf16>
    %c0_134 = arith.constant 0 : index
    %c96_135 = arith.constant 96 : index
    %178 = vector.load %arg16[%c0_134, %c96_135] : memref<288x384xbf16, #tpu.memory_space<vmem>>, vector<288x32xbf16>
    tpu.vector_store %arg16[%c0_134, %c96_135], %177 {strides = array<i32>} : memref<288x384xbf16, #tpu.memory_space<vmem>>, vector<288x32xbf16>,
    %c19_136 = arith.constant 19 : index
    %c0_137 = arith.constant 0 : index
    %179 = vector.load %arg17[%c19_136, %c0_137] : memref<328x128xf32, #tpu.memory_space<vmem>>, vector<288x32xf32>
    %180 = arith.truncf %179 : vector<288x32xf32> to vector<288x32xbf16>
    %c0_138 = arith.constant 0 : index
    %c128_139 = arith.constant 128 : index
    %181 = vector.load %arg16[%c0_138, %c128_139] : memref<288x384xbf16, #tpu.memory_space<vmem>>, vector<288x32xbf16>
    tpu.vector_store %arg16[%c0_138, %c128_139], %180 {strides = array<i32>} : memref<288x384xbf16, #tpu.memory_space<vmem>>, vector<288x32xbf16>,
    %c20_140 = arith.constant 20 : index
    %c0_141 = arith.constant 0 : index
    %182 = vector.load %arg17[%c20_140, %c0_141] : memref<328x128xf32, #tpu.memory_space<vmem>>, vector<288x32xf32>
    %183 = arith.truncf %182 : vector<288x32xf32> to vector<288x32xbf16>
    %c0_142 = arith.constant 0 : index
    %c160_143 = arith.constant 160 : index
    %184 = vector.load %arg16[%c0_142, %c160_143] : memref<288x384xbf16, #tpu.memory_space<vmem>>, vector<288x32xbf16>
    tpu.vector_store %arg16[%c0_142, %c160_143], %183 {strides = array<i32>} : memref<288x384xbf16, #tpu.memory_space<vmem>>, vector<288x32xbf16>,
    %c36 = arith.constant 36 : index
    %c0_144 = arith.constant 0 : index
    %185 = vector.load %arg17[%c36, %c0_144] : memref<328x128xf32, #tpu.memory_space<vmem>>, vector<288x32xf32>
    %186 = arith.truncf %185 : vector<288x32xf32> to vector<288x32xbf16>
    %c0_145 = arith.constant 0 : index
    %c192_146 = arith.constant 192 : index
    %187 = vector.load %arg16[%c0_145, %c192_146] : memref<288x384xbf16, #tpu.memory_space<vmem>>, vector<288x32xbf16>
    tpu.vector_store %arg16[%c0_145, %c192_146], %186 {strides = array<i32>} : memref<288x384xbf16, #tpu.memory_space<vmem>>, vector<288x32xbf16>,
    %c37 = arith.constant 37 : index
    %c0_147 = arith.constant 0 : index
    %188 = vector.load %arg17[%c37, %c0_147] : memref<328x128xf32, #tpu.memory_space<vmem>>, vector<288x32xf32>
    %189 = arith.truncf %188 : vector<288x32xf32> to vector<288x32xbf16>
    %c0_148 = arith.constant 0 : index
    %c224_149 = arith.constant 224 : index
    %190 = vector.load %arg16[%c0_148, %c224_149] : memref<288x384xbf16, #tpu.memory_space<vmem>>, vector<288x32xbf16>
    tpu.vector_store %arg16[%c0_148, %c224_149], %189 {strides = array<i32>} : memref<288x384xbf16, #tpu.memory_space<vmem>>, vector<288x32xbf16>,
    %c38 = arith.constant 38 : index
    %c0_150 = arith.constant 0 : index
    %191 = vector.load %arg17[%c38, %c0_150] : memref<328x128xf32, #tpu.memory_space<vmem>>, vector<288x32xf32>
    %192 = arith.truncf %191 : vector<288x32xf32> to vector<288x32xbf16>
    %c0_151 = arith.constant 0 : index
    %c256_152 = arith.constant 256 : index
    %193 = vector.load %arg16[%c0_151, %c256_152] : memref<288x384xbf16, #tpu.memory_space<vmem>>, vector<288x32xbf16>
    tpu.vector_store %arg16[%c0_151, %c256_152], %192 {strides = array<i32>} : memref<288x384xbf16, #tpu.memory_space<vmem>>, vector<288x32xbf16>,
    %c0_153 = arith.constant 0 : index
    %c0_154 = arith.constant 0 : index
    %194 = vector.load %arg16[%c0_153, %c0_154] : memref<288x384xbf16, #tpu.memory_space<vmem>>, vector<288x384xbf16>
    %c0_155 = arith.constant 0 : index
    %c0_156 = arith.constant 0 : index
    %195 = vector.load %arg4[%c0_155, %c0_156] : memref<384x128xbf16, #tpu.memory_space<vmem>>, vector<384x128xbf16>
    %cst_157 = arith.constant dense<0.000000e+00> : vector<288x128xf32>
    %196 = tpu.matmul %194, %195, %cst_157 {dimension_numbers = #tpu.dot_dimension_numbers<[1], [0], [0], [1], [0, 0, 1, 1], [], []>} : vector<288x384xbf16>, vector<384x128xbf16>, vector<288x128xf32> -> vector<288x128xf32>
    %cst_158 = arith.constant 0.000000e+00 : f32
    %197 = vector.broadcast %cst_158 : f32 to vector<288x128xf32>
    %198 = arith.maximumf %196, %197 : vector<288x128xf32>
    %c0_159 = arith.constant 0 : index
    %c0_160 = arith.constant 0 : index
    %199 = vector.load %arg12[%c0_159, %c0_160] : memref<288x1xf32, #tpu.memory_space<vmem>>, vector<288x1xf32>
    %200 = vector.broadcast %199 : vector<288x1xf32> to vector<288x128xf32>
    %201 = arith.mulf %198, %200 : vector<288x128xf32>
    %cst_161 = arith.constant dense<0.000000e+00> : vector<128xf32>
    %202 = vector.multi_reduction <add>, %201, %cst_161 [0] : vector<288x128xf32> to vector<128xf32>
    %203 = vector.shape_cast %202 : vector<128xf32> to vector<1x128xf32>
    %cst_162 = arith.constant 3.906250e-03 : f32
    %204 = vector.broadcast %cst_162 : f32 to vector<1x128xf32>
    %205 = arith.mulf %203, %204 : vector<1x128xf32>
    %206 = arith.mulf %201, %198 : vector<288x128xf32>
    %cst_163 = arith.constant dense<0.000000e+00> : vector<128xf32>
    %207 = vector.multi_reduction <add>, %206, %cst_163 [0] : vector<288x128xf32> to vector<128xf32>
    %208 = vector.shape_cast %207 : vector<128xf32> to vector<1x128xf32>
    %cst_164 = arith.constant 3.906250e-03 : f32
    %209 = vector.broadcast %cst_164 : f32 to vector<1x128xf32>
    %210 = arith.mulf %208, %209 : vector<1x128xf32>
    %211 = arith.mulf %205, %205 : vector<1x128xf32>
    %212 = arith.subf %210, %211 : vector<1x128xf32>
    %cst_165 = arith.constant 0.000000e+00 : f32
    %213 = vector.broadcast %cst_165 : f32 to vector<1x128xf32>
    %214 = arith.maximumf %212, %213 : vector<1x128xf32>
    %cst_166 = arith.constant 9.99999974E-6 : f32
    %215 = vector.broadcast %cst_166 : f32 to vector<1x128xf32>
    %216 = arith.addf %214, %215 : vector<1x128xf32>
    %217 = math.rsqrt %216 : vector<1x128xf32>
    %c3 = arith.constant 3 : index
    %c0_167 = arith.constant 0 : index
    %218 = vector.load %arg13[%c3, %c0_167] : memref<4x128xf32, #tpu.memory_space<vmem>>, vector<1x128xf32>
    %219 = arith.mulf %217, %218 : vector<1x128xf32>
    %c3_168 = arith.constant 3 : index
    %c0_169 = arith.constant 0 : index
    %220 = vector.load %arg14[%c3_168, %c0_169] : memref<4x128xf32, #tpu.memory_space<vmem>>, vector<1x128xf32>
    %221 = arith.mulf %205, %219 : vector<1x128xf32>
    %222 = arith.subf %220, %221 : vector<1x128xf32>
    %223 = vector.broadcast %219 : vector<1x128xf32> to vector<288x128xf32>
    %224 = arith.mulf %198, %223 : vector<288x128xf32>
    %225 = vector.broadcast %222 : vector<1x128xf32> to vector<288x128xf32>
    %226 = arith.addf %224, %225 : vector<288x128xf32>
    %227 = arith.truncf %226 : vector<288x128xf32> to vector<288x128xbf16>
    %228 = vector.extract_strided_slice %227 {offsets = [0, 0], sizes = [16, 128], strides = [1, 1]} : vector<288x128xbf16> to vector<16x128xbf16>
    %c0_170 = arith.constant 0 : index
    %c0_171 = arith.constant 0 : index
    %229 = vector.load %arg16[%c0_170, %c0_171] : memref<288x384xbf16, #tpu.memory_space<vmem>>, vector<16x128xbf16>
    tpu.vector_store %arg16[%c0_170, %c0_171], %228 {strides = array<i32>} : memref<288x384xbf16, #tpu.memory_space<vmem>>, vector<16x128xbf16>,
    %230 = vector.extract_strided_slice %227 {offsets = [18, 0], sizes = [16, 128], strides = [1, 1]} : vector<288x128xbf16> to vector<16x128xbf16>
    %c16 = arith.constant 16 : index
    %c0_172 = arith.constant 0 : index
    %231 = vector.load %arg16[%c16, %c0_172] : memref<288x384xbf16, #tpu.memory_space<vmem>>, vector<16x128xbf16>
    tpu.vector_store %arg16[%c16, %c0_172], %230 {strides = array<i32>} : memref<288x384xbf16, #tpu.memory_space<vmem>>, vector<16x128xbf16>,
    %232 = vector.extract_strided_slice %227 {offsets = [36, 0], sizes = [16, 128], strides = [1, 1]} : vector<288x128xbf16> to vector<16x128xbf16>
    %c32_173 = arith.constant 32 : index
    %c0_174 = arith.constant 0 : index
    %233 = vector.load %arg16[%c32_173, %c0_174] : memref<288x384xbf16, #tpu.memory_space<vmem>>, vector<16x128xbf16>
    tpu.vector_store %arg16[%c32_173, %c0_174], %232 {strides = array<i32>} : memref<288x384xbf16, #tpu.memory_space<vmem>>, vector<16x128xbf16>,
    %234 = vector.extract_strided_slice %227 {offsets = [54, 0], sizes = [16, 128], strides = [1, 1]} : vector<288x128xbf16> to vector<16x128xbf16>
    %c48 = arith.constant 48 : index
    %c0_175 = arith.constant 0 : index
    %235 = vector.load %arg16[%c48, %c0_175] : memref<288x384xbf16, #tpu.memory_space<vmem>>, vector<16x128xbf16>
    tpu.vector_store %arg16[%c48, %c0_175], %234 {strides = array<i32>} : memref<288x384xbf16, #tpu.memory_space<vmem>>, vector<16x128xbf16>,
    %236 = vector.extract_strided_slice %227 {offsets = [72, 0], sizes = [16, 128], strides = [1, 1]} : vector<288x128xbf16> to vector<16x128xbf16>
    %c64_176 = arith.constant 64 : index
    %c0_177 = arith.constant 0 : index
    %237 = vector.load %arg16[%c64_176, %c0_177] : memref<288x384xbf16, #tpu.memory_space<vmem>>, vector<16x128xbf16>
    tpu.vector_store %arg16[%c64_176, %c0_177], %236 {strides = array<i32>} : memref<288x384xbf16, #tpu.memory_space<vmem>>, vector<16x128xbf16>,
    %238 = vector.extract_strided_slice %227 {offsets = [90, 0], sizes = [16, 128], strides = [1, 1]} : vector<288x128xbf16> to vector<16x128xbf16>
    %c80 = arith.constant 80 : index
    %c0_178 = arith.constant 0 : index
    %239 = vector.load %arg16[%c80, %c0_178] : memref<288x384xbf16, #tpu.memory_space<vmem>>, vector<16x128xbf16>
    tpu.vector_store %arg16[%c80, %c0_178], %238 {strides = array<i32>} : memref<288x384xbf16, #tpu.memory_space<vmem>>, vector<16x128xbf16>,
    %240 = vector.extract_strided_slice %227 {offsets = [108, 0], sizes = [16, 128], strides = [1, 1]} : vector<288x128xbf16> to vector<16x128xbf16>
    %c96_179 = arith.constant 96 : index
    %c0_180 = arith.constant 0 : index
    %241 = vector.load %arg16[%c96_179, %c0_180] : memref<288x384xbf16, #tpu.memory_space<vmem>>, vector<16x128xbf16>
    tpu.vector_store %arg16[%c96_179, %c0_180], %240 {strides = array<i32>} : memref<288x384xbf16, #tpu.memory_space<vmem>>, vector<16x128xbf16>,
    %242 = vector.extract_strided_slice %227 {offsets = [126, 0], sizes = [16, 128], strides = [1, 1]} : vector<288x128xbf16> to vector<16x128xbf16>
    %c112 = arith.constant 112 : index
    %c0_181 = arith.constant 0 : index
    %243 = vector.load %arg16[%c112, %c0_181] : memref<288x384xbf16, #tpu.memory_space<vmem>>, vector<16x128xbf16>
    tpu.vector_store %arg16[%c112, %c0_181], %242 {strides = array<i32>} : memref<288x384xbf16, #tpu.memory_space<vmem>>, vector<16x128xbf16>,
    %244 = vector.extract_strided_slice %227 {offsets = [144, 0], sizes = [16, 128], strides = [1, 1]} : vector<288x128xbf16> to vector<16x128xbf16>
    %c128_182 = arith.constant 128 : index
    %c0_183 = arith.constant 0 : index
    %245 = vector.load %arg16[%c128_182, %c0_183] : memref<288x384xbf16, #tpu.memory_space<vmem>>, vector<16x128xbf16>
    tpu.vector_store %arg16[%c128_182, %c0_183], %244 {strides = array<i32>} : memref<288x384xbf16, #tpu.memory_space<vmem>>, vector<16x128xbf16>,
    %246 = vector.extract_strided_slice %227 {offsets = [162, 0], sizes = [16, 128], strides = [1, 1]} : vector<288x128xbf16> to vector<16x128xbf16>
    %c144 = arith.constant 144 : index
    %c0_184 = arith.constant 0 : index
    %247 = vector.load %arg16[%c144, %c0_184] : memref<288x384xbf16, #tpu.memory_space<vmem>>, vector<16x128xbf16>
    tpu.vector_store %arg16[%c144, %c0_184], %246 {strides = array<i32>} : memref<288x384xbf16, #tpu.memory_space<vmem>>, vector<16x128xbf16>,
    %248 = vector.extract_strided_slice %227 {offsets = [180, 0], sizes = [16, 128], strides = [1, 1]} : vector<288x128xbf16> to vector<16x128xbf16>
    %c160_185 = arith.constant 160 : index
    %c0_186 = arith.constant 0 : index
    %249 = vector.load %arg16[%c160_185, %c0_186] : memref<288x384xbf16, #tpu.memory_space<vmem>>, vector<16x128xbf16>
    tpu.vector_store %arg16[%c160_185, %c0_186], %248 {strides = array<i32>} : memref<288x384xbf16, #tpu.memory_space<vmem>>, vector<16x128xbf16>,
    %250 = vector.extract_strided_slice %227 {offsets = [198, 0], sizes = [16, 128], strides = [1, 1]} : vector<288x128xbf16> to vector<16x128xbf16>
    %c176 = arith.constant 176 : index
    %c0_187 = arith.constant 0 : index
    %251 = vector.load %arg16[%c176, %c0_187] : memref<288x384xbf16, #tpu.memory_space<vmem>>, vector<16x128xbf16>
    tpu.vector_store %arg16[%c176, %c0_187], %250 {strides = array<i32>} : memref<288x384xbf16, #tpu.memory_space<vmem>>, vector<16x128xbf16>,
    %252 = vector.extract_strided_slice %227 {offsets = [216, 0], sizes = [16, 128], strides = [1, 1]} : vector<288x128xbf16> to vector<16x128xbf16>
    %c192_188 = arith.constant 192 : index
    %c0_189 = arith.constant 0 : index
    %253 = vector.load %arg16[%c192_188, %c0_189] : memref<288x384xbf16, #tpu.memory_space<vmem>>, vector<16x128xbf16>
    tpu.vector_store %arg16[%c192_188, %c0_189], %252 {strides = array<i32>} : memref<288x384xbf16, #tpu.memory_space<vmem>>, vector<16x128xbf16>,
    %254 = vector.extract_strided_slice %227 {offsets = [234, 0], sizes = [16, 128], strides = [1, 1]} : vector<288x128xbf16> to vector<16x128xbf16>
    %c208 = arith.constant 208 : index
    %c0_190 = arith.constant 0 : index
    %255 = vector.load %arg16[%c208, %c0_190] : memref<288x384xbf16, #tpu.memory_space<vmem>>, vector<16x128xbf16>
    tpu.vector_store %arg16[%c208, %c0_190], %254 {strides = array<i32>} : memref<288x384xbf16, #tpu.memory_space<vmem>>, vector<16x128xbf16>,
    %256 = vector.extract_strided_slice %227 {offsets = [252, 0], sizes = [16, 128], strides = [1, 1]} : vector<288x128xbf16> to vector<16x128xbf16>
    %c224_191 = arith.constant 224 : index
    %c0_192 = arith.constant 0 : index
    %257 = vector.load %arg16[%c224_191, %c0_192] : memref<288x384xbf16, #tpu.memory_space<vmem>>, vector<16x128xbf16>
    tpu.vector_store %arg16[%c224_191, %c0_192], %256 {strides = array<i32>} : memref<288x384xbf16, #tpu.memory_space<vmem>>, vector<16x128xbf16>,
    %258 = vector.extract_strided_slice %227 {offsets = [270, 0], sizes = [16, 128], strides = [1, 1]} : vector<288x128xbf16> to vector<16x128xbf16>
    %c240 = arith.constant 240 : index
    %c0_193 = arith.constant 0 : index
    %259 = vector.load %arg16[%c240, %c0_193] : memref<288x384xbf16, #tpu.memory_space<vmem>>, vector<16x128xbf16>
    tpu.vector_store %arg16[%c240, %c0_193], %258 {strides = array<i32>} : memref<288x384xbf16, #tpu.memory_space<vmem>>, vector<16x128xbf16>,
    %c0_194 = arith.constant 0 : index
    %c0_195 = arith.constant 0 : index
    %260 = vector.load %arg16[%c0_194, %c0_195] : memref<288x384xbf16, #tpu.memory_space<vmem>>, vector<256x128xbf16>
    %c0_196 = arith.constant 0 : index
    %c0_197 = arith.constant 0 : index
    %261 = vector.load %arg5[%c0_196, %c0_197] : memref<128x128xbf16, #tpu.memory_space<vmem>>, vector<128x128xbf16>
    %cst_198 = arith.constant dense<0.000000e+00> : vector<256x128xf32>
    %262 = tpu.matmul %260, %261, %cst_198 {dimension_numbers = #tpu.dot_dimension_numbers<[1], [0], [0], [1], [0, 0, 1, 1], [], []>} : vector<256x128xbf16>, vector<128x128xbf16>, vector<256x128xf32> -> vector<256x128xf32>
    %c0_199 = arith.constant 0 : index
    %c0_200 = arith.constant 0 : index
    %263 = vector.load %arg15[%c0_199, %c0_200] : memref<256x128xf32, #tpu.memory_space<vmem>>, vector<256x128xf32>
    tpu.vector_store %arg15[%c0_199, %c0_200], %262 {strides = array<i32>} : memref<256x128xf32, #tpu.memory_space<vmem>>, vector<256x128xf32>,
    return
  }
}

</mosaic_0001>

<bundles_post_ra>
// kernel: _lambda_.1
= control target key start
LH: loop header
LB: loop body
LE: loop exit
PB: predicated region body
PF: predicated region fallthrough
CT: control target
= control target key end

     0   :  { %20 = vsyncpa [#allocation6], 0  ;;  %s8850_s0 = inlined_call_operand.vmem [shape: bf16[24,128], index: 0, kind: input, shape index: {}]   ;;  %s8851_s1 = inlined_call_operand.hbm [shape: bf16[128,128], index: 1, kind: input, shape index: {}]   ;;  %s8852_s2 = inlined_call_operand.hbm [shape: bf16[384,128], index: 2, kind: input, shape index: {}]   ;;  %s8853_s3 = inlined_call_operand.hbm [shape: bf16[384,128], index: 3, kind: input, shape index: {}]   ;;  %s8854_s4 = inlined_call_operand.hbm [shape: bf16[384,128], index: 4, kind: input, shape index: {}]   ;;  %s8855_s5 = inlined_call_operand.hbm [shape: bf16[128,128], index: 5, kind: input, shape index: {}]   ;;  %s8856_s6 = inlined_call_operand.hbm [shape: bf16[88,24], index: 6, kind: input, shape index: {}]   ;;  %s8857_s7 = inlined_call_operand.vmem [shape: bf16[176,64], index: 7, kind: input, shape index: {}]   ;;  %s8858_s8 = inlined_call_operand.vmem [shape: bf16[328,144], index: 8, kind: input, shape index: {}]   ;;  %s8859_s9 = inlined_call_operand.hbm [shape: f32[24,1], index: 9, kind: input, shape index: {}]   ;;  %s8860_s10 = inlined_call_operand.hbm [shape: f32[64,1], index: 10, kind: input, shape index: {}]   ;;  %s8861_s11 = inlined_call_operand.hbm [shape: f32[144,1], index: 11, kind: input, shape index: {}]   ;;  %s8862_s12 = inlined_call_operand.hbm [shape: f32[288,1], index: 12, kind: input, shape index: {}]   ;;  %s8863_s13 = inlined_call_operand.vmem [shape: f32[4,128], index: 13, kind: input, shape index: {}]   ;;  %s8864_s14 = inlined_call_operand.vmem [shape: f32[4,128], index: 14, kind: input, shape index: {}]   ;;  %s8865_s15 = inlined_call_operand.vmem [shape: f32[256,128], index: 15, kind: output, shape index: {}]  }
   0x1   :  { %21 = vsyncpa [#allocation8], 0 }
   0x2   :  { %22 = vsyncpa [#allocation11], 0 }
   0x3   :  { %23 = vsyncpa [#allocation14], 0 }
   0x4   :  { %24 = vsyncpa [#allocation17], 0 }
   0x5   :  { %25 = vsyncpa [#allocation20], 0  ;;  %s7076_s18 = smov [#allocation7]   ;;  %s7077_s20 = smov [#allocation10]  }
   0x6   :  { %s45_s19 = sshll.u32 %s7076_s18, 4  ;;  %s69_s21 = sshll.u32 %s7077_s20, 4  ;;  %s46_s19 = int_to_ptr.vmem [resolvable:$true] %s45_s19  ;;  %s7175_s21 = int_to_ptr.vmem [resolvable:$true] %s69_s21 }
   0x7   :  { %s6844_s24 = scalar_lea.hbm %s8852_s2, 3072 }
   0x8   :  { %p6845_p0 = scmp.ne.s32.totalorder %s8852_s2, %s6844_s24  ;;  %p6848_p1 = scmp.lt.u32.totalorder %s6844_s24, %s8852_s2 }
   0xa   :  { %p6850_p2 = pnand %p6848_p1, %p6845_p0 }
   0xc   :  { %6853 = shalt.err (!%p6850_p2)
}
   0xd   :  { %s6854_s29 = scalar_lea.vmem %s46_s19, 3072  ;;  %p6859_p4 = scmp.lt.s32.totalorder %s46_s19, %s46_s19 }
   0xe   :  { %p6855_p3 = scmp.ne.s32.totalorder %s46_s19, %s6854_s29  ;;  %p6860_p5 = scmp.lt.s32.totalorder %s6854_s29, %s6854_s29 }
  0x10   :  { %p6861_p6 = por %p6860_p5, %p6859_p4 }
  0x12   :  { %p6862_p7 = pnand %p6861_p6, %p6855_p3 }
  0x14   :  { %6865 = shalt.err (!%p6862_p7)
}
  0x15   :  { %s7078_s30 = smov 64   ;;  %s7079_s16 = smov 4  }
  0x16   :  { %51 = dma.hbm_to_vmem [thread:$0]  %s8852_s2, 3072, %s46_s19, [#allocation8], %s7078_s30, %s7078_s30, %s7079_s16  }
  0x17   :  { %s6866_s23 = scalar_lea.hbm %s8854_s4, 3072 }
  0x18   :  { %p6867_p8 = scmp.ne.s32.totalorder %s8854_s4, %s6866_s23  ;;  %p6870_p9 = scmp.lt.u32.totalorder %s6866_s23, %s8854_s4 }
  0x1a   :  { %p6872_p10 = pnand %p6870_p9, %p6867_p8 }
  0x1c   :  { %6875 = shalt.err (!%p6872_p10)
}
  0x1d   :  { %s6876_s28 = scalar_lea.vmem %s7175_s21, 3072  ;;  %p6881_p12 = scmp.lt.s32.totalorder %s7175_s21, %s7175_s21 }
  0x1e   :  { %p6877_p11 = scmp.ne.s32.totalorder %s7175_s21, %s6876_s28  ;;  %p6882_p13 = scmp.lt.s32.totalorder %s6876_s28, %s6876_s28 }
  0x20   :  { %p6883_p0 = por %p6882_p13, %p6881_p12 }
  0x22   :  { %p6884_p1 = pnand %p6883_p0, %p6877_p11 }
  0x24   :  { %6887 = shalt.err (!%p6884_p1)
}
  0x25   :  { %75 = dma.hbm_to_vmem [thread:$0]  %s8854_s4, 3072, %s7175_s21, [#allocation11], %s7078_s30, %s7078_s30, %s7079_s16  }
  0x26   :  { %s7080_s29 = smov [#allocation13]   ;;  %s6888_s22 = scalar_lea.hbm %s8856_s6, 704 }
  0x27   :  { %s93_s17 = sshll.u32 %s7080_s29, 4  ;;  %p6889_p2 = scmp.ne.s32.totalorder %s8856_s6, %s6888_s22  ;;  %s94_s17 = int_to_ptr.vmem [resolvable:$true] %s93_s17 }
  0x28   :  { %p6892_p3 = scmp.lt.u32.totalorder %s6888_s22, %s8856_s6 }
  0x2a   :  { %p6894_p4 = pnand %p6892_p3, %p6889_p2 }
  0x2c   :  { %6897 = shalt.err (!%p6894_p4)
}
  0x2d   :  { %s6898_s27 = scalar_lea.vmem %s94_s17, 704  ;;  %p6903_p6 = scmp.lt.s32.totalorder %s94_s17, %s94_s17 }
  0x2e   :  { %p6899_p5 = scmp.ne.s32.totalorder %s94_s17, %s6898_s27  ;;  %p6904_p7 = scmp.lt.s32.totalorder %s6898_s27, %s6898_s27 }
  0x30   :  { %p6905_p8 = por %p6904_p7, %p6903_p6 }
  0x32   :  { %p6906_p9 = pnand %p6905_p8, %p6899_p5 }
  0x34   :  { %6909 = shalt.err (!%p6906_p9)
}
  0x35   :  { %99 = dma.hbm_to_vmem [thread:$0]  %s8856_s6, 704, %s94_s17, [#allocation14], %s7078_s30, %s7078_s30, %s7079_s16  }
  0x36   :  { %s7081_s28 = smov [#allocation16]   ;;  %s7082_s19 = smov [#allocation5]  }
  0x37   :  { %s121_s2 = sshll.u32 %s7081_s28, 4  ;;  %s33_s29 = sshll.u32 %s7082_s19, 4  ;;  %s122_s2 = int_to_ptr.vmem [resolvable:$true] %s121_s2  ;;  %s34_s29 = int_to_ptr.vmem [resolvable:$true] %s33_s29 }
  0x38   :  { %s6910_s22 = scalar_lea.hbm %s8860_s10, 1024 }
  0x39   :  { %p6911_p10 = scmp.ne.s32.totalorder %s8860_s10, %s6910_s22  ;;  %p6914_p11 = scmp.lt.u32.totalorder %s6910_s22, %s8860_s10 }
  0x3b   :  { %p6916_p12 = pnand %p6914_p11, %p6911_p10 }
  0x3d   :  { %6919 = shalt.err (!%p6916_p12)
}
  0x3e   :  { %s6920_s6 = scalar_lea.vmem %s122_s2, 1024  ;;  %p6925_p0 = scmp.lt.s32.totalorder %s122_s2, %s122_s2 }
  0x3f   :  { %p6921_p13 = scmp.ne.s32.totalorder %s122_s2, %s6920_s6  ;;  %p6926_p1 = scmp.lt.s32.totalorder %s6920_s6, %s6920_s6 }
  0x41   :  { %p6927_p2 = por %p6926_p1, %p6925_p0 }
  0x43   :  { %p6928_p3 = pnand %p6927_p2, %p6921_p13 }
  0x45   :  { %6931 = shalt.err (!%p6928_p3)
}
  0x46   :  { %s7083_s17 = smov 128   ;;  %s7084_s27 = smov 8  }
  0x47   :  { %127 = dma.hbm_to_vmem [thread:$0]  %s8860_s10, 1024, %s122_s2, [#allocation17], %s7083_s17, %s7083_s17, %s7084_s27  }
  0x48   :  { %s6932_s18 = scalar_lea.hbm %s8851_s1, 1024 }
  0x49   :  { %p6933_p4 = scmp.ne.s32.totalorder %s8851_s1, %s6932_s18  ;;  %p6936_p5 = scmp.lt.u32.totalorder %s6932_s18, %s8851_s1 }
  0x4b   :  { %p6938_p6 = pnand %p6936_p5, %p6933_p4 }
  0x4d   :  { %6941 = shalt.err (!%p6938_p6)
}
  0x4e   :  { %s6942_s25 = scalar_lea.vmem %s34_s29, 1024  ;;  %p6947_p8 = scmp.lt.s32.totalorder %s34_s29, %s34_s29 }
  0x4f   :  { %p6943_p7 = scmp.ne.s32.totalorder %s34_s29, %s6942_s25  ;;  %p6948_p9 = scmp.lt.s32.totalorder %s6942_s25, %s6942_s25 }
  0x51   :  { %p6949_p10 = por %p6948_p9, %p6947_p8 }
  0x53   :  { %p6950_p11 = pnand %p6949_p10, %p6943_p7 }
  0x55   :  { %6953 = shalt.err (!%p6950_p11)
}
  0x56   :  { %39 = dma.hbm_to_vmem [thread:$0]  %s8851_s1, 1024, %s34_s29, [#allocation6], %s7078_s30, %s7078_s30, %s7079_s16  }
  0x57   :  { %s7085_s26 = smov [#allocation9]   ;;  %s7086_s4 = smov [#allocation12]  }
  0x58   :  { %s57_s6 = sshll.u32 %s7085_s26, 4  ;;  %s81_s21 = sshll.u32 %s7086_s4, 4  ;;  %s58_s6 = int_to_ptr.vmem [resolvable:$true] %s57_s6  ;;  %s82_s21 = int_to_ptr.vmem [resolvable:$true] %s81_s21 }
  0x59   :  { %s6954_s18 = scalar_lea.hbm %s8853_s3, 3072 }
  0x5a   :  { %p6955_p12 = scmp.ne.s32.totalorder %s8853_s3, %s6954_s18  ;;  %p6958_p13 = scmp.lt.u32.totalorder %s6954_s18, %s8853_s3 }
  0x5c   :  { %p6960_p0 = pnand %p6958_p13, %p6955_p12 }
  0x5e   :  { %6963 = shalt.err (!%p6960_p0)
}
  0x5f   :  { %s6964_s1 = scalar_lea.vmem %s58_s6, 3072  ;;  %p6969_p2 = scmp.lt.s32.totalorder %s58_s6, %s58_s6 }
  0x60   :  { %p6965_p1 = scmp.ne.s32.totalorder %s58_s6, %s6964_s1  ;;  %p6970_p3 = scmp.lt.s32.totalorder %s6964_s1, %s6964_s1 }
  0x62   :  { %p6971_p4 = por %p6970_p3, %p6969_p2 }
  0x64   :  { %p6972_p5 = pnand %p6971_p4, %p6965_p1 }
  0x66   :  { %6975 = shalt.err (!%p6972_p5)
}
  0x67   :  { %63 = dma.hbm_to_vmem [thread:$0]  %s8853_s3, 3072, %s58_s6, [#allocation8], %s7078_s30, %s7078_s30, %s7079_s16  }
  0x68   :  { %s6976_s26 = scalar_lea.hbm %s8855_s5, 1024 }
  0x69   :  { %p6977_p6 = scmp.ne.s32.totalorder %s8855_s5, %s6976_s26  ;;  %p6980_p7 = scmp.lt.u32.totalorder %s6976_s26, %s8855_s5 }
  0x6b   :  { %p6982_p8 = pnand %p6980_p7, %p6977_p6 }
  0x6d   :  { %6985 = shalt.err (!%p6982_p8)
}
  0x6e   :  { %s6986_s20 = scalar_lea.vmem %s82_s21, 1024  ;;  %p6991_p10 = scmp.lt.s32.totalorder %s82_s21, %s82_s21 }
  0x6f   :  { %p6987_p9 = scmp.ne.s32.totalorder %s82_s21, %s6986_s20  ;;  %p6992_p11 = scmp.lt.s32.totalorder %s6986_s20, %s6986_s20 }
  0x71   :  { %p6993_p12 = por %p6992_p11, %p6991_p10 }
  0x73   :  { %p6994_p13 = pnand %p6993_p12, %p6987_p9 }
  0x75   :  { %6997 = shalt.err (!%p6994_p13)
}
  0x76   :  { %87 = dma.hbm_to_vmem [thread:$0]  %s8855_s5, 1024, %s82_s21, [#allocation11], %s7078_s30, %s7078_s30, %s7079_s16  }
  0x77   :  { %s7087_s22 = smov [#allocation15]   ;;  %s7088_s24 = smov [#allocation18]  }
  0x78   :  { %s109_s23 = sshll.u32 %s7087_s22, 4  ;;  %s133_s1 = sshll.u32 %s7088_s24, 4  ;;  %s110_s23 = int_to_ptr.vmem [resolvable:$true] %s109_s23  ;;  %s134_s1 = int_to_ptr.vmem [resolvable:$true] %s133_s1 }
  0x79   :  { %s6998_s10 = scalar_lea.hbm %s8859_s9, 384 }
  0x7a   :  { %p6999_p0 = scmp.ne.s32.totalorder %s8859_s9, %s6998_s10  ;;  %p7002_p1 = scmp.lt.u32.totalorder %s6998_s10, %s8859_s9 }
  0x7c   :  { %p7004_p2 = pnand %p7002_p1, %p6999_p0 }
  0x7e   :  { %7007 = shalt.err (!%p7004_p2)
}
  0x7f   :  { %s7008_s5 = scalar_lea.vmem %s110_s23, 384  ;;  %p7013_p4 = scmp.lt.s32.totalorder %s110_s23, %s110_s23 }
  0x80   :  { %p7009_p3 = scmp.ne.s32.totalorder %s110_s23, %s7008_s5  ;;  %p7014_p5 = scmp.lt.s32.totalorder %s7008_s5, %s7008_s5 }
  0x82   :  { %p7015_p6 = por %p7014_p5, %p7013_p4 }
  0x84   :  { %p7016_p7 = pnand %p7015_p6, %p7009_p3 }
  0x86   :  { %7019 = shalt.err (!%p7016_p7)
}
  0x87   :  { %115 = dma.hbm_to_vmem [thread:$0]  %s8859_s9, 384, %s110_s23, [#allocation14], %s7083_s17, %s7083_s17, %s7084_s27  }
  0x88   :  { %s7020_s20 = scalar_lea.hbm %s8861_s11, 2304 }
  0x89   :  { %p7021_p8 = scmp.ne.s32.totalorder %s8861_s11, %s7020_s20  ;;  %p7024_p9 = scmp.lt.u32.totalorder %s7020_s20, %s8861_s11 }
  0x8b   :  { %p7026_p10 = pnand %p7024_p9, %p7021_p8 }
  0x8d   :  { %7029 = shalt.err (!%p7026_p10)
}
  0x8e   :  { %s7030_s29 = scalar_lea.vmem %s134_s1, 2304  ;;  %p7035_p12 = scmp.lt.s32.totalorder %s134_s1, %s134_s1 }
  0x8f   :  { %p7031_p11 = scmp.ne.s32.totalorder %s134_s1, %s7030_s29  ;;  %p7036_p13 = scmp.lt.s32.totalorder %s7030_s29, %s7030_s29 }
  0x91   :  { %p7037_p0 = por %p7036_p13, %p7035_p12 }
  0x93   :  { %p7038_p1 = pnand %p7037_p0, %p7031_p11 }
  0x95   :  { %7041 = shalt.err (!%p7038_p1)
}
  0x96   :  { %139 = dma.hbm_to_vmem [thread:$0]  %s8861_s11, 2304, %s134_s1, [#allocation17], %s7083_s17, %s7083_s17, %s7084_s27  }
  0x97   :  { %s7089_s25 = smov [#allocation19]   ;;  %s7042_s4 = scalar_lea.hbm %s8862_s12, 4608 }
  0x98   :  { %s145_s10 = sshll.u32 %s7089_s25, 4  ;;  %p7043_p2 = scmp.ne.s32.totalorder %s8862_s12, %s7042_s4  ;;  %s146_s10 = int_to_ptr.vmem [resolvable:$true] %s145_s10 }
  0x99   :  { %p7046_p3 = scmp.lt.u32.totalorder %s7042_s4, %s8862_s12 }
  0x9b   :  { %p7048_p4 = pnand %p7046_p3, %p7043_p2 }
  0x9d   :  { %7051 = shalt.err (!%p7048_p4)
}
  0x9e   :  { %s7052_s19 = scalar_lea.vmem %s146_s10, 4608  ;;  %p7057_p6 = scmp.lt.s32.totalorder %s146_s10, %s146_s10 }
  0x9f   :  { %p7053_p5 = scmp.ne.s32.totalorder %s146_s10, %s7052_s19  ;;  %p7058_p7 = scmp.lt.s32.totalorder %s7052_s19, %s7052_s19 }
  0xa1   :  { %p7059_p8 = por %p7058_p7, %p7057_p6 }
  0xa3   :  { %p7060_p9 = pnand %p7059_p8, %p7053_p5 }
  0xa5   :  { %7063 = shalt.err (!%p7060_p9)
}
  0xa6   :  { %151 = dma.hbm_to_vmem [thread:$0]  %s8862_s12, 4608, %s146_s10, [#allocation20], %s7083_s17, %s7083_s17, %s7084_s27  }
  0xa7   :  { %7064 = dma.done.wait [#allocation6], 1024  }
  0xa8   :  { %7065 = vsyncadd [#allocation6], 4294966272 }
  0xa9   :  { %7066 = dma.done.wait [#allocation8], 6144  }
  0xaa   :  { %7067 = vsyncadd [#allocation8], 4294961152 }
  0xab   :  { %7068 = dma.done.wait [#allocation11], 4096  }
  0xac   :  { %7069 = vsyncadd [#allocation11], 4294963200 }
  0xad   :  { %7070 = dma.done.wait [#allocation14], 1088  }
  0xae   :  { %7071 = vsyncadd [#allocation14], 4294966208 }
  0xaf   :  { %7072 = dma.done.wait [#allocation17], 3328  }
  0xb0   :  { %7073 = vsyncadd [#allocation17], 4294963968 }
  0xb1   :  { %7074 = dma.done.wait [#allocation20], 4608  }
  0xb2   :  { %7075 = vsyncadd [#allocation20], 4294962688  ;;  %v7090_v0 = vmov 0   ;;  %v6664_v1 = vld [vmem:[#allocation5] sm:$0xff]   ;;  %v6665_v2 = vld [vmem:[#allocation5 + $0x8] sm:$0xff]   ;;  %vm476_vm0 = vcmask 195584   ;;  %v421_v54 = vlaneseq }
  0xb3   :  { %6662 = vset.pattern.permute.xlu0 %v7090_v0  ;;  %187 = vst [vmem:[#allocation2] sm:$0xff] %v7090_v0  ;;  %188 = vst [vmem:[#allocation2 + $0x8] sm:$0xff] %v7090_v0  ;;  %6663 = vset.pattern.permute.xlu1 %v7090_v0  ;;  %v6666_v3 = vld [vmem:[#allocation5 + $0x10] sm:$0xff]   ;;  %v6667_v4 = vld [vmem:[#allocation5 + $0x18] sm:$0xff]   ;;  %vm495_vm1 = vcmask 1043456   ;;  %vm602_vm2 = vcmask 261120  }
  0xb4   :  { %189 = vst [vmem:[#allocation2 + $0x10] sm:$0xff] %v7090_v0  ;;  %190 = vst [vmem:[#allocation2 + $0x18] sm:$0xff] %v7090_v0  ;;  %6362 = vmatprep.subr.bf16.mxu0 %v6664_v1  ;;  %v6672_v5 = vld [vmem:[%s8850_s0] sm:$0xff]   ;;  %v369_v6 = vld [vmem:[#allocation15] sm:$0xff]  ;;  %v422_v55 = vshrl.u32 %v421_v54, 7  ;;  %s7091_s22 = smov 32  }
  0xb5   :  { %191 = vst [vmem:[#allocation2 + $0x20] sm:$0xff] %v7090_v0  ;;  %192 = vst [vmem:[#allocation2 + $0x28] sm:$0xff] %v7090_v0  ;;  %6363 = vmatpush3.bf16.msra.mxu0 %v6664_v1  ;;  %v6668_v7 = vld [vmem:[#allocation5 + $0x20] sm:$0xff]   ;;  %6378 = vmatprep.mubr.bf16.mxu0 %v6672_v5  ;;  %v370_v8 = vld [vmem:[#allocation15 + $0x8] sm:$0xff]  ;;  %s7092_s24 = smov 96   ;;  %vm640_vm5 = vcmask 523520  }
  0xb6   :  { %193 = vst [vmem:[#allocation2 + $0x30] sm:$0xff] %v7090_v0  ;;  %194 = vst [vmem:[#allocation2 + $0x38] sm:$0xff] %v7090_v0  ;;  %6364 = vmatprep.subr.bf16.mxu0 %v6665_v2  ;;  %374 = vperm.xlu0 %6662, %v369_v6   ;;  %v371_v9 = vld [vmem:[#allocation15 + $0x10] sm:$0xff]  ;;  %v6669_v10 = vld [vmem:[#allocation5 + $0x28] sm:$0xff]   ;;  %v7342_v57 = vsub.s32 0, %v422_v55  ;;  %vm677_vm6 = vcmask 785920  }
  0xb7   :  { %195 = vst [vmem:[#allocation2 + $0x40] sm:$0xff] %v7090_v0  ;;  %199 = vst [vmem:[#allocation2 + $0x60] sm:$0xff] %v7090_v0  ;;  %384 = vperm.xlu1 %6663, %v371_v9   ;;  %v6670_v11 = vld [vmem:[#allocation5 + $0x30] sm:$0xff]   ;;  %v6671_v12 = vld [vmem:[#allocation5 + $0x38] sm:$0xff]   ;;  %vm607_vm3 = vsmask.f32 7424 }
  0xb8   :  { %200 = vst [vmem:[#allocation2 + $0x68] sm:$0xff] %v7090_v0  ;;  %201 = vst [vmem:[#allocation2 + $0x70] sm:$0xff] %v7090_v0  ;;  %v6673_v13 = vld [vmem:[%s8850_s0 + $0x8] ss:$0 sps:$4 sm:$0xff]   ;;  %v6674_v14 = vld [vmem:[#allocation13] sm:$0xff]   ;;  %vm714_vm7 = vcmask 1048320  }
  0xb9   :  { %202 = vst [vmem:[#allocation2 + $0x78] sm:$0xff] %v7090_v0  ;;  %203 = vst [vmem:[#allocation2 + $0x80] sm:$0xff] %v7090_v0  ;;  %6365 = vmatpush3.bf16.msra.mxu0 %v6665_v2  ;;  %6386 = vmatprep.mubr.msk.bf16.mxu1 %vm476_vm0, %v6674_v14  ;;  %v6680_v15 = vld [vmem:[#allocation7 + $0x80] sm:$0xff]   ;;  %v6679_v14 = vld [vmem:[#allocation13 + $0x28] ss:$0 sps:$4 sm:$0xff]   ;;  %vm7094_vm11 = vmmov 0  }
  0xba   :  { %204 = vst [vmem:[#allocation2 + $0x88] sm:$0xff] %v7090_v0  ;;  %205 = vst [vmem:[#allocation2 + $0x90] sm:$0xff] %v7090_v0  ;;  %6366 = vmatprep.subr.bf16.mxu0 %v6666_v3  ;;  %379 = vperm.xlu0 %6662, %v370_v8   ;;  %v416_v56 = vld [vmem:[%s8863_s13] sm:$0x1]  ;;  %v6700_v55 = vld [vmem:[#allocation7 + $0x70] sm:$0xff]   ;;  %vm1410_vm12 = vcmask 523264  }
  0xbb   :  { %206 = vst [vmem:[#allocation2 + $0x98] sm:$0xff] %v7090_v0  ;;  %207 = vst [vmem:[#allocation2 + $0xa0] sm:$0xff] %v7090_v0  ;;  %v418_v60 = vld [vmem:[%s8864_s14] sm:$0x1]  ;;  %vm3074_vm13 = vcmask 130048   ;;  %vm5620_vm14 = vcmask 1040384  }
  0xbc   :  { %208 = vst [vmem:[#allocation2 + $0xa8] sm:$0xff] %v7090_v0  ;;  %209 = vst [vmem:[#allocation2 + $0xb0] sm:$0xff] %v7090_v0  ;;  %vm5578_vm15 = vcmask 1046528  }
  0xbd   :  { %210 = vst [vmem:[#allocation2 + $0xb8] sm:$0xff] %v7090_v0  ;;  %214 = vst [vmem:[#allocation2 + $0xd8] sm:$0xff] %v7090_v0  ;;  %6367 = vmatpush3.bf16.msra.mxu0 %v6666_v3 }
  0xbe   :  { %215 = vst [vmem:[#allocation2 + $0xe0] sm:$0xff] %v7090_v0  ;;  %216 = vst [vmem:[#allocation2 + $0xe8] sm:$0xff] %v7090_v0  ;;  %6368 = vmatprep.subr.bf16.mxu0 %v6667_v4 }
  0xbf   :  { %217 = vst [vmem:[#allocation2 + $0xf0] sm:$0xff] %v7090_v0  ;;  %218 = vst [vmem:[#allocation2 + $0xf8] sm:$0xff] %v7090_v0 }
  0xc0   :  { %219 = vst [vmem:[#allocation2 + $0x100] sm:$0xff] %v7090_v0  ;;  %220 = vst [vmem:[#allocation2 + $0x108] sm:$0xff] %v7090_v0 }
  0xc1   :  { %221 = vst [vmem:[#allocation2 + $0x110] sm:$0xff] %v7090_v0  ;;  %222 = vst [vmem:[#allocation2 + $0x118] sm:$0xff] %v7090_v0  ;;  %6369 = vmatpush3.bf16.msra.mxu0 %v6667_v4 }
  0xc2   :  { %223 = vst [vmem:[#allocation2 + $0x120] sm:$0xff] %v7090_v0  ;;  %224 = vst [vmem:[#allocation2 + $0x128] sm:$0xff] %v7090_v0  ;;  %6370 = vmatprep.subr.bf16.mxu0 %v6668_v7 }
  0xc3   :  { %225 = vst [vmem:[#allocation2 + $0x130] sm:$0xff] %v7090_v0  ;;  %226 = vst [vmem:[#allocation2 + $0x138] sm:$0xff] %v7090_v0 }
  0xc4   :  { %227 = vst [vmem:[#allocation2 + $0x140] sm:$0xff] %v7090_v0  ;;  %228 = vst [vmem:[#allocation2 + $0x148] sm:$0xff] %v7090_v0 }
  0xc5   :  { %229 = vst [vmem:[#allocation2 + $0x150] sm:$0xff] %v7090_v0  ;;  %230 = vst [vmem:[#allocation2 + $0x158] sm:$0xff] %v7090_v0  ;;  %6371 = vmatpush3.bf16.msra.mxu0 %v6668_v7 }
  0xc6   :  { %231 = vst [vmem:[#allocation2 + $0x160] sm:$0xff] %v7090_v0  ;;  %232 = vst [vmem:[#allocation2 + $0x168] sm:$0xff] %v7090_v0  ;;  %6372 = vmatprep.subr.bf16.mxu0 %v6669_v10 }
  0xc7   :  { %233 = vst [vmem:[#allocation2 + $0x170] sm:$0xff] %v7090_v0  ;;  %234 = vst [vmem:[#allocation2 + $0x178] sm:$0xff] %v7090_v0 }
  0xc8   :  { %235 = vst [vmem:[#allocation2 + $0x180] sm:$0xff] %v7090_v0  ;;  %236 = vst [vmem:[#allocation2 + $0x188] sm:$0xff] %v7090_v0 }
  0xc9   :  { %237 = vst [vmem:[#allocation2 + $0x190] sm:$0xff] %v7090_v0  ;;  %238 = vst [vmem:[#allocation2 + $0x198] sm:$0xff] %v7090_v0  ;;  %6373 = vmatpush3.bf16.msra.mxu0 %v6669_v10  ;;  %v6675_v10 = vld [vmem:[#allocation13 + $0x8] sm:$0xff]  }
  0xca   :  { %239 = vst [vmem:[#allocation2 + $0x1a0] sm:$0xff] %v7090_v0  ;;  %240 = vst [vmem:[#allocation2 + $0x1a8] sm:$0xff] %v7090_v0  ;;  %6374 = vmatprep.subr.bf16.mxu0 %v6670_v11 }
  0xcb   :  { %vm7381_vm4 = vmand %vm602_vm2, %vm607_vm3 }
  0xcc   :  { %vm7430_vm8 = vmand %vm640_vm5, %vm607_vm3 }
  0xcd   :  { %6375 = vmatpush3.bf16.msra.mxu0 %v6670_v11  ;;  %v6676_v11 = vld [vmem:[#allocation13 + $0x10] sm:$0xff]   ;;  %vm7437_vm9 = vmand %vm677_vm6, %vm607_vm3 }
  0xce   :  { %6376 = vmatprep.subr.bf16.mxu0 %v6671_v12  ;;  %vm7447_vm10 = vmand %vm714_vm7, %vm607_vm3  ;;  %vm5606_vm3 = vcmask 1042432  }
  0xd1   :  { %6377 = vmatpush3.bf16.msra.mxu0 %v6671_v12  ;;  %v6677_v12 = vld [vmem:[#allocation13 + $0x18] sm:$0xff]  }
  0xd2   :  { %6398 = vmatprep.subr.bf16.mxu0 %v6680_v15 }
  0xd4   :  { %6379 = vmatmul.mubr.bf16.vlgmr.msra.gmra.mrb[0].mxu0 %v6673_v13  ;;  %v6678_v13 = vld [vmem:[#allocation13 + $0x20] sm:$0xff]  }
  0xd5   :  { %6399 = vmatpush3.bf16.msra.mxu0 %v6680_v15  ;;  %v6681_v15 = vld [vmem:[#allocation7 + $0x88] sm:$0xff]  }
  0xd6   :  { %6400 = vmatprep.subr.bf16.mxu0 %v6681_v15 }
  0xd9   :  { %6401 = vmatpush3.bf16.msra.mxu0 %v6681_v15 }
 0x135   :  { %v375_v16 = vpop.permute.xlu0 %374 }
 0x136   :  { %v385_v22 = vpop.permute.xlu1 %384 }
 0x139   :  { %v380_v26 = vpop.permute.xlu0 %379 }
 0x1a7   :  { %v6380_v17 = vpop.f32.mrb[0].mxu0 }
 0x1a8   :  { %v352_v18 = vpop.f32.mrb[1].mxu0  ;;  %v368_v19 = vmax.f32 %v6380_v17, 0.0  ;;  %v6683_v17 = vld [vmem:[#allocation7 + $0x98] sm:$0xff]  }
 0x1a9   :  { %v366_v20 = vmax.f32 %v352_v18, 0.0  ;;  %v6381_v21 = vpop.f32.mrb[2].mxu0  ;;  %v6684_v18 = vld [vmem:[#allocation7 + $0xa0] sm:$0xff]  }
 0x1aa   :  { %v355_v23 = vpop.f32.mrb[3].mxu0  ;;  %v389_v27 = vmul.f32 %v385_v22, %v368_v19  ;;  %v6687_v21 = vld [vmem:[#allocation7 + $0xb8] sm:$0xff]   ;;  %v6688_v22 = vld [vmem:[#allocation7 + $0x40] sm:$0xff]  }
 0x1ab   :  { %v387_v24 = vmul.f32 %v375_v16, %v366_v20  ;;  %v367_v25 = vmax.f32 %v355_v23, 0.0  ;;  %v6682_v16 = vld [vmem:[#allocation7 + $0x90] sm:$0xff]   ;;  %v6689_v23 = vld [vmem:[#allocation7] sm:$0xff]  }
 0x1ac   :  { %v401_v32 = vmul.f32 %v389_v27, %v368_v19  ;;  %6402 = vmatprep.subr.bf16.mxu0 %v6682_v16 }
 0x1ad   :  { %v388_v28 = vmul.f32 %v380_v26, %v367_v25  ;;  %v399_v29 = vmul.f32 %v387_v24, %v366_v20  ;;  %6403 = vmatpush3.bf16.msra.mxu0 %v6682_v16  ;;  %v6692_v26 = vld [vmem:[#allocation7 + $0x50] sm:$0xff]  }
 0x1ae   :  { %6404 = vmatprep.subr.bf16.mxu0 %v6683_v17 }
 0x1af   :  { %v390_v30 = vadd.f32 %v388_v28, %v387_v24  ;;  %v400_v31 = vmul.f32 %v388_v28, %v367_v25  ;;  %v6690_v24 = vld [vmem:[#allocation7 + $0x48] sm:$0xff]   ;;  %v6694_v28 = vld [vmem:[#allocation7 + $0x58] sm:$0xff]  }
 0x1b1   :  { %v391_v33 = vadd.f32 %v390_v30, %v389_v27  ;;  %v402_v34 = vadd.f32 %v400_v31, %v399_v29  ;;  %6405 = vmatpush3.bf16.msra.mxu0 %v6683_v17  ;;  %v6693_v27 = vld [vmem:[#allocation7 + $0x10] sm:$0xff]   ;;  %v6695_v31 = vld [vmem:[#allocation7 + $0x18] sm:$0xff]  }
 0x1b2   :  { %6406 = vmatprep.subr.bf16.mxu0 %v6684_v18  ;;  %v6703_v17 = vld [vmem:[#allocation7 + $0x38] sm:$0xff]  }
 0x1b3   :  { %v392_v35 = vrot.slane %v391_v33, 4  ;;  %v403_v36 = vadd.f32 %v402_v34, %v401_v32  ;;  %v6696_v32 = vld [vmem:[#allocation7 + $0x60] sm:$0xff]  }
 0x1b5   :  { %v393_v37 = vadd.f32 %v392_v35, %v391_v33  ;;  %v404_v38 = vrot.slane %v403_v36, 4  ;;  %6407 = vmatpush3.bf16.msra.mxu0 %v6684_v18 }
 0x1b7   :  { %v394_v39 = vrot.slane %v393_v37, 2  ;;  %v405_v40 = vadd.f32 %v404_v38, %v403_v36  ;;  %v6698_v38 = vld [vmem:[#allocation7 + $0x68] sm:$0xff]  }
 0x1b9   :  { %v395_v41 = vadd.f32 %v394_v39, %v393_v37  ;;  %v406_v42 = vrot.slane %v405_v40, 2  ;;  %v6697_v37 = vld [vmem:[#allocation7 + $0x20] sm:$0xff]  }
 0x1bb   :  { %v396_v43 = vrot.slane %v395_v41, 1  ;;  %v407_v44 = vadd.f32 %v406_v42, %v405_v40 }
 0x1bd   :  { %v397_v45 = vadd.f32 %v396_v43, %v395_v41  ;;  %v408_v46 = vrot.slane %v407_v44, 1  ;;  %v6699_v41 = vld [vmem:[#allocation7 + $0x28] sm:$0xff]  }
 0x1bf   :  { %v398_v47 = vmul.f32 0.020408163, %v397_v45  ;;  %v409_v48 = vadd.f32 %v408_v46, %v407_v44 }
 0x1c1   :  { %v410_v49 = vmul.f32 0.020408163, %v409_v48  ;;  %v411_v50 = vmul.f32 %v398_v47, %v398_v47 }
 0x1c3   :  { %v412_v51 = vsub.f32 %v410_v49, %v411_v50 }
 0x1c5   :  { %v413_v52 = vmax.f32 %v412_v51, 0.0 }
 0x1c7   :  { %v414_v53 = vadd.f32 1e-05, %v413_v52 }
 0x1c9   :  { %6833 = vrsqrt.f32 %v414_v53 }
 0x1d3   :  { %v6834_v58 = vpop.eup %6833 }
 0x1d4   :  { %v417_v59 = vmul.f32 %v6834_v58, %v416_v56  ;;  %v6701_v56 = vld [vmem:[#allocation7 + $0x30] sm:$0xff]   ;;  %v6702_v58 = vld [vmem:[#allocation7 + $0x78] sm:$0xff]  }
 0x1d6   :  { %v424_v61 = vrot.slane %v417_v59, %v7342_v57  ;;  %v419_v62 = vmul.f32 %v417_v59, %v398_v47 }
 0x1d8   :  { %v426_v63 = vmul.f32 %v424_v61, %v367_v25  ;;  %v420_v0 = vsub.f32 %v418_v60, %v419_v62  ;;  %v425_v1 = vmul.f32 %v424_v61, %v366_v20  ;;  %v427_v2 = vmul.f32 %v424_v61, %v368_v19  ;;  %v6685_v19 = vld [vmem:[#allocation7 + $0xa8] sm:$0xff]   ;;  %v6686_v20 = vld [vmem:[#allocation7 + $0xb0] sm:$0xff]  }
 0x1d9   :  { %6408 = vmatprep.subr.bf16.mxu0 %v6685_v19  ;;  %v6691_v25 = vld [vmem:[#allocation7 + $0x8] sm:$0xff]  }
 0x1da   :  { %v431_v3 = vrot.slane %v420_v0, %v7342_v57  ;;  %6409 = vmatpush3.bf16.msra.mxu0 %v6685_v19 }
 0x1db   :  { %6410 = vmatprep.subr.bf16.mxu0 %v6686_v20 }
 0x1dc   :  { %v432_v4 = vadd.f32 %v431_v3, %v425_v1  ;;  %v433_v5 = vadd.f32 %v431_v3, %v426_v63  ;;  %v434_v6 = vadd.f32 %v431_v3, %v427_v2 }
 0x1de   :  { %v446_v7 = vpack.c.bf16 %v433_v5, %v432_v4  ;;  %v447_v8 = vpack.c.bf16 %v434_v6, %v434_v6  ;;  %6411 = vmatpush3.bf16.msra.mxu0 %v6686_v20 }
 0x1df   :  { %6412 = vmatprep.subr.bf16.mxu0 %v6687_v21 }
 0x1e0   :  { %6382 = vmatprep.subr.bf16.mxu1 %v446_v7  ;;  %v497_v9 = vsel %vm495_vm1, %v447_v8, 0 }
 0x1e1   :  { %6383 = vmatpush3.bf16.msra.mxu1 %v446_v7 }
 0x1e2   :  { %6642 = vmatprep.subr.msk.bf16.mxu1 %vm495_vm1, %v447_v8  ;;  %6413 = vmatpush3.bf16.msra.mxu0 %v6687_v21 }
 0x1e5   :  { %6385 = vmatpush3.bf16.msra.mxu1 %v497_v9 }
 0x1e6   :  { %6158 = vmatprep.subr.bf16.mxu1 %v6688_v22 }
 0x1e8   :  { %6387 = vmatmul.mubr.msk.bf16.vlgmr.msra.gmra.mrb[0].mxu1 %vm476_vm0, %v6675_v10 }
 0x1e9   :  { %6390 = vmatprep.mubr.msk.bf16.mxu1 %vm476_vm0, %v6676_v11  ;;  %6159 = vmatpush3.bf16.msra.mxu1 %v6689_v23 }
 0x1ea   :  { %6160 = vmatprep.subr.bf16.mxu1 %v6690_v24 }
 0x1ed   :  { %6161 = vmatpush3.bf16.msra.mxu1 %v6691_v25 }
 0x1ee   :  { %6162 = vmatprep.subr.bf16.mxu1 %v6692_v26 }
 0x1f0   :  { %6391 = vmatmul.mubr.msk.bf16.gmra.mrb[4].mxu1 %vm476_vm0, %v6677_v12 }
 0x1f1   :  { %6394 = vmatprep.mubr.msk.bf16.mxu1 %vm476_vm0, %v6678_v13  ;;  %6163 = vmatpush3.bf16.msra.mxu1 %v6693_v27 }
 0x1f2   :  { %6164 = vmatprep.subr.bf16.mxu1 %v6694_v28 }
 0x1f5   :  { %6165 = vmatpush3.bf16.msra.mxu1 %v6695_v31 }
 0x1f6   :  { %6166 = vmatprep.subr.bf16.mxu1 %v6696_v32 }
 0x1f8   :  { %6395 = vmatmul.mubr.msk.bf16.gmra.mrb[8].mxu1 %vm476_vm0, %v6679_v14  ;;  %vm5585_vm0 = vcmask 1045504  }
 0x1f9   :  { %6167 = vmatpush3.bf16.msra.mxu1 %v6697_v37 }
 0x1fa   :  { %6168 = vmatprep.subr.bf16.mxu1 %v6698_v38 }
 0x1fd   :  { %6169 = vmatpush3.bf16.msra.mxu1 %v6699_v41 }
 0x1fe   :  { %6170 = vmatprep.subr.bf16.mxu1 %v6700_v55 }
 0x201   :  { %6171 = vmatpush3.bf16.msra.mxu1 %v6701_v56 }
 0x202   :  { %6172 = vmatprep.subr.bf16.mxu1 %v6702_v58 }
 0x205   :  { %6173 = vmatpush3.bf16.msra.mxu1 %v6703_v17 }
 0x2bb   :  { %v6388_v29 = vpop.f32.mrb[0].mxu1 }
 0x2bc   :  { %581 = vst [vmem:[#allocation3 + $0x10] sm:$0xff] %v6388_v29  ;;  %v533_v30 = vpop.f32.mrb[1].mxu1 }
 0x2bd   :  { %579 = vst [vmem:[#allocation3] sm:$0xff] %v533_v30  ;;  %v6389_v33 = vpop.f32.mrb[2].mxu1 }
 0x2be   :  { %582 = vst [vmem:[#allocation3 + $0x18] sm:$0xff] %v6389_v33  ;;  %v536_v34 = vpop.f32.mrb[3].mxu1  ;;  %v599_v35 = vpack.c.bf16 %v6389_v33, %v6388_v29 }
 0x2bf   :  { %580 = vst [vmem:[#allocation3 + $0x8] sm:$0xff] %v536_v34  ;;  %v598_v36 = vpack.c.bf16 %v536_v34, %v533_v30  ;;  %v7386_v34 = vld [vmem:[#allocation2 + $0x60] sm:$0xff] }
 0x2c0   :  { %604 = vst.msk [vmem:[#allocation2 + $0x18] sm:$0xff] %vm602_vm2, %v599_v35 }
 0x2c1   :  { %603 = vst.msk [vmem:[#allocation2] sm:$0xff] %vm602_vm2, %v598_v36 }
 0x2c3   :  { %v7358_v39 = vpop.f32.mrb[4].mxu1 }
 0x2c4   :  { %585 = vst [vmem:[#allocation3 + $0x30] sm:$0xff] %v7358_v39  ;;  %v549_v40 = vpop.f32.mrb[5].mxu1 }
 0x2c5   :  { %583 = vst [vmem:[#allocation3 + $0x20] sm:$0xff] %v549_v40  ;;  %v6393_v42 = vpop.f32.mrb[6].mxu1  ;;  %v742_v43 = vld [vmem:[#allocation3 + $0x13] sm:$0xff] }
 0x2c6   :  { %v775_v44 = vld [vmem:[#allocation3 + $0x12] sm:$0xff]  ;;  %586 = vst [vmem:[#allocation3 + $0x38] sm:$0xff] %v6393_v42  ;;  %v552_v45 = vpop.f32.mrb[7].mxu1  ;;  %v612_v47 = vld [vmem:[#allocation3 + $0x1] sm:$0xff]  ;;  %v613_v48 = vld [vmem:[#allocation3 + $0x9] sm:$0xff] }
 0x2c7   :  { %v741_v46 = vld [vmem:[#allocation3 + $0xb] sm:$0xff]  ;;  %584 = vst [vmem:[#allocation3 + $0x28] sm:$0xff] %v552_v45  ;;  %v620_v50 = vpack.c.bf16 %v613_v48, %v612_v47  ;;  %v600_v52 = vpack.c.bf16 %v552_v45, %v549_v40  ;;  %v649_v53 = vld [vmem:[#allocation3 + $0x2] sm:$0xff]  ;;  %v843_v59 = vld [vmem:[#allocation3 + $0x14] sm:$0xff] }
 0x2c8   :  { %v749_v49 = vpack.c.bf16 %v742_v43, %v741_v46  ;;  %v650_v51 = vld [vmem:[#allocation3 + $0xa] sm:$0xff] }
 0x2c9   :  { %v731_v54 = vpack.c.bf16 %v775_v44, %v650_v51  ;;  %628 = vrot.lane.b32.xlu0 %v620_v50, %s7091_s22  ;;  %605 = vst.msk [vmem:[#allocation2 + $0x30] sm:$0xff] %vm602_vm2, %v600_v52  ;;  %v657_v61 = vpack.c.bf16 %v650_v51, %v649_v53  ;;  %v687_v1 = vld [vmem:[#allocation3 + $0x11] sm:$0xff] }
 0x2ca   :  { %757 = vrot.lane.b32.xlu1 %v749_v49, %s7091_s22  ;;  %v694_v10 = vpack.c.bf16 %v687_v1, %v613_v48 }
 0x2cb   :  { %735 = vst.msk [vmem:[#allocation2 + $0x8] sm:$0xff] %vm602_vm2, %v731_v54  ;;  %v6396_v60 = vpop.f32.mrb[8].mxu1 }
 0x2cc   :  { %v844_v62 = vld [vmem:[#allocation3 + $0x1c] sm:$0xff]  ;;  %589 = vst [vmem:[#allocation3 + $0x50] sm:$0xff] %v6396_v60  ;;  %v565_v63 = vpop.f32.mrb[9].mxu1 }
 0x2cd   :  { %v776_v0 = vld [vmem:[#allocation3 + $0x1a] sm:$0xff]  ;;  %v851_v2 = vpack.c.bf16 %v844_v62, %v843_v59  ;;  %587 = vst [vmem:[#allocation3 + $0x40] sm:$0xff] %v565_v63  ;;  %665 = vrot.lane.b32.xlu0 %v657_v61, %s7078_s30  ;;  %v6397_v3 = vpop.f32.mrb[10].mxu1  ;;  %v7370_v16 = vld [vmem:[#allocation3 + $0x32] sm:$0xff] }
 0x2ce   :  { %v783_v4 = vpack.c.bf16 %v776_v0, %v775_v44  ;;  %v845_v5 = vld [vmem:[#allocation3 + $0x24] sm:$0xff]  ;;  %v846_v6 = vld [vmem:[#allocation3 + $0x2c] sm:$0xff]  ;;  %v568_v7 = vpop.f32.mrb[11].mxu1  ;;  %v810_v8 = vld [vmem:[#allocation3 + $0x1b] sm:$0xff] }
 0x2cf   :  { %v852_v9 = vpack.c.bf16 %v846_v6, %v845_v5  ;;  %588 = vst [vmem:[#allocation3 + $0x48] sm:$0xff] %v568_v7  ;;  %855 = vst.msk [vmem:[#allocation2 + $0x10] sm:$0xff] %vm602_vm2, %v851_v2  ;;  %v777_v11 = vld [vmem:[#allocation3 + $0x22] sm:$0xff]  ;;  %v778_v12 = vld [vmem:[#allocation3 + $0x2a] sm:$0xff]  ;;  %v817_v15 = vpack.c.bf16 %v810_v8, %v742_v43 }
 0x2d0   :  { %791 = vrot.lane.b32.xlu1 %v783_v4, %s7078_s30  ;;  %v615_v13 = vld [vmem:[#allocation3 + $0x19] sm:$0xff]  ;;  %v732_v14 = vpack.c.bf16 %v777_v11, %v776_v0  ;;  %v744_v18 = vld [vmem:[#allocation3 + $0x23] sm:$0xff]  ;;  %v733_v19 = vpack.c.bf16 %v7370_v16, %v778_v12  ;;  %v618_v31 = vld [vmem:[#allocation3 + $0x31] sm:$0xff]  ;;  %v784_v33 = vpack.c.bf16 %v778_v12, %v777_v11 }
 0x2d1   :  { %702 = vrot.lane.b32.xlu0 %v694_v10, %s7092_s24  ;;  %856 = vst.msk [vmem:[#allocation2 + $0x28] sm:$0xff] %vm602_vm2, %v852_v9  ;;  %v621_v20 = vpack.c.bf16 %v615_v13, %v687_v1  ;;  %v847_v21 = vld [vmem:[#allocation3 + $0x34] sm:$0xff]  ;;  %v750_v24 = vpack.c.bf16 %v744_v18, %v810_v8  ;;  %v812_v36 = vld [vmem:[#allocation3 + $0x2b] sm:$0xff]  ;;  %v689_v38 = vld [vmem:[#allocation3 + $0x21] sm:$0xff] }
 0x2d2   :  { %736 = vst.msk [vmem:[#allocation2 + $0x20] sm:$0xff] %vm602_vm2, %v732_v14  ;;  %737 = vst.msk [vmem:[#allocation2 + $0x38] sm:$0xff] %vm602_vm2, %v733_v19  ;;  %v619_v32 = vld [vmem:[#allocation3 + $0x39] sm:$0x7f]  ;;  %v818_v40 = vpack.c.bf16 %v812_v36, %v744_v18  ;;  %v695_v43 = vpack.c.bf16 %v689_v38, %v615_v13  ;;  %v617_v50 = vld [vmem:[#allocation3 + $0x29] sm:$0xff] }
 0x2d3   :  { %v623_v37 = vpack.c.bf16 %v619_v32, %v618_v31  ;;  %v746_v42 = vld [vmem:[#allocation3 + $0x33] sm:$0xff]  ;;  %v622_v53 = vpack.c.bf16 %v617_v50, %v689_v38  ;;  %v696_v58 = vpack.c.bf16 %v618_v31, %v617_v50  ;;  %v1204_v2 = vld [vmem:[#allocation16 + $0x8] sm:$0xff]  ;;  %v1205_v5 = vld [vmem:[#allocation16 + $0x10] sm:$0xff] }
 0x2d4   :  { %825 = vrot.lane.b32.xlu1 %v817_v15, %s7092_s24  ;;  %v848_v22 = vld [vmem:[#allocation3 + $0x3c] sm:$0xff]  ;;  %v751_v45 = vpack.c.bf16 %v746_v42, %v812_v36  ;;  %v1203_v3 = vld [vmem:[#allocation16] sm:$0xff]  ;;  %v1210_v8 = vld [vmem:[#allocation16 + $0x38] sm:$0xff] }
 0x2d5   :  { %v853_v23 = vpack.c.bf16 %v848_v22, %v847_v21  ;;  %630 = vrot.lane.b32.xlu0 %v621_v20, %s7091_s22  ;;  %v656_v44 = vld [vmem:[#allocation3 + $0x3a] sm:$0x7f]  ;;  %v693_v60 = vld [vmem:[#allocation3 + $0x41] sm:$0x7f] }
 0x2d6   :  { %v849_v25 = vld [vmem:[#allocation3 + $0x44] sm:$0xff]  ;;  %v850_v26 = vld [vmem:[#allocation3 + $0x4c] sm:$0x7f]  ;;  %v660_v47 = vpack.c.bf16 %v656_v44, %v7370_v16  ;;  %v747_v48 = vld [vmem:[#allocation3 + $0x3b] sm:$0xff] }
 0x2d7   :  { %v863_v27 = vld [vmem:[#allocation2 + $0x10] sm:$0xff]  ;;  %v854_v28 = vpack.c.bf16 %v850_v26, %v849_v25  ;;  %857 = vst.msk [vmem:[#allocation2 + $0x40] sm:$0xff] %vm602_vm2, %v853_v23  ;;  %v782_v52 = vld [vmem:[#allocation3 + $0x4a] sm:$0x7f]  ;;  %v819_v61 = vpack.c.bf16 %v747_v48, %v746_v42  ;;  %v1207_v7 = vld [vmem:[#allocation16 + $0x20] sm:$0xff] }
 0x2d8   :  { %759 = vrot.lane.b32.xlu1 %v750_v24, %s7091_s22  ;;  %6414 = vmatprep.mubr.bf16.mxu0 %v863_v27  ;;  %v866_v30 = vld [vmem:[#allocation2 + $0x28] sm:$0xff]  ;;  %v748_v46 = vld [vmem:[#allocation3 + $0x43] sm:$0x7f]  ;;  %v816_v63 = vld [vmem:[#allocation3 + $0x4b] sm:$0x7f] }
 0x2d9   :  { %667 = vrot.lane.b32.xlu0 %v783_v4, %s7078_s30  ;;  %6415 = vmatmul.mubr.bf16.vlgmr.msra.gmra.mrb[4].mxu0 %v866_v30  ;;  %v859_v35 = vsel %vm7381_vm4, %v854_v28, %v7386_v34  ;;  %v752_v49 = vpack.c.bf16 %v748_v46, %v747_v48  ;;  %v781_v51 = vld [vmem:[#allocation3 + $0x42] sm:$0xff]  ;;  %v7400_v54 = vld [vmem:[#allocation3 + $0x3a] sm:$0xff]  ;;  %v1206_v4 = vld [vmem:[#allocation16 + $0x18] sm:$0xff] }
 0x2da   :  { %860 = vst [vmem:[#allocation2 + $0x58] sm:$0xff] %v859_v35  ;;  %v786_v55 = vpack.c.bf16 %v782_v52, %v781_v51  ;;  %v785_v56 = vpack.c.bf16 %v7400_v54, %v7370_v16  ;;  %v692_v59 = vld [vmem:[#allocation3 + $0x39] sm:$0xff]  ;;  %v815_v62 = vld [vmem:[#allocation3 + $0x43] sm:$0xff] }
 0x2db   :  { %v697_v0 = vpack.c.bf16 %v693_v60, %v692_v59  ;;  %v820_v1 = vpack.c.bf16 %v816_v63, %v815_v62  ;;  %v1208_v6 = vld [vmem:[#allocation16 + $0x28] sm:$0xff]  ;;  %v1209_v9 = vld [vmem:[#allocation16 + $0x30] sm:$0xff] }
 0x2dc   :  { %793 = vrot.lane.b32.xlu1 %v784_v33, %s7078_s30  ;;  %v730_v36 = vld [vmem:[#allocation3 + $0x42] sm:$0x7f] }
 0x2dd   :  { %634 = vrot.lane.b32.xlu0 %v623_v37, %s7091_s22 }
 0x2de   :  { %v869_v41 = vld [vmem:[#allocation2 + $0x40] sm:$0xff] }
 0x2df   :  { %6418 = vmatprep.mubr.bf16.mxu0 %v869_v41  ;;  %v734_v41 = vpack.c.bf16 %v730_v36, %v7400_v54 }
 0x2e0   :  { %827 = vrot.lane.b32.xlu1 %v818_v40, %s7092_s24 }
 0x2e1   :  { %704 = vrot.lane.b32.xlu0 %v695_v43, %s7092_s24  ;;  %6419 = vmatmul.mubr.bf16.gmra.mrb[8].mxu0 %v859_v35  ;;  %v739_v48 = vsel %vm7381_vm4, %v734_v41, %v7386_v34 }
 0x2e4   :  { %761 = vrot.lane.b32.xlu1 %v751_v45, %s7091_s22 }
 0x2e5   :  { %671 = vrot.lane.b32.xlu0 %v660_v47, %s7078_s30 }
 0x2e8   :  { %763 = vrot.lane.b32.xlu1 %v752_v49, %s7091_s22 }
 0x2e9   :  { %669 = vrot.lane.b32.xlu0 %v784_v33, %s7078_s30  ;;  %v597_v33 = vld [vmem:[#allocation3 + $0x38] sm:$0x7f] }
 0x2ea   :  { %v601_v37 = vpack.c.bf16 %v597_v33, %v7358_v39 }
 0x2ec   :  { %632 = vrot.lane.b32.xlu1 %v622_v53, %s7091_s22  ;;  %v610_v39 = vsel %vm7381_vm4, %v601_v37, %v7386_v34 }
 0x2ed   :  { %797 = vrot.lane.b32.xlu0 %v786_v55, %s7078_s30 }
 0x2f0   :  { %795 = vrot.lane.b32.xlu1 %v785_v56, %s7078_s30 }
 0x2f1   :  { %706 = vrot.lane.b32.xlu0 %v696_v58, %s7092_s24 }
 0x2f4   :  { %829 = vrot.lane.b32.xlu1 %v819_v61, %s7092_s24 }
 0x2f5   :  { %708 = vrot.lane.b32.xlu0 %v697_v0, %s7092_s24 }
 0x2f8   :  { %831 = vrot.lane.b32.xlu1 %v820_v1, %s7092_s24 }
 0x2f9   :  { %1218 = vperm.xlu0 %6662, %v1204_v2   ;;  %v7093_v2 = vmov 0.0  }
 0x2fa   :  { %6422 = vmatprep.subr.bf16.mxu1 %v7093_v2 }
 0x2fc   :  { %1213 = vperm.xlu1 %6663, %v1203_v3  }
 0x2fd   :  { %1228 = vperm.xlu0 %6662, %v1206_v4  }
 0x300   :  { %1223 = vperm.xlu1 %6663, %v1205_v5  }
 0x301   :  { %1238 = vperm.xlu0 %6662, %v1208_v6  }
 0x304   :  { %1233 = vperm.xlu1 %6663, %v1207_v7  }
 0x305   :  { %1248 = vperm.xlu0 %6662, %v1210_v8  }
 0x308   :  { %1243 = vperm.xlu1 %6663, %v1209_v9  }
 0x33b   :  { %v629_v11 = vpop.permute.xlu0 %628 }
 0x33c   :  { %v758_v10 = vpop.permute.xlu1 %757  ;;  %641 = vst.msk [vmem:[#allocation2] sm:$0xff] %vm640_vm5, %v629_v11 }
 0x33d   :  { %769 = vst.msk [vmem:[#allocation2 + $0x8] sm:$0xff] %vm640_vm5, %v758_v10 }
 0x33f   :  { %v666_v12 = vpop.permute.xlu0 %665 }
 0x340   :  { %678 = vst.msk [vmem:[#allocation2] sm:$0xff] %vm677_vm6, %v666_v12 }
 0x342   :  { %v792_v13 = vpop.permute.xlu1 %791 }
 0x343   :  { %803 = vst.msk [vmem:[#allocation2 + $0x8] sm:$0xff] %vm677_vm6, %v792_v13  ;;  %v703_v14 = vpop.permute.xlu0 %702 }
 0x344   :  { %715 = vst.msk [vmem:[#allocation2] sm:$0xff] %vm714_vm7, %v703_v14 }
 0x346   :  { %v826_v15 = vpop.permute.xlu1 %825 }
 0x347   :  { %837 = vst.msk [vmem:[#allocation2 + $0x8] sm:$0xff] %vm714_vm7, %v826_v15  ;;  %v631_v16 = vpop.permute.xlu0 %630 }
 0x348   :  { %642 = vst.msk [vmem:[#allocation2 + $0x18] sm:$0xff] %vm640_vm5, %v631_v16 }
 0x34a   :  { %v760_v17 = vpop.permute.xlu1 %759 }
 0x34b   :  { %770 = vst.msk [vmem:[#allocation2 + $0x20] sm:$0xff] %vm640_vm5, %v760_v17  ;;  %v668_v18 = vpop.permute.xlu0 %667  ;;  %v861_v21 = vld [vmem:[#allocation2] sm:$0xff] }
 0x34c   :  { %679 = vst.msk [vmem:[#allocation2 + $0x18] sm:$0xff] %vm677_vm6, %v668_v18 }
 0x34e   :  { %v794_v19 = vpop.permute.xlu1 %793  ;;  %v862_v20 = vld [vmem:[#allocation2 + $0x8] sm:$0xff] }
 0x34f   :  { %804 = vst.msk [vmem:[#allocation2 + $0x20] sm:$0xff] %vm677_vm6, %v794_v19  ;;  %1097 = vmatprep.mubr.bf16.mxu1 %v862_v20  ;;  %v635_v22 = vpop.permute.xlu0 %634 }
 0x350   :  { %1098 = vmatmul.mubr.bf16.vlgmr.msra.gmra.mrb[12].mxu1 %v861_v21  ;;  %v647_v46 = vsel %vm7430_vm8, %v635_v22, %v610_v39 }
 0x352   :  { %v828_v23 = vpop.permute.xlu1 %827 }
 0x353   :  { %838 = vst.msk [vmem:[#allocation2 + $0x20] sm:$0xff] %vm714_vm7, %v828_v23  ;;  %v705_v24 = vpop.permute.xlu0 %704 }
 0x354   :  { %716 = vst.msk [vmem:[#allocation2 + $0x18] sm:$0xff] %vm714_vm7, %v705_v24 }
 0x356   :  { %v762_v25 = vpop.permute.xlu1 %761 }
 0x357   :  { %771 = vst.msk [vmem:[#allocation2 + $0x38] sm:$0xff] %vm640_vm5, %v762_v25  ;;  %v672_v26 = vpop.permute.xlu0 %671 }
 0x358   :  { %v684_v47 = vsel %vm7437_vm9, %v672_v26, %v647_v46 }
 0x35a   :  { %v764_v27 = vpop.permute.xlu1 %763  ;;  %v865_v28 = vld [vmem:[#allocation2 + $0x20] sm:$0xff] }
 0x35b   :  { %1105 = vmatprep.mubr.bf16.mxu1 %v865_v28  ;;  %v670_v30 = vpop.permute.xlu0 %669  ;;  %v864_v31 = vld [vmem:[#allocation2 + $0x18] sm:$0xff]  ;;  %v773_v50 = vsel %vm7430_vm8, %v764_v27, %v739_v48 }
 0x35c   :  { %1106 = vmatmul.mubr.bf16.gmra.mrb[16].mxu1 %v864_v31 }
 0x35e   :  { %v633_v32 = vpop.permute.xlu1 %632 }
 0x35f   :  { %643 = vst.msk [vmem:[#allocation2 + $0x30] sm:$0xff] %vm640_vm5, %v633_v32  ;;  %v798_v35 = vpop.permute.xlu0 %797 }
 0x360   :  { %680 = vst.msk [vmem:[#allocation2 + $0x30] sm:$0xff] %vm677_vm6, %v670_v30  ;;  %v807_v52 = vsel %vm7437_vm9, %v798_v35, %v773_v50 }
 0x362   :  { %v796_v38 = vpop.permute.xlu1 %795 }
 0x363   :  { %805 = vst.msk [vmem:[#allocation2 + $0x38] sm:$0xff] %vm677_vm6, %v796_v38  ;;  %v707_v42 = vpop.permute.xlu0 %706 }
 0x364   :  { %717 = vst.msk [vmem:[#allocation2 + $0x30] sm:$0xff] %vm714_vm7, %v707_v42 }
 0x366   :  { %v830_v44 = vpop.permute.xlu1 %829 }
 0x367   :  { %839 = vst.msk [vmem:[#allocation2 + $0x38] sm:$0xff] %vm714_vm7, %v830_v44  ;;  %v709_v49 = vpop.permute.xlu0 %708 }
 0x368   :  { %v721_v51 = vsel %vm7447_vm10, %v709_v49, %v684_v47 }
 0x369   :  { %722 = vst [vmem:[#allocation2 + $0x48] sm:$0xff] %v721_v51 }
 0x36a   :  { %v832_v53 = vpop.permute.xlu1 %831 }
 0x36b   :  { %v841_v54 = vsel %vm7447_vm10, %v832_v53, %v807_v52  ;;  %v867_v56 = vld [vmem:[#allocation2 + $0x30] sm:$0xff] }
 0x36c   :  { %842 = vst [vmem:[#allocation2 + $0x50] sm:$0xff] %v841_v54 }
 0x36e   :  { %v868_v55 = vld [vmem:[#allocation2 + $0x38] sm:$0xff] }
 0x36f   :  { %1113 = vmatprep.mubr.bf16.mxu1 %v868_v55 }
 0x370   :  { %1114 = vmatmul.mubr.bf16.gmra.mrb[20].mxu1 %v867_v56 }
 0x371   :  { %1121 = vmatprep.mubr.bf16.mxu1 %v841_v54 }
 0x378   :  { %1122 = vmatmul.mubr.bf16.gmra.mrb[24].mxu1 %v721_v51  ;;  %v1219_v15 = vpop.permute.xlu0 %1218 }
 0x379   :  { %6430 = vmatprep.mubr.msk.bf16.mxu1 %vm7094_vm11, %v7093_v2 }
 0x37b   :  { %v1214_v12 = vpop.permute.xlu1 %1213 }
 0x37c   :  { %v1229_v35 = vpop.permute.xlu0 %1228 }
 0x37f   :  { %v1224_v31 = vpop.permute.xlu1 %1223 }
 0x383   :  { %v1234_v55 = vpop.permute.xlu1 %1233 }
 0x3ac   :  { %v6416_v58 = vpop.f32.mrb[4].mxu0 }
 0x3ad   :  { %v1164_v59 = vpop.f32.mrb[5].mxu0 }
 0x3ae   :  { %v6417_v60 = vpop.f32.mrb[6].mxu0 }
 0x3af   :  { %v1167_v61 = vpop.f32.mrb[7].mxu0 }
 0x3b4   :  { %v7467_v62 = vpop.f32.mrb[8].mxu0 }
 0x3b5   :  { %v1180_v63 = vpop.f32.mrb[9].mxu0 }
 0x3b6   :  { %v7469_v0 = vpop.f32.mrb[10].mxu0 }
 0x3b7   :  { %v1183_v1 = vpop.f32.mrb[11].mxu0 }
 0x423   :  { %v6174_v3 = vpop.f32.mrb[12].mxu1 }
 0x424   :  { %v6175_v4 = vpop.f32.mrb[13].mxu1 }
 0x425   :  { %v6176_v5 = vadd.f32 %v6175_v4, %v6174_v3  ;;  %v6177_v6 = vpop.f32.mrb[14].mxu1 }
 0x426   :  { %v6178_v7 = vpop.f32.mrb[15].mxu1 }
 0x427   :  { %v1165_v8 = vadd.f32 %v6176_v5, %v1164_v59  ;;  %v6179_v9 = vadd.f32 %v6178_v7, %v6177_v6 }
 0x429   :  { %v7474_v10 = vmax.f32 %v1165_v8, 0.0  ;;  %v1168_v11 = vadd.f32 %v6179_v9, %v1167_v61 }
 0x42b   :  { %v1251_v13 = vmul.f32 %v1214_v12, %v7474_v10  ;;  %v7477_v14 = vmax.f32 %v1168_v11, 0.0 }
 0x42d   :  { %v1252_v16 = vmul.f32 %v1219_v15, %v7477_v14  ;;  %v1273_v17 = vmul.f32 %v1251_v13, %v7474_v10 }
 0x42f   :  { %v1259_v18 = vadd.f32 %v1252_v16, %v1251_v13  ;;  %v1274_v19 = vmul.f32 %v1252_v16, %v7477_v14  ;;  %v6180_v20 = vpop.f32.mrb[16].mxu1  ;;  %v1244_v16 = vpop.permute.xlu1 %1243 }
 0x430   :  { %v6181_v22 = vpop.f32.mrb[17].mxu1 }
 0x431   :  { %v1281_v21 = vadd.f32 %v1274_v19, %v1273_v17  ;;  %v6182_v23 = vadd.f32 %v6181_v22, %v6180_v20  ;;  %v6183_v24 = vpop.f32.mrb[18].mxu1 }
 0x432   :  { %v6184_v25 = vpop.f32.mrb[19].mxu1 }
 0x433   :  { %v1173_v26 = vadd.f32 %v6416_v58, %v6182_v23  ;;  %v6185_v27 = vadd.f32 %v6184_v25, %v6183_v24 }
 0x435   :  { %v7482_v28 = vmax.f32 %v1173_v26, 0.0  ;;  %v1176_v30 = vadd.f32 %v6417_v60, %v6185_v27  ;;  %v1239_v60 = vpop.permute.xlu0 %1238 }
 0x437   :  { %v1253_v32 = vmul.f32 %v1224_v31, %v7482_v28  ;;  %v7485_v33 = vmax.f32 %v1176_v30, 0.0 }
 0x439   :  { %v1260_v36 = vadd.f32 %v1259_v18, %v1253_v32  ;;  %v1275_v37 = vmul.f32 %v1253_v32, %v7482_v28  ;;  %v1254_v38 = vmul.f32 %v1229_v35, %v7485_v33  ;;  %v1249_v20 = vpop.permute.xlu0 %1248 }
 0x43b   :  { %v1282_v41 = vadd.f32 %v1281_v21, %v1275_v37  ;;  %v1261_v42 = vadd.f32 %v1260_v36, %v1254_v38  ;;  %v1276_v39 = vmul.f32 %v1254_v38, %v7485_v33 }
 0x43d   :  { %v1283_v44 = vadd.f32 %v1282_v41, %v1276_v39 }
 0x443   :  { %v6186_v46 = vpop.f32.mrb[20].mxu1 }
 0x444   :  { %v6187_v47 = vpop.f32.mrb[21].mxu1 }
 0x445   :  { %v6188_v48 = vadd.f32 %v6187_v47, %v6186_v46  ;;  %v6189_v49 = vpop.f32.mrb[22].mxu1 }
 0x446   :  { %v6190_v50 = vpop.f32.mrb[23].mxu1 }
 0x447   :  { %v1181_v51 = vadd.f32 %v6188_v48, %v1180_v63  ;;  %v6191_v52 = vadd.f32 %v6190_v50, %v6189_v49 }
 0x449   :  { %v7490_v53 = vmax.f32 %v1181_v51, 0.0  ;;  %v1184_v54 = vadd.f32 %v6191_v52, %v1183_v1  ;;  %v1300_v51 = vld [vmem:[%s8863_s13 + $0x1] sm:$0x1] }
 0x44b   :  { %v1255_v56 = vmul.f32 %v1234_v55, %v7490_v53  ;;  %v1200_v58 = vmax.f32 %v1184_v54, 0.0  ;;  %v6192_v59 = vpop.f32.mrb[24].mxu1  ;;  %v1302_v55 = vld [vmem:[%s8864_s14 + $0x1] sm:$0x1] }
 0x44c   :  { %v6193_v61 = vpop.f32.mrb[25].mxu1 }
 0x44d   :  { %v1262_v3 = vadd.f32 %v1261_v42, %v1255_v56  ;;  %v1277_v4 = vmul.f32 %v1255_v56, %v7490_v53  ;;  %v1256_v5 = vmul.f32 %v1239_v60, %v1200_v58  ;;  %v6194_v6 = vadd.f32 %v6193_v61, %v6192_v59  ;;  %v6195_v7 = vpop.f32.mrb[26].mxu1 }
 0x44e   :  { %v6196_v8 = vpop.f32.mrb[27].mxu1 }
 0x44f   :  { %v1284_v9 = vadd.f32 %v1283_v44, %v1277_v4  ;;  %v1263_v63 = vadd.f32 %v1262_v3, %v1256_v5  ;;  %v1278_v11 = vmul.f32 %v1256_v5, %v1200_v58  ;;  %v1189_v12 = vadd.f32 %v7467_v62, %v6194_v6 }
 0x450   :  { %v6197_v1 = vadd.f32 %v6196_v8, %v6195_v7 }
 0x451   :  { %v1285_v13 = vadd.f32 %v1284_v9, %v1278_v11  ;;  %v1201_v15 = vmax.f32 %v1189_v12, 0.0 }
 0x452   :  { %v1192_v17 = vadd.f32 %v7469_v0, %v6197_v1 }
 0x453   :  { %v1257_v18 = vmul.f32 %v1244_v16, %v1201_v15 }
 0x454   :  { %v1202_v19 = vmax.f32 %v1192_v17, 0.0 }
 0x455   :  { %v1264_v21 = vadd.f32 %v1263_v63, %v1257_v18  ;;  %v1279_v22 = vmul.f32 %v1257_v18, %v1201_v15 }
 0x456   :  { %v1258_v23 = vmul.f32 %v1249_v20, %v1202_v19 }
 0x457   :  { %v1286_v24 = vadd.f32 %v1285_v13, %v1279_v22  ;;  %v6709_v22 = vld [vmem:[%s8857_s7 + $0x28] sm:$0xff]  }
 0x458   :  { %v1265_v25 = vadd.f32 %v1264_v21, %v1258_v23  ;;  %v1280_v26 = vmul.f32 %v1258_v23, %v1202_v19  ;;  %v6708_v21 = vld [vmem:[%s8857_s7 + $0x20] sm:$0xff]   ;;  %v6710_v23 = vld [vmem:[%s8857_s7 + $0x30] sm:$0xff]  }
 0x45a   :  { %v1266_v27 = vrot.slane %v1265_v25, 4  ;;  %v1287_v30 = vadd.f32 %v1286_v24, %v1280_v26  ;;  %v6711_v24 = vld [vmem:[%s8857_s7 + $0x38] sm:$0xff]   ;;  %v6713_v26 = vld [vmem:[%s8857_s7 + $0x48] sm:$0xff]  }
 0x45c   :  { %v1267_v31 = vadd.f32 %v1266_v27, %v1265_v25  ;;  %v1288_v32 = vrot.slane %v1287_v30, 4  ;;  %v6712_v25 = vld [vmem:[%s8857_s7 + $0x40] sm:$0xff]   ;;  %v6714_v27 = vld [vmem:[%s8857_s7 + $0x50] sm:$0xff]  }
 0x45e   :  { %v1268_v62 = vrot.slane %v1267_v31, 2  ;;  %v1289_v35 = vadd.f32 %v1288_v32, %v1287_v30  ;;  %v6715_v30 = vld [vmem:[#allocation9 + $0x80] sm:$0xff]   ;;  %v6717_v32 = vld [vmem:[#allocation9 + $0x90] sm:$0xff]  }
 0x460   :  { %v1269_v36 = vadd.f32 %v1268_v62, %v1267_v31  ;;  %v1290_v37 = vrot.slane %v1289_v35, 2  ;;  %v6716_v31 = vld [vmem:[#allocation9 + $0x88] sm:$0xff]   ;;  %v6718_v62 = vld [vmem:[#allocation9 + $0x98] sm:$0xff]  }
 0x462   :  { %v1270_v38 = vrot.slane %v1269_v36, 1  ;;  %v1291_v41 = vadd.f32 %v1290_v37, %v1289_v35  ;;  %v6719_v35 = vld [vmem:[#allocation9 + $0xa0] sm:$0xff]   ;;  %v6721_v37 = vld [vmem:[#allocation9 + $0xb0] sm:$0xff]  }
 0x464   :  { %v1271_v0 = vadd.f32 %v1270_v38, %v1269_v36  ;;  %v1292_v42 = vrot.slane %v1291_v41, 1  ;;  %v6720_v36 = vld [vmem:[#allocation9 + $0xa8] sm:$0xff]   ;;  %v6722_v38 = vld [vmem:[#allocation9 + $0xb8] sm:$0xff]  }
 0x466   :  { %v1272_v39 = vmul.f32 0.008264462, %v1271_v0  ;;  %v1293_v44 = vadd.f32 %v1292_v42, %v1291_v41  ;;  %v6723_v41 = vld [vmem:[#allocation9 + $0x40] sm:$0xff]   ;;  %v6725_v42 = vld [vmem:[#allocation9 + $0x48] sm:$0xff]  }
 0x467   :  { %6225 = vmatprep.subr.bf16.mxu0 %v6723_v41  ;;  %v6724_v0 = vld [vmem:[#allocation9] sm:$0xff]  }
 0x468   :  { %v1294_v46 = vmul.f32 0.008264462, %v1293_v44  ;;  %v1295_v47 = vmul.f32 %v1272_v39, %v1272_v39  ;;  %6226 = vmatpush3.bf16.msra.mxu0 %v6724_v0 }
 0x469   :  { %6227 = vmatprep.subr.bf16.mxu0 %v6725_v42 }
 0x46a   :  { %v1296_v48 = vsub.f32 %v1294_v46, %v1295_v47  ;;  %v6726_v46 = vld [vmem:[#allocation9 + $0x8] sm:$0xff]  }
 0x46c   :  { %v1297_v49 = vmax.f32 %v1296_v48, 0.0  ;;  %6228 = vmatpush3.bf16.msra.mxu0 %v6726_v46  ;;  %v6737_v46 = vld [vmem:[#allocation9 + $0x78] sm:$0xff]  }
 0x46e   :  { %v1298_v50 = vadd.f32 1e-05, %v1297_v49  ;;  %v6727_v49 = vld [vmem:[#allocation9 + $0x50] sm:$0xff]  }
 0x46f   :  { %6229 = vmatprep.subr.bf16.mxu0 %v6727_v49 }
 0x470   :  { %6835 = vrsqrt.f32 %v1298_v50 }
 0x47a   :  { %v6836_v52 = vpop.eup %6835 }
 0x47b   :  { %v1301_v54 = vmul.f32 %v6836_v52, %v1300_v51  ;;  %v6728_v51 = vld [vmem:[#allocation9 + $0x10] sm:$0xff]  }
 0x47c   :  { %6230 = vmatpush3.bf16.msra.mxu0 %v6728_v51 }
 0x47d   :  { %v1303_v56 = vmul.f32 %v1301_v54, %v1272_v39  ;;  %v1308_v59 = vrot.slane %v1301_v54, %v7342_v57  ;;  %v6729_v54 = vld [vmem:[#allocation9 + $0x58] sm:$0xff]  }
 0x47e   :  { %6231 = vmatprep.subr.bf16.mxu0 %v6729_v54 }
 0x47f   :  { %v1304_v60 = vsub.f32 %v1302_v55, %v1303_v56  ;;  %v1316_v61 = vmul.f32 %v1308_v59, %v1202_v19  ;;  %v1309_v3 = vmul.f32 %v1308_v59, %v7474_v10  ;;  %v1310_v4 = vmul.f32 %v1308_v59, %v7477_v14 }
 0x480   :  { %v1311_v5 = vmul.f32 %v1308_v59, %v7482_v28  ;;  %v1312_v6 = vmul.f32 %v1308_v59, %v7485_v33  ;;  %v1313_v7 = vmul.f32 %v1308_v59, %v7490_v53  ;;  %v1314_v8 = vmul.f32 %v1308_v59, %v1200_v58  ;;  %v6704_v33 = vld [vmem:[%s8857_s7] sm:$0xff]   ;;  %v6705_v53 = vld [vmem:[%s8857_s7 + $0x8] sm:$0xff]   ;;  %v6706_v58 = vld [vmem:[%s8857_s7 + $0x10] sm:$0xff]  }
 0x481   :  { %v1320_v9 = vrot.slane %v1304_v60, %v7342_v57  ;;  %v1315_v63 = vmul.f32 %v1308_v59, %v1201_v15  ;;  %v6707_v15 = vld [vmem:[%s8857_s7 + $0x18] sm:$0xff]  }
 0x482   :  { %v6730_v60 = vld [vmem:[#allocation9 + $0x18] sm:$0xff]  }
 0x483   :  { %v1321_v11 = vadd.f32 %v1320_v9, %v1309_v3  ;;  %v1322_v12 = vadd.f32 %v1320_v9, %v1310_v4  ;;  %v1323_v1 = vadd.f32 %v1320_v9, %v1311_v5  ;;  %v1324_v13 = vadd.f32 %v1320_v9, %v1312_v6  ;;  %6232 = vmatpush3.bf16.msra.mxu0 %v6730_v60  ;;  %v6732_v4 = vld [vmem:[#allocation9 + $0x20] sm:$0xff]  }
 0x484   :  { %v1325_v16 = vadd.f32 %v1320_v9, %v1313_v7  ;;  %v1326_v17 = vadd.f32 %v1320_v9, %v1314_v8  ;;  %v1327_v18 = vadd.f32 %v1320_v9, %v1315_v63  ;;  %v1328_v10 = vadd.f32 %v1320_v9, %v1316_v61  ;;  %v6731_v61 = vld [vmem:[#allocation9 + $0x60] sm:$0xff]  }
 0x485   :  { %v1351_v19 = vpack.c.bf16 %v1322_v12, %v1321_v11  ;;  %v1352_v14 = vpack.c.bf16 %v1324_v13, %v1323_v1  ;;  %6233 = vmatprep.subr.bf16.mxu0 %v6731_v61 }
 0x486   :  { %v1353_v20 = vpack.c.bf16 %v1326_v17, %v1325_v16  ;;  %v1354_v28 = vpack.c.bf16 %v1328_v10, %v1327_v18  ;;  %v6733_v10 = vld [vmem:[#allocation9 + $0x68] sm:$0xff]  }
 0x487   :  { %6423 = vmatpush3.bf16.msra.mxu1 %v1351_v19  ;;  %6234 = vmatpush3.bf16.msra.mxu0 %v6732_v4 }
 0x488   :  { %6424 = vmatprep.subr.bf16.mxu1 %v7093_v2  ;;  %6235 = vmatprep.subr.bf16.mxu0 %v6733_v10 }
 0x48b   :  { %6425 = vmatpush3.bf16.msra.mxu1 %v1352_v14 }
 0x48c   :  { %6426 = vmatprep.subr.bf16.mxu1 %v7093_v2 }
 0x48f   :  { %6427 = vmatpush3.bf16.msra.mxu1 %v1353_v20 }
 0x490   :  { %6428 = vmatprep.subr.bf16.mxu1 %v7093_v2 }
 0x493   :  { %6429 = vmatpush3.bf16.msra.mxu1 %v1354_v28  ;;  %v6734_v28 = vld [vmem:[#allocation9 + $0x28] sm:$0xff]  }
 0x494   :  { %6474 = vmatprep.subr.bf16.mxu1 %v7093_v2  ;;  %6236 = vmatpush3.bf16.msra.mxu0 %v6734_v28 }
 0x496   :  { %6431 = vmatmul.mubr.msk.bf16.vlgmr.msra.gmra.mrb[28].mxu1 %vm1410_vm12, %v6704_v33 }
 0x497   :  { %6434 = vmatprep.mubr.msk.bf16.mxu1 %vm7094_vm11, %v7093_v2  ;;  %6475 = vmatpush3.bf16.msra.mxu1 %v6715_v30 }
 0x498   :  { %6476 = vmatprep.subr.bf16.mxu1 %v7093_v2 }
 0x49b   :  { %6477 = vmatpush3.bf16.msra.mxu1 %v6716_v31 }
 0x49c   :  { %6478 = vmatprep.subr.bf16.mxu1 %v7093_v2 }
 0x49e   :  { %6435 = vmatmul.mubr.msk.bf16.gmra.mrb[32].mxu1 %vm1410_vm12, %v6705_v53  ;;  %v6735_v53 = vld [vmem:[#allocation9 + $0x70] sm:$0xff]  }
 0x49f   :  { %6438 = vmatprep.mubr.msk.bf16.mxu1 %vm7094_vm11, %v7093_v2  ;;  %6479 = vmatpush3.bf16.msra.mxu1 %v6717_v32 }
 0x4a0   :  { %6480 = vmatprep.subr.bf16.mxu1 %v7093_v2  ;;  %6237 = vmatprep.subr.bf16.mxu0 %v6735_v53 }
 0x4a3   :  { %6481 = vmatpush3.bf16.msra.mxu1 %v6718_v62 }
 0x4a4   :  { %6482 = vmatprep.subr.bf16.mxu1 %v7093_v2 }
 0x4a6   :  { %6439 = vmatmul.mubr.msk.bf16.gmra.mrb[36].mxu1 %vm1410_vm12, %v6706_v58 }
 0x4a7   :  { %6442 = vmatprep.mubr.msk.bf16.mxu1 %vm7094_vm11, %v7093_v2  ;;  %6483 = vmatpush3.bf16.msra.mxu1 %v6719_v35 }
 0x4a8   :  { %6484 = vmatprep.subr.bf16.mxu1 %v7093_v2 }
 0x4ab   :  { %6485 = vmatpush3.bf16.msra.mxu1 %v6720_v36 }
 0x4ac   :  { %6486 = vmatprep.subr.bf16.mxu1 %v7093_v2 }
 0x4ae   :  { %6443 = vmatmul.mubr.msk.bf16.gmra.mrb[40].mxu1 %vm1410_vm12, %v6707_v15  ;;  %v6736_v15 = vld [vmem:[#allocation9 + $0x30] sm:$0xff]  }
 0x4af   :  { %6446 = vmatprep.mubr.msk.bf16.mxu1 %vm7094_vm11, %v7093_v2  ;;  %6487 = vmatpush3.bf16.msra.mxu1 %v6721_v37 }
 0x4b0   :  { %6488 = vmatprep.subr.bf16.mxu1 %v7093_v2  ;;  %6238 = vmatpush3.bf16.msra.mxu0 %v6736_v15 }
 0x4b1   :  { %6239 = vmatprep.subr.bf16.mxu0 %v6737_v46 }
 0x4b3   :  { %6489 = vmatpush3.bf16.msra.mxu1 %v6722_v38 }
 0x4b4   :  { %4705 = vmatprep.subr.bf16.mxu1 %v7386_v34 }
 0x4b6   :  { %6447 = vmatmul.mubr.msk.bf16.gmra.mrb[44].mxu1 %vm1410_vm12, %v6708_v21 }
 0x4b7   :  { %6450 = vmatprep.mubr.msk.bf16.mxu1 %vm7094_vm11, %v7093_v2 }
 0x4be   :  { %6451 = vmatmul.mubr.msk.bf16.gmra.mrb[48].mxu1 %vm1410_vm12, %v6709_v22 }
 0x4bf   :  { %6454 = vmatprep.mubr.msk.bf16.mxu1 %vm7094_vm11, %v7093_v2 }
 0x4c6   :  { %6455 = vmatmul.mubr.msk.bf16.gmra.mrb[52].mxu1 %vm1410_vm12, %v6710_v23 }
 0x4c7   :  { %6458 = vmatprep.mubr.msk.bf16.mxu1 %vm7094_vm11, %v7093_v2 }
 0x4ce   :  { %6459 = vmatmul.mubr.msk.bf16.gmra.mrb[56].mxu1 %vm1410_vm12, %v6711_v24 }
 0x4cf   :  { %6462 = vmatprep.mubr.msk.bf16.mxu1 %vm7094_vm11, %v7093_v2 }
 0x4d6   :  { %6463 = vmatmul.mubr.msk.bf16.gmra.mrb[60].mxu1 %vm1410_vm12, %v6712_v25 }
 0x4d7   :  { %6466 = vmatprep.mubr.msk.bf16.mxu1 %vm7094_vm11, %v7093_v2 }
 0x4de   :  { %6467 = vmatmul.mubr.msk.bf16.gmra.mrb[64].mxu1 %vm1410_vm12, %v6713_v26 }
 0x4df   :  { %6470 = vmatprep.mubr.msk.bf16.mxu1 %vm7094_vm11, %v7093_v2 }
 0x4e6   :  { %6471 = vmatmul.mubr.msk.bf16.gmra.mrb[68].mxu1 %vm1410_vm12, %v6714_v27 }
 0x4e7   :  { %6490 = vmatprep.mubr.msk.bf16.mxu1 %vm7094_vm11, %v7093_v2 }
 0x569   :  { %v1478_v39 = vpop.f32.mrb[28].mxu1 }
 0x56a   :  { %1565 = vst [vmem:[#allocation4] sm:$0xff] %v1478_v39  ;;  %v6432_v44 = vpop.f32.mrb[29].mxu1 }
 0x56b   :  { %v1481_v47 = vpop.f32.mrb[30].mxu1 }
 0x56c   :  { %1566 = vst [vmem:[#allocation4 + $0x8] sm:$0xff] %v1481_v47  ;;  %v6433_v48 = vpop.f32.mrb[31].mxu1  ;;  %v1605_v50 = vpack.c.bf16 %v1481_v47, %v1478_v39  ;;  %v6738_v47 = vld [vmem:[#allocation9 + $0x38] sm:$0xff]  }
 0x56d   :  { %6240 = vmatpush3.bf16.msra.mxu0 %v6738_v47 }
 0x56e   :  { %1614 = vst.msk [vmem:[#allocation2] sm:$0xff] %vm602_vm2, %v1605_v50  ;;  %3138 = vmatprep.subr.bf16.mxu0 %v7386_v34 }
 0x571   :  { %v1486_v52 = vpop.f32.mrb[32].mxu1 }
 0x572   :  { %1567 = vst [vmem:[#allocation4 + $0x10] sm:$0xff] %v1486_v52  ;;  %v6436_v55 = vpop.f32.mrb[33].mxu1 }
 0x573   :  { %v1489_v56 = vpop.f32.mrb[34].mxu1  ;;  %v1625_v6 = vld [vmem:[#allocation4 + $0x1] sm:$0xff] }
 0x574   :  { %1568 = vst [vmem:[#allocation4 + $0x18] sm:$0xff] %v1489_v56  ;;  %v6437_v59 = vpop.f32.mrb[35].mxu1  ;;  %v1606_v3 = vpack.c.bf16 %v1489_v56, %v1486_v52  ;;  %v1699_v14 = vld [vmem:[#allocation4 + $0x2] sm:$0xff] }
 0x576   :  { %1615 = vst.msk [vmem:[#allocation2 + $0x18] sm:$0xff] %vm602_vm2, %v1606_v3 }
 0x579   :  { %v1494_v5 = vpop.f32.mrb[36].mxu1  ;;  %v1626_v7 = vld [vmem:[#allocation4 + $0x9] sm:$0xff] }
 0x57a   :  { %1569 = vst [vmem:[#allocation4 + $0x20] sm:$0xff] %v1494_v5  ;;  %v6440_v8 = vpop.f32.mrb[37].mxu1  ;;  %v1643_v9 = vpack.c.bf16 %v1626_v7, %v1625_v6  ;;  %v1885_v11 = vld [vmem:[#allocation4 + $0xf] sm:$0xff] }
 0x57b   :  { %v1497_v63 = vpop.f32.mrb[38].mxu1  ;;  %v1886_v12 = vld [vmem:[#allocation4 + $0x17] sm:$0xff]  ;;  %v1700_v1 = vld [vmem:[#allocation4 + $0xa] sm:$0xff] }
 0x57c   :  { %1570 = vst [vmem:[#allocation4 + $0x28] sm:$0xff] %v1497_v63  ;;  %1661 = vrot.lane.b32.xlu0 %v1643_v9, %s7091_s22  ;;  %v6441_v13 = vpop.f32.mrb[39].mxu1  ;;  %v1903_v16 = vpack.c.bf16 %v1886_v12, %v1885_v11  ;;  %v1847_v17 = vld [vmem:[#allocation4 + $0xe] sm:$0xff]  ;;  %v1848_v18 = vld [vmem:[#allocation4 + $0x16] sm:$0xff]  ;;  %v1607_v19 = vpack.c.bf16 %v1497_v63, %v1494_v5  ;;  %v1717_v33 = vpack.c.bf16 %v1700_v1, %v1699_v14 }
 0x57d   :  { %v1865_v20 = vpack.c.bf16 %v1848_v18, %v1847_v17  ;;  %v1774_v58 = vld [vmem:[#allocation4 + $0x15] sm:$0xff]  ;;  %v1773_v22 = vld [vmem:[#allocation4 + $0xd] sm:$0xff] }
 0x57e   :  { %1921 = vrot.lane.b32.xlu1 %v1903_v16, %s7091_s22  ;;  %1616 = vst.msk [vmem:[#allocation2 + $0x30] sm:$0xff] %vm602_vm2, %v1607_v19  ;;  %v1791_v25 = vpack.c.bf16 %v1774_v58, %v1773_v22  ;;  %v1627_v37 = vld [vmem:[#allocation4 + $0x11] sm:$0xff] }
 0x57f   :  { %1874 = vst.msk [vmem:[#allocation2 + $0x8] sm:$0xff] %vm602_vm2, %v1865_v20  ;;  %v1701_v51 = vld [vmem:[#allocation4 + $0x12] sm:$0xff] }
 0x580   :  { %1735 = vrot.lane.b32.xlu0 %v1717_v33, %s7078_s30 }
 0x581   :  { %v1502_v21 = vpop.f32.mrb[40].mxu1  ;;  %v2107_v23 = vld [vmem:[#allocation4 + $0x1c] sm:$0xff] }
 0x582   :  { %1571 = vst [vmem:[#allocation4 + $0x30] sm:$0xff] %v1502_v21  ;;  %v6444_v24 = vpop.f32.mrb[41].mxu1  ;;  %v1959_v26 = vld [vmem:[#allocation4 + $0x1a] sm:$0xff] }
 0x583   :  { %v2108_v27 = vld [vmem:[#allocation4 + $0x24] sm:$0xff]  ;;  %v1505_v30 = vpop.f32.mrb[42].mxu1  ;;  %v1628_v32 = vld [vmem:[#allocation4 + $0x19] sm:$0xff]  ;;  %v1718_v55 = vpack.c.bf16 %v1959_v26, %v1701_v51 }
 0x584   :  { %v7594_v31 = vld [vmem:[#allocation4 + $0x22] sm:$0xff]  ;;  %v2125_v62 = vpack.c.bf16 %v2108_v27, %v2107_v23  ;;  %1572 = vst [vmem:[#allocation4 + $0x38] sm:$0xff] %v1505_v30  ;;  %1809 = vrot.lane.b32.xlu0 %v1791_v25, %s7092_s24  ;;  %v6445_v35 = vpop.f32.mrb[43].mxu1  ;;  %v1608_v38 = vpack.c.bf16 %v1505_v30, %v1502_v21  ;;  %v1644_v39 = vpack.c.bf16 %v1628_v32, %v1627_v37 }
 0x585   :  { %v1977_v36 = vpack.c.bf16 %v7594_v31, %v1959_v26  ;;  %v2034_v41 = vld [vmem:[#allocation4 + $0x23] sm:$0xff]  ;;  %v2033_v48 = vld [vmem:[#allocation4 + $0x1b] sm:$0xff] }
 0x586   :  { %v1849_v0 = vld [vmem:[#allocation4 + $0x1e] sm:$0xff]  ;;  %v1850_v42 = vld [vmem:[#allocation4 + $0x26] sm:$0xff]  ;;  %2134 = vst.msk [vmem:[#allocation2 + $0x10] sm:$0xff] %vm602_vm2, %v2125_v62  ;;  %1617 = vst.msk [vmem:[#allocation2 + $0x48] sm:$0xff] %vm602_vm2, %v1608_v38  ;;  %v2051_v49 = vpack.c.bf16 %v2034_v41, %v2033_v48 }
 0x587   :  { %1995 = vrot.lane.b32.xlu1 %v1977_v36, %s7078_s30  ;;  %v1866_v44 = vpack.c.bf16 %v1850_v42, %v1849_v0  ;;  %v1888_v52 = vld [vmem:[#allocation4 + $0x27] sm:$0xff]  ;;  %v1887_v56 = vld [vmem:[#allocation4 + $0x1f] sm:$0xff] }
 0x588   :  { %1663 = vrot.lane.b32.xlu0 %v1644_v39, %s7091_s22  ;;  %v1776_v3 = vld [vmem:[#allocation4 + $0x25] sm:$0xff]  ;;  %v1904_v5 = vpack.c.bf16 %v1888_v52, %v1887_v56  ;;  %v1775_v9 = vld [vmem:[#allocation4 + $0x1d] sm:$0xff] }
 0x589   :  { %1875 = vst.msk [vmem:[#allocation2 + $0x20] sm:$0xff] %vm602_vm2, %v1866_v44  ;;  %v1510_v50 = vpop.f32.mrb[44].mxu1  ;;  %v2109_v59 = vld [vmem:[#allocation4 + $0x2c] sm:$0xff]  ;;  %v1792_v34 = vpack.c.bf16 %v1776_v3, %v1775_v9  ;;  %v1629_v10 = vld [vmem:[#allocation4 + $0x21] sm:$0xff] }
 0x58a   :  { %1573 = vst [vmem:[#allocation4 + $0x40] sm:$0xff] %v1510_v50  ;;  %v6448_v54 = vpop.f32.mrb[45].mxu1  ;;  %v1851_v11 = vld [vmem:[#allocation4 + $0x2e] sm:$0xff] }
 0x58b   :  { %2069 = vrot.lane.b32.xlu1 %v2051_v49, %s7092_s24  ;;  %v2110_v60 = vld [vmem:[#allocation4 + $0x34] sm:$0xff]  ;;  %v1513_v61 = vpop.f32.mrb[46].mxu1  ;;  %v1961_v1 = vld [vmem:[#allocation4 + $0x2a] sm:$0xff] }
 0x58c   :  { %v2126_v4 = vpack.c.bf16 %v2110_v60, %v2109_v59  ;;  %1574 = vst [vmem:[#allocation4 + $0x48] sm:$0xff] %v1513_v61  ;;  %1737 = vrot.lane.b32.xlu0 %v1718_v55, %s7078_s30  ;;  %v6449_v6 = vpop.f32.mrb[47].mxu1  ;;  %v1609_v7 = vpack.c.bf16 %v1513_v61, %v1510_v50  ;;  %v7606_v63 = vld [vmem:[#allocation4 + $0x32] sm:$0xff]  ;;  %v1630_v13 = vld [vmem:[#allocation4 + $0x29] sm:$0xff]  ;;  %v1719_v30 = vpack.c.bf16 %v1961_v1, %v7594_v31 }
 0x58d   :  { %v2147_v8 = vld [vmem:[#allocation2 + $0x10] sm:$0xff]  ;;  %v1978_v17 = vpack.c.bf16 %v7606_v63, %v1961_v1  ;;  %v1645_v20 = vpack.c.bf16 %v1630_v13, %v1629_v10  ;;  %v2035_v58 = vld [vmem:[#allocation4 + $0x2b] sm:$0xff] }
 0x58e   :  { %2135 = vst.msk [vmem:[#allocation2 + $0x28] sm:$0xff] %vm602_vm2, %v2126_v4  ;;  %6491 = vmatmul.mubr.bf16.vlgmr.msra.gmra.mrb[72].mxu1 %v2147_v8  ;;  %v1852_v12 = vld [vmem:[#allocation4 + $0x36] sm:$0xff]  ;;  %1618 = vst.msk [vmem:[#allocation2 + $0x60] sm:$0xff] %vm602_vm2, %v1609_v7  ;;  %v1777_v38 = vld [vmem:[#allocation4 + $0x2d] sm:$0xff] }
 0x58f   :  { %1923 = vrot.lane.b32.xlu1 %v1904_v5, %s7091_s22  ;;  %6494 = vmatprep.mubr.msk.bf16.mxu1 %vm7094_vm11, %v7093_v2  ;;  %v1867_v16 = vpack.c.bf16 %v1852_v12, %v1851_v11  ;;  %v2036_v19 = vld [vmem:[#allocation4 + $0x33] sm:$0xff] }
 0x590   :  { %1811 = vrot.lane.b32.xlu0 %v1792_v34, %s7092_s24  ;;  %v2052_v21 = vpack.c.bf16 %v2036_v19, %v2035_v58  ;;  %v1890_v23 = vld [vmem:[#allocation4 + $0x37] sm:$0xff]  ;;  %v1889_v62 = vld [vmem:[#allocation4 + $0x2f] sm:$0xff] }
 0x591   :  { %v1518_v18 = vpop.f32.mrb[48].mxu1  ;;  %1876 = vst.msk [vmem:[#allocation2 + $0x38] sm:$0xff] %vm602_vm2, %v1867_v16  ;;  %v2111_v28 = vld [vmem:[#allocation4 + $0x3c] sm:$0xff]  ;;  %v1905_v36 = vpack.c.bf16 %v1890_v23, %v1889_v62  ;;  %v1631_v50 = vld [vmem:[#allocation4 + $0x31] sm:$0xff] }
 0x592   :  { %1575 = vst [vmem:[#allocation4 + $0x50] sm:$0xff] %v1518_v18  ;;  %v6452_v14 = vpop.f32.mrb[49].mxu1  ;;  %v1853_v26 = vld [vmem:[#allocation4 + $0x3e] sm:$0xff]  ;;  %v1778_v35 = vld [vmem:[#allocation4 + $0x35] sm:$0xff] }
 0x593   :  { %1997 = vrot.lane.b32.xlu1 %v1978_v17, %s7078_s30  ;;  %v2112_v33 = vld [vmem:[#allocation4 + $0x44] sm:$0xff]  ;;  %v1521_v53 = vpop.f32.mrb[50].mxu1  ;;  %v1793_v0 = vpack.c.bf16 %v1778_v35, %v1777_v38  ;;  %v1963_v42 = vld [vmem:[#allocation4 + $0x3a] sm:$0xff] }
 0x594   :  { %v2127_v15 = vpack.c.bf16 %v2112_v33, %v2111_v28  ;;  %1576 = vst [vmem:[#allocation4 + $0x58] sm:$0xff] %v1521_v53  ;;  %1665 = vrot.lane.b32.xlu0 %v1645_v20, %s7091_s22  ;;  %v6453_v22 = vpop.f32.mrb[51].mxu1  ;;  %v1610_v24 = vpack.c.bf16 %v1521_v53, %v1518_v18  ;;  %v1854_v27 = vld [vmem:[#allocation4 + $0x46] sm:$0xff]  ;;  %v1632_v47 = vld [vmem:[#allocation4 + $0x39] sm:$0xff]  ;;  %v1720_v8 = vpack.c.bf16 %v1963_v42, %v7606_v63 }
 0x595   :  { %v2150_v25 = vld [vmem:[#allocation2 + $0x28] sm:$0xff]  ;;  %v1868_v32 = vpack.c.bf16 %v1854_v27, %v1853_v26  ;;  %v7626_v41 = vld [vmem:[#allocation4 + $0x42] sm:$0xff]  ;;  %v1646_v60 = vpack.c.bf16 %v1632_v47, %v1631_v50 }
 0x596   :  { %2136 = vst.msk [vmem:[#allocation2 + $0x40] sm:$0xff] %vm602_vm2, %v2127_v15  ;;  %6495 = vmatmul.mubr.bf16.gmra.mrb[76].mxu1 %v2150_v25  ;;  %1619 = vst.msk [vmem:[#allocation2 + $0x78] sm:$0xff] %vm602_vm2, %v1610_v24  ;;  %v1979_v49 = vpack.c.bf16 %v7626_v41, %v1963_v42  ;;  %v2038_v51 = vld [vmem:[#allocation4 + $0x43] sm:$0xff]  ;;  %v2037_v3 = vld [vmem:[#allocation4 + $0x3b] sm:$0xff] }
 0x597   :  { %2071 = vrot.lane.b32.xlu1 %v2052_v21, %s7092_s24  ;;  %6498 = vmatprep.mubr.msk.bf16.mxu1 %vm7094_vm11, %v7093_v2  ;;  %1877 = vst.msk [vmem:[#allocation2 + $0x50] sm:$0xff] %vm602_vm2, %v1868_v32  ;;  %v2053_v4 = vpack.c.bf16 %v2038_v51, %v2037_v3  ;;  %v1892_v7 = vld [vmem:[#allocation4 + $0x47] sm:$0xff]  ;;  %v1891_v11 = vld [vmem:[#allocation4 + $0x3f] sm:$0xff] }
 0x598   :  { %1739 = vrot.lane.b32.xlu0 %v1719_v30, %s7078_s30  ;;  %v1780_v1 = vld [vmem:[#allocation4 + $0x45] sm:$0xff]  ;;  %v1906_v16 = vpack.c.bf16 %v1892_v7, %v1891_v11  ;;  %v1779_v17 = vld [vmem:[#allocation4 + $0x3d] sm:$0xff] }
 0x599   :  { %v1526_v37 = vpop.f32.mrb[52].mxu1  ;;  %v2113_v39 = vld [vmem:[#allocation4 + $0x4c] sm:$0xff]  ;;  %v1794_v63 = vpack.c.bf16 %v1780_v1, %v1779_v17  ;;  %v1633_v58 = vld [vmem:[#allocation4 + $0x41] sm:$0xff] }
 0x59a   :  { %1577 = vst [vmem:[#allocation4 + $0x60] sm:$0xff] %v1526_v37  ;;  %v6456_v31 = vpop.f32.mrb[53].mxu1  ;;  %v1855_v56 = vld [vmem:[#allocation4 + $0x4e] sm:$0xff] }
 0x59b   :  { %1925 = vrot.lane.b32.xlu1 %v1905_v36, %s7091_s22  ;;  %v2114_v44 = vld [vmem:[#allocation4 + $0x54] sm:$0xff]  ;;  %v1529_v46 = vpop.f32.mrb[54].mxu1  ;;  %v1965_v53 = vld [vmem:[#allocation4 + $0x4a] sm:$0xff] }
 0x59c   :  { %v2128_v48 = vpack.c.bf16 %v2114_v44, %v2113_v39  ;;  %1578 = vst [vmem:[#allocation4 + $0x68] sm:$0xff] %v1529_v46  ;;  %1813 = vrot.lane.b32.xlu0 %v1793_v0, %s7092_s24  ;;  %v6457_v52 = vpop.f32.mrb[55].mxu1  ;;  %v1611_v54 = vpack.c.bf16 %v1529_v46, %v1526_v37  ;;  %v1856_v59 = vld [vmem:[#allocation4 + $0x56] sm:$0xff]  ;;  %v1634_v15 = vld [vmem:[#allocation4 + $0x49] sm:$0xff]  ;;  %v1721_v42 = vpack.c.bf16 %v1965_v53, %v7626_v41 }
 0x59d   :  { %v2153_v55 = vld [vmem:[#allocation2 + $0x40] sm:$0xff]  ;;  %v1869_v61 = vpack.c.bf16 %v1856_v59, %v1855_v56  ;;  %v7641_v18 = vld [vmem:[#allocation4 + $0x52] sm:$0xff]  ;;  %v1647_v25 = vpack.c.bf16 %v1634_v15, %v1633_v58 }
 0x59e   :  { %2137 = vst.msk [vmem:[#allocation2 + $0x58] sm:$0xff] %vm602_vm2, %v2128_v48  ;;  %6499 = vmatmul.mubr.bf16.gmra.mrb[80].mxu1 %v2153_v55  ;;  %1620 = vst.msk [vmem:[#allocation2 + $0x90] sm:$0xff] %vm602_vm2, %v1611_v54  ;;  %v1980_v21 = vpack.c.bf16 %v7641_v18, %v1965_v53  ;;  %v2040_v23 = vld [vmem:[#allocation4 + $0x53] sm:$0xff]  ;;  %v2039_v30 = vld [vmem:[#allocation4 + $0x4b] sm:$0xff] }
 0x59f   :  { %1999 = vrot.lane.b32.xlu1 %v1979_v49, %s7078_s30  ;;  %6502 = vmatprep.mubr.msk.bf16.mxu1 %vm7094_vm11, %v7093_v2  ;;  %1878 = vst.msk [vmem:[#allocation2 + $0x68] sm:$0xff] %vm602_vm2, %v1869_v61  ;;  %v2054_v35 = vpack.c.bf16 %v2040_v23, %v2039_v30  ;;  %v1894_v36 = vld [vmem:[#allocation4 + $0x57] sm:$0xff]  ;;  %v1893_v44 = vld [vmem:[#allocation4 + $0x4f] sm:$0xff] }
 0x5a0   :  { %1667 = vrot.lane.b32.xlu0 %v1646_v60, %s7091_s22  ;;  %v1782_v46 = vld [vmem:[#allocation4 + $0x55] sm:$0xff]  ;;  %v1907_v47 = vpack.c.bf16 %v1894_v36, %v1893_v44  ;;  %v1781_v48 = vld [vmem:[#allocation4 + $0x4d] sm:$0xff] }
 0x5a1   :  { %v2115_v5 = vld [vmem:[#allocation4 + $0x5c] sm:$0xff]  ;;  %v1534_v6 = vpop.f32.mrb[56].mxu1  ;;  %v1795_v41 = vpack.c.bf16 %v1782_v46, %v1781_v48  ;;  %v1635_v56 = vld [vmem:[#allocation4 + $0x51] sm:$0xff] }
 0x5a2   :  { %1579 = vst [vmem:[#allocation4 + $0x70] sm:$0xff] %v1534_v6  ;;  %v6460_v9 = vpop.f32.mrb[57].mxu1  ;;  %v1857_v20 = vld [vmem:[#allocation4 + $0x5e] sm:$0xff] }
 0x5a3   :  { %2073 = vrot.lane.b32.xlu1 %v2053_v4, %s7092_s24  ;;  %v2116_v34 = vld [vmem:[#allocation4 + $0x64] sm:$0xff]  ;;  %v1537_v12 = vpop.f32.mrb[58].mxu1  ;;  %v1967_v50 = vld [vmem:[#allocation4 + $0x5a] sm:$0xff] }
 0x5a4   :  { %v2129_v13 = vpack.c.bf16 %v2116_v34, %v2115_v5  ;;  %1741 = vrot.lane.b32.xlu0 %v1720_v8, %s7078_s30  ;;  %1580 = vst [vmem:[#allocation4 + $0x78] sm:$0xff] %v1537_v12  ;;  %v6461_v10 = vpop.f32.mrb[59].mxu1  ;;  %v1612_v19 = vpack.c.bf16 %v1537_v12, %v1534_v6  ;;  %v1858_v28 = vld [vmem:[#allocation4 + $0x66] sm:$0xff]  ;;  %v1636_v59 = vld [vmem:[#allocation4 + $0x59] sm:$0xff] }
 0x5a5   :  { %v2156_v14 = vld [vmem:[#allocation2 + $0x58] sm:$0xff]  ;;  %v1870_v33 = vpack.c.bf16 %v1858_v28, %v1857_v20  ;;  %v1648_v8 = vpack.c.bf16 %v1636_v59, %v1635_v56  ;;  %v1722_v10 = vpack.c.bf16 %v1967_v50, %v7641_v18 }
 0x5a6   :  { %2138 = vst.msk [vmem:[#allocation2 + $0x70] sm:$0xff] %vm602_vm2, %v2129_v13  ;;  %6503 = vmatmul.mubr.bf16.gmra.mrb[84].mxu1 %v2156_v14  ;;  %1621 = vst.msk [vmem:[#allocation2 + $0xa8] sm:$0xff] %vm602_vm2, %v1612_v19  ;;  %v7663_v51 = vld [vmem:[#allocation4 + $0x62] sm:$0xff] }
 0x5a7   :  { %1927 = vrot.lane.b32.xlu1 %v1906_v16, %s7091_s22  ;;  %6506 = vmatprep.mubr.msk.bf16.mxu1 %vm7094_vm11, %v7093_v2  ;;  %1879 = vst.msk [vmem:[#allocation2 + $0x80] sm:$0xff] %vm602_vm2, %v1870_v33  ;;  %v1981_v3 = vpack.c.bf16 %v7663_v51, %v1967_v50  ;;  %v2041_v6 = vld [vmem:[#allocation4 + $0x5b] sm:$0xff]  ;;  %v2042_v7 = vld [vmem:[#allocation4 + $0x63] sm:$0xff] }
 0x5a8   :  { %1815 = vrot.lane.b32.xlu0 %v1794_v63, %s7092_s24  ;;  %v2055_v12 = vpack.c.bf16 %v2042_v7, %v2041_v6  ;;  %v1895_v13 = vld [vmem:[#allocation4 + $0x5f] sm:$0xff]  ;;  %v1896_v16 = vld [vmem:[#allocation4 + $0x67] sm:$0xff] }
 0x5a9   :  { %v2117_v22 = vld [vmem:[#allocation4 + $0x6c] sm:$0xff]  ;;  %v7651_v24 = vpop.f32.mrb[60].mxu1  ;;  %v1783_v20 = vld [vmem:[#allocation4 + $0x5d] sm:$0xff]  ;;  %v1908_v33 = vpack.c.bf16 %v1896_v16, %v1895_v13 }
 0x5aa   :  { %1581 = vst [vmem:[#allocation4 + $0x80] sm:$0xff] %v7651_v24  ;;  %v6464_v26 = vpop.f32.mrb[61].mxu1  ;;  %v1859_v31 = vld [vmem:[#allocation4 + $0x6e] sm:$0xff]  ;;  %v1784_v28 = vld [vmem:[#allocation4 + $0x65] sm:$0xff] }
 0x5ab   :  { %2001 = vrot.lane.b32.xlu1 %v1980_v21, %s7078_s30  ;;  %v2118_v27 = vld [vmem:[#allocation4 + $0x74] sm:$0xff]  ;;  %v1545_v32 = vpop.f32.mrb[62].mxu1  ;;  %v1969_v15 = vld [vmem:[#allocation4 + $0x6a] sm:$0xff]  ;;  %v1796_v18 = vpack.c.bf16 %v1784_v28, %v1783_v20  ;;  %v1637_v23 = vld [vmem:[#allocation4 + $0x61] sm:$0xff] }
 0x5ac   :  { %v2130_v62 = vpack.c.bf16 %v2118_v27, %v2117_v22  ;;  %1669 = vrot.lane.b32.xlu0 %v1647_v25, %s7091_s22  ;;  %1582 = vst [vmem:[#allocation4 + $0x88] sm:$0xff] %v1545_v32  ;;  %v6465_v37 = vpop.f32.mrb[63].mxu1  ;;  %v1860_v0 = vld [vmem:[#allocation4 + $0x76] sm:$0xff]  ;;  %v1638_v25 = vld [vmem:[#allocation4 + $0x69] sm:$0xff] }
 0x5ad   :  { %v2159_v38 = vld [vmem:[#allocation2 + $0x70] sm:$0xff]  ;;  %v1871_v39 = vpack.c.bf16 %v1860_v0, %v1859_v31  ;;  %v2043_v27 = vld [vmem:[#allocation4 + $0x6b] sm:$0xff] }
 0x5ae   :  { %2139 = vst.msk [vmem:[#allocation2 + $0x88] sm:$0xff] %vm602_vm2, %v2130_v62  ;;  %6507 = vmatmul.mubr.bf16.gmra.mrb[88].mxu1 %v2159_v38  ;;  %v1970_v21 = vld [vmem:[#allocation4 + $0x72] sm:$0xff]  ;;  %v1649_v62 = vpack.c.bf16 %v1638_v25, %v1637_v23 }
 0x5af   :  { %2075 = vrot.lane.b32.xlu1 %v2054_v35, %s7092_s24  ;;  %6510 = vmatprep.mubr.msk.bf16.mxu1 %vm7094_vm11, %v7093_v2  ;;  %1880 = vst.msk [vmem:[#allocation2 + $0x98] sm:$0xff] %vm602_vm2, %v1871_v39  ;;  %v1982_v26 = vpack.c.bf16 %v1970_v21, %v1969_v15  ;;  %v2044_v30 = vld [vmem:[#allocation4 + $0x73] sm:$0xff]  ;;  %v7686_v39 = vld [vmem:[#allocation2 + $0xd8] sm:$0xff] }
 0x5b0   :  { %1743 = vrot.lane.b32.xlu0 %v1721_v42, %s7078_s30  ;;  %v2056_v36 = vpack.c.bf16 %v2044_v30, %v2043_v27  ;;  %v1897_v38 = vld [vmem:[#allocation4 + $0x6f] sm:$0xff]  ;;  %v1898_v31 = vld [vmem:[#allocation4 + $0x77] sm:$0xff]  ;;  %v1723_v42 = vpack.c.bf16 %v1969_v15, %v7663_v51 }
 0x5b1   :  { %v2119_v49 = vld [vmem:[#allocation4 + $0x7c] sm:$0xff]  ;;  %v1550_v52 = vpop.f32.mrb[64].mxu1  ;;  %v1785_v46 = vld [vmem:[#allocation4 + $0x6d] sm:$0xff]  ;;  %v1909_v48 = vpack.c.bf16 %v1898_v31, %v1897_v38 }
 0x5b2   :  { %1583 = vst [vmem:[#allocation4 + $0x90] sm:$0xff] %v1550_v52  ;;  %v6468_v54 = vpop.f32.mrb[65].mxu1  ;;  %v1861_v9 = vld [vmem:[#allocation4 + $0x7e] sm:$0xff]  ;;  %v2592_v27 = vld [vmem:[#allocation18] sm:$0xff]  ;;  %v2597_v30 = vld [vmem:[#allocation18 + $0x28] sm:$0xff] }
 0x5b3   :  { %1929 = vrot.lane.b32.xlu1 %v1907_v47, %s7091_s22  ;;  %v2120_v55 = vld [vmem:[#allocation4 + $0x84] sm:$0xff]  ;;  %v1553_v60 = vpop.f32.mrb[66].mxu1  ;;  %v1786_v47 = vld [vmem:[#allocation4 + $0x75] sm:$0xff]  ;;  %v2596_v38 = vld [vmem:[#allocation18 + $0x20] sm:$0xff] }
 0x5b4   :  { %v2131_v61 = vpack.c.bf16 %v2120_v55, %v2119_v49  ;;  %1817 = vrot.lane.b32.xlu0 %v1795_v41, %s7092_s24  ;;  %1584 = vst [vmem:[#allocation4 + $0x98] sm:$0xff] %v1553_v60  ;;  %v6469_v4 = vpop.f32.mrb[67].mxu1  ;;  %v1862_v34 = vld [vmem:[#allocation4 + $0x86] sm:$0xff]  ;;  %v1971_v49 = vld [vmem:[#allocation4 + $0x7a] sm:$0xff]  ;;  %v1797_v51 = vpack.c.bf16 %v1786_v47, %v1785_v46 }
 0x5b5   :  { %v2162_v5 = vld [vmem:[#allocation2 + $0x88] sm:$0xff]  ;;  %v1872_v11 = vpack.c.bf16 %v1862_v34, %v1861_v9  ;;  %v1972_v50 = vld [vmem:[#allocation4 + $0x82] sm:$0xff] }
 0x5b6   :  { %2140 = vst.msk [vmem:[#allocation2 + $0xa0] sm:$0xff] %vm602_vm2, %v2131_v61  ;;  %6511 = vmatmul.mubr.bf16.gmra.mrb[92].mxu1 %v2162_v5  ;;  %v1641_v52 = vld [vmem:[#allocation4 + $0x81] sm:$0xff]  ;;  %v1642_v41 = vld [vmem:[#allocation4 + $0x89] sm:$0x7f]  ;;  %v1983_v54 = vpack.c.bf16 %v1972_v50, %v1971_v49  ;;  %v2601_v31 = vld [vmem:[#allocation18 + $0x48] sm:$0xff] }
 0x5b7   :  { %2003 = vrot.lane.b32.xlu1 %v1981_v3, %s7078_s30  ;;  %6514 = vmatprep.mubr.msk.bf16.mxu1 %vm7094_vm11, %v7093_v2  ;;  %1881 = vst.msk [vmem:[#allocation2 + $0xb0] sm:$0xff] %vm602_vm2, %v1872_v11  ;;  %v2045_v55 = vld [vmem:[#allocation4 + $0x7b] sm:$0xff]  ;;  %v2046_v56 = vld [vmem:[#allocation4 + $0x83] sm:$0xff]  ;;  %v1651_v59 = vpack.c.bf16 %v1642_v41, %v1641_v52 }
 0x5b8   :  { %1671 = vrot.lane.b32.xlu0 %v1648_v8, %s7091_s22  ;;  %v2057_v60 = vpack.c.bf16 %v2046_v56, %v2045_v55  ;;  %v1899_v61 = vld [vmem:[#allocation4 + $0x7f] sm:$0xff]  ;;  %v1900_v3 = vld [vmem:[#allocation4 + $0x87] sm:$0xff]  ;;  %v1724_v8 = vpack.c.bf16 %v1971_v49, %v1970_v21 }
 0x5b9   :  { %v2121_v1 = vld [vmem:[#allocation4 + $0x8c] sm:$0xff]  ;;  %v1558_v17 = vpop.f32.mrb[68].mxu1  ;;  %v1910_v5 = vpack.c.bf16 %v1900_v3, %v1899_v61  ;;  %v1787_v16 = vld [vmem:[#allocation4 + $0x7d] sm:$0xff]  ;;  %v2609_v61 = vld [vmem:[#allocation18 + $0x88] sm:$0xff] }
 0x5ba   :  { %1585 = vst [vmem:[#allocation4 + $0xa0] sm:$0xff] %v1558_v17  ;;  %v6472_v19 = vpop.f32.mrb[69].mxu1  ;;  %v1901_v6 = vld [vmem:[#allocation4 + $0x8f] sm:$0xff]  ;;  %v1788_v17 = vld [vmem:[#allocation4 + $0x85] sm:$0xff]  ;;  %v2602_v52 = vld [vmem:[#allocation18 + $0x50] sm:$0xff] }
 0x5bb   :  { %2077 = vrot.lane.b32.xlu1 %v2055_v12, %s7092_s24  ;;  %v2122_v14 = vld [vmem:[#allocation4 + $0x94] sm:$0xff]  ;;  %v1561_v63 = vpop.f32.mrb[70].mxu1  ;;  %v1973_v19 = vld [vmem:[#allocation4 + $0x8a] sm:$0xff]  ;;  %v1798_v20 = vpack.c.bf16 %v1788_v17, %v1787_v16 }
 0x5bc   :  { %1745 = vrot.lane.b32.xlu0 %v1722_v10, %s7078_s30  ;;  %v2132_v53 = vpack.c.bf16 %v2122_v14, %v2121_v1  ;;  %1586 = vst [vmem:[#allocation4 + $0xa8] sm:$0xff] %v1561_v63  ;;  %v6473_v58 = vpop.f32.mrb[71].mxu1  ;;  %v1902_v7 = vld [vmem:[#allocation4 + $0x97] sm:$0x7f]  ;;  %v1789_v28 = vld [vmem:[#allocation4 + $0x8d] sm:$0xff]  ;;  %v2603_v46 = vld [vmem:[#allocation18 + $0x58] sm:$0xff] }
 0x5bd   :  { %v2165_v22 = vld [vmem:[#allocation2 + $0xa0] sm:$0xff]  ;;  %v1911_v11 = vpack.c.bf16 %v1902_v7, %v1901_v6  ;;  %v1639_v12 = vld [vmem:[#allocation4 + $0x71] sm:$0xff]  ;;  %v1640_v1 = vld [vmem:[#allocation4 + $0x79] sm:$0xff] }
 0x5be   :  { %2141 = vst.msk [vmem:[#allocation2 + $0xb8] sm:$0xff] %vm602_vm2, %v2132_v53  ;;  %6515 = vmatmul.mubr.bf16.gmra.mrb[96].mxu1 %v2165_v22  ;;  %v1650_v10 = vpack.c.bf16 %v1640_v1, %v1639_v12  ;;  %v1974_v14 = vld [vmem:[#allocation4 + $0x92] sm:$0xff] }
 0x5bf   :  { %1931 = vrot.lane.b32.xlu1 %v1908_v33, %s7091_s22  ;;  %6518 = vmatprep.mubr.msk.bf16.mxu1 %vm7094_vm11, %v7093_v2  ;;  %v1790_v63 = vld [vmem:[#allocation4 + $0x95] sm:$0x7f]  ;;  %v1984_v33 = vpack.c.bf16 %v1974_v14, %v1973_v19  ;;  %v2047_v53 = vld [vmem:[#allocation4 + $0x8b] sm:$0xff] }
 0x5c0   :  { %1819 = vrot.lane.b32.xlu0 %v1796_v18, %s7092_s24  ;;  %v2048_v58 = vld [vmem:[#allocation4 + $0x93] sm:$0xff]  ;;  %v1799_v15 = vpack.c.bf16 %v1790_v63, %v1789_v28 }
 0x5c1   :  { %v2123_v32 = vld [vmem:[#allocation4 + $0x9c] sm:$0xff]  ;;  %v2058_v21 = vpack.c.bf16 %v2048_v58, %v2047_v53  ;;  %v2593_v22 = vld [vmem:[#allocation18 + $0x8] sm:$0xff]  ;;  %v2604_v56 = vld [vmem:[#allocation18 + $0x60] sm:$0xff] }
 0x5c2   :  { %v1975_v9 = vld [vmem:[#allocation4 + $0x9a] sm:$0xff]  ;;  %v2608_v7 = vld [vmem:[#allocation18 + $0x80] sm:$0xff] }
 0x5c3   :  { %2005 = vrot.lane.b32.xlu1 %v1982_v26, %s7078_s30  ;;  %v2124_v35 = vld [vmem:[#allocation4 + $0xa4] sm:$0x7f]  ;;  %v2049_v18 = vld [vmem:[#allocation4 + $0x9b] sm:$0xff] }
 0x5c4   :  { %1673 = vrot.lane.b32.xlu0 %v1649_v62, %s7091_s22  ;;  %v2133_v37 = vpack.c.bf16 %v2124_v35, %v2123_v32  ;;  %v1976_v34 = vld [vmem:[#allocation4 + $0xa2] sm:$0x7f] }
 0x5c5   :  { %v2168_v0 = vld [vmem:[#allocation2 + $0xb8] sm:$0xff]  ;;  %v1985_v13 = vpack.c.bf16 %v1976_v34, %v1975_v9 }
 0x5c6   :  { %6519 = vmatmul.mubr.bf16.gmra.mrb[100].mxu1 %v2168_v0  ;;  %v2143_v44 = vsel %vm7381_vm4, %v2133_v37, %v7686_v39  ;;  %v2050_v23 = vld [vmem:[#allocation4 + $0xa3] sm:$0x7f] }
 0x5c7   :  { %2079 = vrot.lane.b32.xlu1 %v2056_v36, %s7092_s24  ;;  %6522 = vmatprep.mubr.msk.bf16.mxu1 %vm7094_vm11, %v7093_v2  ;;  %2144 = vst [vmem:[#allocation2 + $0xd0] sm:$0xff] %v2143_v44  ;;  %v1716_v2 = vld [vmem:[#allocation4 + $0x8a] sm:$0x7f]  ;;  %v2059_v25 = vpack.c.bf16 %v2050_v23, %v2049_v18  ;;  %v2594_v62 = vld [vmem:[#allocation18 + $0x10] sm:$0xff] }
 0x5c8   :  { %1747 = vrot.lane.b32.xlu0 %v1723_v42, %s7078_s30  ;;  %v1725_v4 = vpack.c.bf16 %v1716_v2, %v1972_v50  ;;  %v2595_v26 = vld [vmem:[#allocation18 + $0x18] sm:$0xff]  ;;  %v2598_v42 = vld [vmem:[#allocation18 + $0x30] sm:$0xff]  ;;  %v2605_v50 = vld [vmem:[#allocation18 + $0x68] sm:$0xff] }
 0x5c9   :  { %v2599_v36 = vld [vmem:[#allocation18 + $0x38] sm:$0xff] }
 0x5cb   :  { %1933 = vrot.lane.b32.xlu1 %v1909_v48, %s7091_s22  ;;  %v2600_v48 = vld [vmem:[#allocation18 + $0x40] sm:$0xff] }
 0x5cc   :  { %1821 = vrot.lane.b32.xlu0 %v1797_v51, %s7092_s24 }
 0x5ce   :  { %6523 = vmatmul.mubr.bf16.gmra.mrb[104].mxu1 %v2143_v44 }
 0x5cf   :  { %2007 = vrot.lane.b32.xlu1 %v1983_v54, %s7078_s30  ;;  %v2607_v54 = vld [vmem:[#allocation18 + $0x78] sm:$0xff] }
 0x5d0   :  { %1677 = vrot.lane.b32.xlu0 %v1651_v59, %s7091_s22 }
 0x5d3   :  { %2081 = vrot.lane.b32.xlu1 %v2057_v60, %s7092_s24 }
 0x5d4   :  { %1751 = vrot.lane.b32.xlu0 %v1725_v4, %s7078_s30  ;;  %v2606_v4 = vld [vmem:[#allocation18 + $0x70] sm:$0xff] }
 0x5d7   :  { %1935 = vrot.lane.b32.xlu1 %v1910_v5, %s7091_s22 }
 0x5d8   :  { %1749 = vrot.lane.b32.xlu0 %v1724_v8, %s7078_s30 }
 0x5db   :  { %1937 = vrot.lane.b32.xlu1 %v1911_v11, %s7091_s22 }
 0x5dc   :  { %2011 = vrot.lane.b32.xlu0 %v1985_v13, %s7078_s30 }
 0x5df   :  { %1675 = vrot.lane.b32.xlu1 %v1650_v10, %s7091_s22 }
 0x5e0   :  { %1823 = vrot.lane.b32.xlu0 %v1798_v20, %s7092_s24 }
 0x5e3   :  { %2009 = vrot.lane.b32.xlu1 %v1984_v33, %s7078_s30 }
 0x5e4   :  { %1825 = vrot.lane.b32.xlu0 %v1799_v15, %s7092_s24 }
 0x5e7   :  { %2083 = vrot.lane.b32.xlu1 %v2058_v21, %s7092_s24 }
 0x5e8   :  { %2617 = vperm.xlu0 %6662, %v2593_v22  }
 0x5eb   :  { %2085 = vrot.lane.b32.xlu1 %v2059_v25, %s7092_s24 }
 0x5ec   :  { %2627 = vperm.xlu0 %6662, %v2595_v26  }
 0x5ee   :  { %v1662_v32 = vpop.permute.xlu0 %1661 }
 0x5ef   :  { %2612 = vperm.xlu1 %6663, %v2592_v27   ;;  %1688 = vst.msk [vmem:[#allocation2] sm:$0xff] %vm640_vm5, %v1662_v32 }
 0x5f0   :  { %v1922_v35 = vpop.permute.xlu1 %1921  ;;  %2637 = vperm.xlu0 %6662, %v2597_v30  }
 0x5f1   :  { %1948 = vst.msk [vmem:[#allocation2 + $0x8] sm:$0xff] %vm640_vm5, %v1922_v35 }
 0x5f2   :  { %v1736_v37 = vpop.permute.xlu0 %1735 }
 0x5f3   :  { %2622 = vperm.xlu1 %6663, %v2594_v62   ;;  %1762 = vst.msk [vmem:[#allocation2] sm:$0xff] %vm677_vm6, %v1736_v37 }
 0x5f4   :  { %2647 = vperm.xlu0 %6662, %v2599_v36  }
 0x5f6   :  { %v1810_v0 = vpop.permute.xlu0 %1809 }
 0x5f7   :  { %2632 = vperm.xlu1 %6663, %v2596_v38   ;;  %1836 = vst.msk [vmem:[#allocation2] sm:$0xff] %vm714_vm7, %v1810_v0 }
 0x5f8   :  { %2657 = vperm.xlu0 %6662, %v2601_v31  }
 0x5f9   :  { %v1996_v44 = vpop.permute.xlu1 %1995 }
 0x5fa   :  { %2022 = vst.msk [vmem:[#allocation2 + $0x8] sm:$0xff] %vm677_vm6, %v1996_v44  ;;  %v1664_v47 = vpop.permute.xlu0 %1663 }
 0x5fb   :  { %2642 = vperm.xlu1 %6663, %v2598_v42   ;;  %1689 = vst.msk [vmem:[#allocation2 + $0x18] sm:$0xff] %vm640_vm5, %v1664_v47 }
 0x5fc   :  { %2667 = vperm.xlu0 %6662, %v2603_v46  }
 0x5fd   :  { %v2070_v49 = vpop.permute.xlu1 %2069 }
 0x5fe   :  { %2096 = vst.msk [vmem:[#allocation2 + $0x8] sm:$0xff] %vm714_vm7, %v2070_v49  ;;  %v1738_v51 = vpop.permute.xlu0 %1737  ;;  %v2145_v60 = vld [vmem:[#allocation2] sm:$0xff] }
 0x5ff   :  { %2652 = vperm.xlu1 %6663, %v2600_v48   ;;  %1763 = vst.msk [vmem:[#allocation2 + $0x18] sm:$0xff] %vm677_vm6, %v1738_v51 }
 0x600   :  { %2677 = vperm.xlu0 %6662, %v2605_v50  }
 0x601   :  { %v1924_v41 = vpop.permute.xlu1 %1923 }
 0x602   :  { %1949 = vst.msk [vmem:[#allocation2 + $0x20] sm:$0xff] %vm640_vm5, %v1924_v41  ;;  %v1812_v55 = vpop.permute.xlu0 %1811  ;;  %v1604_v41 = vld [vmem:[#allocation4 + $0x88] sm:$0x7f] }
 0x603   :  { %2662 = vperm.xlu1 %6663, %v2602_v52   ;;  %1837 = vst.msk [vmem:[#allocation2 + $0x18] sm:$0xff] %vm714_vm7, %v1812_v55 }
 0x604   :  { %2687 = vperm.xlu0 %6662, %v2607_v54  }
 0x605   :  { %v1998_v59 = vpop.permute.xlu1 %1997  ;;  %v2146_v2 = vld [vmem:[#allocation2 + $0x8] sm:$0xff] }
 0x606   :  { %2023 = vst.msk [vmem:[#allocation2 + $0x20] sm:$0xff] %vm677_vm6, %v1998_v59  ;;  %2396 = vmatprep.mubr.bf16.mxu0 %v2146_v2  ;;  %v1666_v3 = vpop.permute.xlu0 %1665  ;;  %v1863_v2 = vld [vmem:[#allocation4 + $0x8e] sm:$0xff] }
 0x607   :  { %2397 = vmatmul.mubr.bf16.vlgmr.msra.gmra.mrb[12].mxu0 %v2145_v60  ;;  %2672 = vperm.xlu1 %6663, %v2604_v56   ;;  %1690 = vst.msk [vmem:[#allocation2 + $0x30] sm:$0xff] %vm640_vm5, %v1666_v3  ;;  %v1613_v56 = vpack.c.bf16 %v1604_v41, %v7651_v24  ;;  %v1864_v60 = vld [vmem:[#allocation4 + $0x96] sm:$0x7f] }
 0x608   :  { %2697 = vperm.xlu0 %6662, %v2609_v61  }
 0x609   :  { %v2072_v5 = vpop.permute.xlu1 %2071  ;;  %v1623_v3 = vsel %vm7381_vm4, %v1613_v56, %v7686_v39 }
 0x60a   :  { %2097 = vst.msk [vmem:[#allocation2 + $0x20] sm:$0xff] %vm714_vm7, %v2072_v5  ;;  %v1740_v6 = vpop.permute.xlu0 %1739  ;;  %v2148_v12 = vld [vmem:[#allocation2 + $0x18] sm:$0xff] }
 0x60b   :  { %2682 = vperm.xlu1 %6663, %v2606_v4   ;;  %1764 = vst.msk [vmem:[#allocation2 + $0x30] sm:$0xff] %vm677_vm6, %v1740_v6  ;;  %v1873_v4 = vpack.c.bf16 %v1864_v60, %v1863_v2 }
 0x60d   :  { %v1926_v8 = vpop.permute.xlu1 %1925 }
 0x60e   :  { %1950 = vst.msk [vmem:[#allocation2 + $0x38] sm:$0xff] %vm640_vm5, %v1926_v8  ;;  %v1814_v9 = vpop.permute.xlu0 %1813 }
 0x60f   :  { %2692 = vperm.xlu1 %6663, %v2608_v7   ;;  %1838 = vst.msk [vmem:[#allocation2 + $0x30] sm:$0xff] %vm714_vm7, %v1814_v9  ;;  %v1883_v9 = vsel %vm7381_vm4, %v1873_v4, %v7686_v39  ;;  %vm5613_vm4 = vcmask 1041408  }
 0x611   :  { %v2000_v34 = vpop.permute.xlu1 %1999  ;;  %v2149_v11 = vld [vmem:[#allocation2 + $0x20] sm:$0xff] }
 0x612   :  { %2024 = vst.msk [vmem:[#allocation2 + $0x38] sm:$0xff] %vm677_vm6, %v2000_v34  ;;  %2404 = vmatprep.mubr.bf16.mxu0 %v2149_v11  ;;  %v1668_v1 = vpop.permute.xlu0 %1667 }
 0x613   :  { %2405 = vmatmul.mubr.bf16.gmra.mrb[16].mxu0 %v2148_v12  ;;  %1691 = vst.msk [vmem:[#allocation2 + $0x48] sm:$0xff] %vm640_vm5, %v1668_v1 }
 0x615   :  { %v2074_v13 = vpop.permute.xlu1 %2073 }
 0x616   :  { %2098 = vst.msk [vmem:[#allocation2 + $0x38] sm:$0xff] %vm714_vm7, %v2074_v13  ;;  %v1742_v16 = vpop.permute.xlu0 %1741  ;;  %v2151_v20 = vld [vmem:[#allocation2 + $0x30] sm:$0xff] }
 0x617   :  { %1765 = vst.msk [vmem:[#allocation2 + $0x48] sm:$0xff] %vm677_vm6, %v1742_v16 }
 0x619   :  { %v1928_v17 = vpop.permute.xlu1 %1927 }
 0x61a   :  { %1951 = vst.msk [vmem:[#allocation2 + $0x50] sm:$0xff] %vm640_vm5, %v1928_v17  ;;  %v1816_v10 = vpop.permute.xlu0 %1815 }
 0x61b   :  { %1839 = vst.msk [vmem:[#allocation2 + $0x48] sm:$0xff] %vm714_vm7, %v1816_v10 }
 0x61d   :  { %v2002_v19 = vpop.permute.xlu1 %2001  ;;  %v2152_v14 = vld [vmem:[#allocation2 + $0x38] sm:$0xff] }
 0x61e   :  { %2025 = vst.msk [vmem:[#allocation2 + $0x50] sm:$0xff] %vm677_vm6, %v2002_v19  ;;  %2412 = vmatprep.mubr.bf16.mxu0 %v2152_v14  ;;  %v1670_v28 = vpop.permute.xlu0 %1669 }
 0x61f   :  { %2413 = vmatmul.mubr.bf16.gmra.mrb[20].mxu0 %v2151_v20  ;;  %1692 = vst.msk [vmem:[#allocation2 + $0x60] sm:$0xff] %vm640_vm5, %v1670_v28 }
 0x621   :  { %v2076_v63 = vpop.permute.xlu1 %2075 }
 0x622   :  { %2099 = vst.msk [vmem:[#allocation2 + $0x50] sm:$0xff] %vm714_vm7, %v2076_v63  ;;  %v1744_v33 = vpop.permute.xlu0 %1743  ;;  %v2154_v22 = vld [vmem:[#allocation2 + $0x48] sm:$0xff] }
 0x623   :  { %1766 = vst.msk [vmem:[#allocation2 + $0x60] sm:$0xff] %vm677_vm6, %v1744_v33 }
 0x625   :  { %v1930_v53 = vpop.permute.xlu1 %1929 }
 0x626   :  { %1952 = vst.msk [vmem:[#allocation2 + $0x68] sm:$0xff] %vm640_vm5, %v1930_v53  ;;  %v1818_v58 = vpop.permute.xlu0 %1817 }
 0x627   :  { %1840 = vst.msk [vmem:[#allocation2 + $0x60] sm:$0xff] %vm714_vm7, %v1818_v58 }
 0x629   :  { %v2004_v15 = vpop.permute.xlu1 %2003  ;;  %v2155_v21 = vld [vmem:[#allocation2 + $0x50] sm:$0xff] }
 0x62a   :  { %2026 = vst.msk [vmem:[#allocation2 + $0x68] sm:$0xff] %vm677_vm6, %v2004_v15  ;;  %2420 = vmatprep.mubr.bf16.mxu0 %v2155_v21  ;;  %v1672_v18 = vpop.permute.xlu0 %1671 }
 0x62b   :  { %2421 = vmatmul.mubr.bf16.gmra.mrb[24].mxu0 %v2154_v22  ;;  %1693 = vst.msk [vmem:[#allocation2 + $0x78] sm:$0xff] %vm640_vm5, %v1672_v18 }
 0x62d   :  { %v2078_v23 = vpop.permute.xlu1 %2077 }
 0x62e   :  { %2100 = vst.msk [vmem:[#allocation2 + $0x68] sm:$0xff] %vm714_vm7, %v2078_v23  ;;  %v1746_v25 = vpop.permute.xlu0 %1745  ;;  %v2157_v62 = vld [vmem:[#allocation2 + $0x60] sm:$0xff] }
 0x62f   :  { %1767 = vst.msk [vmem:[#allocation2 + $0x78] sm:$0xff] %vm677_vm6, %v1746_v25 }
 0x631   :  { %v1932_v26 = vpop.permute.xlu1 %1931 }
 0x632   :  { %1953 = vst.msk [vmem:[#allocation2 + $0x80] sm:$0xff] %vm640_vm5, %v1932_v26  ;;  %v1820_v27 = vpop.permute.xlu0 %1819 }
 0x633   :  { %1841 = vst.msk [vmem:[#allocation2 + $0x78] sm:$0xff] %vm714_vm7, %v1820_v27 }
 0x635   :  { %v2006_v30 = vpop.permute.xlu1 %2005  ;;  %v2158_v32 = vld [vmem:[#allocation2 + $0x68] sm:$0xff] }
 0x636   :  { %2027 = vst.msk [vmem:[#allocation2 + $0x80] sm:$0xff] %vm677_vm6, %v2006_v30  ;;  %2428 = vmatprep.mubr.bf16.mxu0 %v2158_v32  ;;  %v1674_v35 = vpop.permute.xlu0 %1673 }
 0x637   :  { %2429 = vmatmul.mubr.bf16.gmra.mrb[28].mxu0 %v2157_v62  ;;  %1694 = vst.msk [vmem:[#allocation2 + $0x90] sm:$0xff] %vm640_vm5, %v1674_v35 }
 0x639   :  { %v2080_v36 = vpop.permute.xlu1 %2079 }
 0x63a   :  { %2101 = vst.msk [vmem:[#allocation2 + $0x80] sm:$0xff] %vm714_vm7, %v2080_v36  ;;  %v1748_v37 = vpop.permute.xlu0 %1747  ;;  %v2160_v44 = vld [vmem:[#allocation2 + $0x78] sm:$0xff] }
 0x63b   :  { %1768 = vst.msk [vmem:[#allocation2 + $0x90] sm:$0xff] %vm677_vm6, %v1748_v37 }
 0x63d   :  { %v1934_v38 = vpop.permute.xlu1 %1933 }
 0x63e   :  { %1954 = vst.msk [vmem:[#allocation2 + $0x98] sm:$0xff] %vm640_vm5, %v1934_v38  ;;  %v1822_v31 = vpop.permute.xlu0 %1821 }
 0x63f   :  { %1842 = vst.msk [vmem:[#allocation2 + $0x90] sm:$0xff] %vm714_vm7, %v1822_v31 }
 0x641   :  { %v2008_v0 = vpop.permute.xlu1 %2007  ;;  %v2161_v42 = vld [vmem:[#allocation2 + $0x80] sm:$0xff] }
 0x642   :  { %2028 = vst.msk [vmem:[#allocation2 + $0x98] sm:$0xff] %vm677_vm6, %v2008_v0  ;;  %2436 = vmatprep.mubr.bf16.mxu0 %v2161_v42  ;;  %v1678_v46 = vpop.permute.xlu0 %1677 }
 0x643   :  { %2437 = vmatmul.mubr.bf16.gmra.mrb[32].mxu0 %v2160_v44  ;;  %v1697_v6 = vsel %vm7430_vm8, %v1678_v46, %v1623_v3 }
 0x645   :  { %v2082_v47 = vpop.permute.xlu1 %2081 }
 0x646   :  { %2102 = vst.msk [vmem:[#allocation2 + $0x98] sm:$0xff] %vm714_vm7, %v2082_v47  ;;  %v1752_v48 = vpop.permute.xlu0 %1751  ;;  %v2163_v54 = vld [vmem:[#allocation2 + $0x90] sm:$0xff] }
 0x647   :  { %v1771_v24 = vsel %vm7437_vm9, %v1752_v48, %v1697_v6 }
 0x649   :  { %v1936_v49 = vpop.permute.xlu1 %1935 }
 0x64a   :  { %1955 = vst.msk [vmem:[#allocation2 + $0xb0] sm:$0xff] %vm640_vm5, %v1936_v49  ;;  %v1750_v50 = vpop.permute.xlu0 %1749 }
 0x64d   :  { %v1938_v51 = vpop.permute.xlu1 %1937  ;;  %v2164_v52 = vld [vmem:[#allocation2 + $0x98] sm:$0xff] }
 0x64e   :  { %2444 = vmatprep.mubr.bf16.mxu0 %v2164_v52  ;;  %v2012_v55 = vpop.permute.xlu0 %2011  ;;  %v1957_v11 = vsel %vm7430_vm8, %v1938_v51, %v1883_v9 }
 0x64f   :  { %2445 = vmatmul.mubr.bf16.gmra.mrb[36].mxu0 %v2163_v54  ;;  %v2031_v12 = vsel %vm7437_vm9, %v2012_v55, %v1957_v11 }
 0x651   :  { %v1676_v59 = vpop.permute.xlu1 %1675 }
 0x652   :  { %1695 = vst.msk [vmem:[#allocation2 + $0xa8] sm:$0xff] %vm640_vm5, %v1676_v59  ;;  %v1824_v61 = vpop.permute.xlu0 %1823 }
 0x653   :  { %1769 = vst.msk [vmem:[#allocation2 + $0xa8] sm:$0xff] %vm677_vm6, %v1750_v50 }
 0x654   :  { %1843 = vst.msk [vmem:[#allocation2 + $0xa8] sm:$0xff] %vm714_vm7, %v1824_v61 }
 0x655   :  { %v2010_v5 = vpop.permute.xlu1 %2009 }
 0x656   :  { %2029 = vst.msk [vmem:[#allocation2 + $0xb0] sm:$0xff] %vm677_vm6, %v2010_v5  ;;  %v1826_v7 = vpop.permute.xlu0 %1825 }
 0x657   :  { %v1845_v8 = vsel %vm7447_vm10, %v1826_v7, %v1771_v24 }
 0x658   :  { %1846 = vst [vmem:[#allocation2 + $0xc0] sm:$0xff] %v1845_v8 }
 0x659   :  { %v2084_v34 = vpop.permute.xlu1 %2083 }
 0x65a   :  { %2103 = vst.msk [vmem:[#allocation2 + $0xb0] sm:$0xff] %vm714_vm7, %v2084_v34 }
 0x65b   :  { %v2166_v29 = vld [vmem:[#allocation2 + $0xa8] sm:$0xff] }
 0x65d   :  { %v2086_v1 = vpop.permute.xlu1 %2085 }
 0x65e   :  { %v2105_v13 = vsel %vm7447_vm10, %v2086_v1, %v2031_v12 }
 0x65f   :  { %2106 = vst [vmem:[#allocation2 + $0xc8] sm:$0xff] %v2105_v13 }
 0x661   :  { %v2167_v16 = vld [vmem:[#allocation2 + $0xb0] sm:$0xff]  ;;  %v2503_v17 = vpop.f32.mrb[72].mxu1 }
 0x662   :  { %2452 = vmatprep.mubr.bf16.mxu0 %v2167_v16  ;;  %v6492_v39 = vpop.f32.mrb[73].mxu1 }
 0x663   :  { %2453 = vmatmul.mubr.bf16.gmra.mrb[40].mxu0 %v2166_v29  ;;  %v2506_v10 = vpop.f32.mrb[74].mxu1 }
 0x664   :  { %2460 = vmatprep.mubr.bf16.mxu0 %v2105_v13  ;;  %v6493_v40 = vpop.f32.mrb[75].mxu1 }
 0x669   :  { %v2511_v19 = vpop.f32.mrb[76].mxu1 }
 0x66a   :  { %v6496_v14 = vpop.f32.mrb[77].mxu1 }
 0x66b   :  { %2461 = vmatmul.mubr.bf16.gmra.mrb[44].mxu0 %v1845_v8  ;;  %v2514_v20 = vpop.f32.mrb[78].mxu1 }
 0x66c   :  { %v6497_v43 = vpop.f32.mrb[79].mxu1 }
 0x671   :  { %v2519_v28 = vpop.f32.mrb[80].mxu1 }
 0x672   :  { %v6500_v63 = vpop.f32.mrb[81].mxu1 }
 0x673   :  { %v2522_v33 = vpop.f32.mrb[82].mxu1 }
 0x674   :  { %v6501_v45 = vpop.f32.mrb[83].mxu1 }
 0x679   :  { %v2527_v53 = vpop.f32.mrb[84].mxu1 }
 0x67a   :  { %v6504_v58 = vpop.f32.mrb[85].mxu1 }
 0x67b   :  { %v2530_v15 = vpop.f32.mrb[86].mxu1  ;;  %v2613_v58 = vpop.permute.xlu1 %2612 }
 0x67c   :  { %v6505_v21 = vpop.f32.mrb[87].mxu1 }
 0x681   :  { %v2535_v22 = vpop.f32.mrb[88].mxu1 }
 0x682   :  { %v6508_v18 = vpop.f32.mrb[89].mxu1 }
 0x683   :  { %v2538_v23 = vpop.f32.mrb[90].mxu1 }
 0x684   :  { %v6509_v25 = vpop.f32.mrb[91].mxu1 }
 0x689   :  { %v7777_v26 = vpop.f32.mrb[92].mxu1 }
 0x68a   :  { %v6512_v27 = vpop.f32.mrb[93].mxu1 }
 0x68b   :  { %v7779_v30 = vpop.f32.mrb[94].mxu1 }
 0x68c   :  { %v6513_v32 = vpop.f32.mrb[95].mxu1 }
 0x68d   :  { %v2618_v32 = vpop.permute.xlu0 %2617 }
 0x691   :  { %v7781_v62 = vpop.f32.mrb[96].mxu1 }
 0x692   :  { %v6516_v35 = vpop.f32.mrb[97].mxu1 }
 0x693   :  { %v7783_v36 = vpop.f32.mrb[98].mxu1  ;;  %v2623_v35 = vpop.permute.xlu1 %2622 }
 0x694   :  { %v6517_v37 = vpop.f32.mrb[99].mxu1 }
 0x699   :  { %v7785_v38 = vpop.f32.mrb[100].mxu1 }
 0x69a   :  { %v6520_v31 = vpop.f32.mrb[101].mxu1 }
 0x69b   :  { %v7787_v0 = vpop.f32.mrb[102].mxu1 }
 0x69c   :  { %v6521_v42 = vpop.f32.mrb[103].mxu1 }
 0x6a1   :  { %v7789_v44 = vpop.f32.mrb[104].mxu1 }
 0x6a2   :  { %v6524_v46 = vpop.f32.mrb[105].mxu1 }
 0x6a3   :  { %v7791_v47 = vpop.f32.mrb[106].mxu1 }
 0x6a4   :  { %v6525_v48 = vpop.f32.mrb[107].mxu1 }
 0x6a5   :  { %v2628_v48 = vpop.permute.xlu0 %2627 }
 0x6da   :  { %v6241_v49 = vpop.f32.mrb[12].mxu0 }
 0x6db   :  { %v6242_v50 = vpop.f32.mrb[13].mxu0 }
 0x6dc   :  { %v6243_v51 = vadd.f32 %v6242_v50, %v6241_v49  ;;  %v6244_v52 = vpop.f32.mrb[14].mxu0 }
 0x6dd   :  { %v6245_v41 = vpop.f32.mrb[15].mxu0 }
 0x6de   :  { %v2504_v54 = vadd.f32 %v6243_v51, %v2503_v17  ;;  %v6246_v55 = vadd.f32 %v6245_v41, %v6244_v52 }
 0x6e0   :  { %v2507_v56 = vadd.f32 %v6246_v55, %v2506_v10  ;;  %v2633_v55 = vpop.permute.xlu1 %2632 }
 0x6e2   :  { %v7793_v25 = vmax.f32 %v2507_v56, 0.0 }
 0x6e6   :  { %v6247_v59 = vpop.f32.mrb[16].mxu0 }
 0x6e7   :  { %v6248_v2 = vpop.f32.mrb[17].mxu0 }
 0x6e8   :  { %v6249_v60 = vadd.f32 %v6248_v2, %v6247_v59  ;;  %v6250_v61 = vpop.f32.mrb[18].mxu0 }
 0x6e9   :  { %v6251_v3 = vpop.f32.mrb[19].mxu0 }
 0x6ea   :  { %v2512_v4 = vadd.f32 %v6249_v60, %v2511_v19  ;;  %v6252_v5 = vadd.f32 %v6251_v3, %v6250_v61  ;;  %v6741_v60 = vld [vmem:[%s8858_s8 + $0x4] ss:$8 sps:$4 sm:$0xff]  }
 0x6eb   :  { %6087 = vmatprep.mubr.msk.bf16.mxu0 %vm3074_vm13, %v6741_v60 }
 0x6ec   :  { %v2515_v6 = vadd.f32 %v6252_v5, %v2514_v20  ;;  %v7797_v27 = vmax.f32 %v2512_v4, 0.0 }
 0x6ee   :  { %v2702_v37 = vmul.f32 %v2623_v35, %v7797_v27  ;;  %v7802_v31 = vmax.f32 %v2515_v6, 0.0 }
 0x6f0   :  { %v2744_v52 = vmul.f32 %v2702_v37, %v7797_v27  ;;  %v2703_v41 = vmul.f32 %v2628_v48, %v7802_v31 }
 0x6f2   :  { %v6253_v24 = vpop.f32.mrb[20].mxu0 }
 0x6f3   :  { %v6254_v7 = vpop.f32.mrb[21].mxu0 }
 0x6f4   :  { %v6255_v8 = vadd.f32 %v6254_v7, %v6253_v24  ;;  %v6256_v9 = vpop.f32.mrb[22].mxu0  ;;  %v2745_v7 = vmul.f32 %v2703_v41, %v7802_v31 }
 0x6f5   :  { %v6257_v34 = vpop.f32.mrb[23].mxu0 }
 0x6f6   :  { %v2520_v11 = vadd.f32 %v6255_v8, %v2519_v28  ;;  %v6258_v12 = vadd.f32 %v6257_v34, %v6256_v9  ;;  %v2638_v8 = vpop.permute.xlu0 %2637 }
 0x6f8   :  { %v2523_v1 = vadd.f32 %v6258_v12, %v2522_v33  ;;  %v7795_v33 = vmax.f32 %v2504_v54, 0.0  ;;  %v7805_v46 = vmax.f32 %v2520_v11, 0.0  ;;  %v2643_v11 = vpop.permute.xlu1 %2642 }
 0x6fa   :  { %v2704_v3 = vmul.f32 %v2633_v55, %v7805_v46  ;;  %v7815_v4 = vmax.f32 %v2523_v1, 0.0 }
 0x6fc   :  { %v2746_v9 = vmul.f32 %v2704_v3, %v7805_v46  ;;  %v2705_v34 = vmul.f32 %v2638_v8, %v7815_v4 }
 0x6fe   :  { %v6259_v13 = vpop.f32.mrb[24].mxu0 }
 0x6ff   :  { %v6260_v16 = vpop.f32.mrb[25].mxu0 }
 0x700   :  { %v6261_v17 = vadd.f32 %v6260_v16, %v6259_v13  ;;  %v6262_v29 = vpop.f32.mrb[26].mxu0 }
 0x701   :  { %v6263_v39 = vpop.f32.mrb[27].mxu0 }
 0x702   :  { %v2528_v10 = vadd.f32 %v6261_v17, %v2527_v53  ;;  %v6264_v40 = vadd.f32 %v6263_v39, %v6262_v29  ;;  %v2701_v53 = vmul.f32 %v2618_v32, %v7793_v25  ;;  %v2747_v39 = vmul.f32 %v2705_v34, %v7815_v4 }
 0x704   :  { %v2531_v14 = vadd.f32 %v6264_v40, %v2530_v15  ;;  %v2700_v15 = vmul.f32 %v2613_v58, %v7795_v33 }
 0x706   :  { %v2742_v51 = vmul.f32 %v2700_v15, %v7795_v33  ;;  %v2718_v56 = vadd.f32 %v2701_v53, %v2700_v15  ;;  %v7825_v16 = vmax.f32 %v2531_v14, 0.0 }
 0x708   :  { %v2719_v5 = vadd.f32 %v2718_v56, %v2702_v37 }
 0x70a   :  { %v6265_v43 = vpop.f32.mrb[28].mxu0  ;;  %v2720_v12 = vadd.f32 %v2719_v5, %v2703_v41 }
 0x70b   :  { %v6266_v19 = vpop.f32.mrb[29].mxu0 }
 0x70c   :  { %v6267_v63 = vadd.f32 %v6266_v19, %v6265_v43  ;;  %v6268_v20 = vpop.f32.mrb[30].mxu0  ;;  %v2648_v43 = vpop.permute.xlu0 %2647 }
 0x70d   :  { %v6269_v45 = vpop.f32.mrb[31].mxu0 }
 0x70e   :  { %v2536_v21 = vadd.f32 %v6267_v63, %v2535_v22  ;;  %v6270_v18 = vadd.f32 %v6269_v45, %v6268_v20  ;;  %v2743_v22 = vmul.f32 %v2701_v53, %v7793_v25  ;;  %v2707_v45 = vmul.f32 %v2648_v43, %v7825_v16 }
 0x710   :  { %v2539_v28 = vadd.f32 %v6270_v18, %v2538_v23  ;;  %v2760_v61 = vadd.f32 %v2743_v22, %v2742_v51  ;;  %v7828_v40 = vmax.f32 %v2536_v21, 0.0  ;;  %v2653_v18 = vpop.permute.xlu1 %2652 }
 0x712   :  { %v2761_v24 = vadd.f32 %v2760_v61, %v2744_v52  ;;  %v2708_v15 = vmul.f32 %v2653_v18, %v7828_v40  ;;  %v7834_v37 = vmax.f32 %v2539_v28, 0.0 }
 0x714   :  { %v2762_v13 = vadd.f32 %v2761_v24, %v2745_v7 }
 0x716   :  { %v6271_v42 = vpop.f32.mrb[32].mxu0  ;;  %v2763_v29 = vadd.f32 %v2762_v13, %v2746_v9 }
 0x717   :  { %v6272_v23 = vpop.f32.mrb[33].mxu0 }
 0x718   :  { %v6273_v49 = vadd.f32 %v6272_v23, %v6271_v42  ;;  %v6274_v50 = vpop.f32.mrb[34].mxu0  ;;  %v2764_v35 = vadd.f32 %v2763_v29, %v2747_v39  ;;  %v2749_v23 = vmul.f32 %v2707_v45, %v7825_v16 }
 0x719   :  { %v6275_v54 = vpop.f32.mrb[35].mxu0 }
 0x71a   :  { %v2544_v59 = vadd.f32 %v6273_v49, %v7777_v26  ;;  %v6276_v2 = vadd.f32 %v6275_v54, %v6274_v50  ;;  %v7820_v26 = vmax.f32 %v2528_v10, 0.0  ;;  %v2658_v49 = vpop.permute.xlu0 %2657  ;;  %v2750_v50 = vmul.f32 %v2708_v15, %v7828_v40 }
 0x71b   :  { %v2709_v51 = vmul.f32 %v2658_v49, %v7834_v37 }
 0x71c   :  { %v2547_v6 = vadd.f32 %v6276_v2, %v7779_v30  ;;  %v2706_v1 = vmul.f32 %v2643_v11, %v7820_v26  ;;  %v2721_v30 = vadd.f32 %v2720_v12, %v2704_v3  ;;  %v7838_v48 = vmax.f32 %v2544_v59, 0.0 }
 0x71e   :  { %v2748_v20 = vmul.f32 %v2706_v1, %v7820_v26  ;;  %v2722_v32 = vadd.f32 %v2721_v30, %v2705_v34  ;;  %v7843_v28 = vmax.f32 %v2547_v6, 0.0  ;;  %v2668_v59 = vpop.permute.xlu0 %2667 }
 0x720   :  { %v2723_v21 = vadd.f32 %v2722_v32, %v2706_v1  ;;  %v2765_v22 = vadd.f32 %v2764_v35, %v2748_v20  ;;  %v2711_v61 = vmul.f32 %v2668_v59, %v7843_v28 }
 0x722   :  { %v6277_v17 = vpop.f32.mrb[36].mxu0  ;;  %v2724_v52 = vadd.f32 %v2723_v21, %v2707_v45  ;;  %v2766_v41 = vadd.f32 %v2765_v22, %v2749_v23  ;;  %v2753_v34 = vmul.f32 %v2711_v61, %v7843_v28  ;;  %v2678_v11 = vpop.permute.xlu0 %2677 }
 0x723   :  { %v6278_v10 = vpop.f32.mrb[37].mxu0 }
 0x724   :  { %v6279_v19 = vadd.f32 %v6278_v10, %v6277_v17  ;;  %v6280_v63 = vpop.f32.mrb[38].mxu0  ;;  %v2725_v55 = vadd.f32 %v2724_v52, %v2708_v15  ;;  %v2767_v56 = vadd.f32 %v2766_v41, %v2750_v50 }
 0x725   :  { %v6281_v58 = vpop.f32.mrb[39].mxu0 }
 0x726   :  { %v2552_v14 = vadd.f32 %v6279_v19, %v7781_v62  ;;  %v6282_v53 = vadd.f32 %v6281_v58, %v6280_v63  ;;  %v2663_v62 = vpop.permute.xlu1 %2662  ;;  %v2726_v5 = vadd.f32 %v2725_v55, %v2709_v51 }
 0x727   :  { %v2710_v54 = vmul.f32 %v2663_v62, %v7838_v48 }
 0x728   :  { %v2555_v42 = vadd.f32 %v6282_v53, %v7783_v36  ;;  %v2751_v36 = vmul.f32 %v2709_v51, %v7834_v37  ;;  %v7846_v2 = vmax.f32 %v2552_v14, 0.0 }
 0x729   :  { %v2752_v60 = vmul.f32 %v2710_v54, %v7838_v48  ;;  %v2727_v6 = vadd.f32 %v2726_v5, %v2710_v54 }
 0x72a   :  { %v2673_v3 = vpop.permute.xlu1 %2672  ;;  %v2768_v24 = vadd.f32 %v2767_v56, %v2751_v36  ;;  %v7851_v8 = vmax.f32 %v2555_v42, 0.0  ;;  %v2688_v42 = vpop.permute.xlu0 %2687 }
 0x72b   :  { %v2712_v7 = vmul.f32 %v2673_v3, %v7846_v2  ;;  %v2728_v17 = vadd.f32 %v2727_v6, %v2711_v61 }
 0x72c   :  { %v2769_v9 = vadd.f32 %v2768_v24, %v2752_v60  ;;  %v2713_v1 = vmul.f32 %v2678_v11, %v7851_v8 }
 0x72d   :  { %v2754_v13 = vmul.f32 %v2712_v7, %v7846_v2  ;;  %v2729_v19 = vadd.f32 %v2728_v17, %v2712_v7 }
 0x72e   :  { %v2770_v10 = vadd.f32 %v2769_v9, %v2753_v34  ;;  %v2755_v58 = vmul.f32 %v2713_v1, %v7851_v8  ;;  %v2683_v14 = vpop.permute.xlu1 %2682  ;;  %v2698_v24 = vpop.permute.xlu0 %2697 }
 0x72f   :  { %v2730_v53 = vadd.f32 %v2729_v19, %v2713_v1 }
 0x730   :  { %v2771_v45 = vadd.f32 %v2770_v10, %v2754_v13 }
 0x732   :  { %v2772_v22 = vadd.f32 %v2771_v45, %v2755_v58  ;;  %v2693_v60 = vpop.permute.xlu1 %2692 }
 0x736   :  { %v6283_v12 = vpop.f32.mrb[40].mxu0 }
 0x737   :  { %v6284_v30 = vpop.f32.mrb[41].mxu0 }
 0x738   :  { %v6285_v29 = vadd.f32 %v6284_v30, %v6283_v12  ;;  %v6286_v39 = vpop.f32.mrb[42].mxu0 }
 0x739   :  { %v6287_v43 = vpop.f32.mrb[43].mxu0 }
 0x73a   :  { %v2560_v63 = vadd.f32 %v6285_v29, %v7785_v38  ;;  %v6288_v20 = vadd.f32 %v6287_v43, %v6286_v39 }
 0x73c   :  { %v7858_v18 = vmax.f32 %v2560_v63, 0.0  ;;  %v2563_v32 = vadd.f32 %v6288_v20, %v7787_v0 }
 0x73e   :  { %v2714_v35 = vmul.f32 %v2683_v14, %v7858_v18  ;;  %v7862_v15 = vmax.f32 %v2563_v32, 0.0  ;;  %v6289_v21 = vpop.f32.mrb[44].mxu0 }
 0x73f   :  { %v6290_v23 = vpop.f32.mrb[45].mxu0 }
 0x740   :  { %v2731_v49 = vadd.f32 %v2730_v53, %v2714_v35  ;;  %v2756_v38 = vmul.f32 %v2714_v35, %v7858_v18  ;;  %v2715_v50 = vmul.f32 %v2688_v42, %v7862_v15  ;;  %v6291_v51 = vadd.f32 %v6290_v23, %v6289_v21  ;;  %v6292_v62 = vpop.f32.mrb[46].mxu0  ;;  %v2789_v21 = vld [vmem:[%s8863_s13 + $0x2] sm:$0x1] }
 0x741   :  { %v6293_v52 = vpop.f32.mrb[47].mxu0  ;;  %v2791_v23 = vld [vmem:[%s8864_s14 + $0x2] sm:$0x1] }
 0x742   :  { %v2773_v41 = vadd.f32 %v2772_v22, %v2756_v38  ;;  %v2732_v0 = vadd.f32 %v2731_v49, %v2715_v50  ;;  %v2757_v54 = vmul.f32 %v2715_v50, %v7862_v15  ;;  %v2568_v55 = vadd.f32 %v6291_v51, %v7789_v44 }
 0x743   :  { %v6294_v56 = vadd.f32 %v6293_v52, %v6292_v62 }
 0x744   :  { %v2774_v36 = vadd.f32 %v2773_v41, %v2757_v54  ;;  %v7868_v59 = vmax.f32 %v2568_v55, 0.0 }
 0x745   :  { %v2571_v61 = vadd.f32 %v6294_v56, %v7791_v47 }
 0x746   :  { %v2716_v3 = vmul.f32 %v2693_v60, %v7868_v59 }
 0x747   :  { %v2591_v5 = vmax.f32 %v2571_v61, 0.0 }
 0x748   :  { %v2733_v7 = vadd.f32 %v2732_v0, %v2716_v3  ;;  %v2758_v6 = vmul.f32 %v2716_v3, %v7868_v59 }
 0x749   :  { %v2717_v9 = vmul.f32 %v2698_v24, %v2591_v5 }
 0x74a   :  { %v2775_v34 = vadd.f32 %v2774_v36, %v2758_v6 }
 0x74b   :  { %v2734_v11 = vadd.f32 %v2733_v7, %v2717_v9  ;;  %v2759_v12 = vmul.f32 %v2717_v9, %v2591_v5 }
 0x74d   :  { %v2735_v13 = vrot.slane %v2734_v11, 4  ;;  %v2776_v44 = vadd.f32 %v2775_v34, %v2759_v12 }
 0x74f   :  { %v2736_v1 = vadd.f32 %v2735_v13, %v2734_v11  ;;  %v2777_v30 = vrot.slane %v2776_v44, 4 }
 0x751   :  { %v2737_v17 = vrot.slane %v2736_v1, 2  ;;  %v2778_v29 = vadd.f32 %v2777_v30, %v2776_v44 }
 0x753   :  { %v2738_v39 = vadd.f32 %v2737_v17, %v2736_v1  ;;  %v2779_v10 = vrot.slane %v2778_v29, 2  ;;  %v7896_v1 = vld [vmem:[#allocation2 + $0xd8] sm:$0xff] }
 0x755   :  { %v2739_v47 = vrot.slane %v2738_v39, 1  ;;  %v2780_v43 = vadd.f32 %v2779_v10, %v2778_v29 }
 0x757   :  { %v2740_v19 = vadd.f32 %v2739_v47, %v2738_v39  ;;  %v2781_v63 = vrot.slane %v2780_v43, 1 }
 0x759   :  { %v2741_v20 = vmul.f32 0.00390625, %v2740_v19  ;;  %v2782_v45 = vadd.f32 %v2781_v63, %v2780_v43 }
 0x75b   :  { %v2783_v58 = vmul.f32 0.00390625, %v2782_v45  ;;  %v2784_v32 = vmul.f32 %v2741_v20, %v2741_v20  ;;  %v6745_v45 = vld [vmem:[%s8858_s8 + $0x24] ss:$8 sps:$4 sm:$0xff]  }
 0x75d   :  { %v2785_v14 = vsub.f32 %v2783_v58, %v2784_v32  ;;  %v6747_v58 = vld [vmem:[%s8858_s8 + $0x20] ss:$8 sps:$4 sm:$0xff]   ;;  %v6748_v32 = vld [vmem:[%s8858_s8 + $0x34] ss:$8 sps:$4 sm:$0xff]  }
 0x75f   :  { %v2786_v53 = vmax.f32 %v2785_v14, 0.0  ;;  %v6750_v14 = vld [vmem:[%s8858_s8 + $0x30] ss:$8 sps:$4 sm:$0xff]  }
 0x761   :  { %v2787_v35 = vadd.f32 1e-05, %v2786_v53  ;;  %v6751_v53 = vld [vmem:[%s8858_s8 + $0x44] ss:$8 sps:$4 sm:$0xff]  }
 0x763   :  { %6837 = vrsqrt.f32 %v2787_v35  ;;  %v6753_v35 = vld [vmem:[%s8858_s8 + $0x40] ss:$8 sps:$4 sm:$0xff]  }
 0x76d   :  { %v6838_v42 = vpop.eup %6837 }
 0x76e   :  { %v2790_v22 = vmul.f32 %v6838_v42, %v2789_v21  ;;  %v6754_v21 = vld [vmem:[%s8858_s8 + $0x54] ss:$8 sps:$4 sm:$0xff]   ;;  %v6756_v42 = vld [vmem:[%s8858_s8 + $0x50] ss:$8 sps:$4 sm:$0xff]  }
 0x770   :  { %v2792_v49 = vmul.f32 %v2790_v22, %v2741_v20  ;;  %v2797_v38 = vrot.slane %v2790_v22, %v7342_v57  ;;  %v6744_v20 = vld [vmem:[%s8858_s8 + $0x10] ss:$8 sps:$4 sm:$0xff]   ;;  %v6757_v22 = vld [vmem:[%s8858_s8 + $0x64] ss:$8 sps:$4 sm:$0xff]  }
 0x772   :  { %v2793_v50 = vsub.f32 %v2791_v23, %v2792_v49  ;;  %v2815_v51 = vmul.f32 %v2797_v38, %v2591_v5  ;;  %v2798_v62 = vmul.f32 %v2797_v38, %v7795_v33  ;;  %v2799_v52 = vmul.f32 %v2797_v38, %v7793_v25  ;;  %v6759_v23 = vld [vmem:[%s8858_s8 + $0x60] ss:$8 sps:$4 sm:$0xff]   ;;  %v6760_v49 = vld [vmem:[%s8858_s8 + $0x74] ss:$8 sps:$4 sm:$0xff]  }
 0x773   :  { %v2800_v41 = vmul.f32 %v2797_v38, %v7797_v27  ;;  %v2801_v0 = vmul.f32 %v2797_v38, %v7802_v31  ;;  %v2802_v54 = vmul.f32 %v2797_v38, %v7805_v46  ;;  %v2803_v55 = vmul.f32 %v2797_v38, %v7815_v4 }
 0x774   :  { %v2819_v56 = vrot.slane %v2793_v50, %v7342_v57  ;;  %v2804_v36 = vmul.f32 %v2797_v38, %v7820_v26  ;;  %v2805_v60 = vmul.f32 %v2797_v38, %v7825_v16  ;;  %v2806_v61 = vmul.f32 %v2797_v38, %v7828_v40  ;;  %v6763_v50 = vld [vmem:[%s8858_s8 + $0x84] ss:$8 sps:$4 sm:$0xff]  }
 0x775   :  { %v2807_v33 = vmul.f32 %v2797_v38, %v7834_v37  ;;  %v2808_v25 = vmul.f32 %v2797_v38, %v7838_v48  ;;  %v2809_v27 = vmul.f32 %v2797_v38, %v7843_v28  ;;  %v2810_v31 = vmul.f32 %v2797_v38, %v7846_v2 }
 0x776   :  { %v2820_v3 = vadd.f32 %v2819_v56, %v2798_v62  ;;  %v2821_v46 = vadd.f32 %v2819_v56, %v2799_v52  ;;  %v2822_v5 = vadd.f32 %v2819_v56, %v2800_v41  ;;  %v2823_v4 = vadd.f32 %v2819_v56, %v2801_v0  ;;  %v6766_v62 = vld [vmem:[%s8858_s8 + $0x94] ss:$8 sps:$4 sm:$0xff]   ;;  %v6768_v52 = vld [vmem:[%s8858_s8 + $0x90] ss:$8 sps:$4 sm:$0xff]   ;;  %v6769_v41 = vld [vmem:[%s8858_s8 + $0xa4] ss:$8 sps:$4 sm:$0xff]  }
 0x777   :  { %v2824_v24 = vadd.f32 %v2819_v56, %v2802_v54  ;;  %v2825_v7 = vadd.f32 %v2819_v56, %v2803_v55  ;;  %v2826_v6 = vadd.f32 %v2819_v56, %v2804_v36  ;;  %v2827_v26 = vadd.f32 %v2819_v56, %v2805_v60  ;;  %v6771_v0 = vld [vmem:[%s8858_s8 + $0xa0] ss:$8 sps:$4 sm:$0xff]   ;;  %v6772_v54 = vld [vmem:[%s8858_s8 + $0xb4] ss:$8 sps:$4 sm:$0xff]   ;;  %v6774_v55 = vld [vmem:[%s8858_s8 + $0xb0] ss:$8 sps:$4 sm:$0xff]  }
 0x778   :  { %v2879_v9 = vpack.c.bf16 %v2821_v46, %v2820_v3  ;;  %v2880_v16 = vpack.c.bf16 %v2823_v4, %v2822_v5  ;;  %v2828_v34 = vadd.f32 %v2819_v56, %v2806_v61  ;;  %v2829_v40 = vadd.f32 %v2819_v56, %v2807_v33  ;;  %v6777_v36 = vld [vmem:[%s8858_s8 + $0xc0] ss:$8 sps:$4 sm:$0xff]   ;;  %v6778_v60 = vld [vmem:[%s8858_s8 + $0xd4] ss:$8 sps:$4 sm:$0xff]   ;;  %v6780_v61 = vld [vmem:[%s8858_s8 + $0xd0] ss:$8 sps:$4 sm:$0xff]  }
 0x779   :  { %v2881_v11 = vpack.c.bf16 %v2825_v7, %v2824_v24  ;;  %v2882_v37 = vpack.c.bf16 %v2827_v26, %v2826_v6  ;;  %v2830_v12 = vadd.f32 %v2819_v56, %v2808_v25  ;;  %v2831_v48 = vadd.f32 %v2819_v56, %v2809_v27  ;;  %v6781_v33 = vld [vmem:[%s8858_s8 + $0xe4] ss:$8 sps:$4 sm:$0xff]   ;;  %v6783_v25 = vld [vmem:[%s8858_s8 + $0xe0] ss:$8 sps:$4 sm:$0xff]   ;;  %v6784_v27 = vld [vmem:[%s8858_s8 + $0xf4] ss:$8 sps:$4 sm:$0xff]  }
 0x77a   :  { %3139 = vmatpush1.bf16.msra.mxu0 %v2879_v9  ;;  %v2883_v28 = vpack.c.bf16 %v2829_v40, %v2828_v34  ;;  %v2811_v2 = vmul.f32 %v2797_v38, %v7851_v8  ;;  %v2832_v13 = vadd.f32 %v2819_v56, %v2810_v31  ;;  %v2812_v44 = vmul.f32 %v2797_v38, %v7858_v18  ;;  %v6801_v31 = vld [vmem:[#allocation10 + $0x80] sm:$0xff]   ;;  %v6802_v3 = vld [vmem:[#allocation10 + $0x88] sm:$0xff]   ;;  %v6786_v46 = vld [vmem:[%s8858_s8 + $0xf0] ss:$8 sps:$4 sm:$0xff]  }
 0x77b   :  { %3140 = vmatprep.subr.bf16.mxu0 %v7896_v1  ;;  %v2884_v30 = vpack.c.bf16 %v2831_v48, %v2830_v12  ;;  %v2813_v17 = vmul.f32 %v2797_v38, %v7862_v15  ;;  %v2814_v29 = vmul.f32 %v2797_v38, %v7868_v59  ;;  %v2837_v39 = vadd.f32 %v2819_v56, %v2815_v51  ;;  %v6739_v15 = vld [vmem:[%s8858_s8] ss:$8 sps:$4 sm:$0xff]   ;;  %v6742_v59 = vld [vmem:[%s8858_s8 + $0x14] ss:$8 sps:$4 sm:$0xff]   ;;  %v6762_v38 = vld [vmem:[%s8858_s8 + $0x70] ss:$8 sps:$4 sm:$0xff]  }
 0x77c   :  { %v2833_v10 = vadd.f32 %v2819_v56, %v2811_v2  ;;  %v2834_v47 = vadd.f32 %v2819_v56, %v2812_v44  ;;  %v6765_v51 = vld [vmem:[%s8858_s8 + $0x80] ss:$8 sps:$4 sm:$0xff]   ;;  %v6787_v5 = vld [vmem:[%s8858_s8 + $0x104] ss:$8 sps:$4 sm:$0xff]   ;;  %v6803_v4 = vld [vmem:[#allocation10 + $0x90] sm:$0xff]  }
 0x77d   :  { %v2835_v43 = vadd.f32 %v2819_v56, %v2813_v17  ;;  %v2836_v19 = vadd.f32 %v2819_v56, %v2814_v29  ;;  %v6775_v56 = vld [vmem:[%s8858_s8 + $0xc4] ss:$8 sps:$4 sm:$0xff]   ;;  %v6804_v24 = vld [vmem:[#allocation10 + $0x98] sm:$0xff]   ;;  %v6789_v7 = vld [vmem:[%s8858_s8 + $0x100] ss:$8 sps:$4 sm:$0xff]  }
 0x77e   :  { %3141 = vmatpush1.bf16.msra.mxu0 %v2880_v16  ;;  %v2885_v63 = vpack.c.bf16 %v2833_v10, %v2832_v13  ;;  %v6790_v6 = vld [vmem:[%s8858_s8 + $0x114] ss:$8 sps:$4 sm:$0xff]   ;;  %v6805_v26 = vld [vmem:[#allocation10 + $0xa0] sm:$0xff]   ;;  %v6806_v9 = vld [vmem:[#allocation10 + $0xa8] sm:$0xff]  }
 0x77f   :  { %3142 = vmatprep.subr.bf16.mxu0 %v7896_v1  ;;  %v2886_v8 = vpack.c.bf16 %v2835_v43, %v2834_v47  ;;  %v2887_v18 = vpack.c.bf16 %v2837_v39, %v2836_v19  ;;  %v6792_v16 = vld [vmem:[%s8858_s8 + $0x110] ss:$8 sps:$4 sm:$0xff]   ;;  %v6793_v34 = vld [vmem:[%s8858_s8 + $0x124] ss:$8 sps:$4 sm:$0xff]   ;;  %v6796_v12 = vld [vmem:[%s8858_s8 + $0x134] ss:$8 sps:$4 sm:$0xff]  }
 0x780   :  { %v6807_v40 = vld [vmem:[#allocation10 + $0xb0] sm:$0xff]   ;;  %v2878_v48 = vld [vmem:[%s8858_s8 + $0x140] sm:$0xff]  ;;  %v6812_v29 = vld [vmem:[#allocation10 + $0x18] sm:$0xff]  }
 0x781   :  { %v6086_v2 = vcombine.high %v2878_v48, %v2878_v48  ;;  %v6085_v13 = vcombine.low %v2878_v48, %v2878_v48  ;;  %v6809_v44 = vld [vmem:[#allocation10] sm:$0xff]   ;;  %v6811_v17 = vld [vmem:[#allocation10 + $0x10] sm:$0xff]   ;;  %v6814_v10 = vld [vmem:[#allocation10 + $0x28] sm:$0xff]  }
 0x782   :  { %3143 = vmatpush1.bf16.msra.mxu0 %v2881_v11  ;;  %v6808_v11 = vld [vmem:[#allocation10 + $0xb8] sm:$0xff]   ;;  %4706 = vmatpush1.bf16.msra.mxu1 %v6809_v44  ;;  %v6813_v39 = vld [vmem:[#allocation10 + $0x20] sm:$0xff]   ;;  %v6815_v47 = vld [vmem:[#allocation10 + $0x30] sm:$0xff]  }
 0x783   :  { %3144 = vmatprep.subr.bf16.mxu0 %v7896_v1  ;;  %4707 = vmatprep.subr.bf16.mxu1 %v7896_v1  ;;  %v6816_v43 = vld [vmem:[#allocation10 + $0x38] sm:$0xff]  }
 0x786   :  { %3145 = vmatpush1.bf16.msra.mxu0 %v2882_v37  ;;  %v6795_v37 = vld [vmem:[%s8858_s8 + $0x120] ss:$8 sps:$4 sm:$0xff]  }
 0x787   :  { %3146 = vmatprep.subr.bf16.mxu0 %v7896_v1 }
 0x78a   :  { %3147 = vmatpush1.bf16.msra.mxu0 %v2883_v28  ;;  %v6798_v28 = vld [vmem:[%s8858_s8 + $0x130] ss:$8 sps:$4 sm:$0xff]  }
 0x78b   :  { %3148 = vmatprep.subr.bf16.mxu0 %v7896_v1 }
 0x78e   :  { %3149 = vmatpush1.bf16.msra.mxu0 %v2884_v30  ;;  %v6810_v30 = vld [vmem:[#allocation10 + $0x8] sm:$0xff]  }
 0x78f   :  { %3150 = vmatprep.subr.bf16.mxu0 %v7896_v1  ;;  %4708 = vmatpush1.bf16.msra.mxu1 %v6810_v30 }
 0x790   :  { %4709 = vmatprep.subr.bf16.mxu1 %v7896_v1 }
 0x792   :  { %3151 = vmatpush1.bf16.msra.mxu0 %v2885_v63 }
 0x793   :  { %3152 = vmatprep.subr.bf16.mxu0 %v7896_v1  ;;  %4710 = vmatpush1.bf16.msra.mxu1 %v6811_v17 }
 0x794   :  { %4711 = vmatprep.subr.bf16.mxu1 %v7896_v1 }
 0x796   :  { %3153 = vmatpush1.bf16.msra.mxu0 %v2886_v8 }
 0x797   :  { %3154 = vmatprep.subr.bf16.mxu0 %v7896_v1  ;;  %4712 = vmatpush1.bf16.msra.mxu1 %v6812_v29 }
 0x798   :  { %4713 = vmatprep.subr.bf16.mxu1 %v7896_v1 }
 0x79a   :  { %3155 = vmatpush1.bf16.msra.mxu0 %v2887_v18 }
 0x79b   :  { %6526 = vmatprep.subr.bf16.mxu0 %v6801_v31  ;;  %4714 = vmatpush1.bf16.msra.mxu1 %v6813_v39 }
 0x79c   :  { %4715 = vmatprep.subr.bf16.mxu1 %v7896_v1 }
 0x79d   :  { %3171 = vmatmul.mubr.bf16.vlgmr.msra.gmra.mrb[48].mxu0 %v6739_v15  ;;  %v6817_v15 = vld [vmem:[#allocation10 + $0x40] sm:$0xff]  }
 0x79e   :  { %6088 = vmatprep.mubr.msk.bf16.mxu0 %vm3074_vm13, %v6742_v59  ;;  %6527 = vmatpush3.bf16.msra.mxu0 %v6801_v31 }
 0x79f   :  { %6528 = vmatprep.subr.bf16.mxu0 %v6802_v3  ;;  %4716 = vmatpush1.bf16.msra.mxu1 %v6814_v10 }
 0x7a0   :  { %4717 = vmatprep.subr.bf16.mxu1 %v7896_v1 }
 0x7a2   :  { %6529 = vmatpush3.bf16.msra.mxu0 %v6802_v3 }
 0x7a3   :  { %6530 = vmatprep.subr.bf16.mxu0 %v6803_v4  ;;  %4718 = vmatpush1.bf16.msra.mxu1 %v6815_v47 }
 0x7a4   :  { %4719 = vmatprep.subr.bf16.mxu1 %v7896_v1 }
 0x7a5   :  { %3179 = vmatmul.mubr.bf16.gmra.mrb[52].mxu0 %v6744_v20  ;;  %v6818_v20 = vld [vmem:[#allocation10 + $0x48] sm:$0xff]  }
 0x7a6   :  { %6089 = vmatprep.mubr.msk.bf16.mxu0 %vm3074_vm13, %v6745_v45  ;;  %6531 = vmatpush3.bf16.msra.mxu0 %v6803_v4 }
 0x7a7   :  { %6532 = vmatprep.subr.bf16.mxu0 %v6804_v24  ;;  %4720 = vmatpush1.bf16.msra.mxu1 %v6816_v43 }
 0x7a8   :  { %4721 = vmatprep.subr.bf16.mxu1 %v7896_v1 }
 0x7aa   :  { %6533 = vmatpush3.bf16.msra.mxu0 %v6804_v24 }
 0x7ab   :  { %6534 = vmatprep.subr.bf16.mxu0 %v6805_v26  ;;  %4722 = vmatpush1.bf16.msra.mxu1 %v6817_v15 }
 0x7ac   :  { %4723 = vmatprep.subr.bf16.mxu1 %v7896_v1 }
 0x7ad   :  { %3187 = vmatmul.mubr.bf16.gmra.mrb[56].mxu0 %v6747_v58 }
 0x7ae   :  { %6090 = vmatprep.mubr.msk.bf16.mxu0 %vm3074_vm13, %v6748_v32  ;;  %6535 = vmatpush3.bf16.msra.mxu0 %v6805_v26  ;;  %v6823_v26 = vld [vmem:[#allocation10 + $0x70] sm:$0xff]  }
 0x7af   :  { %6536 = vmatprep.subr.bf16.mxu0 %v6806_v9  ;;  %4724 = vmatpush1.bf16.msra.mxu1 %v6818_v20 }
 0x7b0   :  { %4725 = vmatprep.subr.bf16.mxu1 %v7896_v1 }
 0x7b2   :  { %6537 = vmatpush3.bf16.msra.mxu0 %v6806_v9 }
 0x7b3   :  { %6538 = vmatprep.subr.bf16.mxu0 %v6807_v40 }
 0x7b5   :  { %3195 = vmatmul.mubr.bf16.gmra.mrb[60].mxu0 %v6750_v14 }
 0x7b6   :  { %6091 = vmatprep.mubr.msk.bf16.mxu0 %vm3074_vm13, %v6751_v53  ;;  %6539 = vmatpush3.bf16.msra.mxu0 %v6807_v40  ;;  %v6819_v53 = vld [vmem:[#allocation10 + $0x50] sm:$0xff]  }
 0x7b7   :  { %6540 = vmatprep.subr.bf16.mxu0 %v6808_v11  ;;  %4726 = vmatpush1.bf16.msra.mxu1 %v6819_v53 }
 0x7b8   :  { %4727 = vmatprep.subr.bf16.mxu1 %v7896_v1 }
 0x7ba   :  { %6541 = vmatpush3.bf16.msra.mxu0 %v6808_v11 }
 0x7bd   :  { %3203 = vmatmul.mubr.bf16.gmra.mrb[64].mxu0 %v6753_v35  ;;  %v6820_v35 = vld [vmem:[#allocation10 + $0x58] sm:$0xff]  }
 0x7be   :  { %6092 = vmatprep.mubr.msk.bf16.mxu0 %vm3074_vm13, %v6754_v21  ;;  %4728 = vmatpush1.bf16.msra.mxu1 %v6820_v35 }
 0x7bf   :  { %4729 = vmatprep.subr.bf16.mxu1 %v7896_v1 }
 0x7c5   :  { %3211 = vmatmul.mubr.bf16.gmra.mrb[68].mxu0 %v6756_v42 }
 0x7c6   :  { %6093 = vmatprep.mubr.msk.bf16.mxu0 %vm3074_vm13, %v6757_v22 }
 0x7cd   :  { %3219 = vmatmul.mubr.bf16.gmra.mrb[72].mxu0 %v6759_v23 }
 0x7ce   :  { %6094 = vmatprep.mubr.msk.bf16.mxu0 %vm3074_vm13, %v6760_v49 }
 0x7d5   :  { %3227 = vmatmul.mubr.bf16.gmra.mrb[76].mxu0 %v6762_v38 }
 0x7d6   :  { %6095 = vmatprep.mubr.msk.bf16.mxu0 %vm3074_vm13, %v6763_v50 }
 0x7dd   :  { %3235 = vmatmul.mubr.bf16.gmra.mrb[80].mxu0 %v6765_v51 }
 0x7de   :  { %6096 = vmatprep.mubr.msk.bf16.mxu0 %vm3074_vm13, %v6766_v62  ;;  %v6821_v62 = vld [vmem:[#allocation10 + $0x60] sm:$0xff]  }
 0x7df   :  { %4730 = vmatpush1.bf16.msra.mxu1 %v6821_v62 }
 0x7e0   :  { %4731 = vmatprep.subr.bf16.mxu1 %v7896_v1 }
 0x7e5   :  { %3243 = vmatmul.mubr.bf16.gmra.mrb[84].mxu0 %v6768_v52 }
 0x7e6   :  { %6097 = vmatprep.mubr.msk.bf16.mxu0 %vm3074_vm13, %v6769_v41 }
 0x7ed   :  { %3251 = vmatmul.mubr.bf16.gmra.mrb[88].mxu0 %v6771_v0 }
 0x7ee   :  { %6098 = vmatprep.mubr.msk.bf16.mxu0 %vm3074_vm13, %v6772_v54 }
 0x7f5   :  { %3259 = vmatmul.mubr.bf16.gmra.mrb[92].mxu0 %v6774_v55 }
 0x7f6   :  { %6099 = vmatprep.mubr.msk.bf16.mxu0 %vm3074_vm13, %v6775_v56 }
 0x7fd   :  { %3267 = vmatmul.mubr.bf16.gmra.mrb[96].mxu0 %v6777_v36  ;;  %v6822_v36 = vld [vmem:[#allocation10 + $0x68] sm:$0xff]  }
 0x7fe   :  { %6100 = vmatprep.mubr.msk.bf16.mxu0 %vm3074_vm13, %v6778_v60  ;;  %4732 = vmatpush1.bf16.msra.mxu1 %v6822_v36 }
 0x7ff   :  { %4733 = vmatprep.subr.bf16.mxu1 %v7896_v1 }
 0x802   :  { %4734 = vmatpush1.bf16.msra.mxu1 %v6823_v26 }
 0x803   :  { %4735 = vmatprep.subr.bf16.mxu1 %v7896_v1 }
 0x805   :  { %3275 = vmatmul.mubr.bf16.gmra.mrb[100].mxu0 %v6780_v61 }
 0x806   :  { %6101 = vmatprep.mubr.msk.bf16.mxu0 %vm3074_vm13, %v6781_v33 }
 0x80d   :  { %3283 = vmatmul.mubr.bf16.gmra.mrb[104].mxu0 %v6783_v25 }
 0x80e   :  { %6102 = vmatprep.mubr.msk.bf16.mxu0 %vm3074_vm13, %v6784_v27 }
 0x815   :  { %3291 = vmatmul.mubr.bf16.gmra.mrb[108].mxu0 %v6786_v46 }
 0x816   :  { %6103 = vmatprep.mubr.msk.bf16.mxu0 %vm3074_vm13, %v6787_v5 }
 0x81d   :  { %3299 = vmatmul.mubr.bf16.gmra.mrb[112].mxu0 %v6789_v7 }
 0x81e   :  { %6104 = vmatprep.mubr.msk.bf16.mxu0 %vm3074_vm13, %v6790_v6 }
 0x825   :  { %3307 = vmatmul.mubr.bf16.gmra.mrb[116].mxu0 %v6792_v16 }
 0x826   :  { %6105 = vmatprep.mubr.msk.bf16.mxu0 %vm3074_vm13, %v6793_v34 }
 0x82d   :  { %3315 = vmatmul.mubr.bf16.gmra.mrb[120].mxu0 %v6795_v37  ;;  %v6824_v37 = vld [vmem:[#allocation10 + $0x78] sm:$0xff]  }
 0x82e   :  { %6106 = vmatprep.mubr.msk.bf16.mxu0 %vm3074_vm13, %v6796_v12  ;;  %4736 = vmatpush1.bf16.msra.mxu1 %v6824_v37 }
 0x835   :  { %3323 = vmatmul.mubr.bf16.gmra.mrb[124].mxu0 %v6798_v28 }
 0x836   :  { %6107 = vmatprep.mubr.msk.bf16.mxu0 %vm3074_vm13, %v6086_v2 }
 0x83d   :  { %3331 = vmatmul.mubr.bf16.gmra.mrb[128].mxu0 %v6085_v13 }
 0x870   :  { %v3172_v19 = vpop.f32.mrb[48].mxu0 }
 0x871   :  { %3338 = vst [vmem:[#allocation3] sm:$0xff] %v3172_v19  ;;  %v3174_v63 = vpop.f32.mrb[49].mxu0 }
 0x872   :  { %v3175_v8 = vpop.f32.mrb[50].mxu0 }
 0x873   :  { %3339 = vst [vmem:[#allocation3 + $0x8] sm:$0xff] %v3175_v8  ;;  %v3177_v18 = vpop.f32.mrb[51].mxu0  ;;  %v3415_v59 = vpack.c.bf16 %v3175_v8, %v3172_v19 }
 0x875   :  { %3433 = vst.msk [vmem:[#allocation2] sm:$0xff] %vm602_vm2, %v3415_v59 }
 0x878   :  { %v3180_v45 = vpop.f32.mrb[52].mxu0 }
 0x879   :  { %3340 = vst [vmem:[#allocation3 + $0x10] sm:$0xff] %v3180_v45  ;;  %v3182_v58 = vpop.f32.mrb[53].mxu0 }
 0x87a   :  { %v3183_v32 = vpop.f32.mrb[54].mxu0  ;;  %v3451_v42 = vld [vmem:[#allocation3 + $0x1] sm:$0xff] }
 0x87b   :  { %3341 = vst [vmem:[#allocation3 + $0x18] sm:$0xff] %v3183_v32  ;;  %v3185_v14 = vpop.f32.mrb[55].mxu0  ;;  %v3595_v0 = vld [vmem:[#allocation3 + $0x2] sm:$0xff] }
 0x880   :  { %v3188_v21 = vpop.f32.mrb[56].mxu0  ;;  %v3452_v22 = vld [vmem:[#allocation3 + $0x9] sm:$0xff] }
 0x881   :  { %3342 = vst [vmem:[#allocation3 + $0x20] sm:$0xff] %v3188_v21  ;;  %v3487_v23 = vpack.c.bf16 %v3452_v22, %v3451_v42  ;;  %v3190_v49 = vpop.f32.mrb[57].mxu0  ;;  %v3596_v50 = vld [vmem:[#allocation3 + $0xa] sm:$0xff] }
 0x882   :  { %v3191_v38 = vpop.f32.mrb[58].mxu0  ;;  %v3381_v52 = vld [vmem:[#allocation3 + $0x10] sm:$0xff]  ;;  %v3382_v41 = vld [vmem:[#allocation3 + $0x18] sm:$0xff]  ;;  %v3631_v55 = vpack.c.bf16 %v3596_v50, %v3595_v0 }
 0x883   :  { %3523 = vrot.lane.b32.xlu0 %v3487_v23, %s7091_s22  ;;  %3343 = vst [vmem:[#allocation3 + $0x28] sm:$0xff] %v3191_v38  ;;  %v3193_v51 = vpop.f32.mrb[59].mxu0  ;;  %v3416_v54 = vpack.c.bf16 %v3382_v41, %v3381_v52  ;;  %v3739_v56 = vld [vmem:[#allocation3 + $0x12] sm:$0xff] }
 0x884   :  { %v3955_v33 = vld [vmem:[#allocation3 + $0x14] sm:$0xff] }
 0x885   :  { %3434 = vst.msk [vmem:[#allocation2 + $0x18] sm:$0xff] %vm602_vm2, %v3416_v54  ;;  %v3883_v46 = vld [vmem:[#allocation3 + $0x13] sm:$0xff] }
 0x886   :  { %v3453_v9 = vld [vmem:[#allocation3 + $0x11] sm:$0xff] }
 0x887   :  { %3667 = vrot.lane.b32.xlu0 %v3631_v55, %s7078_s30 }
 0x888   :  { %v3196_v60 = vpop.f32.mrb[60].mxu0  ;;  %v3740_v61 = vld [vmem:[#allocation3 + $0x1a] sm:$0xff] }
 0x889   :  { %v3956_v25 = vld [vmem:[#allocation3 + $0x1c] sm:$0xff]  ;;  %3344 = vst [vmem:[#allocation3 + $0x30] sm:$0xff] %v3196_v60  ;;  %v3775_v27 = vpack.c.bf16 %v3740_v61, %v3739_v56  ;;  %v3198_v3 = vpop.f32.mrb[61].mxu0 }
 0x88a   :  { %v3991_v31 = vpack.c.bf16 %v3956_v25, %v3955_v33  ;;  %v3884_v5 = vld [vmem:[#allocation3 + $0x1b] sm:$0xff]  ;;  %v3199_v24 = vpop.f32.mrb[62].mxu0  ;;  %v3384_v34 = vld [vmem:[#allocation3 + $0x28] sm:$0xff] }
 0x88b   :  { %v3454_v4 = vld [vmem:[#allocation3 + $0x19] sm:$0xff]  ;;  %v3919_v7 = vpack.c.bf16 %v3884_v5, %v3883_v46  ;;  %3811 = vrot.lane.b32.xlu0 %v3775_v27, %s7092_s24  ;;  %3345 = vst [vmem:[#allocation3 + $0x38] sm:$0xff] %v3199_v24  ;;  %v3201_v6 = vpop.f32.mrb[63].mxu0  ;;  %v4099_v12 = vld [vmem:[#allocation3 + $0x24] sm:$0xff] }
 0x88c   :  { %4027 = vrot.lane.b32.xlu1 %v3991_v31, %s7091_s22  ;;  %v3383_v16 = vld [vmem:[#allocation3 + $0x20] sm:$0xff]  ;;  %v3488_v40 = vpack.c.bf16 %v3454_v4, %v3453_v9 }
 0x88d   :  { %3937 = vst.msk [vmem:[#allocation2 + $0x8] sm:$0xff] %vm602_vm2, %v3919_v7  ;;  %v3417_v11 = vpack.c.bf16 %v3384_v34, %v3383_v16  ;;  %v4387_v2 = vld [vmem:[#allocation3 + $0x26] sm:$0xff] }
 0x88e   :  { %v3885_v17 = vld [vmem:[#allocation3 + $0x23] sm:$0xff] }
 0x88f   :  { %3525 = vrot.lane.b32.xlu0 %v3488_v40, %s7091_s22  ;;  %3435 = vst.msk [vmem:[#allocation2 + $0x30] sm:$0xff] %vm602_vm2, %v3417_v11  ;;  %v4243_v19 = vld [vmem:[#allocation3 + $0x25] sm:$0xff] }
 0x890   :  { %v4100_v48 = vld [vmem:[#allocation3 + $0x2c] sm:$0xff]  ;;  %v3204_v28 = vpop.f32.mrb[64].mxu0  ;;  %v3741_v8 = vld [vmem:[#allocation3 + $0x22] sm:$0xff] }
 0x891   :  { %v4135_v13 = vpack.c.bf16 %v4100_v48, %v4099_v12  ;;  %3346 = vst [vmem:[#allocation3 + $0x40] sm:$0xff] %v3204_v28  ;;  %v3206_v44 = vpop.f32.mrb[65].mxu0  ;;  %v4388_v30 = vld [vmem:[#allocation3 + $0x2e] sm:$0xff]  ;;  %v3455_v32 = vld [vmem:[#allocation3 + $0x21] sm:$0xff] }
 0x892   :  { %v3886_v29 = vld [vmem:[#allocation3 + $0x2b] sm:$0xff]  ;;  %v3207_v47 = vpop.f32.mrb[66].mxu0  ;;  %v4423_v1 = vpack.c.bf16 %v4388_v30, %v4387_v2  ;;  %v3386_v15 = vld [vmem:[#allocation3 + $0x38] sm:$0xff] }
 0x893   :  { %v4244_v39 = vld [vmem:[#allocation3 + $0x2d] sm:$0xff]  ;;  %v3920_v43 = vpack.c.bf16 %v3886_v29, %v3885_v17  ;;  %3669 = vrot.lane.b32.xlu0 %v3775_v27, %s7078_s30  ;;  %4171 = vrot.lane.b32.xlu1 %v4135_v13, %s7078_s30  ;;  %3347 = vst [vmem:[#allocation3 + $0x48] sm:$0xff] %v3207_v47  ;;  %v3209_v63 = vpop.f32.mrb[67].mxu0  ;;  %v4389_v53 = vld [vmem:[#allocation3 + $0x36] sm:$0xff] }
 0x894   :  { %v3742_v10 = vld [vmem:[#allocation3 + $0x2a] sm:$0xff]  ;;  %4441 = vst.msk [vmem:[#allocation2 + $0x10] sm:$0xff] %vm602_vm2, %v4423_v1  ;;  %v4279_v59 = vpack.c.bf16 %v4244_v39, %v4243_v19  ;;  %v3887_v22 = vld [vmem:[#allocation3 + $0x33] sm:$0xff] }
 0x895   :  { %3938 = vst.msk [vmem:[#allocation2 + $0x20] sm:$0xff] %vm602_vm2, %v3920_v43  ;;  %v3385_v18 = vld [vmem:[#allocation3 + $0x30] sm:$0xff]  ;;  %v3776_v20 = vpack.c.bf16 %v3742_v10, %v3741_v8 }
 0x896   :  { %v3418_v45 = vpack.c.bf16 %v3386_v15, %v3385_v18  ;;  %v3456_v58 = vld [vmem:[#allocation3 + $0x29] sm:$0xff]  ;;  %v4101_v41 = vld [vmem:[#allocation3 + $0x34] sm:$0xff] }
 0x897   :  { %4315 = vrot.lane.b32.xlu1 %v4279_v59, %s7092_s24  ;;  %3813 = vrot.lane.b32.xlu0 %v3776_v20, %s7092_s24  ;;  %v3489_v35 = vpack.c.bf16 %v3456_v58, %v3455_v32  ;;  %v4245_v61 = vld [vmem:[#allocation3 + $0x35] sm:$0xff] }
 0x898   :  { %3436 = vst.msk [vmem:[#allocation2 + $0x48] sm:$0xff] %vm602_vm2, %v3418_v45  ;;  %v3212_v14 = vpop.f32.mrb[68].mxu0  ;;  %v4390_v42 = vld [vmem:[#allocation3 + $0x3e] sm:$0xff]  ;;  %v3743_v27 = vld [vmem:[#allocation3 + $0x32] sm:$0xff] }
 0x899   :  { %3348 = vst [vmem:[#allocation3 + $0x50] sm:$0xff] %v3212_v14  ;;  %v3214_v21 = vpop.f32.mrb[69].mxu0  ;;  %v3888_v23 = vld [vmem:[#allocation3 + $0x3b] sm:$0xff]  ;;  %v4424_v50 = vpack.c.bf16 %v4390_v42, %v4389_v53  ;;  %v3457_v40 = vld [vmem:[#allocation3 + $0x31] sm:$0xff] }
 0x89a   :  { %v4102_v49 = vld [vmem:[#allocation3 + $0x3c] sm:$0xff]  ;;  %v3215_v38 = vpop.f32.mrb[70].mxu0  ;;  %v3921_v51 = vpack.c.bf16 %v3888_v23, %v3887_v22  ;;  %v3388_v54 = vld [vmem:[#allocation3 + $0x48] sm:$0xff] }
 0x89b   :  { %4029 = vrot.lane.b32.xlu1 %v4135_v13, %s7091_s22  ;;  %3527 = vrot.lane.b32.xlu0 %v3489_v35, %s7091_s22  ;;  %3349 = vst [vmem:[#allocation3 + $0x58] sm:$0xff] %v3215_v38  ;;  %v3217_v62 = vpop.f32.mrb[71].mxu0  ;;  %v4461_v52 = vld [vmem:[#allocation2 + $0x10] sm:$0xff]  ;;  %4442 = vst.msk [vmem:[#allocation2 + $0x28] sm:$0xff] %vm602_vm2, %v4424_v50  ;;  %v4136_v55 = vpack.c.bf16 %v4102_v49, %v4101_v41 }
 0x89c   :  { %6542 = vmatprep.mubr.bf16.mxu0 %v4461_v52  ;;  %3939 = vst.msk [vmem:[#allocation2 + $0x38] sm:$0xff] %vm602_vm2, %v3921_v51  ;;  %v3387_v0 = vld [vmem:[#allocation3 + $0x40] sm:$0xff] }
 0x89d   :  { %v3419_v56 = vpack.c.bf16 %v3388_v54, %v3387_v0  ;;  %v4246_v36 = vld [vmem:[#allocation3 + $0x3d] sm:$0xff]  ;;  %v4391_v33 = vld [vmem:[#allocation3 + $0x46] sm:$0xff] }
 0x89e   :  { %v3744_v60 = vld [vmem:[#allocation3 + $0x3a] sm:$0xff]  ;;  %v4280_v46 = vpack.c.bf16 %v4246_v36, %v4245_v61  ;;  %v3889_v24 = vld [vmem:[#allocation3 + $0x43] sm:$0xff] }
 0x89f   :  { %3671 = vrot.lane.b32.xlu0 %v3776_v20, %s7078_s30  ;;  %4173 = vrot.lane.b32.xlu1 %v4136_v55, %s7078_s30  ;;  %3437 = vst.msk [vmem:[#allocation2 + $0x60] sm:$0xff] %vm602_vm2, %v3419_v56  ;;  %v3777_v5 = vpack.c.bf16 %v3744_v60, %v3743_v27  ;;  %v3458_v6 = vld [vmem:[#allocation3 + $0x39] sm:$0xff]  ;;  %v4103_v44 = vld [vmem:[#allocation3 + $0x44] sm:$0xff] }
 0x8a0   :  { %v4392_v25 = vld [vmem:[#allocation3 + $0x4e] sm:$0xff]  ;;  %v3220_v31 = vpop.f32.mrb[72].mxu0  ;;  %v3490_v12 = vpack.c.bf16 %v3458_v6, %v3457_v40  ;;  %v4247_v8 = vld [vmem:[#allocation3 + $0x45] sm:$0xff] }
 0x8a1   :  { %v4425_v3 = vpack.c.bf16 %v4392_v25, %v4391_v33  ;;  %3350 = vst [vmem:[#allocation3 + $0x60] sm:$0xff] %v3220_v31  ;;  %v3222_v4 = vpop.f32.mrb[73].mxu0  ;;  %v3890_v7 = vld [vmem:[#allocation3 + $0x4b] sm:$0xff]  ;;  %v3745_v59 = vld [vmem:[#allocation3 + $0x42] sm:$0xff] }
 0x8a2   :  { %v3223_v26 = vpop.f32.mrb[74].mxu0  ;;  %v3922_v9 = vpack.c.bf16 %v3890_v7, %v3889_v24  ;;  %v4464_v34 = vld [vmem:[#allocation2 + $0x28] sm:$0xff]  ;;  %v3389_v11 = vld [vmem:[#allocation3 + $0x50] sm:$0xff]  ;;  %v3459_v42 = vld [vmem:[#allocation3 + $0x41] sm:$0xff] }
 0x8a3   :  { %4443 = vst.msk [vmem:[#allocation2 + $0x40] sm:$0xff] %vm602_vm2, %v4425_v3  ;;  %4317 = vrot.lane.b32.xlu1 %v4280_v46, %s7092_s24  ;;  %3815 = vrot.lane.b32.xlu0 %v3777_v5, %s7092_s24  ;;  %3351 = vst [vmem:[#allocation3 + $0x68] sm:$0xff] %v3223_v26  ;;  %v3225_v16 = vpop.f32.mrb[75].mxu0  ;;  %v3390_v37 = vld [vmem:[#allocation3 + $0x58] sm:$0xff]  ;;  %v4104_v2 = vld [vmem:[#allocation3 + $0x4c] sm:$0xff] }
 0x8a4   :  { %6543 = vmatmul.mubr.bf16.vlgmr.msra.gmra.mrb[132].mxu0 %v4464_v34  ;;  %3940 = vst.msk [vmem:[#allocation2 + $0x50] sm:$0xff] %vm602_vm2, %v3922_v9  ;;  %v3420_v48 = vpack.c.bf16 %v3390_v37, %v3389_v11  ;;  %v4393_v28 = vld [vmem:[#allocation3 + $0x56] sm:$0xff]  ;;  %v4137_v29 = vpack.c.bf16 %v4104_v2, %v4103_v44  ;;  %v4248_v1 = vld [vmem:[#allocation3 + $0x4d] sm:$0xff] }
 0x8a5   :  { %v3891_v13 = vld [vmem:[#allocation3 + $0x53] sm:$0xff]  ;;  %v3746_v43 = vld [vmem:[#allocation3 + $0x4a] sm:$0xff]  ;;  %v4281_v58 = vpack.c.bf16 %v4248_v1, %v4247_v8 }
 0x8a6   :  { %3438 = vst.msk [vmem:[#allocation2 + $0x78] sm:$0xff] %vm602_vm2, %v3420_v48  ;;  %v3778_v32 = vpack.c.bf16 %v3746_v43, %v3745_v59  ;;  %v3460_v53 = vld [vmem:[#allocation3 + $0x49] sm:$0xff]  ;;  %v4105_v62 = vld [vmem:[#allocation3 + $0x54] sm:$0xff] }
 0x8a7   :  { %4031 = vrot.lane.b32.xlu1 %v4136_v55, %s7091_s22  ;;  %3529 = vrot.lane.b32.xlu0 %v3490_v12, %s7091_s22  ;;  %v3491_v49 = vpack.c.bf16 %v3460_v53, %v3459_v42  ;;  %v4249_v61 = vld [vmem:[#allocation3 + $0x55] sm:$0xff] }
 0x8a8   :  { %v4394_v30 = vld [vmem:[#allocation3 + $0x5e] sm:$0xff]  ;;  %v3228_v17 = vpop.f32.mrb[76].mxu0  ;;  %v3747_v33 = vld [vmem:[#allocation3 + $0x52] sm:$0xff] }
 0x8a9   :  { %v4426_v39 = vpack.c.bf16 %v4394_v30, %v4393_v28  ;;  %3352 = vst [vmem:[#allocation3 + $0x70] sm:$0xff] %v3228_v17  ;;  %v3230_v10 = vpop.f32.mrb[77].mxu0  ;;  %v3892_v47 = vld [vmem:[#allocation3 + $0x5b] sm:$0xff]  ;;  %v3461_v16 = vld [vmem:[#allocation3 + $0x51] sm:$0xff] }
 0x8aa   :  { %v3231_v19 = vpop.f32.mrb[78].mxu0  ;;  %v3923_v63 = vpack.c.bf16 %v3892_v47, %v3891_v13  ;;  %v4467_v15 = vld [vmem:[#allocation2 + $0x40] sm:$0xff]  ;;  %v3391_v20 = vld [vmem:[#allocation3 + $0x60] sm:$0xff]  ;;  %v3392_v45 = vld [vmem:[#allocation3 + $0x68] sm:$0xff] }
 0x8ab   :  { %3673 = vrot.lane.b32.xlu0 %v3777_v5, %s7078_s30  ;;  %4175 = vrot.lane.b32.xlu1 %v4137_v29, %s7078_s30  ;;  %4444 = vst.msk [vmem:[#allocation2 + $0x58] sm:$0xff] %vm602_vm2, %v4426_v39  ;;  %3353 = vst [vmem:[#allocation3 + $0x78] sm:$0xff] %v3231_v19  ;;  %v3233_v18 = vpop.f32.mrb[79].mxu0  ;;  %v3421_v14 = vpack.c.bf16 %v3392_v45, %v3391_v20  ;;  %v4395_v35 = vld [vmem:[#allocation3 + $0x66] sm:$0xff]  ;;  %v4106_v52 = vld [vmem:[#allocation3 + $0x5c] sm:$0xff] }
 0x8ac   :  { %6546 = vmatprep.mubr.bf16.mxu0 %v4467_v15  ;;  %3941 = vst.msk [vmem:[#allocation2 + $0x68] sm:$0xff] %vm602_vm2, %v3923_v63  ;;  %v3893_v21 = vld [vmem:[#allocation3 + $0x63] sm:$0xff]  ;;  %v4138_v60 = vpack.c.bf16 %v4106_v52, %v4105_v62  ;;  %v3748_v31 = vld [vmem:[#allocation3 + $0x5a] sm:$0xff] }
 0x8ad   :  { %3439 = vst.msk [vmem:[#allocation2 + $0x90] sm:$0xff] %vm602_vm2, %v3421_v14  ;;  %v4250_v27 = vld [vmem:[#allocation3 + $0x5d] sm:$0xff]  ;;  %v3779_v7 = vpack.c.bf16 %v3748_v31, %v3747_v33  ;;  %v4251_v1 = vld [vmem:[#allocation3 + $0x65] sm:$0xff] }
 0x8ae   :  { %v4282_v24 = vpack.c.bf16 %v4250_v27, %v4249_v61  ;;  %v3462_v34 = vld [vmem:[#allocation3 + $0x59] sm:$0xff]  ;;  %v4107_v44 = vld [vmem:[#allocation3 + $0x64] sm:$0xff] }
 0x8af   :  { %4319 = vrot.lane.b32.xlu1 %v4281_v58, %s7092_s24  ;;  %3817 = vrot.lane.b32.xlu0 %v3778_v32, %s7092_s24  ;;  %v3492_v2 = vpack.c.bf16 %v3462_v34, %v3461_v16  ;;  %v3749_v18 = vld [vmem:[#allocation3 + $0x62] sm:$0xff] }
 0x8b0   :  { %v4396_v22 = vld [vmem:[#allocation3 + $0x6e] sm:$0xff]  ;;  %v3236_v23 = vpop.f32.mrb[80].mxu0  ;;  %v3463_v42 = vld [vmem:[#allocation3 + $0x61] sm:$0xff] }
 0x8b1   :  { %v4427_v38 = vpack.c.bf16 %v4396_v22, %v4395_v35  ;;  %3354 = vst [vmem:[#allocation3 + $0x80] sm:$0xff] %v3236_v23  ;;  %v3238_v50 = vpop.f32.mrb[81].mxu0  ;;  %v3894_v51 = vld [vmem:[#allocation3 + $0x6b] sm:$0xff] }
 0x8b2   :  { %v3239_v41 = vpop.f32.mrb[82].mxu0  ;;  %v3924_v0 = vpack.c.bf16 %v3894_v51, %v3893_v21  ;;  %v4470_v55 = vld [vmem:[#allocation2 + $0x58] sm:$0xff]  ;;  %v3393_v56 = vld [vmem:[#allocation3 + $0x70] sm:$0xff]  ;;  %v3394_v36 = vld [vmem:[#allocation3 + $0x78] sm:$0xff] }
 0x8b3   :  { %4033 = vrot.lane.b32.xlu1 %v4137_v29, %s7091_s22  ;;  %3531 = vrot.lane.b32.xlu0 %v3491_v49, %s7091_s22  ;;  %4445 = vst.msk [vmem:[#allocation2 + $0x70] sm:$0xff] %vm602_vm2, %v4427_v38  ;;  %3355 = vst [vmem:[#allocation3 + $0x88] sm:$0xff] %v3239_v41  ;;  %v3241_v54 = vpop.f32.mrb[83].mxu0  ;;  %v3422_v25 = vpack.c.bf16 %v3394_v36, %v3393_v56  ;;  %v4397_v3 = vld [vmem:[#allocation3 + $0x76] sm:$0xff]  ;;  %v4108_v30 = vld [vmem:[#allocation3 + $0x6c] sm:$0xff] }
 0x8b4   :  { %6547 = vmatmul.mubr.bf16.gmra.mrb[136].mxu0 %v4470_v55  ;;  %3942 = vst.msk [vmem:[#allocation2 + $0x80] sm:$0xff] %vm602_vm2, %v3924_v0  ;;  %v3895_v46 = vld [vmem:[#allocation3 + $0x73] sm:$0xff]  ;;  %v4139_v47 = vpack.c.bf16 %v4108_v30, %v4107_v44  ;;  %v3750_v15 = vld [vmem:[#allocation3 + $0x6a] sm:$0xff] }
 0x8b5   :  { %3440 = vst.msk [vmem:[#allocation2 + $0xa8] sm:$0xff] %vm602_vm2, %v3422_v25  ;;  %v4252_v8 = vld [vmem:[#allocation3 + $0x6d] sm:$0xff]  ;;  %v3780_v35 = vpack.c.bf16 %v3750_v15, %v3749_v18  ;;  %v4253_v27 = vld [vmem:[#allocation3 + $0x75] sm:$0xff] }
 0x8b6   :  { %v4283_v53 = vpack.c.bf16 %v4252_v8, %v4251_v1  ;;  %v3464_v22 = vld [vmem:[#allocation3 + $0x69] sm:$0xff]  ;;  %v4109_v0 = vld [vmem:[#allocation3 + $0x74] sm:$0xff] }
 0x8b7   :  { %3675 = vrot.lane.b32.xlu0 %v3778_v32, %s7078_s30  ;;  %4177 = vrot.lane.b32.xlu1 %v4138_v60, %s7078_s30  ;;  %v3493_v51 = vpack.c.bf16 %v3464_v22, %v3463_v42  ;;  %v3751_v31 = vld [vmem:[#allocation3 + $0x72] sm:$0xff] }
 0x8b8   :  { %v4398_v5 = vld [vmem:[#allocation3 + $0x7e] sm:$0xff]  ;;  %v3244_v4 = vpop.f32.mrb[84].mxu0 }
 0x8b9   :  { %v4428_v6 = vpack.c.bf16 %v4398_v5, %v4397_v3  ;;  %3356 = vst [vmem:[#allocation3 + $0x90] sm:$0xff] %v3244_v4  ;;  %v3246_v26 = vpop.f32.mrb[85].mxu0  ;;  %v3896_v9 = vld [vmem:[#allocation3 + $0x7b] sm:$0xff] }
 0x8ba   :  { %v3247_v40 = vpop.f32.mrb[86].mxu0  ;;  %v3925_v11 = vpack.c.bf16 %v3896_v9, %v3895_v46  ;;  %v4473_v12 = vld [vmem:[#allocation2 + $0x70] sm:$0xff]  ;;  %v3396_v28 = vld [vmem:[#allocation3 + $0x88] sm:$0xff] }
 0x8bb   :  { %4321 = vrot.lane.b32.xlu1 %v4282_v24, %s7092_s24  ;;  %3819 = vrot.lane.b32.xlu0 %v3779_v7, %s7092_s24  ;;  %4446 = vst.msk [vmem:[#allocation2 + $0x88] sm:$0xff] %vm602_vm2, %v4428_v6  ;;  %3357 = vst [vmem:[#allocation3 + $0x98] sm:$0xff] %v3247_v40  ;;  %v3249_v37 = vpop.f32.mrb[87].mxu0  ;;  %v3395_v48 = vld [vmem:[#allocation3 + $0x80] sm:$0xff] }
 0x8bc   :  { %6550 = vmatprep.mubr.bf16.mxu0 %v4473_v12  ;;  %3943 = vst.msk [vmem:[#allocation2 + $0x98] sm:$0xff] %vm602_vm2, %v3925_v11  ;;  %v3423_v13 = vpack.c.bf16 %v3396_v28, %v3395_v48  ;;  %v4399_v17 = vld [vmem:[#allocation3 + $0x86] sm:$0xff]  ;;  %v4110_v54 = vld [vmem:[#allocation3 + $0x7c] sm:$0xff]  ;;  %v3465_v11 = vld [vmem:[#allocation3 + $0x71] sm:$0xff] }
 0x8bd   :  { %v3897_v29 = vld [vmem:[#allocation3 + $0x83] sm:$0xff]  ;;  %v4140_v25 = vpack.c.bf16 %v4110_v54, %v4109_v0  ;;  %v3752_v5 = vld [vmem:[#allocation3 + $0x7a] sm:$0xff] }
 0x8be   :  { %3441 = vst.msk [vmem:[#allocation2 + $0xc0] sm:$0xff] %vm602_vm2, %v3423_v13  ;;  %v4254_v46 = vld [vmem:[#allocation3 + $0x7d] sm:$0xff]  ;;  %v3781_v9 = vpack.c.bf16 %v3752_v5, %v3751_v31 }
 0x8bf   :  { %4035 = vrot.lane.b32.xlu1 %v4138_v60, %s7091_s22  ;;  %3533 = vrot.lane.b32.xlu0 %v3492_v2, %s7091_s22  ;;  %v4284_v26 = vpack.c.bf16 %v4254_v46, %v4253_v27  ;;  %v3466_v37 = vld [vmem:[#allocation3 + $0x79] sm:$0xff] }
 0x8c0   :  { %v4400_v39 = vld [vmem:[#allocation3 + $0x8e] sm:$0xff]  ;;  %v3252_v10 = vpop.f32.mrb[88].mxu0  ;;  %v3494_v30 = vpack.c.bf16 %v3466_v37, %v3465_v11 }
 0x8c1   :  { %v4429_v43 = vpack.c.bf16 %v4400_v39, %v4399_v17  ;;  %3358 = vst [vmem:[#allocation3 + $0xa0] sm:$0xff] %v3252_v10  ;;  %v3254_v19 = vpop.f32.mrb[89].mxu0  ;;  %v3898_v63 = vld [vmem:[#allocation3 + $0x8b] sm:$0xff] }
 0x8c2   :  { %v3255_v59 = vpop.f32.mrb[90].mxu0  ;;  %v3926_v20 = vpack.c.bf16 %v3898_v63, %v3897_v29  ;;  %v4476_v58 = vld [vmem:[#allocation2 + $0x88] sm:$0xff]  ;;  %v3397_v32 = vld [vmem:[#allocation3 + $0x90] sm:$0xff]  ;;  %v4111_v29 = vld [vmem:[#allocation3 + $0x84] sm:$0xff] }
 0x8c3   :  { %3677 = vrot.lane.b32.xlu0 %v3779_v7, %s7078_s30  ;;  %4179 = vrot.lane.b32.xlu1 %v4139_v47, %s7078_s30  ;;  %4447 = vst.msk [vmem:[#allocation2 + $0xa0] sm:$0xff] %vm602_vm2, %v4429_v43  ;;  %3359 = vst [vmem:[#allocation3 + $0xa8] sm:$0xff] %v3255_v59  ;;  %v3257_v45 = vpop.f32.mrb[91].mxu0  ;;  %v3398_v14 = vld [vmem:[#allocation3 + $0x98] sm:$0xff]  ;;  %v4112_v39 = vld [vmem:[#allocation3 + $0x8c] sm:$0xff] }
 0x8c4   :  { %6551 = vmatmul.mubr.bf16.gmra.mrb[140].mxu0 %v4476_v58  ;;  %3944 = vst.msk [vmem:[#allocation2 + $0xb0] sm:$0xff] %vm602_vm2, %v3926_v20  ;;  %v3424_v21 = vpack.c.bf16 %v3398_v14, %v3397_v32  ;;  %v4401_v23 = vld [vmem:[#allocation3 + $0x96] sm:$0xff]  ;;  %v4141_v19 = vpack.c.bf16 %v4112_v39, %v4111_v29  ;;  %v4255_v63 = vld [vmem:[#allocation3 + $0x85] sm:$0xff]  ;;  %v4256_v59 = vld [vmem:[#allocation3 + $0x8d] sm:$0xff] }
 0x8c5   :  { %v3899_v49 = vld [vmem:[#allocation3 + $0x93] sm:$0xff]  ;;  %v3753_v20 = vld [vmem:[#allocation3 + $0x82] sm:$0xff]  ;;  %v3754_v45 = vld [vmem:[#allocation3 + $0x8a] sm:$0xff] }
 0x8c6   :  { %3442 = vst.msk [vmem:[#allocation2 + $0xd8] sm:$0xff] %vm602_vm2, %v3424_v21  ;;  %v4285_v21 = vpack.c.bf16 %v4256_v59, %v4255_v63  ;;  %v3782_v42 = vpack.c.bf16 %v3754_v45, %v3753_v20  ;;  %v3755_v46 = vld [vmem:[#allocation3 + $0x92] sm:$0xff] }
 0x8c7   :  { %4323 = vrot.lane.b32.xlu1 %v4283_v53, %s7092_s24  ;;  %3821 = vrot.lane.b32.xlu0 %v3780_v35, %s7092_s24  ;;  %v3469_v37 = vld [vmem:[#allocation3 + $0x91] sm:$0xff] }
 0x8c8   :  { %v4402_v38 = vld [vmem:[#allocation3 + $0x9e] sm:$0xff]  ;;  %v3260_v50 = vpop.f32.mrb[92].mxu0 }
 0x8c9   :  { %v4430_v62 = vpack.c.bf16 %v4402_v38, %v4401_v23  ;;  %3360 = vst [vmem:[#allocation3 + $0xb0] sm:$0xff] %v3260_v50  ;;  %v3262_v52 = vpop.f32.mrb[93].mxu0  ;;  %v3900_v41 = vld [vmem:[#allocation3 + $0x9b] sm:$0xff] }
 0x8ca   :  { %v3263_v55 = vpop.f32.mrb[94].mxu0  ;;  %v3927_v56 = vpack.c.bf16 %v3900_v41, %v3899_v49  ;;  %v4479_v60 = vld [vmem:[#allocation2 + $0xa0] sm:$0xff]  ;;  %v3399_v61 = vld [vmem:[#allocation3 + $0xa0] sm:$0xff]  ;;  %v3400_v33 = vld [vmem:[#allocation3 + $0xa8] sm:$0xff] }
 0x8cb   :  { %4037 = vrot.lane.b32.xlu1 %v4139_v47, %s7091_s22  ;;  %3535 = vrot.lane.b32.xlu0 %v3493_v51, %s7091_s22  ;;  %4448 = vst.msk [vmem:[#allocation2 + $0xb8] sm:$0xff] %vm602_vm2, %v4430_v62  ;;  %3361 = vst [vmem:[#allocation3 + $0xb8] sm:$0xff] %v3263_v55  ;;  %v3265_v36 = vpop.f32.mrb[95].mxu0  ;;  %v3425_v3 = vpack.c.bf16 %v3400_v33, %v3399_v61  ;;  %v4403_v4 = vld [vmem:[#allocation3 + $0xa6] sm:$0xff] }
 0x8cc   :  { %6554 = vmatprep.mubr.bf16.mxu0 %v4479_v60  ;;  %3945 = vst.msk [vmem:[#allocation2 + $0xc8] sm:$0xff] %vm602_vm2, %v3927_v56  ;;  %v3901_v24 = vld [vmem:[#allocation3 + $0xa3] sm:$0xff]  ;;  %v4113_v56 = vld [vmem:[#allocation3 + $0x94] sm:$0xff] }
 0x8cd   :  { %3443 = vst.msk [vmem:[#allocation2 + $0xf0] sm:$0xff] %vm602_vm2, %v3425_v3  ;;  %v3467_v23 = vld [vmem:[#allocation3 + $0x81] sm:$0xff]  ;;  %v3468_v49 = vld [vmem:[#allocation3 + $0x89] sm:$0xff]  ;;  %v4257_v3 = vld [vmem:[#allocation3 + $0x95] sm:$0xff] }
 0x8ce   :  { %v3495_v41 = vpack.c.bf16 %v3468_v49, %v3467_v23  ;;  %v4114_v36 = vld [vmem:[#allocation3 + $0x9c] sm:$0xff] }
 0x8cf   :  { %3679 = vrot.lane.b32.xlu0 %v3780_v35, %s7078_s30  ;;  %4181 = vrot.lane.b32.xlu1 %v4140_v25, %s7078_s30  ;;  %v4142_v31 = vpack.c.bf16 %v4114_v36, %v4113_v56 }
 0x8d0   :  { %v4404_v7 = vld [vmem:[#allocation3 + $0xae] sm:$0xff]  ;;  %v3268_v6 = vpop.f32.mrb[96].mxu0 }
 0x8d1   :  { %v4431_v16 = vpack.c.bf16 %v4404_v7, %v4403_v4  ;;  %3362 = vst [vmem:[#allocation3 + $0xc0] sm:$0xff] %v3268_v6  ;;  %v3270_v34 = vpop.f32.mrb[97].mxu0  ;;  %v3902_v40 = vld [vmem:[#allocation3 + $0xab] sm:$0xff]  ;;  %v4258_v4 = vld [vmem:[#allocation3 + $0x9d] sm:$0xff] }
 0x8d2   :  { %v3271_v12 = vpop.f32.mrb[98].mxu0  ;;  %v3928_v48 = vpack.c.bf16 %v3902_v40, %v3901_v24  ;;  %v4482_v2 = vld [vmem:[#allocation2 + $0xb8] sm:$0xff]  ;;  %v3401_v13 = vld [vmem:[#allocation3 + $0xb0] sm:$0xff]  ;;  %v3402_v44 = vld [vmem:[#allocation3 + $0xb8] sm:$0xff] }
 0x8d3   :  { %4325 = vrot.lane.b32.xlu1 %v4284_v26, %s7092_s24  ;;  %3823 = vrot.lane.b32.xlu0 %v3781_v9, %s7092_s24  ;;  %4449 = vst.msk [vmem:[#allocation2 + $0xd0] sm:$0xff] %vm602_vm2, %v4431_v16  ;;  %3363 = vst [vmem:[#allocation3 + $0xc8] sm:$0xff] %v3271_v12  ;;  %v3273_v28 = vpop.f32.mrb[99].mxu0  ;;  %v3426_v17 = vpack.c.bf16 %v3402_v44, %v3401_v13  ;;  %v4405_v10 = vld [vmem:[#allocation3 + $0xb6] sm:$0xff]  ;;  %v4286_v16 = vpack.c.bf16 %v4258_v4, %v4257_v3  ;;  %v4260_v45 = vld [vmem:[#allocation3 + $0xad] sm:$0xff] }
 0x8d4   :  { %6555 = vmatmul.mubr.bf16.gmra.mrb[144].mxu0 %v4482_v2  ;;  %3946 = vst.msk [vmem:[#allocation2 + $0xe0] sm:$0xff] %vm602_vm2, %v3928_v48  ;;  %v3903_v47 = vld [vmem:[#allocation3 + $0xb3] sm:$0xff] }
 0x8d5   :  { %3444 = vst.msk [vmem:[#allocation2 + $0x108] sm:$0xff] %vm602_vm2, %v3426_v17  ;;  %v3756_v24 = vld [vmem:[#allocation3 + $0x9a] sm:$0xff] }
 0x8d6   :  { %v3783_v34 = vpack.c.bf16 %v3756_v24, %v3755_v46  ;;  %v3470_v12 = vld [vmem:[#allocation3 + $0x99] sm:$0xff] }
 0x8d7   :  { %4039 = vrot.lane.b32.xlu1 %v4140_v25, %s7091_s22  ;;  %3537 = vrot.lane.b32.xlu0 %v3494_v30, %s7091_s22  ;;  %v3496_v30 = vpack.c.bf16 %v3470_v12, %v3469_v37  ;;  %v4261_v46 = vld [vmem:[#allocation3 + $0xb5] sm:$0xff] }
 0x8d8   :  { %v4406_v1 = vld [vmem:[#allocation3 + $0xbe] sm:$0xff]  ;;  %v3276_v43 = vpop.f32.mrb[100].mxu0 }
 0x8d9   :  { %v4432_v8 = vpack.c.bf16 %v4406_v1, %v4405_v10  ;;  %3364 = vst [vmem:[#allocation3 + $0xd0] sm:$0xff] %v3276_v43  ;;  %v3278_v18 = vpop.f32.mrb[101].mxu0  ;;  %v3904_v15 = vld [vmem:[#allocation3 + $0xbb] sm:$0xff]  ;;  %v4115_v10 = vld [vmem:[#allocation3 + $0xa4] sm:$0xff] }
 0x8da   :  { %v3279_v58 = vpop.f32.mrb[102].mxu0  ;;  %v3929_v32 = vpack.c.bf16 %v3904_v15, %v3903_v47  ;;  %v4485_v53 = vld [vmem:[#allocation2 + $0xd0] sm:$0xff]  ;;  %v3404_v22 = vld [vmem:[#allocation3 + $0xc8] sm:$0xff] }
 0x8db   :  { %3681 = vrot.lane.b32.xlu0 %v3781_v9, %s7078_s30  ;;  %4183 = vrot.lane.b32.xlu1 %v4141_v19, %s7078_s30  ;;  %4450 = vst.msk [vmem:[#allocation2 + $0xe8] sm:$0xff] %vm602_vm2, %v4432_v8  ;;  %3365 = vst [vmem:[#allocation3 + $0xd8] sm:$0xff] %v3279_v58  ;;  %v3281_v14 = vpop.f32.mrb[103].mxu0  ;;  %v3403_v35 = vld [vmem:[#allocation3 + $0xc0] sm:$0xff]  ;;  %v4116_v47 = vld [vmem:[#allocation3 + $0xac] sm:$0xff] }
 0x8dc   :  { %6558 = vmatprep.mubr.bf16.mxu0 %v4485_v53  ;;  %3947 = vst.msk [vmem:[#allocation2 + $0xf8] sm:$0xff] %vm602_vm2, %v3929_v32  ;;  %v4407_v38 = vld [vmem:[#allocation3 + $0xc6] sm:$0xff]  ;;  %v3427_v50 = vpack.c.bf16 %v3404_v22, %v3403_v35  ;;  %v4143_v8 = vpack.c.bf16 %v4116_v47, %v4115_v10 }
 0x8dd   :  { %v3905_v51 = vld [vmem:[#allocation3 + $0xc3] sm:$0xff] }
 0x8de   :  { %3445 = vst.msk [vmem:[#allocation2 + $0x120] sm:$0xff] %vm602_vm2, %v3427_v50  ;;  %v4259_v18 = vld [vmem:[#allocation3 + $0xa5] sm:$0xff] }
 0x8df   :  { %4327 = vrot.lane.b32.xlu1 %v4285_v21, %s7092_s24  ;;  %3825 = vrot.lane.b32.xlu0 %v3782_v42, %s7092_s24  ;;  %v3757_v15 = vld [vmem:[#allocation3 + $0xa2] sm:$0xff]  ;;  %v3758_v58 = vld [vmem:[#allocation3 + $0xaa] sm:$0xff] }
 0x8e0   :  { %v4408_v62 = vld [vmem:[#allocation3 + $0xce] sm:$0xff]  ;;  %v3284_v52 = vpop.f32.mrb[104].mxu0  ;;  %v3784_v22 = vpack.c.bf16 %v3758_v58, %v3757_v15 }
 0x8e1   :  { %v4433_v0 = vpack.c.bf16 %v4408_v62, %v4407_v38  ;;  %3366 = vst [vmem:[#allocation3 + $0xe0] sm:$0xff] %v3284_v52  ;;  %v3286_v54 = vpop.f32.mrb[105].mxu0  ;;  %v3906_v55 = vld [vmem:[#allocation3 + $0xcb] sm:$0xff] }
 0x8e2   :  { %v3287_v60 = vpop.f32.mrb[106].mxu0  ;;  %v3930_v61 = vpack.c.bf16 %v3906_v55, %v3905_v51  ;;  %v4488_v25 = vld [vmem:[#allocation2 + $0xe8] sm:$0xff]  ;;  %v3405_v27 = vld [vmem:[#allocation3 + $0xd0] sm:$0xff]  ;;  %v3471_v51 = vld [vmem:[#allocation3 + $0xa1] sm:$0xff] }
 0x8e3   :  { %4041 = vrot.lane.b32.xlu1 %v4141_v19, %s7091_s22  ;;  %3539 = vrot.lane.b32.xlu0 %v3495_v41, %s7091_s22  ;;  %4451 = vst.msk [vmem:[#allocation2 + $0x100] sm:$0xff] %vm602_vm2, %v4433_v0  ;;  %3367 = vst [vmem:[#allocation3 + $0xe8] sm:$0xff] %v3287_v60  ;;  %v3289_v33 = vpop.f32.mrb[107].mxu0  ;;  %v3406_v5 = vld [vmem:[#allocation3 + $0xd8] sm:$0xff]  ;;  %v3472_v62 = vld [vmem:[#allocation3 + $0xa9] sm:$0xff] }
 0x8e4   :  { %6559 = vmatmul.mubr.bf16.gmra.mrb[148].mxu0 %v4488_v25  ;;  %3948 = vst.msk [vmem:[#allocation2 + $0x110] sm:$0xff] %vm602_vm2, %v3930_v61  ;;  %v4409_v7 = vld [vmem:[#allocation3 + $0xd6] sm:$0xff]  ;;  %v3428_v6 = vpack.c.bf16 %v3406_v5, %v3405_v27  ;;  %v3497_v55 = vpack.c.bf16 %v3472_v62, %v3471_v51 }
 0x8e5   :  { %v3907_v28 = vld [vmem:[#allocation3 + $0xd3] sm:$0xff]  ;;  %v4118_v33 = vld [vmem:[#allocation3 + $0xbc] sm:$0xff] }
 0x8e6   :  { %3446 = vst.msk [vmem:[#allocation2 + $0x138] sm:$0xff] %vm602_vm2, %v3428_v6  ;;  %v4117_v61 = vld [vmem:[#allocation3 + $0xb4] sm:$0xff] }
 0x8e7   :  { %3683 = vrot.lane.b32.xlu0 %v3782_v42, %s7078_s30  ;;  %4185 = vrot.lane.b32.xlu1 %v4142_v31, %s7078_s30  ;;  %v4287_v42 = vpack.c.bf16 %v4260_v45, %v4259_v18  ;;  %v4144_v4 = vpack.c.bf16 %v4118_v33, %v4117_v61  ;;  %v3475_v33 = vld [vmem:[#allocation3 + $0xc1] sm:$0xff] }
 0x8e8   :  { %v4410_v26 = vld [vmem:[#allocation3 + $0xde] sm:$0xff]  ;;  %v3292_v9 = vpop.f32.mrb[108].mxu0 }
 0x8e9   :  { %v4434_v40 = vpack.c.bf16 %v4410_v26, %v4409_v7  ;;  %3368 = vst [vmem:[#allocation3 + $0xf0] sm:$0xff] %v3292_v9  ;;  %v3294_v11 = vpop.f32.mrb[109].mxu0  ;;  %v3908_v44 = vld [vmem:[#allocation3 + $0xdb] sm:$0xff]  ;;  %v3759_v7 = vld [vmem:[#allocation3 + $0xb2] sm:$0xff] }
 0x8ea   :  { %v3295_v48 = vpop.f32.mrb[110].mxu0  ;;  %v4491_v13 = vld [vmem:[#allocation2 + $0x100] sm:$0xff]  ;;  %v3931_v17 = vpack.c.bf16 %v3908_v44, %v3907_v28  ;;  %v3407_v29 = vld [vmem:[#allocation3 + $0xe0] sm:$0xff]  ;;  %v3408_v39 = vld [vmem:[#allocation3 + $0xe8] sm:$0xff] }
 0x8eb   :  { %4329 = vrot.lane.b32.xlu1 %v4286_v16, %s7092_s24  ;;  %3827 = vrot.lane.b32.xlu0 %v3783_v34, %s7092_s24  ;;  %4452 = vst.msk [vmem:[#allocation2 + $0x118] sm:$0xff] %vm602_vm2, %v4434_v40  ;;  %3369 = vst [vmem:[#allocation3 + $0xf8] sm:$0xff] %v3295_v48  ;;  %v3297_v2 = vpop.f32.mrb[111].mxu0  ;;  %v4411_v1 = vld [vmem:[#allocation3 + $0xe6] sm:$0xff]  ;;  %v3429_v43 = vpack.c.bf16 %v3408_v39, %v3407_v29  ;;  %v3760_v40 = vld [vmem:[#allocation3 + $0xba] sm:$0xff] }
 0x8ec   :  { %6562 = vmatprep.mubr.bf16.mxu0 %v4491_v13  ;;  %3949 = vst.msk [vmem:[#allocation2 + $0x128] sm:$0xff] %vm602_vm2, %v3931_v17  ;;  %v3909_v14 = vld [vmem:[#allocation3 + $0xe3] sm:$0xff]  ;;  %v3785_v2 = vpack.c.bf16 %v3760_v40, %v3759_v7  ;;  %v3473_v17 = vld [vmem:[#allocation3 + $0xb1] sm:$0xff]  ;;  %v3474_v29 = vld [vmem:[#allocation3 + $0xb9] sm:$0xff] }
 0x8ed   :  { %3447 = vst.msk [vmem:[#allocation2 + $0x150] sm:$0xff] %vm602_vm2, %v3429_v43 }
 0x8ef   :  { %4043 = vrot.lane.b32.xlu1 %v4142_v31, %s7091_s22  ;;  %3541 = vrot.lane.b32.xlu0 %v3496_v30, %s7091_s22 }
 0x8f0   :  { %v4412_v19 = vld [vmem:[#allocation3 + $0xee] sm:$0xff]  ;;  %v3300_v63 = vpop.f32.mrb[112].mxu0 }
 0x8f1   :  { %v4435_v59 = vpack.c.bf16 %v4412_v19, %v4411_v1  ;;  %3370 = vst [vmem:[#allocation3 + $0x100] sm:$0xff] %v3300_v63  ;;  %v3302_v20 = vpop.f32.mrb[113].mxu0  ;;  %v3910_v21 = vld [vmem:[#allocation3 + $0xeb] sm:$0xff]  ;;  %v3498_v63 = vpack.c.bf16 %v3474_v29, %v3473_v17  ;;  %v3764_v29 = vld [vmem:[#allocation3 + $0xda] sm:$0xff] }
 0x8f2   :  { %v3303_v32 = vpop.f32.mrb[114].mxu0  ;;  %v4494_v35 = vld [vmem:[#allocation2 + $0x118] sm:$0xff]  ;;  %v3932_v49 = vpack.c.bf16 %v3910_v21, %v3909_v14  ;;  %v3409_v38 = vld [vmem:[#allocation3 + $0xf0] sm:$0xff]  ;;  %v3410_v50 = vld [vmem:[#allocation3 + $0xf8] sm:$0xff] }
 0x8f3   :  { %3685 = vrot.lane.b32.xlu0 %v3783_v34, %s7078_s30  ;;  %4187 = vrot.lane.b32.xlu1 %v4143_v8, %s7078_s30  ;;  %4453 = vst.msk [vmem:[#allocation2 + $0x130] sm:$0xff] %vm602_vm2, %v4435_v59  ;;  %3371 = vst [vmem:[#allocation3 + $0x108] sm:$0xff] %v3303_v32  ;;  %v3305_v53 = vpop.f32.mrb[115].mxu0  ;;  %v4413_v52 = vld [vmem:[#allocation3 + $0xf6] sm:$0xff]  ;;  %v3430_v41 = vpack.c.bf16 %v3410_v50, %v3409_v38  ;;  %v4119_v59 = vld [vmem:[#allocation3 + $0xc4] sm:$0xff] }
 0x8f4   :  { %6563 = vmatmul.mubr.bf16.gmra.mrb[152].mxu0 %v4494_v35  ;;  %3950 = vst.msk [vmem:[#allocation2 + $0x140] sm:$0xff] %vm602_vm2, %v3932_v49  ;;  %v3911_v27 = vld [vmem:[#allocation3 + $0xf3] sm:$0xff]  ;;  %v4262_v34 = vld [vmem:[#allocation3 + $0xbd] sm:$0xff]  ;;  %v4263_v21 = vld [vmem:[#allocation3 + $0xc5] sm:$0xff] }
 0x8f5   :  { %v3524_v23 = vpop.permute.xlu0 %3523  ;;  %3448 = vst.msk [vmem:[#allocation2 + $0x168] sm:$0xff] %vm602_vm2, %v3430_v41  ;;  %v4288_v28 = vpack.c.bf16 %v4262_v34, %v4261_v46  ;;  %v4120_v20 = vld [vmem:[#allocation3 + $0xcc] sm:$0xff] }
 0x8f6   :  { %3577 = vst.msk [vmem:[#allocation2] sm:$0xff] %vm640_vm5, %v3524_v23  ;;  %v4145_v35 = vpack.c.bf16 %v4120_v20, %v4119_v59  ;;  %v4264_v49 = vld [vmem:[#allocation3 + $0xcd] sm:$0xff] }
 0x8f7   :  { %4331 = vrot.lane.b32.xlu1 %v4287_v42, %s7092_s24  ;;  %3829 = vrot.lane.b32.xlu0 %v3784_v22, %s7092_s24  ;;  %v3761_v42 = vld [vmem:[#allocation3 + $0xc2] sm:$0xff]  ;;  %v3762_v38 = vld [vmem:[#allocation3 + $0xca] sm:$0xff]  ;;  %v3763_v17 = vld [vmem:[#allocation3 + $0xd2] sm:$0xff] }
 0x8f8   :  { %v4414_v0 = vld [vmem:[#allocation3 + $0xfe] sm:$0xff]  ;;  %v3308_v54 = vpop.f32.mrb[116].mxu0 }
 0x8f9   :  { %v3668_v56 = vpop.permute.xlu0 %3667  ;;  %v4436_v36 = vpack.c.bf16 %v4414_v0, %v4413_v52  ;;  %3372 = vst [vmem:[#allocation3 + $0x110] sm:$0xff] %v3308_v54  ;;  %v3310_v60 = vpop.f32.mrb[117].mxu0  ;;  %v3912_v5 = vld [vmem:[#allocation3 + $0xfb] sm:$0xff] }
 0x8fa   :  { %3721 = vst.msk [vmem:[#allocation2] sm:$0xff] %vm677_vm6, %v3668_v56  ;;  %v8165_v25 = vpop.f32.mrb[118].mxu0  ;;  %v4497_v3 = vld [vmem:[#allocation2 + $0x130] sm:$0xff]  ;;  %v3933_v26 = vpack.c.bf16 %v3912_v5, %v3911_v27  ;;  %v3412_v16 = vld [vmem:[#allocation3 + $0x108] sm:$0xff]  ;;  %v3786_v56 = vpack.c.bf16 %v3762_v38, %v3761_v42  ;;  %v4121_v5 = vld [vmem:[#allocation3 + $0xd4] sm:$0xff] }
 0x8fb   :  { %4045 = vrot.lane.b32.xlu1 %v4143_v8, %s7091_s22  ;;  %3543 = vrot.lane.b32.xlu0 %v3497_v55, %s7091_s22  ;;  %4454 = vst.msk [vmem:[#allocation2 + $0x148] sm:$0xff] %vm602_vm2, %v4436_v36  ;;  %3373 = vst [vmem:[#allocation3 + $0x118] sm:$0xff] %v8165_v25  ;;  %v3313_v31 = vpop.f32.mrb[119].mxu0  ;;  %v3411_v9 = vld [vmem:[#allocation3 + $0x100] sm:$0xff]  ;;  %v4289_v55 = vpack.c.bf16 %v4264_v49, %v4263_v21  ;;  %v3766_v38 = vld [vmem:[#allocation3 + $0xea] sm:$0xff] }
 0x8fc   :  { %6566 = vmatprep.mubr.bf16.mxu0 %v4497_v3  ;;  %v4415_v11 = vld [vmem:[#allocation3 + $0x106] sm:$0xff]  ;;  %v3431_v37 = vpack.c.bf16 %v3412_v16, %v3411_v9  ;;  %3951 = vst.msk [vmem:[#allocation2 + $0x158] sm:$0xff] %vm602_vm2, %v3933_v26 }
 0x8fd   :  { %v3812_v6 = vpop.permute.xlu0 %3811  ;;  %v3913_v10 = vld [vmem:[#allocation3 + $0x103] sm:$0xff] }
 0x8fe   :  { %v4028_v24 = vpop.permute.xlu1 %4027  ;;  %3865 = vst.msk [vmem:[#allocation2] sm:$0xff] %vm714_vm7, %v3812_v6  ;;  %v4267_v42 = vld [vmem:[#allocation3 + $0xe5] sm:$0xff] }
 0x8ff   :  { %4081 = vst.msk [vmem:[#allocation2 + $0x8] sm:$0xff] %vm640_vm5, %v4028_v24  ;;  %3687 = vrot.lane.b32.xlu0 %v3784_v22, %s7078_s30  ;;  %4189 = vrot.lane.b32.xlu1 %v4144_v4, %s7078_s30  ;;  %v3765_v49 = vld [vmem:[#allocation3 + $0xe2] sm:$0xff] }
 0x900   :  { %v4416_v12 = vld [vmem:[#allocation3 + $0x10e] sm:$0xff]  ;;  %v3316_v48 = vpop.f32.mrb[120].mxu0  ;;  %3449 = vst.msk [vmem:[#allocation2 + $0x180] sm:$0xff] %vm602_vm2, %v3431_v37 }
 0x901   :  { %v3526_v13 = vpop.permute.xlu0 %3525  ;;  %v4437_v44 = vpack.c.bf16 %v4416_v12, %v4415_v11  ;;  %3374 = vst [vmem:[#allocation3 + $0x120] sm:$0xff] %v3316_v48  ;;  %v3318_v30 = vpop.f32.mrb[121].mxu0  ;;  %v3914_v43 = vld [vmem:[#allocation3 + $0x10b] sm:$0xff] }
 0x902   :  { %3578 = vst.msk [vmem:[#allocation2 + $0x18] sm:$0xff] %vm640_vm5, %v3526_v13  ;;  %v3319_v39 = vpop.f32.mrb[122].mxu0  ;;  %v4500_v1 = vld [vmem:[#allocation2 + $0x148] sm:$0xff]  ;;  %v3934_v18 = vpack.c.bf16 %v3914_v43, %v3913_v10  ;;  %v3413_v15 = vld [vmem:[#allocation3 + $0x110] sm:$0xff] }
 0x903   :  { %4333 = vrot.lane.b32.xlu1 %v4288_v28, %s7092_s24  ;;  %3831 = vrot.lane.b32.xlu0 %v3785_v2, %s7092_s24  ;;  %4455 = vst.msk [vmem:[#allocation2 + $0x160] sm:$0xff] %vm602_vm2, %v4437_v44  ;;  %3375 = vst [vmem:[#allocation3 + $0x128] sm:$0xff] %v3319_v39  ;;  %v3321_v47 = vpop.f32.mrb[123].mxu0  ;;  %v4417_v45 = vld [vmem:[#allocation3 + $0x116] sm:$0xff]  ;;  %v3432_v58 = vpack.c.bf16 %v8165_v25, %v3413_v15  ;;  %v3476_v25 = vld [vmem:[#allocation3 + $0xc9] sm:$0xff] }
 0x904   :  { %6567 = vmatmul.mubr.bf16.gmra.mrb[156].mxu0 %v4500_v1  ;;  %3952 = vst.msk [vmem:[#allocation2 + $0x170] sm:$0xff] %vm602_vm2, %v3934_v18  ;;  %v3915_v51 = vld [vmem:[#allocation3 + $0x113] sm:$0xff]  ;;  %v3499_v26 = vpack.c.bf16 %v3476_v25, %v3475_v33  ;;  %v4266_v44 = vld [vmem:[#allocation3 + $0xdd] sm:$0xff] }
 0x905   :  { %v4172_v19 = vpop.permute.xlu1 %4171  ;;  %v3670_v8 = vpop.permute.xlu0 %3669  ;;  %3450 = vst.msk [vmem:[#allocation2 + $0x198] sm:$0xff] %vm602_vm2, %v3432_v58  ;;  %v4459_v6 = vld [vmem:[#allocation2] sm:$0xff]  ;;  %v3478_v18 = vld [vmem:[#allocation3 + $0xd9] sm:$0xff] }
 0x906   :  { %4225 = vst.msk [vmem:[#allocation2 + $0x8] sm:$0xff] %vm677_vm6, %v4172_v19  ;;  %3722 = vst.msk [vmem:[#allocation2 + $0x18] sm:$0xff] %vm677_vm6, %v3670_v8  ;;  %v4265_v13 = vld [vmem:[#allocation3 + $0xd5] sm:$0xff]  ;;  %v3787_v19 = vpack.c.bf16 %v3764_v29, %v3763_v17  ;;  %v4272_v17 = vld [vmem:[#allocation3 + $0x10d] sm:$0xff] }
 0x907   :  { %4047 = vrot.lane.b32.xlu1 %v4144_v4, %s7091_s22  ;;  %3545 = vrot.lane.b32.xlu0 %v3498_v63, %s7091_s22  ;;  %v4122_v4 = vld [vmem:[#allocation3 + $0xdc] sm:$0xff]  ;;  %v4290_v47 = vpack.c.bf16 %v4266_v44, %v4265_v13  ;;  %v3477_v8 = vld [vmem:[#allocation3 + $0xd1] sm:$0xff] }
 0x908   :  { %v4418_v32 = vld [vmem:[#allocation3 + $0x11e] sm:$0xff]  ;;  %v3324_v14 = vpop.f32.mrb[124].mxu0  ;;  %v4146_v48 = vpack.c.bf16 %v4122_v4, %v4121_v5  ;;  %v3500_v58 = vpack.c.bf16 %v3478_v18, %v3477_v8  ;;  %v3767_v5 = vld [vmem:[#allocation3 + $0xf2] sm:$0xff] }
 0x909   :  { %v4316_v53 = vpop.permute.xlu1 %4315  ;;  %v3814_v22 = vpop.permute.xlu0 %3813  ;;  %v4438_v23 = vpack.c.bf16 %v4418_v32, %v4417_v45  ;;  %3376 = vst [vmem:[#allocation3 + $0x130] sm:$0xff] %v3324_v14  ;;  %v3916_v0 = vld [vmem:[#allocation3 + $0x11b] sm:$0xff]  ;;  %v4123_v32 = vld [vmem:[#allocation3 + $0xe4] sm:$0xff]  ;;  %v4124_v14 = vld [vmem:[#allocation3 + $0xec] sm:$0xff] }
 0x90a   :  { %4369 = vst.msk [vmem:[#allocation2 + $0x8] sm:$0xff] %vm714_vm7, %v4316_v53  ;;  %3866 = vst.msk [vmem:[#allocation2 + $0x18] sm:$0xff] %vm714_vm7, %v3814_v22  ;;  %v3326_v50 = vpop.f32.mrb[125].mxu0  ;;  %v4503_v52 = vld [vmem:[#allocation2 + $0x160] sm:$0xff]  ;;  %v3935_v60 = vpack.c.bf16 %v3916_v0, %v3915_v51  ;;  %v4419_v61 = vld [vmem:[#allocation3 + $0x126] sm:$0xff] }
 0x90b   :  { %3689 = vrot.lane.b32.xlu0 %v3785_v2, %s7078_s30  ;;  %4191 = vrot.lane.b32.xlu1 %v4145_v35, %s7078_s30  ;;  %4456 = vst.msk [vmem:[#allocation2 + $0x178] sm:$0xff] %vm602_vm2, %v4438_v23  ;;  %v3327_v62 = vpop.f32.mrb[126].mxu0  ;;  %v3917_v34 = vld [vmem:[#allocation3 + $0x123] sm:$0xff]  ;;  %v4268_v22 = vld [vmem:[#allocation3 + $0xed] sm:$0xff]  ;;  %v3768_v4 = vld [vmem:[#allocation3 + $0xfa] sm:$0xff] }
 0x90c   :  { %3377 = vst [vmem:[#allocation3 + $0x138] sm:$0xff] %v3327_v62  ;;  %v3329_v41 = vpop.f32.mrb[127].mxu0  ;;  %6570 = vmatprep.mubr.bf16.mxu0 %v4503_v52  ;;  %3953 = vst.msk [vmem:[#allocation2 + $0x188] sm:$0xff] %vm602_vm2, %v3935_v60  ;;  %v4291_v51 = vpack.c.bf16 %v4268_v22, %v4267_v42  ;;  %v3788_v52 = vpack.c.bf16 %v3766_v38, %v3765_v49  ;;  %v3480_v0 = vld [vmem:[#allocation3 + $0xe9] sm:$0xff]  ;;  %v4126_v33 = vld [vmem:[#allocation3 + $0xfc] sm:$0xff] }
 0x90d   :  { %v4030_v54 = vpop.permute.xlu1 %4029  ;;  %v3528_v36 = vpop.permute.xlu0 %3527  ;;  %v3479_v41 = vld [vmem:[#allocation3 + $0xe1] sm:$0xff]  ;;  %v3771_v42 = vld [vmem:[#allocation3 + $0x112] sm:$0xff] }
 0x90e   :  { %4082 = vst.msk [vmem:[#allocation2 + $0x20] sm:$0xff] %vm640_vm5, %v4030_v54  ;;  %3579 = vst.msk [vmem:[#allocation2 + $0x30] sm:$0xff] %vm640_vm5, %v3528_v36  ;;  %v3501_v60 = vpack.c.bf16 %v3480_v0, %v3479_v41  ;;  %v3769_v29 = vld [vmem:[#allocation3 + $0x102] sm:$0xff]  ;;  %v3772_v22 = vld [vmem:[#allocation3 + $0x11a] sm:$0xff] }
 0x90f   :  { %4335 = vrot.lane.b32.xlu1 %v4289_v55, %s7092_s24  ;;  %3833 = vrot.lane.b32.xlu0 %v3786_v56, %s7092_s24 }
 0x910   :  { %v4420_v27 = vld [vmem:[#allocation3 + $0x12e] sm:$0xff]  ;;  %v3332_v31 = vpop.f32.mrb[128].mxu0 }
 0x911   :  { %v4174_v3 = vpop.permute.xlu1 %4173  ;;  %v4460_v46 = vld [vmem:[#allocation2 + $0x8] sm:$0xff]  ;;  %v3672_v24 = vpop.permute.xlu0 %3671  ;;  %v4439_v7 = vpack.c.bf16 %v4420_v27, %v4419_v61  ;;  %3378 = vst [vmem:[#allocation3 + $0x140] sm:$0xff] %v3332_v31  ;;  %v3918_v37 = vld [vmem:[#allocation3 + $0x12b] sm:$0xff] }
 0x912   :  { %4226 = vst.msk [vmem:[#allocation2 + $0x20] sm:$0xff] %vm677_vm6, %v4174_v3  ;;  %4737 = vmatprep.mubr.bf16.mxu1 %v4460_v46  ;;  %3723 = vst.msk [vmem:[#allocation2 + $0x30] sm:$0xff] %vm677_vm6, %v3672_v24  ;;  %v4506_v9 = vld [vmem:[#allocation2 + $0x178] sm:$0xff]  ;;  %v3334_v16 = vpop.f32.mrb[129].mxu0  ;;  %v3936_v2 = vpack.c.bf16 %v3918_v37, %v3917_v34  ;;  %v4125_v61 = vld [vmem:[#allocation3 + $0xf4] sm:$0xff] }
 0x913   :  { %4738 = vmatmul.mubr.bf16.vlgmr.msra.gmra.mrb[108].mxu1 %v4459_v6  ;;  %4049 = vrot.lane.b32.xlu1 %v4145_v35, %s7091_s22  ;;  %4457 = vst.msk [vmem:[#allocation2 + $0x190] sm:$0xff] %vm602_vm2, %v4439_v7  ;;  %v3335_v40 = vpop.f32.mrb[130].mxu0  ;;  %v4421_v30 = vld [vmem:[#allocation3 + $0x136] sm:$0xff]  ;;  %v4462_v45 = vld [vmem:[#allocation2 + $0x18] sm:$0xff]  ;;  %v4147_v35 = vpack.c.bf16 %v4124_v14, %v4123_v32  ;;  %v4148_v27 = vpack.c.bf16 %v4126_v33, %v4125_v61 }
 0x914   :  { %3547 = vrot.lane.b32.xlu0 %v3499_v26, %s7091_s22  ;;  %6571 = vmatmul.mubr.bf16.gmra.mrb[160].mxu0 %v4506_v9  ;;  %v3336_v11 = vpop.f32.mrb[131].mxu0  ;;  %3954 = vst.msk [vmem:[#allocation2 + $0x1a0] sm:$0xff] %vm602_vm2, %v3936_v2  ;;  %v4269_v3 = vld [vmem:[#allocation3 + $0xf5] sm:$0xff]  ;;  %v4270_v46 = vld [vmem:[#allocation3 + $0xfd] sm:$0xff]  ;;  %v3789_v26 = vpack.c.bf16 %v3768_v4, %v3767_v5 }
 0x915   :  { %v4318_v12 = vpop.permute.xlu1 %4317  ;;  %v3816_v28 = vpop.permute.xlu0 %3815  ;;  %v4292_v7 = vpack.c.bf16 %v4270_v46, %v4269_v3  ;;  %v3481_v9 = vld [vmem:[#allocation3 + $0xf1] sm:$0xff]  ;;  %v3482_v16 = vld [vmem:[#allocation3 + $0xf9] sm:$0xff] }
 0x916   :  { %4370 = vst.msk [vmem:[#allocation2 + $0x20] sm:$0xff] %vm714_vm7, %v4318_v12  ;;  %3867 = vst.msk [vmem:[#allocation2 + $0x30] sm:$0xff] %vm714_vm7, %v3816_v28  ;;  %v3502_v12 = vpack.c.bf16 %v3482_v16, %v3481_v9  ;;  %v4128_v28 = vld [vmem:[#allocation3 + $0x10c] sm:$0xff] }
 0x917   :  { %4193 = vrot.lane.b32.xlu1 %v4146_v48, %s7078_s30  ;;  %v3774_v3 = vld [vmem:[#allocation3 + $0x12a] sm:$0xff] }
 0x918   :  { %3691 = vrot.lane.b32.xlu0 %v3786_v56, %s7078_s30  ;;  %v4422_v39 = vld [vmem:[#allocation3 + $0x13e] sm:$0xff] }
 0x919   :  { %v4032_v10 = vpop.permute.xlu1 %4031  ;;  %v3530_v1 = vpop.permute.xlu0 %3529  ;;  %v4440_v43 = vpack.c.bf16 %v4422_v39, %v4421_v30  ;;  %v4271_v30 = vld [vmem:[#allocation3 + $0x105] sm:$0xff] }
 0x91a   :  { %4083 = vst.msk [vmem:[#allocation2 + $0x38] sm:$0xff] %vm640_vm5, %v4032_v10  ;;  %3580 = vst.msk [vmem:[#allocation2 + $0x48] sm:$0xff] %vm640_vm5, %v3530_v1  ;;  %v4509_v63 = vld [vmem:[#allocation2 + $0x190] sm:$0xff]  ;;  %v3770_v39 = vld [vmem:[#allocation3 + $0x10a] sm:$0xff] }
 0x91b   :  { %4337 = vrot.lane.b32.xlu1 %v4290_v47, %s7092_s24  ;;  %4458 = vst.msk [vmem:[#allocation2 + $0x1a8] sm:$0xff] %vm602_vm2, %v4440_v43  ;;  %6574 = vmatprep.mubr.bf16.mxu0 %v4509_v63  ;;  %v4293_v47 = vpack.c.bf16 %v4272_v17, %v4271_v30  ;;  %v3790_v43 = vpack.c.bf16 %v3770_v39, %v3769_v29  ;;  %v3484_v63 = vld [vmem:[#allocation3 + $0x109] sm:$0xff]  ;;  %vm5592_vm2 = vcmask 1044480  }
 0x91c   :  { %3835 = vrot.lane.b32.xlu0 %v3787_v19, %s7092_s24  ;;  %v5095_v29 = vld [vmem:[#allocation19] sm:$0xff] }
 0x91d   :  { %v4176_v15 = vpop.permute.xlu1 %4175  ;;  %v4463_v59 = vld [vmem:[#allocation2 + $0x20] sm:$0xff]  ;;  %v3674_v20 = vpop.permute.xlu0 %3673  ;;  %v4465_v36 = vld [vmem:[#allocation2 + $0x30] sm:$0xff] }
 0x91e   :  { %4227 = vst.msk [vmem:[#allocation2 + $0x38] sm:$0xff] %vm677_vm6, %v4176_v15  ;;  %4745 = vmatprep.mubr.bf16.mxu1 %v4463_v59  ;;  %3724 = vst.msk [vmem:[#allocation2 + $0x48] sm:$0xff] %vm677_vm6, %v3674_v20 }
 0x91f   :  { %4746 = vmatmul.mubr.bf16.gmra.mrb[112].mxu1 %v4462_v45  ;;  %4051 = vrot.lane.b32.xlu1 %v4146_v48, %s7091_s22  ;;  %v4127_v48 = vld [vmem:[#allocation3 + $0x104] sm:$0xff]  ;;  %v4129_v45 = vld [vmem:[#allocation3 + $0x114] sm:$0xff] }
 0x920   :  { %3549 = vrot.lane.b32.xlu0 %v3500_v58, %s7091_s22  ;;  %v4149_v13 = vpack.c.bf16 %v4128_v28, %v4127_v48  ;;  %v4130_v58 = vld [vmem:[#allocation3 + $0x11c] sm:$0xff] }
 0x921   :  { %v4320_v53 = vpop.permute.xlu1 %4319  ;;  %v3818_v21 = vpop.permute.xlu0 %3817  ;;  %v4150_v14 = vpack.c.bf16 %v4130_v58, %v4129_v45  ;;  %v4277_v28 = vld [vmem:[#allocation3 + $0x135] sm:$0xff] }
 0x922   :  { %4371 = vst.msk [vmem:[#allocation2 + $0x38] sm:$0xff] %vm714_vm7, %v4320_v53  ;;  %3868 = vst.msk [vmem:[#allocation2 + $0x48] sm:$0xff] %vm714_vm7, %v3818_v21  ;;  %v4512_v23 = vld [vmem:[#allocation2 + $0x1a8] sm:$0xff] }
 0x923   :  { %4195 = vrot.lane.b32.xlu1 %v4147_v35, %s7078_s30  ;;  %6575 = vmatmul.mubr.bf16.gmra.mrb[164].mxu0 %v4512_v23  ;;  %v4274_v21 = vld [vmem:[#allocation3 + $0x11d] sm:$0xff]  ;;  %v5101_v58 = vld [vmem:[#allocation19 + $0x30] sm:$0xff] }
 0x924   :  { %3693 = vrot.lane.b32.xlu0 %v3787_v19, %s7078_s30  ;;  %v3483_v19 = vld [vmem:[#allocation3 + $0x101] sm:$0xff] }
 0x925   :  { %v4034_v50 = vpop.permute.xlu1 %4033  ;;  %v3532_v62 = vpop.permute.xlu0 %3531  ;;  %v3503_v20 = vpack.c.bf16 %v3484_v63, %v3483_v19  ;;  %v5097_v19 = vld [vmem:[#allocation19 + $0x10] sm:$0xff] }
 0x926   :  { %4084 = vst.msk [vmem:[#allocation2 + $0x50] sm:$0xff] %vm640_vm5, %v4034_v50  ;;  %3581 = vst.msk [vmem:[#allocation2 + $0x60] sm:$0xff] %vm640_vm5, %v3532_v62  ;;  %v3791_v50 = vpack.c.bf16 %v3772_v22, %v3771_v42  ;;  %v3486_v62 = vld [vmem:[#allocation3 + $0x119] sm:$0xff]  ;;  %v5103_v42 = vld [vmem:[#allocation19 + $0x40] sm:$0xff] }
 0x927   :  { %4339 = vrot.lane.b32.xlu1 %v4291_v51, %s7092_s24  ;;  %v3485_v51 = vld [vmem:[#allocation3 + $0x111] sm:$0xff] }
 0x928   :  { %3837 = vrot.lane.b32.xlu0 %v3788_v52, %s7092_s24 }
 0x929   :  { %v4178_v54 = vpop.permute.xlu1 %4177  ;;  %v4466_v55 = vld [vmem:[#allocation2 + $0x38] sm:$0xff]  ;;  %v3676_v56 = vpop.permute.xlu0 %3675  ;;  %v4468_v37 = vld [vmem:[#allocation2 + $0x48] sm:$0xff] }
 0x92a   :  { %4228 = vst.msk [vmem:[#allocation2 + $0x50] sm:$0xff] %vm677_vm6, %v4178_v54  ;;  %4753 = vmatprep.mubr.bf16.mxu1 %v4466_v55  ;;  %3725 = vst.msk [vmem:[#allocation2 + $0x60] sm:$0xff] %vm677_vm6, %v3676_v56  ;;  %v3504_v55 = vpack.c.bf16 %v3486_v62, %v3485_v51  ;;  %v4131_v56 = vld [vmem:[#allocation3 + $0x124] sm:$0xff] }
 0x92b   :  { %4754 = vmatmul.mubr.bf16.gmra.mrb[116].mxu1 %v4465_v36  ;;  %4053 = vrot.lane.b32.xlu1 %v4147_v35, %s7091_s22  ;;  %v4273_v35 = vld [vmem:[#allocation3 + $0x115] sm:$0xff]  ;;  %v4132_v36 = vld [vmem:[#allocation3 + $0x12c] sm:$0xff] }
 0x92c   :  { %3551 = vrot.lane.b32.xlu0 %v3501_v60, %s7091_s22  ;;  %v4294_v49 = vpack.c.bf16 %v4274_v21, %v4273_v35  ;;  %v4151_v61 = vpack.c.bf16 %v4132_v36, %v4131_v56 }
 0x92d   :  { %v4322_v25 = vpop.permute.xlu1 %4321  ;;  %v3820_v31 = vpop.permute.xlu0 %3819 }
 0x92e   :  { %4372 = vst.msk [vmem:[#allocation2 + $0x50] sm:$0xff] %vm714_vm7, %v4322_v25  ;;  %3869 = vst.msk [vmem:[#allocation2 + $0x60] sm:$0xff] %vm714_vm7, %v3820_v31  ;;  %v4275_v25 = vld [vmem:[#allocation3 + $0x125] sm:$0xff] }
 0x92f   :  { %4197 = vrot.lane.b32.xlu1 %v4148_v27, %s7078_s30  ;;  %v3773_v31 = vld [vmem:[#allocation3 + $0x122] sm:$0xff] }
 0x930   :  { %3695 = vrot.lane.b32.xlu0 %v3788_v52, %s7078_s30 }
 0x931   :  { %v4036_v24 = vpop.permute.xlu1 %4035  ;;  %v3534_v6 = vpop.permute.xlu0 %3533 }
 0x932   :  { %4085 = vst.msk [vmem:[#allocation2 + $0x68] sm:$0xff] %vm640_vm5, %v4036_v24  ;;  %3582 = vst.msk [vmem:[#allocation2 + $0x78] sm:$0xff] %vm640_vm5, %v3534_v6  ;;  %v3792_v24 = vpack.c.bf16 %v3774_v3, %v3773_v31  ;;  %v5116_v31 = vld [vmem:[#allocation19 + $0xa8] sm:$0xff] }
 0x933   :  { %4341 = vrot.lane.b32.xlu1 %v4292_v7, %s7092_s24 }
 0x934   :  { %3839 = vrot.lane.b32.xlu0 %v3789_v26, %s7092_s24 }
 0x935   :  { %v4180_v34 = vpop.permute.xlu1 %4179  ;;  %v4469_v40 = vld [vmem:[#allocation2 + $0x50] sm:$0xff]  ;;  %v3678_v11 = vpop.permute.xlu0 %3677  ;;  %v4471_v59 = vld [vmem:[#allocation2 + $0x60] sm:$0xff] }
 0x936   :  { %4229 = vst.msk [vmem:[#allocation2 + $0x68] sm:$0xff] %vm677_vm6, %v4180_v34  ;;  %4761 = vmatprep.mubr.bf16.mxu1 %v4469_v40  ;;  %3726 = vst.msk [vmem:[#allocation2 + $0x78] sm:$0xff] %vm677_vm6, %v3678_v11  ;;  %v4133_v34 = vld [vmem:[#allocation3 + $0x134] sm:$0xff]  ;;  %v4134_v40 = vld [vmem:[#allocation3 + $0x13c] sm:$0xff] }
 0x937   :  { %4762 = vmatmul.mubr.bf16.gmra.mrb[120].mxu1 %v4468_v37  ;;  %4055 = vrot.lane.b32.xlu1 %v4148_v27, %s7091_s22  ;;  %v4276_v27 = vld [vmem:[#allocation3 + $0x12d] sm:$0xff]  ;;  %v5098_v37 = vld [vmem:[#allocation19 + $0x18] sm:$0xff] }
 0x938   :  { %3553 = vrot.lane.b32.xlu0 %v3502_v12, %s7091_s22  ;;  %v4295_v5 = vpack.c.bf16 %v4276_v27, %v4275_v25  ;;  %v4152_v12 = vpack.c.bf16 %v4134_v40, %v4133_v34  ;;  %v5109_v25 = vld [vmem:[#allocation19 + $0x70] sm:$0xff]  ;;  %v5120_v34 = vld [vmem:[#allocation19 + $0xc8] sm:$0xff] }
 0x939   :  { %v4324_v2 = vpop.permute.xlu1 %4323  ;;  %v3822_v44 = vpop.permute.xlu0 %3821 }
 0x93a   :  { %4373 = vst.msk [vmem:[#allocation2 + $0x68] sm:$0xff] %vm714_vm7, %v4324_v2  ;;  %3870 = vst.msk [vmem:[#allocation2 + $0x78] sm:$0xff] %vm714_vm7, %v3822_v44  ;;  %v4278_v2 = vld [vmem:[#allocation3 + $0x13d] sm:$0xff]  ;;  %v5100_v44 = vld [vmem:[#allocation19 + $0x28] sm:$0xff] }
 0x93b   :  { %4199 = vrot.lane.b32.xlu1 %v4149_v13, %s7078_s30  ;;  %v4296_v30 = vpack.c.bf16 %v4278_v2, %v4277_v28  ;;  %v5122_v2 = vld [vmem:[#allocation19 + $0xd8] sm:$0xff] }
 0x93c   :  { %3697 = vrot.lane.b32.xlu0 %v3789_v26, %s7078_s30  ;;  %v5096_v26 = vld [vmem:[#allocation19 + $0x8] sm:$0xff] }
 0x93d   :  { %v4038_v10 = vpop.permute.xlu1 %4037  ;;  %v3536_v1 = vpop.permute.xlu0 %3535 }
 0x93e   :  { %4086 = vst.msk [vmem:[#allocation2 + $0x80] sm:$0xff] %vm640_vm5, %v4038_v10  ;;  %3583 = vst.msk [vmem:[#allocation2 + $0x90] sm:$0xff] %vm640_vm5, %v3536_v1 }
 0x93f   :  { %4343 = vrot.lane.b32.xlu1 %v4293_v47, %s7092_s24  ;;  %v5102_v47 = vld [vmem:[#allocation19 + $0x38] sm:$0xff] }
 0x940   :  { %3841 = vrot.lane.b32.xlu0 %v3790_v43, %s7092_s24 }
 0x941   :  { %v4182_v8 = vpop.permute.xlu1 %4181  ;;  %v4472_v18 = vld [vmem:[#allocation2 + $0x68] sm:$0xff]  ;;  %v3680_v15 = vpop.permute.xlu0 %3679  ;;  %v4474_v54 = vld [vmem:[#allocation2 + $0x78] sm:$0xff] }
 0x942   :  { %4230 = vst.msk [vmem:[#allocation2 + $0x80] sm:$0xff] %vm677_vm6, %v4182_v8  ;;  %4769 = vmatprep.mubr.bf16.mxu1 %v4472_v18  ;;  %3727 = vst.msk [vmem:[#allocation2 + $0x90] sm:$0xff] %vm677_vm6, %v3680_v15  ;;  %v5104_v8 = vld [vmem:[#allocation19 + $0x48] sm:$0xff]  ;;  %v5099_v15 = vld [vmem:[#allocation19 + $0x20] sm:$0xff] }
 0x943   :  { %4770 = vmatmul.mubr.bf16.gmra.mrb[124].mxu1 %v4471_v59  ;;  %4057 = vrot.lane.b32.xlu1 %v4149_v13, %s7091_s22 }
 0x944   :  { %3555 = vrot.lane.b32.xlu0 %v3503_v20, %s7091_s22  ;;  %v5106_v20 = vld [vmem:[#allocation19 + $0x58] sm:$0xff] }
 0x945   :  { %v4326_v32 = vpop.permute.xlu1 %4325  ;;  %v3824_v53 = vpop.permute.xlu0 %3823 }
 0x946   :  { %4374 = vst.msk [vmem:[#allocation2 + $0x80] sm:$0xff] %vm714_vm7, %v4326_v32  ;;  %3871 = vst.msk [vmem:[#allocation2 + $0x90] sm:$0xff] %vm714_vm7, %v3824_v53  ;;  %v5108_v53 = vld [vmem:[#allocation19 + $0x68] sm:$0xff] }
 0x947   :  { %4201 = vrot.lane.b32.xlu1 %v4150_v14, %s7078_s30 }
 0x948   :  { %3699 = vrot.lane.b32.xlu0 %v3790_v43, %s7078_s30 }
 0x949   :  { %v4040_v23 = vpop.permute.xlu1 %4039  ;;  %v3538_v38 = vpop.permute.xlu0 %3537 }
 0x94a   :  { %4087 = vst.msk [vmem:[#allocation2 + $0x98] sm:$0xff] %vm640_vm5, %v4040_v23  ;;  %3584 = vst.msk [vmem:[#allocation2 + $0xa8] sm:$0xff] %vm640_vm5, %v3538_v38  ;;  %v5110_v23 = vld [vmem:[#allocation19 + $0x78] sm:$0xff] }
 0x94b   :  { %4345 = vrot.lane.b32.xlu1 %v4294_v49, %s7092_s24 }
 0x94c   :  { %3843 = vrot.lane.b32.xlu0 %v3791_v50, %s7092_s24 }
 0x94d   :  { %v4184_v52 = vpop.permute.xlu1 %4183  ;;  %v4475_v41 = vld [vmem:[#allocation2 + $0x80] sm:$0xff]  ;;  %v3682_v0 = vpop.permute.xlu0 %3681  ;;  %v4477_v16 = vld [vmem:[#allocation2 + $0x90] sm:$0xff] }
 0x94e   :  { %4231 = vst.msk [vmem:[#allocation2 + $0x98] sm:$0xff] %vm677_vm6, %v4184_v52  ;;  %4777 = vmatprep.mubr.bf16.mxu1 %v4475_v41  ;;  %3728 = vst.msk [vmem:[#allocation2 + $0xa8] sm:$0xff] %vm677_vm6, %v3682_v0  ;;  %v5112_v52 = vld [vmem:[#allocation19 + $0x88] sm:$0xff] }
 0x94f   :  { %4778 = vmatmul.mubr.bf16.gmra.mrb[128].mxu1 %v4474_v54  ;;  %4059 = vrot.lane.b32.xlu1 %v4150_v14, %s7091_s22 }
 0x950   :  { %3557 = vrot.lane.b32.xlu0 %v3504_v55, %s7091_s22  ;;  %v5107_v55 = vld [vmem:[#allocation19 + $0x60] sm:$0xff] }
 0x951   :  { %v4328_v60 = vpop.permute.xlu1 %4327  ;;  %v3826_v33 = vpop.permute.xlu0 %3825 }
 0x952   :  { %4375 = vst.msk [vmem:[#allocation2 + $0x98] sm:$0xff] %vm714_vm7, %v4328_v60  ;;  %3872 = vst.msk [vmem:[#allocation2 + $0xa8] sm:$0xff] %vm714_vm7, %v3826_v33  ;;  %v5114_v60 = vld [vmem:[#allocation19 + $0x98] sm:$0xff] }
 0x953   :  { %4203 = vrot.lane.b32.xlu1 %v4151_v61, %s7078_s30 }
 0x954   :  { %3701 = vrot.lane.b32.xlu0 %v3791_v50, %s7078_s30  ;;  %v5105_v50 = vld [vmem:[#allocation19 + $0x50] sm:$0xff] }
 0x955   :  { %v4042_v46 = vpop.permute.xlu1 %4041  ;;  %v3540_v4 = vpop.permute.xlu0 %3539 }
 0x956   :  { %4088 = vst.msk [vmem:[#allocation2 + $0xb0] sm:$0xff] %vm640_vm5, %v4042_v46  ;;  %3585 = vst.msk [vmem:[#allocation2 + $0xc0] sm:$0xff] %vm640_vm5, %v3540_v4  ;;  %v5111_v46 = vld [vmem:[#allocation19 + $0x80] sm:$0xff]  ;;  %v5118_v4 = vld [vmem:[#allocation19 + $0xb8] sm:$0xff] }
 0x957   :  { %4347 = vrot.lane.b32.xlu1 %v4295_v5, %s7092_s24 }
 0x958   :  { %3845 = vrot.lane.b32.xlu0 %v3792_v24, %s7092_s24 }
 0x959   :  { %v4186_v7 = vpop.permute.xlu1 %4185  ;;  %v4478_v6 = vld [vmem:[#allocation2 + $0x98] sm:$0xff]  ;;  %v3684_v9 = vpop.permute.xlu0 %3683  ;;  %v4480_v43 = vld [vmem:[#allocation2 + $0xa8] sm:$0xff] }
 0x95a   :  { %4232 = vst.msk [vmem:[#allocation2 + $0xb0] sm:$0xff] %vm677_vm6, %v4186_v7  ;;  %4785 = vmatprep.mubr.bf16.mxu1 %v4478_v6  ;;  %3729 = vst.msk [vmem:[#allocation2 + $0xc0] sm:$0xff] %vm677_vm6, %v3684_v9  ;;  %v5113_v6 = vld [vmem:[#allocation19 + $0x90] sm:$0xff] }
 0x95b   :  { %4786 = vmatmul.mubr.bf16.gmra.mrb[132].mxu1 %v4477_v16  ;;  %4061 = vrot.lane.b32.xlu1 %v4151_v61, %s7091_s22 }
 0x95c   :  { %5138 = vperm.xlu0 %6662, %v5096_v26  }
 0x95d   :  { %v4330_v11 = vpop.permute.xlu1 %4329  ;;  %v3828_v48 = vpop.permute.xlu0 %3827 }
 0x95e   :  { %4376 = vst.msk [vmem:[#allocation2 + $0xb0] sm:$0xff] %vm714_vm7, %v4330_v11  ;;  %3873 = vst.msk [vmem:[#allocation2 + $0xc0] sm:$0xff] %vm714_vm7, %v3828_v48  ;;  %v5115_v48 = vld [vmem:[#allocation19 + $0xa0] sm:$0xff] }
 0x95f   :  { %4205 = vrot.lane.b32.xlu1 %v4152_v12, %s7078_s30 }
 0x960   :  { %5148 = vperm.xlu0 %6662, %v5098_v37  }
 0x961   :  { %v4044_v13 = vpop.permute.xlu1 %4043  ;;  %v3542_v17 = vpop.permute.xlu0 %3541 }
 0x962   :  { %4089 = vst.msk [vmem:[#allocation2 + $0xc8] sm:$0xff] %vm640_vm5, %v4044_v13  ;;  %3586 = vst.msk [vmem:[#allocation2 + $0xd8] sm:$0xff] %vm640_vm5, %v3542_v17  ;;  %v5124_v17 = vld [vmem:[#allocation19 + $0xe8] sm:$0xff] }
 0x963   :  { %4349 = vrot.lane.b32.xlu1 %v4296_v30, %s7092_s24 }
 0x964   :  { %5158 = vperm.xlu0 %6662, %v5100_v44   ;;  %v5117_v44 = vld [vmem:[#allocation19 + $0xb0] sm:$0xff] }
 0x965   :  { %v4188_v39 = vpop.permute.xlu1 %4187  ;;  %v4481_v10 = vld [vmem:[#allocation2 + $0xb0] sm:$0xff]  ;;  %v3686_v1 = vpop.permute.xlu0 %3685  ;;  %v4483_v21 = vld [vmem:[#allocation2 + $0xc0] sm:$0xff] }
 0x966   :  { %4233 = vst.msk [vmem:[#allocation2 + $0xc8] sm:$0xff] %vm677_vm6, %v4188_v39  ;;  %4793 = vmatprep.mubr.bf16.mxu1 %v4481_v10  ;;  %3730 = vst.msk [vmem:[#allocation2 + $0xd8] sm:$0xff] %vm677_vm6, %v3686_v1  ;;  %v5119_v39 = vld [vmem:[#allocation19 + $0xc0] sm:$0xff]  ;;  %v5126_v1 = vld [vmem:[#allocation19 + $0xf8] sm:$0xff] }
 0x967   :  { %4794 = vmatmul.mubr.bf16.gmra.mrb[136].mxu1 %v4480_v43  ;;  %5133 = vperm.xlu1 %6663, %v5095_v29  }
 0x968   :  { %5168 = vperm.xlu0 %6662, %v5102_v47  }
 0x969   :  { %v4332_v63 = vpop.permute.xlu1 %4331  ;;  %v3830_v18 = vpop.permute.xlu0 %3829 }
 0x96a   :  { %4377 = vst.msk [vmem:[#allocation2 + $0xc8] sm:$0xff] %vm714_vm7, %v4332_v63  ;;  %3874 = vst.msk [vmem:[#allocation2 + $0xd8] sm:$0xff] %vm714_vm7, %v3830_v18 }
 0x96b   :  { %5143 = vperm.xlu1 %6663, %v5097_v19  }
 0x96c   :  { %5178 = vperm.xlu0 %6662, %v5104_v8   ;;  %v5121_v8 = vld [vmem:[#allocation19 + $0xd0] sm:$0xff] }
 0x96d   :  { %v4046_v59 = vpop.permute.xlu1 %4045  ;;  %v3544_v45 = vpop.permute.xlu0 %3543 }
 0x96e   :  { %4090 = vst.msk [vmem:[#allocation2 + $0xe0] sm:$0xff] %vm640_vm5, %v4046_v59  ;;  %3587 = vst.msk [vmem:[#allocation2 + $0xf0] sm:$0xff] %vm640_vm5, %v3544_v45  ;;  %v5128_v59 = vld [vmem:[#allocation19 + $0x108] sm:$0xff] }
 0x96f   :  { %5153 = vperm.xlu1 %6663, %v5099_v15  }
 0x970   :  { %5188 = vperm.xlu0 %6662, %v5106_v20  }
 0x971   :  { %v4190_v32 = vpop.permute.xlu1 %4189  ;;  %v4484_v14 = vld [vmem:[#allocation2 + $0xc8] sm:$0xff]  ;;  %v3688_v35 = vpop.permute.xlu0 %3687  ;;  %v4486_v33 = vld [vmem:[#allocation2 + $0xd8] sm:$0xff] }
 0x972   :  { %4234 = vst.msk [vmem:[#allocation2 + $0xe0] sm:$0xff] %vm677_vm6, %v4190_v32  ;;  %4801 = vmatprep.mubr.bf16.mxu1 %v4484_v14  ;;  %3731 = vst.msk [vmem:[#allocation2 + $0xf0] sm:$0xff] %vm677_vm6, %v3688_v35  ;;  %v5123_v32 = vld [vmem:[#allocation19 + $0xe0] sm:$0xff] }
 0x973   :  { %4802 = vmatmul.mubr.bf16.gmra.mrb[140].mxu1 %v4483_v21  ;;  %5163 = vperm.xlu1 %6663, %v5101_v58   ;;  %v5125_v21 = vld [vmem:[#allocation19 + $0xf0] sm:$0xff] }
 0x974   :  { %5198 = vperm.xlu0 %6662, %v5108_v53   ;;  %v5130_v53 = vld [vmem:[#allocation19 + $0x118] sm:$0xff] }
 0x975   :  { %v4334_v22 = vpop.permute.xlu1 %4333  ;;  %v3832_v49 = vpop.permute.xlu0 %3831 }
 0x976   :  { %4378 = vst.msk [vmem:[#allocation2 + $0xe0] sm:$0xff] %vm714_vm7, %v4334_v22  ;;  %3875 = vst.msk [vmem:[#allocation2 + $0xf0] sm:$0xff] %vm714_vm7, %v3832_v49 }
 0x977   :  { %5173 = vperm.xlu1 %6663, %v5103_v42   ;;  %v8292_v38 = vpop.f32.mrb[132].mxu0 }
 0x978   :  { %5208 = vperm.xlu0 %6662, %v5110_v23   ;;  %v8294_v51 = vpop.f32.mrb[133].mxu0 }
 0x979   :  { %v4048_v62 = vpop.permute.xlu1 %4047  ;;  %v3546_v41 = vpop.permute.xlu0 %3545 }
 0x97a   :  { %4091 = vst.msk [vmem:[#allocation2 + $0xf8] sm:$0xff] %vm640_vm5, %v4048_v62  ;;  %3588 = vst.msk [vmem:[#allocation2 + $0x108] sm:$0xff] %vm640_vm5, %v3546_v41  ;;  %v8298_v0 = vpop.f32.mrb[134].mxu0 }
 0x97b   :  { %5183 = vperm.xlu1 %6663, %v5105_v50   ;;  %v8300_v54 = vpop.f32.mrb[135].mxu0  ;;  %v5127_v50 = vld [vmem:[#allocation19 + $0x100] sm:$0xff] }
 0x97c   :  { %5218 = vperm.xlu0 %6662, %v5112_v52  }
 0x97d   :  { %v4192_v56 = vpop.permute.xlu1 %4191  ;;  %v4487_v36 = vld [vmem:[#allocation2 + $0xe0] sm:$0xff]  ;;  %v3690_v61 = vpop.permute.xlu0 %3689  ;;  %v4489_v11 = vld [vmem:[#allocation2 + $0xf0] sm:$0xff] }
 0x97e   :  { %4235 = vst.msk [vmem:[#allocation2 + $0xf8] sm:$0xff] %vm677_vm6, %v4192_v56  ;;  %4809 = vmatprep.mubr.bf16.mxu1 %v4487_v36  ;;  %3732 = vst.msk [vmem:[#allocation2 + $0x108] sm:$0xff] %vm677_vm6, %v3690_v61 }
 0x97f   :  { %4810 = vmatmul.mubr.bf16.gmra.mrb[144].mxu1 %v4486_v33  ;;  %5193 = vperm.xlu1 %6663, %v5107_v55   ;;  %v5129_v55 = vld [vmem:[#allocation19 + $0x110] sm:$0xff] }
 0x980   :  { %5228 = vperm.xlu0 %6662, %v5114_v60  }
 0x981   :  { %v4336_v27 = vpop.permute.xlu1 %4335  ;;  %v3834_v3 = vpop.permute.xlu0 %3833 }
 0x982   :  { %4379 = vst.msk [vmem:[#allocation2 + $0xf8] sm:$0xff] %vm714_vm7, %v4336_v27  ;;  %3876 = vst.msk [vmem:[#allocation2 + $0x108] sm:$0xff] %vm714_vm7, %v3834_v3 }
 0x983   :  { %5203 = vperm.xlu1 %6663, %v5109_v25  }
 0x984   :  { %5238 = vperm.xlu0 %6662, %v5116_v31  }
 0x985   :  { %v4050_v5 = vpop.permute.xlu1 %4049 }
 0x986   :  { %4092 = vst.msk [vmem:[#allocation2 + $0x110] sm:$0xff] %vm640_vm5, %v4050_v5  ;;  %v3548_v24 = vpop.permute.xlu0 %3547 }
 0x987   :  { %5213 = vperm.xlu1 %6663, %v5111_v46   ;;  %3589 = vst.msk [vmem:[#allocation2 + $0x120] sm:$0xff] %vm640_vm5, %v3548_v24  ;;  %v8308_v7 = vpop.f32.mrb[136].mxu0 }
 0x988   :  { %5248 = vperm.xlu0 %6662, %v5118_v4   ;;  %v8310_v26 = vpop.f32.mrb[137].mxu0 }
 0x989   :  { %v4194_v9 = vpop.permute.xlu1 %4193  ;;  %v4490_v16 = vld [vmem:[#allocation2 + $0xf8] sm:$0xff]  ;;  %v8312_v40 = vpop.f32.mrb[138].mxu0  ;;  %v4492_v43 = vld [vmem:[#allocation2 + $0x108] sm:$0xff] }
 0x98a   :  { %4236 = vst.msk [vmem:[#allocation2 + $0x110] sm:$0xff] %vm677_vm6, %v4194_v9  ;;  %4817 = vmatprep.mubr.bf16.mxu1 %v4490_v16  ;;  %v3692_v37 = vpop.permute.xlu0 %3691  ;;  %v8315_v12 = vpop.f32.mrb[139].mxu0 }
 0x98b   :  { %4818 = vmatmul.mubr.bf16.gmra.mrb[148].mxu1 %v4489_v11  ;;  %5223 = vperm.xlu1 %6663, %v5113_v6   ;;  %3733 = vst.msk [vmem:[#allocation2 + $0x120] sm:$0xff] %vm677_vm6, %v3692_v37 }
 0x98c   :  { %5258 = vperm.xlu0 %6662, %v5120_v34  }
 0x98d   :  { %v4338_v28 = vpop.permute.xlu1 %4337 }
 0x98e   :  { %4380 = vst.msk [vmem:[#allocation2 + $0x110] sm:$0xff] %vm714_vm7, %v4338_v28  ;;  %v3836_v13 = vpop.permute.xlu0 %3835 }
 0x98f   :  { %5233 = vperm.xlu1 %6663, %v5115_v48   ;;  %3877 = vst.msk [vmem:[#allocation2 + $0x120] sm:$0xff] %vm714_vm7, %v3836_v13 }
 0x990   :  { %5268 = vperm.xlu0 %6662, %v5122_v2  }
 0x991   :  { %v4052_v30 = vpop.permute.xlu1 %4051 }
 0x992   :  { %4093 = vst.msk [vmem:[#allocation2 + $0x128] sm:$0xff] %vm640_vm5, %v4052_v30  ;;  %v3550_v29 = vpop.permute.xlu0 %3549 }
 0x993   :  { %5243 = vperm.xlu1 %6663, %v5117_v44   ;;  %3590 = vst.msk [vmem:[#allocation2 + $0x138] sm:$0xff] %vm640_vm5, %v3550_v29 }
 0x994   :  { %5278 = vperm.xlu0 %6662, %v5124_v17  }
 0x995   :  { %v4196_v10 = vpop.permute.xlu1 %4195  ;;  %v4493_v47 = vld [vmem:[#allocation2 + $0x110] sm:$0xff] }
 0x996   :  { %4237 = vst.msk [vmem:[#allocation2 + $0x128] sm:$0xff] %vm677_vm6, %v4196_v10  ;;  %4825 = vmatprep.mubr.bf16.mxu1 %v4493_v47  ;;  %v3694_v19 = vpop.permute.xlu0 %3693  ;;  %v4495_v23 = vld [vmem:[#allocation2 + $0x120] sm:$0xff] }
 0x997   :  { %4826 = vmatmul.mubr.bf16.gmra.mrb[152].mxu1 %v4492_v43  ;;  %5253 = vperm.xlu1 %6663, %v5119_v39   ;;  %3734 = vst.msk [vmem:[#allocation2 + $0x138] sm:$0xff] %vm677_vm6, %v3694_v19  ;;  %v8324_v63 = vpop.f32.mrb[140].mxu0 }
 0x998   :  { %5288 = vperm.xlu0 %6662, %v5126_v1   ;;  %v8326_v18 = vpop.f32.mrb[141].mxu0 }
 0x999   :  { %v4340_v15 = vpop.permute.xlu1 %4339  ;;  %v8328_v20 = vpop.f32.mrb[142].mxu0 }
 0x99a   :  { %4381 = vst.msk [vmem:[#allocation2 + $0x128] sm:$0xff] %vm714_vm7, %v4340_v15  ;;  %v3838_v45 = vpop.permute.xlu0 %3837  ;;  %v8331_v58 = vpop.f32.mrb[143].mxu0 }
 0x99b   :  { %5263 = vperm.xlu1 %6663, %v5121_v8   ;;  %3878 = vst.msk [vmem:[#allocation2 + $0x138] sm:$0xff] %vm714_vm7, %v3838_v45 }
 0x99c   :  { %5298 = vperm.xlu0 %6662, %v5128_v59  }
 0x99d   :  { %v4054_v14 = vpop.permute.xlu1 %4053 }
 0x99e   :  { %4094 = vst.msk [vmem:[#allocation2 + $0x140] sm:$0xff] %vm640_vm5, %v4054_v14  ;;  %v3552_v35 = vpop.permute.xlu0 %3551 }
 0x99f   :  { %5273 = vperm.xlu1 %6663, %v5123_v32   ;;  %3591 = vst.msk [vmem:[#allocation2 + $0x150] sm:$0xff] %vm640_vm5, %v3552_v35 }
 0x9a0   :  { %5308 = vperm.xlu0 %6662, %v5130_v53  }
 0x9a1   :  { %v4198_v42 = vpop.permute.xlu1 %4197  ;;  %v4496_v22 = vld [vmem:[#allocation2 + $0x128] sm:$0xff] }
 0x9a2   :  { %4238 = vst.msk [vmem:[#allocation2 + $0x140] sm:$0xff] %vm677_vm6, %v4198_v42  ;;  %4833 = vmatprep.mubr.bf16.mxu1 %v4496_v22  ;;  %v3696_v49 = vpop.permute.xlu0 %3695  ;;  %v4498_v31 = vld [vmem:[#allocation2 + $0x138] sm:$0xff] }
 0x9a3   :  { %4834 = vmatmul.mubr.bf16.gmra.mrb[156].mxu1 %v4495_v23  ;;  %5283 = vperm.xlu1 %6663, %v5125_v21   ;;  %3735 = vst.msk [vmem:[#allocation2 + $0x150] sm:$0xff] %vm677_vm6, %v3696_v49 }
 0x9a5   :  { %v4342_v62 = vpop.permute.xlu1 %4341 }
 0x9a6   :  { %4382 = vst.msk [vmem:[#allocation2 + $0x140] sm:$0xff] %vm714_vm7, %v4342_v62  ;;  %v3840_v52 = vpop.permute.xlu0 %3839 }
 0x9a7   :  { %5293 = vperm.xlu1 %6663, %v5127_v50   ;;  %3879 = vst.msk [vmem:[#allocation2 + $0x150] sm:$0xff] %vm714_vm7, %v3840_v52  ;;  %v8340_v41 = vpop.f32.mrb[144].mxu0 }
 0x9a8   :  { %v8342_v56 = vpop.f32.mrb[145].mxu0 }
 0x9a9   :  { %v4056_v36 = vpop.permute.xlu1 %4055  ;;  %v8344_v60 = vpop.f32.mrb[146].mxu0 }
 0x9aa   :  { %4095 = vst.msk [vmem:[#allocation2 + $0x158] sm:$0xff] %vm640_vm5, %v4056_v36  ;;  %v3554_v61 = vpop.permute.xlu0 %3553  ;;  %v8347_v33 = vpop.f32.mrb[147].mxu0 }
 0x9ab   :  { %5303 = vperm.xlu1 %6663, %v5129_v55   ;;  %3592 = vst.msk [vmem:[#allocation2 + $0x168] sm:$0xff] %vm640_vm5, %v3554_v61 }
 0x9ad   :  { %v4200_v25 = vpop.permute.xlu1 %4199  ;;  %v4499_v27 = vld [vmem:[#allocation2 + $0x140] sm:$0xff] }
 0x9ae   :  { %4239 = vst.msk [vmem:[#allocation2 + $0x158] sm:$0xff] %vm677_vm6, %v4200_v25  ;;  %4841 = vmatprep.mubr.bf16.mxu1 %v4499_v27  ;;  %v3698_v3 = vpop.permute.xlu0 %3697  ;;  %v4501_v37 = vld [vmem:[#allocation2 + $0x150] sm:$0xff] }
 0x9af   :  { %4842 = vmatmul.mubr.bf16.gmra.mrb[160].mxu1 %v4498_v31  ;;  %3736 = vst.msk [vmem:[#allocation2 + $0x168] sm:$0xff] %vm677_vm6, %v3698_v3 }
 0x9b1   :  { %v4344_v46 = vpop.permute.xlu1 %4343 }
 0x9b2   :  { %4383 = vst.msk [vmem:[#allocation2 + $0x158] sm:$0xff] %vm714_vm7, %v4344_v46  ;;  %v3842_v5 = vpop.permute.xlu0 %3841 }
 0x9b3   :  { %3880 = vst.msk [vmem:[#allocation2 + $0x168] sm:$0xff] %vm714_vm7, %v3842_v5 }
 0x9b5   :  { %v4058_v4 = vpop.permute.xlu1 %4057 }
 0x9b6   :  { %4096 = vst.msk [vmem:[#allocation2 + $0x170] sm:$0xff] %vm640_vm5, %v4058_v4  ;;  %v3556_v24 = vpop.permute.xlu0 %3555 }
 0x9b7   :  { %3593 = vst.msk [vmem:[#allocation2 + $0x180] sm:$0xff] %vm640_vm5, %v3556_v24  ;;  %v8356_v6 = vpop.f32.mrb[148].mxu0 }
 0x9b8   :  { %v8358_v9 = vpop.f32.mrb[149].mxu0 }
 0x9b9   :  { %v4202_v16 = vpop.permute.xlu1 %4201  ;;  %v4502_v34 = vld [vmem:[#allocation2 + $0x158] sm:$0xff]  ;;  %v8360_v11 = vpop.f32.mrb[150].mxu0 }
 0x9ba   :  { %4240 = vst.msk [vmem:[#allocation2 + $0x170] sm:$0xff] %vm677_vm6, %v4202_v16  ;;  %4849 = vmatprep.mubr.bf16.mxu1 %v4502_v34  ;;  %v3700_v48 = vpop.permute.xlu0 %3699  ;;  %v8363_v28 = vpop.f32.mrb[151].mxu0  ;;  %v4504_v39 = vld [vmem:[#allocation2 + $0x168] sm:$0xff] }
 0x9bb   :  { %4850 = vmatmul.mubr.bf16.gmra.mrb[164].mxu1 %v4501_v37  ;;  %3737 = vst.msk [vmem:[#allocation2 + $0x180] sm:$0xff] %vm677_vm6, %v3700_v48 }
 0x9bd   :  { %v4346_v2 = vpop.permute.xlu1 %4345 }
 0x9be   :  { %4384 = vst.msk [vmem:[#allocation2 + $0x170] sm:$0xff] %vm714_vm7, %v4346_v2  ;;  %v3844_v13 = vpop.permute.xlu0 %3843 }
 0x9bf   :  { %3881 = vst.msk [vmem:[#allocation2 + $0x180] sm:$0xff] %vm714_vm7, %v3844_v13 }
 0x9c1   :  { %v4060_v44 = vpop.permute.xlu1 %4059 }
 0x9c2   :  { %4097 = vst.msk [vmem:[#allocation2 + $0x188] sm:$0xff] %vm640_vm5, %v4060_v44  ;;  %v3558_v30 = vpop.permute.xlu0 %3557 }
 0x9c3   :  { %3594 = vst.msk [vmem:[#allocation2 + $0x198] sm:$0xff] %vm640_vm5, %v3558_v30 }
 0x9c5   :  { %v4204_v17 = vpop.permute.xlu1 %4203  ;;  %v4505_v29 = vld [vmem:[#allocation2 + $0x170] sm:$0xff] }
 0x9c6   :  { %4241 = vst.msk [vmem:[#allocation2 + $0x188] sm:$0xff] %vm677_vm6, %v4204_v17  ;;  %4857 = vmatprep.mubr.bf16.mxu1 %v4505_v29  ;;  %v3702_v10 = vpop.permute.xlu0 %3701  ;;  %v4507_v14 = vld [vmem:[#allocation2 + $0x180] sm:$0xff] }
 0x9c7   :  { %4858 = vmatmul.mubr.bf16.gmra.mrb[168].mxu1 %v4504_v39  ;;  %3738 = vst.msk [vmem:[#allocation2 + $0x198] sm:$0xff] %vm677_vm6, %v3702_v10  ;;  %v8372_v47 = vpop.f32.mrb[152].mxu0 }
 0x9c8   :  { %v8374_v1 = vpop.f32.mrb[153].mxu0 }
 0x9c9   :  { %v4348_v43 = vpop.permute.xlu1 %4347  ;;  %v8376_v19 = vpop.f32.mrb[154].mxu0 }
 0x9ca   :  { %4385 = vst.msk [vmem:[#allocation2 + $0x188] sm:$0xff] %vm714_vm7, %v4348_v43  ;;  %v3846_v8 = vpop.permute.xlu0 %3845  ;;  %v8379_v15 = vpop.f32.mrb[155].mxu0 }
 0x9cb   :  { %3882 = vst.msk [vmem:[#allocation2 + $0x198] sm:$0xff] %vm714_vm7, %v3846_v8 }
 0x9cd   :  { %v4062_v59 = vpop.permute.xlu1 %4061 }
 0x9ce   :  { %4098 = vst.msk [vmem:[#allocation2 + $0x1a0] sm:$0xff] %vm640_vm5, %v4062_v59  ;;  %v6825_v59 = vld [vmem:[#allocation12] sm:$0xff]  }
 0x9cf   :  { %6626 = vmatprep.subr.bf16.mxu1 %v6825_v59  ;;  %6578 = vmatprep.subr.bf16.mxu0 %v6825_v59 }
 0x9d0   :  { %6634 = vmatpush3.bf16.msra.mxu1 %v6825_v59  ;;  %6579 = vmatpush3.bf16.msra.mxu0 %v6825_v59 }
 0x9d1   :  { %v4206_v45 = vpop.permute.xlu1 %4205  ;;  %v4508_v32 = vld [vmem:[#allocation2 + $0x188] sm:$0xff] }
 0x9d2   :  { %4242 = vst.msk [vmem:[#allocation2 + $0x1a0] sm:$0xff] %vm677_vm6, %v4206_v45  ;;  %4865 = vmatprep.mubr.bf16.mxu1 %v4508_v32  ;;  %v4510_v49 = vld [vmem:[#allocation2 + $0x198] sm:$0xff] }
 0x9d3   :  { %4866 = vmatmul.mubr.bf16.gmra.mrb[172].mxu1 %v4507_v14 }
 0x9d5   :  { %v4350_v53 = vpop.permute.xlu1 %4349 }
 0x9d6   :  { %4386 = vst.msk [vmem:[#allocation2 + $0x1a0] sm:$0xff] %vm714_vm7, %v4350_v53 }
 0x9d7   :  { %v8385_v35 = vpop.f32.mrb[156].mxu0 }
 0x9d8   :  { %v8387_v21 = vpop.f32.mrb[157].mxu0 }
 0x9d9   :  { %v8389_v42 = vpop.f32.mrb[158].mxu0 }
 0x9da   :  { %v8391_v22 = vpop.f32.mrb[159].mxu0 }
 0x9dd   :  { %v4511_v23 = vld [vmem:[#allocation2 + $0x1a0] sm:$0xff] }
 0x9de   :  { %4873 = vmatprep.mubr.bf16.mxu1 %v4511_v23 }
 0x9df   :  { %4874 = vmatmul.mubr.bf16.gmra.mrb[176].mxu1 %v4510_v49 }
 0x9e6   :  { %v4739_v50 = vpop.f32.mrb[108].mxu1 }
 0x9e7   :  { %v8394_v62 = vadd.f32 %v8294_v51, %v4739_v50  ;;  %v4741_v52 = vpop.f32.mrb[109].mxu1  ;;  %v8396_v36 = vpop.f32.mrb[160].mxu0 }
 0x9e8   :  { %v4742_v55 = vpop.f32.mrb[110].mxu1  ;;  %v8401_v27 = vpop.f32.mrb[161].mxu0 }
 0x9e9   :  { %v8399_v61 = vadd.f32 %v8300_v54, %v4742_v55  ;;  %v4744_v25 = vpop.f32.mrb[111].mxu1  ;;  %v8403_v31 = vpop.f32.mrb[162].mxu0  ;;  %v6826_v55 = vld [vmem:[#allocation12 + $0x8] sm:$0xff]  }
 0x9ea   :  { %v8405_v3 = vpop.f32.mrb[163].mxu0  ;;  %6627 = vmatprep.subr.bf16.mxu1 %v6826_v55  ;;  %6580 = vmatprep.subr.bf16.mxu0 %v6826_v55 }
 0x9eb   :  { %6635 = vmatpush3.bf16.msra.mxu1 %v6826_v55  ;;  %6581 = vmatpush3.bf16.msra.mxu0 %v6826_v55 }
 0x9f2   :  { %v4747_v46 = vpop.f32.mrb[112].mxu1 }
 0x9f3   :  { %v8408_v5 = vadd.f32 %v8292_v38, %v4747_v46  ;;  %v4749_v51 = vpop.f32.mrb[113].mxu1 }
 0x9f4   :  { %v4750_v4 = vpop.f32.mrb[114].mxu1 }
 0x9f5   :  { %v8411_v24 = vadd.f32 %v8298_v0, %v4750_v4  ;;  %v4752_v16 = vpop.f32.mrb[115].mxu1  ;;  %v6827_v4 = vld [vmem:[#allocation12 + $0x10] sm:$0xff]  }
 0x9f6   :  { %v8413_v34 = vpop.f32.mrb[164].mxu0  ;;  %6628 = vmatprep.subr.bf16.mxu1 %v6827_v4  ;;  %6582 = vmatprep.subr.bf16.mxu0 %v6827_v4 }
 0x9f7   :  { %v8415_v54 = vpop.f32.mrb[165].mxu0  ;;  %6636 = vmatpush3.bf16.msra.mxu1 %v6827_v4  ;;  %6583 = vmatpush3.bf16.msra.mxu0 %v6827_v4 }
 0x9f8   :  { %v8417_v37 = vpop.f32.mrb[166].mxu0 }
 0x9f9   :  { %v8419_v48 = vpop.f32.mrb[167].mxu0 }
 0x9fe   :  { %v4755_v2 = vpop.f32.mrb[116].mxu1 }
 0x9ff   :  { %v8422_v13 = vadd.f32 %v8310_v26, %v4755_v2  ;;  %v4757_v38 = vpop.f32.mrb[117].mxu1 }
 0xa00   :  { %v4758_v44 = vpop.f32.mrb[118].mxu1 }
 0xa01   :  { %v8425_v30 = vadd.f32 %v8315_v12, %v4758_v44  ;;  %v4760_v0 = vpop.f32.mrb[119].mxu1 }
 0xa02   :  { %v5134_v0 = vpop.permute.xlu1 %5133 }
 0xa0a   :  { %v4763_v17 = vpop.f32.mrb[120].mxu1 }
 0xa0b   :  { %v8428_v29 = vadd.f32 %v8308_v7, %v4763_v17  ;;  %v4765_v39 = vpop.f32.mrb[121].mxu1 }
 0xa0c   :  { %v4766_v10 = vpop.f32.mrb[122].mxu1 }
 0xa0d   :  { %v8431_v43 = vadd.f32 %v8312_v40, %v4766_v10  ;;  %v4768_v8 = vpop.f32.mrb[123].mxu1 }
 0xa0e   :  { %v8464_v8 = vmax.f32 %v8394_v62, 0.0 }
 0xa16   :  { %v4771_v26 = vpop.f32.mrb[124].mxu1 }
 0xa17   :  { %v8434_v12 = vadd.f32 %v8326_v18, %v4771_v26  ;;  %v4773_v45 = vpop.f32.mrb[125].mxu1  ;;  %v5139_v26 = vpop.permute.xlu0 %5138 }
 0xa18   :  { %v4774_v32 = vpop.f32.mrb[126].mxu1 }
 0xa19   :  { %v8437_v7 = vadd.f32 %v8331_v58, %v4774_v32  ;;  %v4776_v14 = vpop.f32.mrb[127].mxu1  ;;  %v5144_v32 = vpop.permute.xlu1 %5143 }
 0xa1a   :  { %v5311_v14 = vmul.f32 %v5134_v0, %v8464_v8 }
 0xa22   :  { %v4779_v53 = vpop.f32.mrb[128].mxu1 }
 0xa23   :  { %v8440_v40 = vadd.f32 %v8324_v63, %v4779_v53  ;;  %v4781_v23 = vpop.f32.mrb[129].mxu1  ;;  %v8476_v53 = vmax.f32 %v8411_v24, 0.0  ;;  %v8487_v24 = vmax.f32 %v8425_v30, 0.0 }
 0xa24   :  { %v4782_v49 = vpop.f32.mrb[130].mxu1  ;;  %v5149_v23 = vpop.permute.xlu0 %5148 }
 0xa25   :  { %v8443_v50 = vadd.f32 %v8328_v20, %v4782_v49  ;;  %v4784_v52 = vpop.f32.mrb[131].mxu1 }
 0xa26   :  { %v5314_v52 = vmul.f32 %v5149_v23, %v8476_v53 }
 0xa2e   :  { %v4787_v18 = vpop.f32.mrb[132].mxu1 }
 0xa2f   :  { %v8446_v58 = vadd.f32 %v8342_v56, %v4787_v18  ;;  %v4789_v25 = vpop.f32.mrb[133].mxu1  ;;  %v5154_v18 = vpop.permute.xlu1 %5153 }
 0xa30   :  { %v4790_v46 = vpop.f32.mrb[134].mxu1 }
 0xa31   :  { %v8449_v63 = vadd.f32 %v8347_v33, %v4790_v46  ;;  %v4792_v51 = vpop.f32.mrb[135].mxu1  ;;  %v8458_v33 = vmax.f32 %v8399_v61, 0.0 }
 0xa33   :  { %v5312_v61 = vmul.f32 %v5139_v26, %v8458_v33 }
 0xa35   :  { %v5390_v62 = vmul.f32 %v5312_v61, %v8458_v33  ;;  %v5347_v55 = vadd.f32 %v5312_v61, %v5311_v14 }
 0xa3a   :  { %v4795_v20 = vpop.f32.mrb[136].mxu1 }
 0xa3b   :  { %v8452_v16 = vadd.f32 %v8340_v41, %v4795_v20  ;;  %v4797_v2 = vpop.f32.mrb[137].mxu1  ;;  %v8467_v41 = vmax.f32 %v8408_v5, 0.0  ;;  %v8480_v5 = vmax.f32 %v8422_v13, 0.0 }
 0xa3c   :  { %v4798_v38 = vpop.f32.mrb[138].mxu1 }
 0xa3d   :  { %v8455_v56 = vadd.f32 %v8344_v60, %v4798_v38  ;;  %v4800_v44 = vpop.f32.mrb[139].mxu1  ;;  %v5315_v46 = vmul.f32 %v5154_v18, %v8480_v5  ;;  %v5392_v38 = vmul.f32 %v5314_v52, %v8476_v53 }
 0xa3e   :  { %v8494_v44 = vmax.f32 %v8428_v29, 0.0 }
 0xa3f   :  { %v5393_v30 = vmul.f32 %v5315_v46, %v8480_v5 }
 0xa46   :  { %v4803_v17 = vpop.f32.mrb[140].mxu1 }
 0xa47   :  { %v8461_v39 = vadd.f32 %v8358_v9, %v4803_v17  ;;  %v4805_v10 = vpop.f32.mrb[141].mxu1  ;;  %v5313_v9 = vmul.f32 %v5144_v32, %v8467_v41  ;;  %v5159_v17 = vpop.permute.xlu0 %5158 }
 0xa48   :  { %v4806_v59 = vpop.f32.mrb[142].mxu1  ;;  %v5316_v26 = vmul.f32 %v5159_v17, %v8487_v24 }
 0xa49   :  { %v8470_v60 = vadd.f32 %v8363_v28, %v4806_v59  ;;  %v4808_v45 = vpop.f32.mrb[143].mxu1  ;;  %v5389_v28 = vmul.f32 %v5311_v14, %v8464_v8  ;;  %v5391_v49 = vmul.f32 %v5313_v9, %v8467_v41  ;;  %v5348_v4 = vadd.f32 %v5347_v55, %v5313_v9 }
 0xa4a   :  { %v5164_v45 = vpop.permute.xlu1 %5163  ;;  %v8503_v14 = vmax.f32 %v8431_v43, 0.0  ;;  %v8513_v43 = vmax.f32 %v8437_v7, 0.0 }
 0xa4b   :  { %v5425_v25 = vadd.f32 %v5390_v62, %v5389_v28  ;;  %v5317_v32 = vmul.f32 %v5164_v45, %v8494_v44  ;;  %v5394_v62 = vmul.f32 %v5316_v26, %v8487_v24  ;;  %v5169_v23 = vpop.permute.xlu0 %5168 }
 0xa4d   :  { %v5426_v2 = vadd.f32 %v5425_v25, %v5391_v49  ;;  %v5395_v28 = vmul.f32 %v5317_v32, %v8494_v44  ;;  %v5318_v49 = vmul.f32 %v5169_v23, %v8503_v14 }
 0xa4e   :  { %v5174_v55 = vpop.permute.xlu1 %5173 }
 0xa4f   :  { %v5427_v61 = vadd.f32 %v5426_v2, %v5392_v38  ;;  %v5396_v2 = vmul.f32 %v5318_v49, %v8503_v14  ;;  %v8520_v38 = vmax.f32 %v8440_v40, 0.0  ;;  %v5179_v17 = vpop.permute.xlu0 %5178 }
 0xa51   :  { %v5428_v9 = vadd.f32 %v5427_v61, %v5393_v30 }
 0xa52   :  { %v4811_v51 = vpop.f32.mrb[144].mxu1  ;;  %v5184_v45 = vpop.permute.xlu1 %5183 }
 0xa53   :  { %v8490_v13 = vadd.f32 %v8356_v6, %v4811_v51  ;;  %v4813_v20 = vpop.f32.mrb[145].mxu1  ;;  %v5349_v6 = vadd.f32 %v5348_v4, %v5314_v52  ;;  %v5429_v18 = vadd.f32 %v5428_v9, %v5394_v62  ;;  %v5321_v61 = vmul.f32 %v5184_v45, %v8520_v38  ;;  %v6828_v62 = vld [vmem:[#allocation12 + $0x18] sm:$0xff]   ;;  %v5189_v23 = vpop.permute.xlu0 %5188 }
 0xa54   :  { %v4814_v0 = vpop.f32.mrb[146].mxu1  ;;  %6629 = vmatprep.subr.bf16.mxu1 %v6828_v62  ;;  %6584 = vmatprep.subr.bf16.mxu0 %v6828_v62 }
 0xa55   :  { %v8497_v10 = vadd.f32 %v8360_v11, %v4814_v0  ;;  %v4816_v59 = vpop.f32.mrb[147].mxu1  ;;  %v5350_v29 = vadd.f32 %v5349_v6, %v5315_v46  ;;  %v8507_v11 = vmax.f32 %v8434_v12, 0.0  ;;  %v5430_v20 = vadd.f32 %v5429_v18, %v5395_v28  ;;  %6637 = vmatpush3.bf16.msra.mxu1 %v6828_v62  ;;  %6585 = vmatpush3.bf16.msra.mxu0 %v6828_v62 }
 0xa56   :  { %v5399_v28 = vmul.f32 %v5321_v61, %v8520_v38 }
 0xa57   :  { %v5351_v52 = vadd.f32 %v5350_v29, %v5316_v26  ;;  %v5319_v25 = vmul.f32 %v5174_v55, %v8507_v11  ;;  %v5320_v26 = vmul.f32 %v5179_v17, %v8513_v43  ;;  %v5431_v6 = vadd.f32 %v5430_v20, %v5396_v2 }
 0xa59   :  { %v5352_v51 = vadd.f32 %v5351_v52, %v5317_v32  ;;  %v5397_v7 = vmul.f32 %v5319_v25, %v8507_v11  ;;  %v8529_v32 = vmax.f32 %v8443_v50, 0.0  ;;  %v5398_v9 = vmul.f32 %v5320_v26, %v8513_v43 }
 0xa5b   :  { %v5432_v29 = vadd.f32 %v5431_v6, %v5397_v7  ;;  %v5322_v55 = vmul.f32 %v5189_v23, %v8529_v32 }
 0xa5d   :  { %v5433_v50 = vadd.f32 %v5432_v29, %v5398_v9  ;;  %v5400_v2 = vmul.f32 %v5322_v55, %v8529_v32  ;;  %v6829_v29 = vld [vmem:[#allocation12 + $0x20] sm:$0xff]  }
 0xa5e   :  { %v4819_v46 = vpop.f32.mrb[148].mxu1  ;;  %6630 = vmatprep.subr.bf16.mxu1 %v6829_v29  ;;  %6586 = vmatprep.subr.bf16.mxu0 %v6829_v29 }
 0xa5f   :  { %v8516_v4 = vadd.f32 %v8374_v1, %v4819_v46  ;;  %v4821_v12 = vpop.f32.mrb[149].mxu1  ;;  %v5353_v1 = vadd.f32 %v5352_v51, %v5318_v49  ;;  %v5194_v49 = vpop.permute.xlu1 %5193  ;;  %v5434_v20 = vadd.f32 %v5433_v50, %v5399_v28  ;;  %6638 = vmatpush3.bf16.msra.mxu1 %v6829_v29  ;;  %6587 = vmatpush3.bf16.msra.mxu0 %v6829_v29  ;;  %v8579_v29 = vmax.f32 %v8497_v10, 0.0 }
 0xa60   :  { %v4822_v0 = vpop.f32.mrb[150].mxu1 }
 0xa61   :  { %v8523_v59 = vadd.f32 %v8379_v15, %v4822_v0  ;;  %v4824_v30 = vpop.f32.mrb[151].mxu1  ;;  %v5354_v40 = vadd.f32 %v5353_v1, %v5319_v25  ;;  %v8533_v15 = vmax.f32 %v8446_v58, 0.0  ;;  %v8539_v25 = vmax.f32 %v8449_v63, 0.0 }
 0xa62   :  { %v8546_v0 = vmax.f32 %v8452_v16, 0.0  ;;  %v5199_v30 = vpop.permute.xlu0 %5198  ;;  %v5435_v6 = vadd.f32 %v5434_v20, %v5400_v2 }
 0xa63   :  { %v5355_v52 = vadd.f32 %v5354_v40, %v5320_v26  ;;  %v5323_v18 = vmul.f32 %v5194_v49, %v8533_v15  ;;  %v5324_v45 = vmul.f32 %v5199_v30, %v8539_v25  ;;  %v5204_v1 = vpop.permute.xlu1 %5203  ;;  %v8555_v40 = vmax.f32 %v8455_v56, 0.0 }
 0xa64   :  { %v8572_v30 = vmax.f32 %v8490_v13, 0.0 }
 0xa65   :  { %v5356_v46 = vadd.f32 %v5355_v52, %v5321_v61  ;;  %v5401_v63 = vmul.f32 %v5323_v18, %v8533_v15  ;;  %v5325_v61 = vmul.f32 %v5204_v1, %v8546_v0  ;;  %v5402_v62 = vmul.f32 %v5324_v45, %v8539_v25 }
 0xa66   :  { %v5209_v23 = vpop.permute.xlu0 %5208 }
 0xa67   :  { %v5436_v9 = vadd.f32 %v5435_v6, %v5401_v63  ;;  %v5403_v28 = vmul.f32 %v5325_v61, %v8546_v0  ;;  %v5214_v49 = vpop.permute.xlu1 %5213 }
 0xa69   :  { %v5437_v52 = vadd.f32 %v5436_v9, %v5402_v62 }
 0xa6a   :  { %v4827_v58 = vpop.f32.mrb[152].mxu1  ;;  %v5219_v63 = vpop.permute.xlu0 %5218 }
 0xa6b   :  { %v8542_v51 = vadd.f32 %v8372_v47, %v4827_v58  ;;  %v4829_v12 = vpop.f32.mrb[153].mxu1  ;;  %v5357_v47 = vadd.f32 %v5356_v46, %v5322_v55  ;;  %v5326_v55 = vmul.f32 %v5209_v23, %v8555_v40  ;;  %v5438_v2 = vadd.f32 %v5437_v52, %v5403_v28  ;;  %v5224_v6 = vpop.permute.xlu1 %5223  ;;  %v6832_v28 = vld [vmem:[#allocation12 + $0x38] sm:$0xff]  }
 0xa6c   :  { %v4830_v17 = vpop.f32.mrb[154].mxu1  ;;  %v5329_v13 = vmul.f32 %v5224_v6, %v8572_v30  ;;  %v8583_v23 = vmax.f32 %v8516_v4, 0.0 }
 0xa6d   :  { %v8549_v7 = vadd.f32 %v8376_v19, %v4830_v17  ;;  %v4832_v26 = vpop.f32.mrb[155].mxu1  ;;  %v5358_v16 = vadd.f32 %v5357_v47, %v5323_v18  ;;  %v8559_v19 = vmax.f32 %v8461_v39, 0.0  ;;  %v8565_v18 = vmax.f32 %v8470_v60, 0.0  ;;  %v6830_v39 = vld [vmem:[#allocation12 + $0x28] sm:$0xff]   ;;  %v6831_v47 = vld [vmem:[#allocation12 + $0x30] sm:$0xff]  }
 0xa6e   :  { %v5404_v17 = vmul.f32 %v5326_v55, %v8555_v40  ;;  %6631 = vmatprep.subr.bf16.mxu1 %v6830_v39  ;;  %6588 = vmatprep.subr.bf16.mxu0 %v6830_v39 }
 0xa6f   :  { %v5359_v56 = vadd.f32 %v5358_v16, %v5324_v45  ;;  %v5327_v50 = vmul.f32 %v5214_v49, %v8559_v19  ;;  %6639 = vmatpush3.bf16.msra.mxu1 %v6830_v39  ;;  %6589 = vmatpush3.bf16.msra.mxu0 %v6830_v39  ;;  %v5229_v49 = vpop.permute.xlu0 %5228  ;;  %v5234_v10 = vpop.permute.xlu1 %5233  ;;  %v8589_v39 = vmax.f32 %v8523_v59, 0.0 }
 0xa70   :  { %v5439_v16 = vadd.f32 %v5438_v2, %v5404_v17  ;;  %6590 = vmatprep.subr.bf16.mxu0 %v6831_v47  ;;  %6632 = vmatprep.subr.bf16.mxu1 %v6831_v47 }
 0xa71   :  { %v5360_v46 = vadd.f32 %v5359_v56, %v5325_v61  ;;  %v5405_v1 = vmul.f32 %v5327_v50, %v8559_v19  ;;  %v5330_v56 = vmul.f32 %v5229_v49, %v8579_v29 }
 0xa73   :  { %v5361_v61 = vadd.f32 %v5360_v46, %v5326_v55  ;;  %6591 = vmatpush3.bf16.msra.mxu0 %v6831_v47  ;;  %6640 = vmatpush3.bf16.msra.mxu1 %v6831_v47  ;;  %v5407_v55 = vmul.f32 %v5329_v13, %v8572_v30 }
 0xa74   :  { %6592 = vmatprep.subr.bf16.mxu0 %v6832_v28  ;;  %6633 = vmatprep.subr.bf16.mxu1 %v6832_v28 }
 0xa75   :  { %v5362_v9 = vadd.f32 %v5361_v61, %v5327_v50  ;;  %v5244_v61 = vpop.permute.xlu1 %5243 }
 0xa76   :  { %v4835_v58 = vpop.f32.mrb[156].mxu1 }
 0xa77   :  { %v8568_v12 = vadd.f32 %v8387_v21, %v4835_v58  ;;  %v4837_v20 = vpop.f32.mrb[157].mxu1  ;;  %v5328_v21 = vmul.f32 %v5219_v63, %v8565_v18  ;;  %6593 = vmatpush3.bf16.msra.mxu0 %v6832_v28  ;;  %6641 = vmatpush3.bf16.msra.mxu1 %v6832_v28  ;;  %v5331_v58 = vmul.f32 %v5234_v10, %v8583_v23  ;;  %v8594_v63 = vmax.f32 %v8542_v51, 0.0 }
 0xa78   :  { %v4838_v26 = vpop.f32.mrb[158].mxu1 }
 0xa79   :  { %v5016_v60 = vadd.f32 %v8391_v22, %v4838_v26  ;;  %v4840_v45 = vpop.f32.mrb[159].mxu1  ;;  %v5440_v22 = vadd.f32 %v5439_v16, %v5405_v1  ;;  %v5406_v62 = vmul.f32 %v5328_v21, %v8565_v18  ;;  %v5363_v52 = vadd.f32 %v5362_v9, %v5328_v21  ;;  %v5239_v1 = vpop.permute.xlu0 %5238 }
 0xa7a   :  { %v5408_v26 = vmul.f32 %v5330_v56, %v8579_v29  ;;  %v5409_v6 = vmul.f32 %v5331_v58, %v8583_v23  ;;  %v5332_v59 = vmul.f32 %v5239_v1, %v8589_v39  ;;  %v8601_v9 = vmax.f32 %v8549_v7, 0.0  ;;  %v5254_v10 = vpop.permute.xlu1 %5253 }
 0xa7b   :  { %v5441_v50 = vadd.f32 %v5440_v22, %v5406_v62  ;;  %v5364_v46 = vadd.f32 %v5363_v52, %v5329_v13  ;;  %v8605_v28 = vmax.f32 %v8568_v12, 0.0 }
 0xa7c   :  { %v5410_v62 = vmul.f32 %v5332_v59, %v8589_v39 }
 0xa7d   :  { %v5442_v17 = vadd.f32 %v5441_v50, %v5407_v55  ;;  %v5365_v16 = vadd.f32 %v5364_v46, %v5330_v56  ;;  %v5335_v50 = vmul.f32 %v5254_v10, %v8605_v28 }
 0xa7f   :  { %v5443_v13 = vadd.f32 %v5442_v17, %v5408_v26  ;;  %v5366_v22 = vadd.f32 %v5365_v16, %v5331_v58  ;;  %v5264_v16 = vpop.permute.xlu1 %5263 }
 0xa81   :  { %v5444_v51 = vadd.f32 %v5443_v13, %v5409_v6  ;;  %v5367_v56 = vadd.f32 %v5366_v22, %v5332_v59  ;;  %v5413_v59 = vmul.f32 %v5335_v50, %v8605_v28 }
 0xa82   :  { %v4843_v4 = vpop.f32.mrb[160].mxu1 }
 0xa83   :  { %v5021_v20 = vadd.f32 %v8385_v35, %v4843_v4  ;;  %v4845_v2 = vpop.f32.mrb[161].mxu1  ;;  %v5333_v35 = vmul.f32 %v5244_v61, %v8594_v63  ;;  %v5445_v52 = vadd.f32 %v5444_v51, %v5410_v62  ;;  %v8610_v4 = vmax.f32 %v5016_v60, 0.0 }
 0xa84   :  { %v4846_v45 = vpop.f32.mrb[162].mxu1 }
 0xa85   :  { %v5024_v21 = vadd.f32 %v8389_v42, %v4846_v45  ;;  %v4848_v47 = vpop.f32.mrb[163].mxu1  ;;  %v5249_v42 = vpop.permute.xlu0 %5248  ;;  %v5411_v49 = vmul.f32 %v5333_v35, %v8594_v63  ;;  %v5368_v58 = vadd.f32 %v5367_v56, %v5333_v35  ;;  %v8614_v1 = vmax.f32 %v5021_v20, 0.0 }
 0xa86   :  { %v5334_v55 = vmul.f32 %v5249_v42, %v8601_v9  ;;  %v5274_v56 = vpop.permute.xlu1 %5273 }
 0xa87   :  { %v5446_v17 = vadd.f32 %v5445_v52, %v5411_v49  ;;  %v8620_v22 = vmax.f32 %v5024_v21, 0.0 }
 0xa88   :  { %v5412_v12 = vmul.f32 %v5334_v55, %v8601_v9  ;;  %v5369_v61 = vadd.f32 %v5368_v58, %v5334_v55 }
 0xa89   :  { %v5259_v45 = vpop.permute.xlu0 %5258 }
 0xa8a   :  { %v5336_v60 = vmul.f32 %v5259_v45, %v8610_v4  ;;  %v5447_v13 = vadd.f32 %v5446_v17, %v5412_v12  ;;  %v5370_v35 = vadd.f32 %v5369_v61, %v5335_v50 }
 0xa8c   :  { %v5448_v51 = vadd.f32 %v5447_v13, %v5413_v59  ;;  %v5414_v62 = vmul.f32 %v5336_v60, %v8610_v4 }
 0xa8d   :  { %v5269_v42 = vpop.permute.xlu0 %5268 }
 0xa8e   :  { %v4851_v7 = vpop.f32.mrb[164].mxu1  ;;  %v5338_v10 = vmul.f32 %v5269_v42, %v8620_v22  ;;  %v5449_v55 = vadd.f32 %v5448_v51, %v5414_v62 }
 0xa8f   :  { %v5029_v46 = vadd.f32 %v8401_v27, %v4851_v7  ;;  %v4853_v2 = vpop.f32.mrb[165].mxu1  ;;  %v5337_v27 = vmul.f32 %v5264_v16, %v8614_v1 }
 0xa90   :  { %v4854_v26 = vpop.f32.mrb[166].mxu1  ;;  %v5416_v12 = vmul.f32 %v5338_v10, %v8620_v22 }
 0xa91   :  { %v5032_v47 = vadd.f32 %v8405_v3, %v4854_v26  ;;  %v4856_v6 = vpop.f32.mrb[167].mxu1  ;;  %v8623_v20 = vmax.f32 %v5029_v46, 0.0  ;;  %v5371_v3 = vadd.f32 %v5370_v35, %v5336_v60  ;;  %v5415_v49 = vmul.f32 %v5337_v27, %v8614_v1  ;;  %v5279_v59 = vpop.permute.xlu0 %5278 }
 0xa93   :  { %v5372_v7 = vadd.f32 %v5371_v3, %v5337_v27  ;;  %v5339_v50 = vmul.f32 %v5274_v56, %v8623_v20  ;;  %v8628_v58 = vmax.f32 %v5032_v47, 0.0  ;;  %v5450_v46 = vadd.f32 %v5449_v55, %v5415_v49  ;;  %v5284_v47 = vpop.permute.xlu1 %5283 }
 0xa95   :  { %v5373_v60 = vadd.f32 %v5372_v7, %v5338_v10  ;;  %v5417_v61 = vmul.f32 %v5339_v50, %v8623_v20  ;;  %v5340_v16 = vmul.f32 %v5279_v59, %v8628_v58  ;;  %v5451_v13 = vadd.f32 %v5450_v46, %v5416_v12  ;;  %v5289_v42 = vpop.permute.xlu0 %5288 }
 0xa97   :  { %v5374_v35 = vadd.f32 %v5373_v60, %v5339_v50  ;;  %v5452_v51 = vadd.f32 %v5451_v13, %v5417_v61  ;;  %v5418_v62 = vmul.f32 %v5340_v16, %v8628_v58 }
 0xa99   :  { %v5375_v3 = vadd.f32 %v5374_v35, %v5340_v16  ;;  %v5453_v56 = vadd.f32 %v5452_v51, %v5418_v62  ;;  %v5299_v61 = vpop.permute.xlu0 %5298 }
 0xa9a   :  { %v4859_v52 = vpop.f32.mrb[168].mxu1 }
 0xa9b   :  { %v5037_v21 = vadd.f32 %v8396_v36, %v4859_v52  ;;  %v4861_v2 = vpop.f32.mrb[169].mxu1 }
 0xa9c   :  { %v4862_v17 = vpop.f32.mrb[170].mxu1 }
 0xa9d   :  { %v8632_v26 = vmax.f32 %v5037_v21, 0.0  ;;  %v5040_v45 = vadd.f32 %v8403_v31, %v4862_v17  ;;  %v4864_v6 = vpop.f32.mrb[171].mxu1 }
 0xa9f   :  { %v5341_v36 = vmul.f32 %v5284_v47, %v8632_v26  ;;  %v8638_v27 = vmax.f32 %v5040_v45, 0.0  ;;  %v5294_v45 = vpop.permute.xlu1 %5293 }
 0xaa1   :  { %v5419_v31 = vmul.f32 %v5341_v36, %v8632_v26  ;;  %v5342_v49 = vmul.f32 %v5289_v42, %v8638_v27  ;;  %v5376_v55 = vadd.f32 %v5375_v3, %v5341_v36 }
 0xaa3   :  { %v5454_v21 = vadd.f32 %v5453_v56, %v5419_v31  ;;  %v5420_v2 = vmul.f32 %v5342_v49, %v8638_v27  ;;  %v5377_v6 = vadd.f32 %v5376_v55, %v5342_v49  ;;  %v5304_v55 = vpop.permute.xlu1 %5303 }
 0xaa5   :  { %v5455_v16 = vadd.f32 %v5454_v21, %v5420_v2 }
 0xaa6   :  { %v4867_v10 = vpop.f32.mrb[172].mxu1 }
 0xaa7   :  { %v5045_v52 = vadd.f32 %v8415_v54, %v4867_v10  ;;  %v4869_v7 = vpop.f32.mrb[173].mxu1 }
 0xaa8   :  { %v4870_v50 = vpop.f32.mrb[174].mxu1 }
 0xaa9   :  { %v5091_v17 = vmax.f32 %v5045_v52, 0.0  ;;  %v5048_v46 = vadd.f32 %v8419_v48, %v4870_v50  ;;  %v4872_v12 = vpop.f32.mrb[175].mxu1  ;;  %v5309_v50 = vpop.permute.xlu0 %5308 }
 0xaab   :  { %v5343_v59 = vmul.f32 %v5294_v45, %v5091_v17  ;;  %v5092_v60 = vmax.f32 %v5048_v46, 0.0 }
 0xaad   :  { %v5378_v47 = vadd.f32 %v5377_v6, %v5343_v59  ;;  %v5421_v13 = vmul.f32 %v5343_v59, %v5091_v17  ;;  %v5344_v35 = vmul.f32 %v5299_v61, %v5092_v60 }
 0xaaf   :  { %v5456_v36 = vadd.f32 %v5455_v16, %v5421_v13  ;;  %v5379_v54 = vadd.f32 %v5378_v47, %v5344_v35  ;;  %v5422_v51 = vmul.f32 %v5344_v35, %v5092_v60 }
 0xab1   :  { %v5457_v62 = vadd.f32 %v5456_v36, %v5422_v51 }
 0xab2   :  { %v4875_v42 = vpop.f32.mrb[176].mxu1 }
 0xab3   :  { %v5053_v3 = vadd.f32 %v8413_v34, %v4875_v42  ;;  %v4877_v31 = vpop.f32.mrb[177].mxu1 }
 0xab4   :  { %v4878_v10 = vpop.f32.mrb[178].mxu1 }
 0xab5   :  { %v5093_v48 = vmax.f32 %v5053_v3, 0.0  ;;  %v5056_v56 = vadd.f32 %v8417_v37, %v4878_v10  ;;  %v4880_v49 = vpop.f32.mrb[179].mxu1 }
 0xab7   :  { %v5345_v52 = vmul.f32 %v5304_v55, %v5093_v48  ;;  %v5094_v7 = vmax.f32 %v5056_v56, 0.0 }
 0xab9   :  { %v5380_v21 = vadd.f32 %v5379_v54, %v5345_v52  ;;  %v5423_v2 = vmul.f32 %v5345_v52, %v5093_v48  ;;  %v5346_v46 = vmul.f32 %v5309_v50, %v5094_v7  ;;  %v5472_v52 = vld [vmem:[%s8863_s13 + $0x3] sm:$0x1] }
 0xabb   :  { %v5458_v12 = vadd.f32 %v5457_v62, %v5423_v2  ;;  %v5381_v45 = vadd.f32 %v5380_v21, %v5346_v46  ;;  %v5424_v6 = vmul.f32 %v5346_v46, %v5094_v7  ;;  %v5474_v2 = vld [vmem:[%s8864_s14 + $0x3] sm:$0x1] }
 0xabd   :  { %v5382_v59 = vrot.slane %v5381_v45, 4  ;;  %v5459_v61 = vadd.f32 %v5458_v12, %v5424_v6 }
 0xabf   :  { %v5383_v16 = vadd.f32 %v5382_v59, %v5381_v45  ;;  %v5460_v34 = vrot.slane %v5459_v61, 4 }
 0xac1   :  { %v5384_v47 = vrot.slane %v5383_v16, 2  ;;  %v5461_v13 = vadd.f32 %v5460_v34, %v5459_v61 }
 0xac3   :  { %v5385_v35 = vadd.f32 %v5384_v47, %v5383_v16  ;;  %v5462_v36 = vrot.slane %v5461_v13, 2 }
 0xac5   :  { %v5386_v37 = vrot.slane %v5385_v35, 1  ;;  %v5463_v51 = vadd.f32 %v5462_v36, %v5461_v13 }
 0xac7   :  { %v5387_v42 = vadd.f32 %v5386_v37, %v5385_v35  ;;  %v5464_v3 = vrot.slane %v5463_v51, 1 }
 0xac9   :  { %v5388_v31 = vmul.f32 0.00390625, %v5387_v42  ;;  %v5465_v10 = vadd.f32 %v5464_v3, %v5463_v51 }
 0xacb   :  { %v5466_v54 = vmul.f32 0.00390625, %v5465_v10  ;;  %v5467_v56 = vmul.f32 %v5388_v31, %v5388_v31 }
 0xacd   :  { %v5468_v49 = vsub.f32 %v5466_v54, %v5467_v56 }
 0xacf   :  { %v5469_v62 = vmax.f32 %v5468_v49, 0.0 }
 0xad1   :  { %v5470_v55 = vadd.f32 1e-05, %v5469_v62 }
 0xad3   :  { %6839 = vrsqrt.f32 %v5470_v55 }
 0xadd   :  { %v6840_v50 = vpop.eup %6839 }
 0xade   :  { %v5473_v21 = vmul.f32 %v6840_v50, %v5472_v52 }
 0xae0   :  { %v5475_v46 = vmul.f32 %v5473_v21, %v5388_v31  ;;  %v5480_v12 = vrot.slane %v5473_v21, %v7342_v57 }
 0xae2   :  { %v5476_v45 = vsub.f32 %v5474_v2, %v5475_v46  ;;  %v5513_v6 = vmul.f32 %v5480_v12, %v5091_v17  ;;  %v5514_v59 = vmul.f32 %v5480_v12, %v5092_v60  ;;  %v5515_v61 = vmul.f32 %v5480_v12, %v5093_v48 }
 0xae3   :  { %v5516_v16 = vmul.f32 %v5480_v12, %v5094_v7  ;;  %v5481_v34 = vmul.f32 %v5480_v12, %v8464_v8  ;;  %v5482_v47 = vmul.f32 %v5480_v12, %v8458_v33  ;;  %v5483_v13 = vmul.f32 %v5480_v12, %v8467_v41 }
 0xae4   :  { %v8659_v35 = vrot.slane %v5476_v45, %v7342_v57  ;;  %v5484_v36 = vmul.f32 %v5480_v12, %v8476_v53  ;;  %v5485_v37 = vmul.f32 %v5480_v12, %v8480_v5  ;;  %v5486_v51 = vmul.f32 %v5480_v12, %v8487_v24 }
 0xae5   :  { %v5487_v17 = vmul.f32 %v5480_v12, %v8494_v44  ;;  %v5488_v60 = vmul.f32 %v5480_v12, %v8503_v14  ;;  %v5489_v48 = vmul.f32 %v5480_v12, %v8507_v11  ;;  %v5490_v8 = vmul.f32 %v5480_v12, %v8513_v43 }
 0xae6   :  { %v5553_v33 = vadd.f32 %v8659_v35, %v5513_v6  ;;  %v5554_v41 = vadd.f32 %v8659_v35, %v5514_v59  ;;  %v5555_v57 = vadd.f32 %v8659_v35, %v5515_v61  ;;  %v5556_v53 = vadd.f32 %v8659_v35, %v5516_v16 }
 0xae7   :  { %v5491_v5 = vmul.f32 %v5480_v12, %v8520_v38  ;;  %v5492_v24 = vmul.f32 %v5480_v12, %v8529_v32  ;;  %v5493_v44 = vmul.f32 %v5480_v12, %v8533_v15  ;;  %v5494_v14 = vmul.f32 %v5480_v12, %v8539_v25 }
 0xae8   :  { %v8676_v7 = vpack.c.bf16 %v5554_v41, %v5553_v33  ;;  %v5574_v11 = vpack.c.bf16 %v5556_v53, %v5555_v57  ;;  %v5495_v43 = vmul.f32 %v5480_v12, %v8546_v0  ;;  %v5496_v42 = vmul.f32 %v5480_v12, %v8555_v40 }
 0xae9   :  { %v5497_v3 = vmul.f32 %v5480_v12, %v8559_v19  ;;  %v5498_v31 = vmul.f32 %v5480_v12, %v8565_v18  ;;  %v5499_v10 = vmul.f32 %v5480_v12, %v8572_v30  ;;  %v5500_v38 = vmul.f32 %v5480_v12, %v8579_v29 }
 0xaea   :  { %v5665_v32 = vrot.slane %v8676_v7, 7  ;;  %v5666_v15 = vrot.slane %v5574_v11, 7  ;;  %v5501_v25 = vmul.f32 %v5480_v12, %v8583_v23  ;;  %v5502_v54 = vmul.f32 %v5480_v12, %v8589_v39 }
 0xaeb   :  { %v5503_v56 = vmul.f32 %v5480_v12, %v8594_v63  ;;  %v5504_v0 = vmul.f32 %v5480_v12, %v8601_v9  ;;  %v5505_v40 = vmul.f32 %v5480_v12, %v8605_v28  ;;  %v5506_v19 = vmul.f32 %v5480_v12, %v8610_v4 }
 0xaec   :  { %v8692_v18 = vsel %vm5620_vm14, %v5665_v32, %v5666_v15  ;;  %v5507_v30 = vmul.f32 %v5480_v12, %v8614_v1  ;;  %v5508_v29 = vmul.f32 %v5480_v12, %v8620_v22  ;;  %v5509_v49 = vmul.f32 %v5480_v12, %v8623_v20 }
 0xaed   :  { %5669 = vst [vmem:[#allocation2 + $0x168] sm:$0xff] %v8692_v18  ;;  %v5510_v23 = vmul.f32 %v5480_v12, %v8628_v58  ;;  %v5511_v39 = vmul.f32 %v5480_v12, %v8632_v26  ;;  %v5512_v63 = vmul.f32 %v5480_v12, %v8638_v27  ;;  %v5660_v9 = vrot.slane %v8676_v7, 6 }
 0xaee   :  { %v5521_v28 = vadd.f32 %v8659_v35, %v5481_v34  ;;  %v5522_v4 = vadd.f32 %v8659_v35, %v5482_v47  ;;  %v5523_v1 = vadd.f32 %v8659_v35, %v5483_v13  ;;  %v5524_v22 = vadd.f32 %v8659_v35, %v5484_v36 }
 0xaef   :  { %v5525_v20 = vadd.f32 %v8659_v35, %v5485_v37  ;;  %v5526_v62 = vadd.f32 %v8659_v35, %v5486_v51  ;;  %v5527_v58 = vadd.f32 %v8659_v35, %v5487_v17  ;;  %v5528_v26 = vadd.f32 %v8659_v35, %v5488_v60 }
 0xaf0   :  { %v5529_v27 = vadd.f32 %v8659_v35, %v5489_v48  ;;  %v5530_v55 = vadd.f32 %v8659_v35, %v5490_v8  ;;  %v5531_v52 = vadd.f32 %v8659_v35, %v5491_v5  ;;  %v5532_v50 = vadd.f32 %v8659_v35, %v5492_v24 }
 0xaf1   :  { %v5533_v21 = vadd.f32 %v8659_v35, %v5493_v44  ;;  %v5534_v2 = vadd.f32 %v8659_v35, %v5494_v14  ;;  %v5535_v46 = vadd.f32 %v8659_v35, %v5495_v43  ;;  %v5536_v12 = vadd.f32 %v8659_v35, %v5496_v42 }
 0xaf2   :  { %v5537_v45 = vadd.f32 %v8659_v35, %v5497_v3  ;;  %v5538_v6 = vadd.f32 %v8659_v35, %v5498_v31  ;;  %v5539_v59 = vadd.f32 %v8659_v35, %v5499_v10  ;;  %v5540_v61 = vadd.f32 %v8659_v35, %v5500_v38 }
 0xaf3   :  { %v5541_v16 = vadd.f32 %v8659_v35, %v5501_v25  ;;  %v5542_v34 = vadd.f32 %v8659_v35, %v5502_v54  ;;  %v5543_v47 = vadd.f32 %v8659_v35, %v5503_v56  ;;  %v5544_v13 = vadd.f32 %v8659_v35, %v5504_v0 }
 0xaf4   :  { %v5545_v36 = vadd.f32 %v8659_v35, %v5505_v40  ;;  %v5546_v37 = vadd.f32 %v8659_v35, %v5506_v19  ;;  %v5547_v51 = vadd.f32 %v8659_v35, %v5507_v30  ;;  %v5548_v17 = vadd.f32 %v8659_v35, %v5508_v29 }
 0xaf5   :  { %v5549_v60 = vadd.f32 %v8659_v35, %v5509_v49  ;;  %v5550_v48 = vadd.f32 %v8659_v35, %v5510_v23  ;;  %v5551_v8 = vadd.f32 %v8659_v35, %v5511_v39  ;;  %v5552_v33 = vadd.f32 %v8659_v35, %v5512_v63 }
 0xaf6   :  { %v5557_v41 = vpack.c.bf16 %v5522_v4, %v5521_v28  ;;  %v5558_v57 = vpack.c.bf16 %v5524_v22, %v5523_v1  ;;  %v5559_v53 = vpack.c.bf16 %v5526_v62, %v5525_v20  ;;  %v5560_v5 = vpack.c.bf16 %v5528_v26, %v5527_v58 }
 0xaf7   :  { %v5561_v24 = vpack.c.bf16 %v5530_v55, %v5529_v27  ;;  %v5562_v44 = vpack.c.bf16 %v5532_v50, %v5531_v52  ;;  %v5563_v14 = vpack.c.bf16 %v5534_v2, %v5533_v21  ;;  %v5564_v11 = vpack.c.bf16 %v5536_v12, %v5535_v46 }
 0xaf8   :  { %v5565_v43 = vpack.c.bf16 %v5538_v6, %v5537_v45  ;;  %v8734_v42 = vpack.c.bf16 %v5540_v61, %v5539_v59  ;;  %v5567_v3 = vpack.c.bf16 %v5542_v34, %v5541_v16  ;;  %v5568_v31 = vpack.c.bf16 %v5544_v13, %v5543_v47  ;;  %5575 = vst [vmem:[#allocation2] sm:$0xff] %v5557_v41 }
 0xaf9   :  { %6594 = vmatprep.mubr.bf16.mxu0 %v5557_v41  ;;  %v5569_v10 = vpack.c.bf16 %v5546_v37, %v5545_v36  ;;  %v5570_v38 = vpack.c.bf16 %v5548_v17, %v5547_v51  ;;  %v5571_v35 = vpack.c.bf16 %v5550_v48, %v5549_v60  ;;  %v5572_v32 = vpack.c.bf16 %v5552_v33, %v5551_v8 }
 0xafa   :  { %v5579_v15 = vrot.slane %v5558_v57, 1  ;;  %v5580_v25 = vrot.slane %v5559_v53, 1  ;;  %v5586_v54 = vrot.slane %v5559_v53, 2  ;;  %v5587_v56 = vrot.slane %v5560_v5, 2  ;;  %5626 = vst [vmem:[#allocation2 + $0xc0] sm:$0xff] %v8734_v42 }
 0xafb   :  { %v5593_v0 = vrot.slane %v5560_v5, 3  ;;  %v5594_v40 = vrot.slane %v5561_v24, 3  ;;  %v5600_v19 = vrot.slane %v5561_v24, 4  ;;  %v5601_v30 = vrot.slane %v5562_v44, 4 }
 0xafc   :  { %v5607_v29 = vrot.slane %v5562_v44, 5  ;;  %v5608_v49 = vrot.slane %v5563_v14, 5  ;;  %v5614_v23 = vrot.slane %v5563_v14, 6  ;;  %v5615_v39 = vrot.slane %v5564_v11, 6 }
 0xafd   :  { %v5621_v63 = vrot.slane %v5564_v11, 7  ;;  %v5622_v28 = vrot.slane %v5565_v43, 7  ;;  %v5629_v4 = vrot.slane %v5567_v3, 1  ;;  %v5630_v1 = vrot.slane %v5568_v31, 1 }
 0xafe   :  { %v5635_v22 = vrot.slane %v5568_v31, 2  ;;  %v5636_v20 = vrot.slane %v5569_v10, 2  ;;  %v5641_v62 = vrot.slane %v5569_v10, 3  ;;  %v5642_v58 = vrot.slane %v5570_v38, 3 }
 0xaff   :  { %v5647_v26 = vrot.slane %v5570_v38, 4  ;;  %v5648_v27 = vrot.slane %v5571_v35, 4  ;;  %v5653_v55 = vrot.slane %v5571_v35, 5  ;;  %v5654_v52 = vrot.slane %v5572_v32, 5 }
 0xb00   :  { %v5659_v50 = vrot.slane %v5572_v32, 6  ;;  %v5581_v21 = vsel %vm5578_vm15, %v5579_v15, %v5580_v25  ;;  %v5588_v2 = vsel %vm5585_vm0, %v5586_v54, %v5587_v56  ;;  %v5595_v46 = vsel %vm5592_vm2, %v5593_v0, %v5594_v40 }
 0xb01   :  { %v5602_v12 = vsel %vm495_vm1, %v5600_v19, %v5601_v30  ;;  %v5609_v45 = vsel %vm5606_vm3, %v5607_v29, %v5608_v49  ;;  %v5616_v6 = vsel %vm5613_vm4, %v5614_v23, %v5615_v39  ;;  %v5623_v59 = vsel %vm5620_vm14, %v5621_v63, %v5622_v28  ;;  %5583 = vst [vmem:[#allocation2 + $0x18] sm:$0xff] %v5581_v21 }
 0xb02   :  { %5590 = vst [vmem:[#allocation2 + $0x30] sm:$0xff] %v5588_v2  ;;  %5597 = vst [vmem:[#allocation2 + $0x48] sm:$0xff] %v5595_v46  ;;  %6595 = vmatmul.mubr.bf16.vlgmr.msra.gmra.mrb[168].mxu0 %v5581_v21  ;;  %v5631_v61 = vsel %vm5578_vm15, %v5629_v4, %v5630_v1  ;;  %v5637_v16 = vsel %vm5585_vm0, %v5635_v22, %v5636_v20  ;;  %v5643_v34 = vsel %vm5592_vm2, %v5641_v62, %v5642_v58 }
 0xb03   :  { %v5649_v47 = vsel %vm495_vm1, %v5647_v26, %v5648_v27  ;;  %5604 = vst [vmem:[#allocation2 + $0x60] sm:$0xff] %v5602_v12  ;;  %5611 = vst [vmem:[#allocation2 + $0x78] sm:$0xff] %v5609_v45  ;;  %6602 = vmatprep.mubr.bf16.mxu1 %v5602_v12  ;;  %v5655_v13 = vsel %vm5606_vm3, %v5653_v55, %v5654_v52  ;;  %v5661_v36 = vsel %vm5613_vm4, %v5659_v50, %v5660_v9 }
 0xb04   :  { %5618 = vst [vmem:[#allocation2 + $0x90] sm:$0xff] %v5616_v6  ;;  %5625 = vst [vmem:[#allocation2 + $0xa8] sm:$0xff] %v5623_v59  ;;  %6598 = vmatprep.mubr.bf16.mxu0 %v5588_v2  ;;  %6603 = vmatmul.mubr.bf16.vlgmr.msra.gmra.mrb[180].mxu1 %v5609_v45 }
 0xb05   :  { %5633 = vst [vmem:[#allocation2 + $0xd8] sm:$0xff] %v5631_v61  ;;  %5639 = vst [vmem:[#allocation2 + $0xf0] sm:$0xff] %v5637_v16  ;;  %6606 = vmatprep.mubr.bf16.mxu1 %v5616_v6 }
 0xb06   :  { %5645 = vst [vmem:[#allocation2 + $0x108] sm:$0xff] %v5643_v34  ;;  %5651 = vst [vmem:[#allocation2 + $0x120] sm:$0xff] %v5649_v47 }
 0xb07   :  { %5657 = vst [vmem:[#allocation2 + $0x138] sm:$0xff] %v5655_v13  ;;  %5663 = vst [vmem:[#allocation2 + $0x150] sm:$0xff] %v5661_v36 }
 0xb0a   :  { %6599 = vmatmul.mubr.bf16.gmra.mrb[172].mxu0 %v5595_v46 }
 0xb0c   :  { %6607 = vmatmul.mubr.bf16.gmra.mrb[184].mxu1 %v5623_v59 }
 0xb0d   :  { %6610 = vmatprep.mubr.bf16.mxu1 %v8734_v42 }
 0xb14   :  { %6611 = vmatmul.mubr.bf16.gmra.mrb[188].mxu1 %v5631_v61 }
 0xb15   :  { %6614 = vmatprep.mubr.bf16.mxu1 %v5637_v16 }
 0xb1c   :  { %6615 = vmatmul.mubr.bf16.gmra.mrb[192].mxu1 %v5643_v34 }
 0xb1d   :  { %6618 = vmatprep.mubr.bf16.mxu1 %v5649_v47 }
 0xb24   :  { %6619 = vmatmul.mubr.bf16.gmra.mrb[196].mxu1 %v5655_v13 }
 0xb25   :  { %6622 = vmatprep.mubr.bf16.mxu1 %v5661_v36 }
 0xb2c   :  { %6623 = vmatmul.mubr.bf16.gmra.mrb[200].mxu1 %v8692_v18 }
 0xbd5   :  { %v6596_v7 = vpop.f32.mrb[168].mxu0 }
 0xbd6   :  { %5913 = vst [vmem:[%s8865_s15 + $0x10] sm:$0xff] %v6596_v7  ;;  %v5784_v9 = vpop.f32.mrb[169].mxu0 }
 0xbd7   :  { %5911 = vst [vmem:[%s8865_s15] sm:$0xff] %v5784_v9  ;;  %v6604_v37 = vpop.f32.mrb[180].mxu1  ;;  %v6597_v51 = vpop.f32.mrb[170].mxu0 }
 0xbd8   :  { %5921 = vst [vmem:[%s8865_s15 + $0x50] sm:$0xff] %v6604_v37  ;;  %5914 = vst [vmem:[%s8865_s15 + $0x18] sm:$0xff] %v6597_v51  ;;  %v5816_v18 = vpop.f32.mrb[181].mxu1  ;;  %v5787_v17 = vpop.f32.mrb[171].mxu0 }
 0xbd9   :  { %5919 = vst [vmem:[%s8865_s15 + $0x40] sm:$0xff] %v5816_v18  ;;  %5912 = vst [vmem:[%s8865_s15 + $0x8] sm:$0xff] %v5787_v17  ;;  %v6605_v60 = vpop.f32.mrb[182].mxu1 }
 0xbda   :  { %5922 = vst [vmem:[%s8865_s15 + $0x58] sm:$0xff] %v6605_v60  ;;  %v5819_v48 = vpop.f32.mrb[183].mxu1 }
 0xbdb   :  { %5920 = vst [vmem:[%s8865_s15 + $0x48] sm:$0xff] %v5819_v48 }
 0xbdd   :  { %v6600_v8 = vpop.f32.mrb[172].mxu0 }
 0xbde   :  { %5917 = vst [vmem:[%s8865_s15 + $0x30] sm:$0xff] %v6600_v8  ;;  %v5800_v33 = vpop.f32.mrb[173].mxu0 }
 0xbdf   :  { %5915 = vst [vmem:[%s8865_s15 + $0x20] sm:$0xff] %v5800_v33  ;;  %v6608_v41 = vpop.f32.mrb[184].mxu1  ;;  %v6601_v57 = vpop.f32.mrb[174].mxu0 }
 0xbe0   :  { %5925 = vst [vmem:[%s8865_s15 + $0x70] sm:$0xff] %v6608_v41  ;;  %5918 = vst [vmem:[%s8865_s15 + $0x38] sm:$0xff] %v6601_v57  ;;  %v5832_v53 = vpop.f32.mrb[185].mxu1  ;;  %v5803_v5 = vpop.f32.mrb[175].mxu0 }
 0xbe1   :  { %5923 = vst [vmem:[%s8865_s15 + $0x60] sm:$0xff] %v5832_v53  ;;  %5916 = vst [vmem:[%s8865_s15 + $0x28] sm:$0xff] %v5803_v5  ;;  %v6609_v24 = vpop.f32.mrb[186].mxu1 }
 0xbe2   :  { %5926 = vst [vmem:[%s8865_s15 + $0x78] sm:$0xff] %v6609_v24  ;;  %v5835_v44 = vpop.f32.mrb[187].mxu1 }
 0xbe3   :  { %5924 = vst [vmem:[%s8865_s15 + $0x68] sm:$0xff] %v5835_v44 }
 0xbe7   :  { %v6612_v14 = vpop.f32.mrb[188].mxu1 }
 0xbe8   :  { %5929 = vst [vmem:[%s8865_s15 + $0x90] sm:$0xff] %v6612_v14  ;;  %v5848_v11 = vpop.f32.mrb[189].mxu1 }
 0xbe9   :  { %5927 = vst [vmem:[%s8865_s15 + $0x80] sm:$0xff] %v5848_v11  ;;  %v6613_v43 = vpop.f32.mrb[190].mxu1 }
 0xbea   :  { %5930 = vst [vmem:[%s8865_s15 + $0x98] sm:$0xff] %v6613_v43  ;;  %v5851_v42 = vpop.f32.mrb[191].mxu1 }
 0xbeb   :  { %5928 = vst [vmem:[%s8865_s15 + $0x88] sm:$0xff] %v5851_v42 }
 0xbef   :  { %v6616_v3 = vpop.f32.mrb[192].mxu1 }
 0xbf0   :  { %5933 = vst [vmem:[%s8865_s15 + $0xb0] sm:$0xff] %v6616_v3  ;;  %v5864_v31 = vpop.f32.mrb[193].mxu1 }
 0xbf1   :  { %5931 = vst [vmem:[%s8865_s15 + $0xa0] sm:$0xff] %v5864_v31  ;;  %v6617_v10 = vpop.f32.mrb[194].mxu1 }
 0xbf2   :  { %5934 = vst [vmem:[%s8865_s15 + $0xb8] sm:$0xff] %v6617_v10  ;;  %v5867_v38 = vpop.f32.mrb[195].mxu1 }
 0xbf3   :  { %5932 = vst [vmem:[%s8865_s15 + $0xa8] sm:$0xff] %v5867_v38 }
 0xbf7   :  { %v6620_v35 = vpop.f32.mrb[196].mxu1 }
 0xbf8   :  { %5937 = vst [vmem:[%s8865_s15 + $0xd0] sm:$0xff] %v6620_v35  ;;  %v5880_v32 = vpop.f32.mrb[197].mxu1 }
 0xbf9   :  { %5935 = vst [vmem:[%s8865_s15 + $0xc0] sm:$0xff] %v5880_v32  ;;  %v6621_v15 = vpop.f32.mrb[198].mxu1 }
 0xbfa   :  { %5938 = vst [vmem:[%s8865_s15 + $0xd8] sm:$0xff] %v6621_v15  ;;  %v5883_v25 = vpop.f32.mrb[199].mxu1 }
 0xbfb   :  { %5936 = vst [vmem:[%s8865_s15 + $0xc8] sm:$0xff] %v5883_v25 }
 0xbff   :  { %v6624_v54 = vpop.f32.mrb[200].mxu1 }
 0xc00   :  { %5941 = vst [vmem:[%s8865_s15 + $0xf0] sm:$0xff] %v6624_v54  ;;  %v5896_v56 = vpop.f32.mrb[201].mxu1 }
 0xc01   :  { %5939 = vst [vmem:[%s8865_s15 + $0xe0] sm:$0xff] %v5896_v56  ;;  %v6625_v0 = vpop.f32.mrb[202].mxu1 }
 0xc02   :  { %5942 = vst [vmem:[%s8865_s15 + $0xf8] sm:$0xff] %v6625_v0  ;;  %v5899_v40 = vpop.f32.mrb[203].mxu1 }
 0xc03   :  { %5940 = vst [vmem:[%s8865_s15 + $0xe8] sm:$0xff] %v5899_v40 }
 0xc04   :  { %5947 = vsyncpa [#allocation6], 1 }
 0xc05   :  { %5948 = vsyncpa [#allocation8], 1 }
 0xc06   :  { %5949 = vsyncpa [#allocation11], 1 }
 0xc07   :  { %5950 = vsyncpa [#allocation14], 1 }
 0xc08   :  { %5951 = vsyncpa [#allocation17], 1 }
 0xc09   :  { %5952 = vsyncpa [#allocation20], 1 }

</bundles_post_ra>
